<compile_context>
chip_gen: v7x
topology: tpu7x:2x2x1
jax: 0.10.0
libtpu: 0.0.40
codegen_flags: <defaults>
</compile_context>

<pallas_src>
import math
import numpy as np
import jax
import jax.numpy as jnp
from jax.experimental import pallas as pl
from jax.experimental.pallas import tpu as pltpu

KERNEL_SIZE = 3
DILATIONS = (1, 3)
AA_KS = 12                      # Activation1d anti-alias filter taps (ratio = 2)
ALPHA_LOGSCALE = True           # cfg.model.bigvgan.snake_logscale
MXU_BF16 = True                 # cast matmul operands to bf16 (f32 accumulate)
LANE = 128                      # TPU lane width; channels padded to a multiple
DEFAULT_TILE_L = 512            # target time-tile length (rows per grid step)
VMEM_BUDGET = 40 * 1024 * 1024  # per-step VMEM budget (fits v7x's 64 MiB)


def kaiser_sinc_filter1d(cutoff, half_width, kernel_size):
    """Same math as BigVGAN's alias-free-torch kaiser_sinc_filter1d."""
    even = (kernel_size % 2 == 0)
    half_size = kernel_size // 2
    delta_f = 4.0 * half_width
    A = 2.285 * (half_size - 1) * math.pi * delta_f + 7.95
    if A > 50.0:
        beta = 0.1102 * (A - 8.7)
    elif A >= 21.0:
        beta = 0.5842 * (A - 21.0) ** 0.4 + 0.07886 * (A - 21.0)
    else:
        beta = 0.0
    window = np.kaiser(kernel_size, beta)
    if even:
        time = np.arange(-half_size, half_size) + 0.5
    else:
        time = np.arange(kernel_size) - half_size
    filt = 2.0 * cutoff * window * np.sinc(2.0 * cutoff * time)
    filt = filt / filt.sum()
    return filt.astype(np.float64)


# ratio = 2 for both up and down sampling -> identical 12-tap filter.
_F = kaiser_sinc_filter1d(cutoff=0.5 / 2, half_width=0.6 / 2, kernel_size=AA_KS)
F = [float(v) for v in _F]      # baked into the kernel as static constants


# ----------------------------------------------------------------------------
# Fused per-layer kernel: upsample + snake + downsample + conv + bias + residual
# ----------------------------------------------------------------------------
def build_fused_layer(B, L, CP, d, T):
    """Grid (B, L // T).  For output rows t in [t0, t0 + T):
         upsample phases E/O needed for m in [t0-d-3, t0+T+d+2]   (NM rows)
         which need input rows      x[t0-d-6 .. t0+T+d+5]         (T + 2H rows)
       so each grid step reads its tile plus an H = d+6 row halo.  The halos are
       fetched via two small HB-row halo BlockSpecs bound to the same array x
       (block index clamped at the edges; edge rows are replicate-filled in the
       kernel), so only T + 2*HB rows of x are read per step."""
    NT = L // T
    H = d + 6                 # x halo per side (FIR reach 3 + 3 + dilation d)
    NM = T + 2 * d + 6        # upsample-phase rows
    NU = T + 2 * d + 5        # padded-phase rows feeding the downsample FIR
    NS = T + 2 * d            # downsampled rows feeding the dilated conv
    assert L % T == 0 and T >= H, "time tile must divide L and cover the halo"

    # Halo block rows: smallest sublane multiple covering H that tiles T.
    # Falls back to a full tile (original 3-tile read) if none fits.
    HB = T
    for h in (8, 16):
        if h >= H and T % h == 0:
            HB = h
            break
    nb = T // HB              # halo blocks per time tile

    op_dtype = jnp.bfloat16 if MXU_BF16 else jnp.float32

    def kernel(prevh_ref, cur_ref, nxth_ref, a_ref, inv_ref, w_ref, b_ref,
               o_ref, xw_ref, xcat_ref):
        i = pl.program_id(1)
        t0 = i * T

        # ---- assemble the input window with halos --------------------------
        xw_ref[0:H, :] = prevh_ref[HB - H:HB, :]
        xw_ref[H:H + T, :] = cur_ref[...]
        xw_ref[H + T:, :] = nxth_ref[0:H, :]

        @pl.when(i == 0)
        def _():                              # left sequence edge: replicate x[0]
            xw_ref[0:H, :] = jnp.broadcast_to(cur_ref[0:1, :], (H, CP))

        @pl.when(i == NT - 1)
        def _():                              # right sequence edge: replicate x[L-1]
            xw_ref[H + T:, :] = jnp.broadcast_to(cur_ref[T - 1:T, :], (H, CP))

        xwin = xw_ref[...]                    # (T + 2H, CP)

        # ---- 2x anti-aliased upsample: even/odd polyphase of the 12-tap FIR -
        even = jnp.zeros((NM, CP), jnp.float32)
        odd = jnp.zeros((NM, CP), jnp.float32)
        for j in range(6):
            even = even + (2.0 * F[2 * j + 1]) * xwin[5 - j:5 - j + NM, :]
            odd = odd + (2.0 * F[2 * j]) * xwin[6 - j:6 - j + NM, :]

        # ---- Snake (exp(alpha) and 1/alpha hoisted to the wrapper) ----------
        a = a_ref[...]
        inv = inv_ref[...]
        e_ph = even + inv * jnp.square(jnp.sin(even * a))
        o_ph = odd + inv * jnp.square(jnp.sin(odd * a))

        # ---- replicate pad at the upsampled-signal level --------------------
        # Rows with global phase index <= 2 (resp. >= L+2 / L+3) must read
        # z[0] = E[0] / z[2L-1] = O[L-1].  Only the first / last tile ever
        # selects these rows, and there e0 / oL are exactly E[0] / O[L-1].
        e0 = e_ph[d + 3:d + 4, :]
        oL = o_ph[T + d + 2:T + d + 3, :]
        ug = (t0 - d) + jax.lax.broadcasted_iota(jnp.int32, (NU, 1), 0)
        z_a = jnp.where(ug <= 2, e0,
                        jnp.where(ug >= L + 3, oL, o_ph[:NU, :]))
        z_b = jnp.where(ug <= 1, e0,
                        jnp.where(ug >= L + 2, oL, e_ph[1:NU + 1, :]))

        # ---- 2x anti-alias downsample, computed once over T + 2d rows -------
        xs = jnp.zeros((NS, CP), jnp.float32)
        for j in range(6):
            xs = xs + F[2 * j] * z_a[j:j + NS, :] + F[2 * j + 1] * z_b[j:j + NS, :]
        # Conv1d zero padding: downsampled rows outside [0, L) are zero.
        tg = (t0 - d) + jax.lax.broadcasted_iota(jnp.int32, (NS, 1), 0)
        xs = jnp.where((tg >= 0) & (tg < L), xs, 0.0)

        # ---- dilated Conv1d(k=3) as one K = 3*CP matmul + bias + residual ---
        xcat_ref[:, 0:CP] = xs[0:T, :].astype(op_dtype)                  # xs[t-d]
        xcat_ref[:, CP:2 * CP] = xs[d:d + T, :].astype(op_dtype)         # xs[t]
        xcat_ref[:, 2 * CP:3 * CP] = xs[2 * d:2 * d + T, :].astype(op_dtype)  # xs[t+d]
        acc = jnp.dot(xcat_ref[...], w_ref[...],
                      preferred_element_type=jnp.float32)
        o_ref[...] = acc + b_ref[...] + cur_ref[...]

    cost = pl.CostEstimate(
        flops=2 * B * L * (3 * CP) * CP + 80 * B * L * CP,
        transcendentals=2 * B * L * CP,
        bytes_accessed=(2 * B * L * CP + 2 * B * NT * HB * CP) * 4
                       + 3 * CP * CP * (2 if MXU_BF16 else 4))

    par_spec = lambda shape: pl.BlockSpec(shape, lambda b, i: (0,) * len(shape))

    return pl.pallas_call(
        kernel,
        out_shape=jax.ShapeDtypeStruct((B, L, CP), jnp.float32),
        grid=(B, NT),
        in_specs=[
            # left-halo block (HB rows just before the tile; clamped at i == 0)
            pl.BlockSpec((None, HB, CP),
                         lambda b, i: (b, jnp.maximum(i * nb - 1, 0), 0)),
            # current tile
            pl.BlockSpec((None, T, CP), lambda b, i: (b, i, 0)),
            # right-halo block (HB rows just after the tile; clamped at the end)
            pl.BlockSpec((None, HB, CP),
                         lambda b, i: (b, jnp.minimum((i + 1) * nb, L // HB - 1), 0)),
            par_spec((1, CP)),             # exp(alpha)
            par_spec((1, CP)),             # 1 / (exp(alpha) + eps)
            par_spec((3 * CP, CP)),        # conv taps stacked along contraction
            par_spec((1, CP)),             # bias
        ],
        out_specs=pl.BlockSpec((None, T, CP), lambda b, i: (b, i, 0)),
        scratch_shapes=[pltpu.VMEM((T + 2 * H, CP), jnp.float32),
                        pltpu.VMEM((T, 3 * CP), op_dtype)],
        compiler_params=pltpu.CompilerParams(
            dimension_semantics=("parallel", "parallel"),
            vmem_limit_bytes=64 * 1024 * 1024),
        cost_estimate=cost,
    )


# ----------------------------------------------------------------------------
# Tile selection (multiple of 8, divides L, covers the halo, fits VMEM budget)
# ----------------------------------------------------------------------------
def _tile_vmem_bytes(T, CP, d):
    H = d + 6
    HB = 16
    stream = 2 * 4 * CP * ((T + 2 * HB) + T)            # in (tile+halos) + out, 2-buffered
    scratch = (T + 2 * H) * CP * 4 + T * 3 * CP * (2 if MXU_BF16 else 4)
    temps = 8 * (T + 2 * H) * CP * 4                    # E/O/phase/xs intermediates
    weights = 3 * CP * CP * (2 if MXU_BF16 else 4)
    return stream + scratch + temps + weights


def _pick_tile(L, CP, d, target=DEFAULT_TILE_L, budget=VMEM_BUDGET):
    cands = [t for t in range(8, L + 1, 8)
             if L % t == 0 and t >= d + 6 and t <= target
             and _tile_vmem_bytes(t, CP, d) <= budget]
    if not cands:
        return L                                        # fall back to a single tile
    c16 = [t for t in cands if t % 16 == 0]             # prefer halo-block-friendly tiles
    return max(c16) if c16 else max(cands)


# ----------------------------------------------------------------------------
# Forward wrapper (layout + parameter prep only; no per-layer glue passes)
# ----------------------------------------------------------------------------
def amp_block2_forward(x_ncl, params, tile_l=None):
    """AMPBlock2.forward.  x_ncl: (B, C, L) float32 (PyTorch NCL layout)."""
    B, C, L = x_ncl.shape
    CP = ((C + LANE - 1) // LANE) * LANE
    op_dtype = jnp.bfloat16 if MXU_BF16 else jnp.float32

    # (B, C, L) -> (B, L, C); channels zero-padded to a lane-dense multiple of 128.
    x = jnp.transpose(x_ncl, (0, 2, 1)).astype(jnp.float32)
    if CP != C:
        x = jnp.pad(x, ((0, 0), (0, 0), (0, CP - C)))

    for layer, d in enumerate(DILATIONS):
        T = tile_l if tile_l is not None else _pick_tile(L, CP, d)

        # Snake parameters, hoisted out of the kernel (pad lanes -> identity).
        alpha = params["alpha"][layer]
        a = jnp.exp(alpha) if ALPHA_LOGSCALE else alpha
        a_pad = jnp.ones((CP,), jnp.float32).at[:C].set(a)
        inv_pad = (1.0 / (a_pad + 1e-9)).reshape(1, CP)
        a_pad = a_pad.reshape(1, CP)

        # Conv taps stacked along the contraction axis: (3 * CP, CP).
        W = params["W"][layer]                                   # (3, C_in, C_out)
        W3 = jnp.zeros((3, CP, CP), jnp.float32).at[:, :C, :C].set(W)
        W3 = W3.reshape(3 * CP, CP).astype(op_dtype)
        bias = jnp.zeros((CP,), jnp.float32).at[:C].set(
            params["bias"][layer]).reshape(1, CP)

        layer_call = build_fused_layer(B, L, CP, d, T)
        x = layer_call(x, x, x, a_pad, inv_pad, W3, bias)        # (B, L, CP)

    return jnp.transpose(x[:, :, :C], (0, 2, 1))                 # back to NCL


# ----------------------------------------------------------------------------
# Deterministic parameter init (weight_norm Conv1d + Snake alpha)
# ----------------------------------------------------------------------------
def init_params(key, C):
    params = {"alpha": [], "W": [], "bias": [], "w_torch": []}
    for _ in range(len(DILATIONS)):
        key, k1, k2, k3, k4 = jax.random.split(key, 5)
        # weight_norm: w = g * v / ||v|| over (in_ch, k) per output channel
        v = 0.01 * jax.random.normal(k1, (C, C, KERNEL_SIZE), jnp.float32)
        norm = jnp.sqrt(jnp.sum(v * v, axis=(1, 2), keepdims=True))
        g = norm[:, 0, 0] * jnp.exp(0.1 * jax.random.normal(k2, (C,), jnp.float32))
        w = g[:, None, None] * v / norm                          # (C_out, C_in, 3)
        params["w_torch"].append(w)
        params["W"].append(jnp.transpose(w, (2, 1, 0)))          # (k, C_in, C_out)
        params["bias"].append(0.05 * jax.random.normal(k3, (C,), jnp.float32))
        params["alpha"].append(0.1 * jax.random.normal(k4, (C,), jnp.float32))
    return params


# ----------------------------------------------------------------------------
# Independent numpy reference (direct PyTorch-semantics loops) for validation
# ----------------------------------------------------------------------------
def reference_forward(x_ncl, params):
    x = np.array(x_ncl, dtype=np.float64)
    f = np.array(_F, dtype=np.float64)
    B, C, L = x.shape
    K = AA_KS
    for layer, d in enumerate(DILATIONS):
        alpha = np.array(params["alpha"][layer], np.float64)
        w = np.array(params["w_torch"][layer], np.float64)
        b = np.array(params["bias"][layer], np.float64)
        # UpSample1d: replicate pad 5, depthwise conv_transpose stride 2, *2, crop 15
        xp = np.pad(x, ((0, 0), (0, 0), (5, 5)), mode="edge")
        Lf = (L + 10 - 1) * 2 + K
        y = np.zeros((B, C, Lf))
        for s in range(L + 10):
            y[:, :, 2 * s:2 * s + K] += xp[:, :, s:s + 1] * f[None, None, :]
        xu = 2.0 * y[:, :, 15:Lf - 15]
        # Snake
        a = np.exp(alpha) if ALPHA_LOGSCALE else alpha
        a = a[None, :, None]
        xu = xu + (1.0 / (a + 1e-9)) * np.sin(xu * a) ** 2
        # DownSample1d: replicate pad (5, 6), depthwise conv stride 2
        xup = np.pad(xu, ((0, 0), (0, 0), (5, 6)), mode="edge")
        xs = np.zeros((B, C, L))
        for t in range(L):
            xs[:, :, t] = np.sum(xup[:, :, 2 * t:2 * t + K] * f[None, None, :], -1)
        # Conv1d(C, C, 3, dilation=d, padding=d) + bias, residual
        xsp = np.pad(xs, ((0, 0), (0, 0), (d, d)))
        out = np.zeros((B, C, L))
        for t in range(L):
            for k in range(KERNEL_SIZE):
                out[:, :, t] += xsp[:, :, t + k * d] @ w[:, :, k].T
        out = out + b[None, :, None]
        x = out + x
    return x


if __name__ == "__main__":
    B, C, L = 2, 16, 64
    key = jax.random.PRNGKey(0)
    kx, kp = jax.random.split(key)
    x = jax.random.normal(kx, (B, C, L), jnp.float32)   # NCL, like the PyTorch module
    params = init_params(kp, C)

    ref = reference_forward(np.asarray(x), params)
    tol = 3e-2 if MXU_BF16 else 1e-4   # bf16 MXU operands -> relaxed tolerance

    # Multi-tile path: grid (B, 4), exercises first / interior / last tile halos
    # and both HB = 8 (d=1) and HB = 16 (d=3) halo-block reads.
    out = jax.block_until_ready(
        jax.jit(lambda xx, pp: amp_block2_forward(xx, pp, tile_l=16))(x, params))
    assert out.shape == (B, C, L)
    np.testing.assert_allclose(np.asarray(out), ref, rtol=tol, atol=tol)

    # Default auto-picked tiling (single tile here).
    out2 = jax.block_until_ready(jax.jit(amp_block2_forward)(x, params))
    np.testing.assert_allclose(np.asarray(out2), ref, rtol=tol, atol=tol)

    print("KERNEL_OK")
</pallas_src>

<mosaic_0001>
module attributes {stable_mosaic.version = 11 : i64} {
  func.func @kernel(%arg0: i32, %arg1: i32, %arg2: memref<1x8x128xf32, #tpu.memory_space<vmem>>, %arg3: memref<1x16x128xf32, #tpu.memory_space<vmem>>, %arg4: memref<1x8x128xf32, #tpu.memory_space<vmem>>, %arg5: memref<1x128xf32, #tpu.memory_space<vmem>>, %arg6: memref<1x128xf32, #tpu.memory_space<vmem>>, %arg7: memref<384x128xbf16, #tpu.memory_space<vmem>>, %arg8: memref<1x128xf32, #tpu.memory_space<vmem>>, %arg9: memref<1x16x128xf32, #tpu.memory_space<vmem>>, %arg10: memref<30x128xf32, #tpu.memory_space<vmem>>, %arg11: memref<16x384xbf16, #tpu.memory_space<vmem>>) attributes {dimension_semantics = [#tpu.dimension_semantics<parallel>, #tpu.dimension_semantics<parallel>], iteration_bounds = array<i64: 2, 4>, scalar_prefetch = 0 : i64, scratch_operands = 2 : i64, tpu.core_type = #tpu.core_type<tc>, window_params = [{transform_indices = @transform_0, window_bounds = array<i64: 1, 8, 128>}, {transform_indices = @transform_1, window_bounds = array<i64: 1, 16, 128>}, {transform_indices = @transform_2, window_bounds = array<i64: 1, 8, 128>}, {pipeline_mode = #tpu.pipeline_mode<synchronous>, transform_indices = @transform_3, window_bounds = array<i64: 1, 128>}, {pipeline_mode = #tpu.pipeline_mode<synchronous>, transform_indices = @transform_4, window_bounds = array<i64: 1, 128>}, {pipeline_mode = #tpu.pipeline_mode<synchronous>, transform_indices = @transform_5, window_bounds = array<i64: 384, 128>}, {pipeline_mode = #tpu.pipeline_mode<synchronous>, transform_indices = @transform_6, window_bounds = array<i64: 1, 128>}, {transform_indices = @transform_7, window_bounds = array<i64: 1, 16, 128>}]} {
    %c16_i32 = arith.constant 16 : i32
    %0 = arith.muli %arg1, %c16_i32 : i32
    %c0 = arith.constant 0 : index
    %c1 = arith.constant 1 : index
    %c0_0 = arith.constant 0 : index
    %1 = vector.load %arg2[%c0, %c1, %c0_0] : memref<1x8x128xf32, #tpu.memory_space<vmem>>, vector<1x7x128xf32>
    %2 = vector.shape_cast %1 : vector<1x7x128xf32> to vector<7x128xf32>
    %c0_1 = arith.constant 0 : index
    %c0_2 = arith.constant 0 : index
    %3 = vector.load %arg10[%c0_1, %c0_2] : memref<30x128xf32, #tpu.memory_space<vmem>>, vector<7x128xf32>
    tpu.vector_store %arg10[%c0_1, %c0_2], %2 {strides = array<i32>} : memref<30x128xf32, #tpu.memory_space<vmem>>, vector<7x128xf32>,
    %c0_3 = arith.constant 0 : index
    %c0_4 = arith.constant 0 : index
    %c0_5 = arith.constant 0 : index
    %4 = vector.load %arg3[%c0_3, %c0_4, %c0_5] : memref<1x16x128xf32, #tpu.memory_space<vmem>>, vector<1x16x128xf32>
    %5 = vector.shape_cast %4 : vector<1x16x128xf32> to vector<16x128xf32>
    %c7 = arith.constant 7 : index
    %c0_6 = arith.constant 0 : index
    %6 = vector.load %arg10[%c7, %c0_6] : memref<30x128xf32, #tpu.memory_space<vmem>>, vector<16x128xf32>
    tpu.vector_store %arg10[%c7, %c0_6], %5 {strides = array<i32>} : memref<30x128xf32, #tpu.memory_space<vmem>>, vector<16x128xf32>,
    %c0_7 = arith.constant 0 : index
    %c0_8 = arith.constant 0 : index
    %c0_9 = arith.constant 0 : index
    %7 = vector.load %arg4[%c0_7, %c0_8, %c0_9] : memref<1x8x128xf32, #tpu.memory_space<vmem>>, vector<1x7x128xf32>
    %8 = vector.shape_cast %7 : vector<1x7x128xf32> to vector<7x128xf32>
    %c23 = arith.constant 23 : index
    %c0_10 = arith.constant 0 : index
    %9 = vector.load %arg10[%c23, %c0_10] : memref<30x128xf32, #tpu.memory_space<vmem>>, vector<7x128xf32>
    tpu.vector_store %arg10[%c23, %c0_10], %8 {strides = array<i32>} : memref<30x128xf32, #tpu.memory_space<vmem>>, vector<7x128xf32>,
    %c0_i32 = arith.constant 0 : i32
    %10 = arith.cmpi eq, %arg1, %c0_i32 : i32
    %11 = arith.extui %10 : i1 to i32
    %c0_i32_11 = arith.constant 0 : i32
    %12 = arith.cmpi ne, %11, %c0_i32_11 : i32
    scf.if %12 {
      %c0_66 = arith.constant 0 : index
      %c0_67 = arith.constant 0 : index
      %c0_68 = arith.constant 0 : index
      %202 = vector.load %arg3[%c0_66, %c0_67, %c0_68] : memref<1x16x128xf32, #tpu.memory_space<vmem>>, vector<1x1x128xf32>
      %203 = vector.shape_cast %202 : vector<1x1x128xf32> to vector<1x128xf32>
      %204 = vector.shape_cast %203 : vector<1x128xf32> to vector<1x128xf32>
      %205 = vector.broadcast %204 : vector<1x128xf32> to vector<7x128xf32>
      %c0_69 = arith.constant 0 : index
      %c0_70 = arith.constant 0 : index
      %206 = vector.load %arg10[%c0_69, %c0_70] : memref<30x128xf32, #tpu.memory_space<vmem>>, vector<7x128xf32>
      tpu.vector_store %arg10[%c0_69, %c0_70], %205 {strides = array<i32>} : memref<30x128xf32, #tpu.memory_space<vmem>>, vector<7x128xf32>,
    } else {
    }
    %c3_i32 = arith.constant 3 : i32
    %13 = arith.cmpi eq, %arg1, %c3_i32 : i32
    %14 = arith.extui %13 : i1 to i32
    %c0_i32_12 = arith.constant 0 : i32
    %15 = arith.cmpi ne, %14, %c0_i32_12 : i32
    scf.if %15 {
      %c0_66 = arith.constant 0 : index
      %c15 = arith.constant 15 : index
      %c0_67 = arith.constant 0 : index
      %202 = vector.load %arg3[%c0_66, %c15, %c0_67] : memref<1x16x128xf32, #tpu.memory_space<vmem>>, vector<1x1x128xf32>
      %203 = vector.shape_cast %202 : vector<1x1x128xf32> to vector<1x128xf32>
      %204 = vector.shape_cast %203 : vector<1x128xf32> to vector<1x128xf32>
      %205 = vector.broadcast %204 : vector<1x128xf32> to vector<7x128xf32>
      %c23_68 = arith.constant 23 : index
      %c0_69 = arith.constant 0 : index
      %206 = vector.load %arg10[%c23_68, %c0_69] : memref<30x128xf32, #tpu.memory_space<vmem>>, vector<7x128xf32>
      tpu.vector_store %arg10[%c23_68, %c0_69], %205 {strides = array<i32>} : memref<30x128xf32, #tpu.memory_space<vmem>>, vector<7x128xf32>,
    } else {
    }
    %c0_13 = arith.constant 0 : index
    %c0_14 = arith.constant 0 : index
    %16 = vector.load %arg10[%c0_13, %c0_14] : memref<30x128xf32, #tpu.memory_space<vmem>>, vector<30x128xf32>
    %cst = arith.constant 0.000000e+00 : f32
    %17 = vector.broadcast %cst : f32 to vector<24x128xf32>
    %cst_15 = arith.constant 0.000000e+00 : f32
    %18 = vector.broadcast %cst_15 : f32 to vector<24x128xf32>
    %19 = vector.extract_strided_slice %16 {offsets = [5, 0], sizes = [24, 128], strides = [1, 1]} : vector<30x128xf32> to vector<24x128xf32>
    %cst_16 = arith.constant 0.0187789276 : f32
    %20 = vector.broadcast %cst_16 : f32 to vector<24x128xf32>
    %21 = arith.mulf %20, %19 : vector<24x128xf32>
    %22 = arith.addf %17, %21 : vector<24x128xf32>
    %23 = vector.extract_strided_slice %16 {offsets = [6, 0], sizes = [24, 128], strides = [1, 1]} : vector<30x128xf32> to vector<24x128xf32>
    %cst_17 = arith.constant 0.00405793311 : f32
    %24 = vector.broadcast %cst_17 : f32 to vector<24x128xf32>
    %25 = arith.mulf %24, %23 : vector<24x128xf32>
    %26 = arith.addf %18, %25 : vector<24x128xf32>
    %27 = vector.extract_strided_slice %16 {offsets = [4, 0], sizes = [24, 128], strides = [1, 1]} : vector<30x128xf32> to vector<24x128xf32>
    %cst_18 = arith.constant -0.115314752 : f32
    %28 = vector.broadcast %cst_18 : f32 to vector<24x128xf32>
    %29 = arith.mulf %28, %27 : vector<24x128xf32>
    %30 = arith.addf %22, %29 : vector<24x128xf32>
    %31 = vector.extract_strided_slice %16 {offsets = [5, 0], sizes = [24, 128], strides = [1, 1]} : vector<30x128xf32> to vector<24x128xf32>
    %cst_19 = arith.constant -0.0510869287 : f32
    %32 = vector.broadcast %cst_19 : f32 to vector<24x128xf32>
    %33 = arith.mulf %32, %31 : vector<24x128xf32>
    %34 = arith.addf %26, %33 : vector<24x128xf32>
    %35 = vector.extract_strided_slice %16 {offsets = [3, 0], sizes = [24, 128], strides = [1, 1]} : vector<30x128xf32> to vector<24x128xf32>
    %cst_20 = arith.constant 0.886419594 : f32
    %36 = vector.broadcast %cst_20 : f32 to vector<24x128xf32>
    %37 = arith.mulf %36, %35 : vector<24x128xf32>
    %38 = arith.addf %30, %37 : vector<24x128xf32>
    %39 = vector.extract_strided_slice %16 {offsets = [4, 0], sizes = [24, 128], strides = [1, 1]} : vector<30x128xf32> to vector<24x128xf32>
    %cst_21 = arith.constant 0.257145226 : f32
    %40 = vector.broadcast %cst_21 : f32 to vector<24x128xf32>
    %41 = arith.mulf %40, %39 : vector<24x128xf32>
    %42 = arith.addf %34, %41 : vector<24x128xf32>
    %43 = vector.extract_strided_slice %16 {offsets = [2, 0], sizes = [24, 128], strides = [1, 1]} : vector<30x128xf32> to vector<24x128xf32>
    %cst_22 = arith.constant 0.257145226 : f32
    %44 = vector.broadcast %cst_22 : f32 to vector<24x128xf32>
    %45 = arith.mulf %44, %43 : vector<24x128xf32>
    %46 = arith.addf %38, %45 : vector<24x128xf32>
    %47 = vector.extract_strided_slice %16 {offsets = [3, 0], sizes = [24, 128], strides = [1, 1]} : vector<30x128xf32> to vector<24x128xf32>
    %cst_23 = arith.constant 0.886419594 : f32
    %48 = vector.broadcast %cst_23 : f32 to vector<24x128xf32>
    %49 = arith.mulf %48, %47 : vector<24x128xf32>
    %50 = arith.addf %42, %49 : vector<24x128xf32>
    %51 = vector.extract_strided_slice %16 {offsets = [1, 0], sizes = [24, 128], strides = [1, 1]} : vector<30x128xf32> to vector<24x128xf32>
    %cst_24 = arith.constant -0.0510869287 : f32
    %52 = vector.broadcast %cst_24 : f32 to vector<24x128xf32>
    %53 = arith.mulf %52, %51 : vector<24x128xf32>
    %54 = arith.addf %46, %53 : vector<24x128xf32>
    %55 = vector.extract_strided_slice %16 {offsets = [2, 0], sizes = [24, 128], strides = [1, 1]} : vector<30x128xf32> to vector<24x128xf32>
    %cst_25 = arith.constant -0.115314752 : f32
    %56 = vector.broadcast %cst_25 : f32 to vector<24x128xf32>
    %57 = arith.mulf %56, %55 : vector<24x128xf32>
    %58 = arith.addf %50, %57 : vector<24x128xf32>
    %59 = vector.extract_strided_slice %16 {offsets = [0, 0], sizes = [24, 128], strides = [1, 1]} : vector<30x128xf32> to vector<24x128xf32>
    %cst_26 = arith.constant 0.00405793311 : f32
    %60 = vector.broadcast %cst_26 : f32 to vector<24x128xf32>
    %61 = arith.mulf %60, %59 : vector<24x128xf32>
    %62 = arith.addf %54, %61 : vector<24x128xf32>
    %63 = vector.extract_strided_slice %16 {offsets = [1, 0], sizes = [24, 128], strides = [1, 1]} : vector<30x128xf32> to vector<24x128xf32>
    %cst_27 = arith.constant 0.0187789276 : f32
    %64 = vector.broadcast %cst_27 : f32 to vector<24x128xf32>
    %65 = arith.mulf %64, %63 : vector<24x128xf32>
    %66 = arith.addf %58, %65 : vector<24x128xf32>
    %c0_28 = arith.constant 0 : index
    %c0_29 = arith.constant 0 : index
    %67 = vector.load %arg5[%c0_28, %c0_29] : memref<1x128xf32, #tpu.memory_space<vmem>>, vector<1x128xf32>
    %c0_30 = arith.constant 0 : index
    %c0_31 = arith.constant 0 : index
    %68 = vector.load %arg6[%c0_30, %c0_31] : memref<1x128xf32, #tpu.memory_space<vmem>>, vector<1x128xf32>
    %69 = vector.broadcast %67 : vector<1x128xf32> to vector<24x128xf32>
    %70 = arith.mulf %62, %69 : vector<24x128xf32>
    %71 = math.sin %70 : vector<24x128xf32>
    %72 = arith.mulf %71, %71 : vector<24x128xf32>
    %73 = vector.broadcast %68 : vector<1x128xf32> to vector<24x128xf32>
    %74 = arith.mulf %73, %72 : vector<24x128xf32>
    %75 = arith.addf %62, %74 : vector<24x128xf32>
    %76 = vector.broadcast %67 : vector<1x128xf32> to vector<24x128xf32>
    %77 = arith.mulf %66, %76 : vector<24x128xf32>
    %78 = math.sin %77 : vector<24x128xf32>
    %79 = arith.mulf %78, %78 : vector<24x128xf32>
    %80 = vector.broadcast %68 : vector<1x128xf32> to vector<24x128xf32>
    %81 = arith.mulf %80, %79 : vector<24x128xf32>
    %82 = arith.addf %66, %81 : vector<24x128xf32>
    %83 = vector.extract_strided_slice %75 {offsets = [4, 0], sizes = [1, 128], strides = [1, 1]} : vector<24x128xf32> to vector<1x128xf32>
    %84 = vector.extract_strided_slice %82 {offsets = [19, 0], sizes = [1, 128], strides = [1, 1]} : vector<24x128xf32> to vector<1x128xf32>
    %c1_i32 = arith.constant 1 : i32
    %85 = arith.subi %0, %c1_i32 : i32
    %86 = tpu.iota {dimensions = array<i32: 0>} : vector<23x1xi32>
    %87 = vector.broadcast %85 : i32 to vector<23x1xi32>
    %88 = arith.addi %87, %86 : vector<23x1xi32>
    %c2_i32 = arith.constant 2 : i32
    %89 = vector.broadcast %c2_i32 : i32 to vector<23x1xi32>
    %90 = arith.cmpi sle, %88, %89 : vector<23x1xi32>
    %c67_i32 = arith.constant 67 : i32
    %91 = vector.broadcast %c67_i32 : i32 to vector<23x1xi32>
    %92 = arith.cmpi sge, %88, %91 : vector<23x1xi32>
    %93 = vector.extract_strided_slice %82 {offsets = [0, 0], sizes = [23, 128], strides = [1, 1]} : vector<24x128xf32> to vector<23x128xf32>
    %94 = vector.shape_cast %92 : vector<23x1xi1> to vector<23x1xi1>
    %95 = vector.broadcast %94 : vector<23x1xi1> to vector<23x128xi1>
    %96 = vector.shape_cast %84 : vector<1x128xf32> to vector<1x128xf32>
    %97 = vector.broadcast %96 : vector<1x128xf32> to vector<23x128xf32>
    %98 = arith.select %95, %97, %93 : vector<23x128xi1>, vector<23x128xf32>
    %99 = vector.shape_cast %90 : vector<23x1xi1> to vector<23x1xi1>
    %100 = vector.broadcast %99 : vector<23x1xi1> to vector<23x128xi1>
    %101 = vector.shape_cast %83 : vector<1x128xf32> to vector<1x128xf32>
    %102 = vector.broadcast %101 : vector<1x128xf32> to vector<23x128xf32>
    %103 = arith.select %100, %102, %98 : vector<23x128xi1>, vector<23x128xf32>
    %c1_i32_32 = arith.constant 1 : i32
    %104 = vector.broadcast %c1_i32_32 : i32 to vector<23x1xi32>
    %105 = arith.cmpi sle, %88, %104 : vector<23x1xi32>
    %c66_i32 = arith.constant 66 : i32
    %106 = vector.broadcast %c66_i32 : i32 to vector<23x1xi32>
    %107 = arith.cmpi sge, %88, %106 : vector<23x1xi32>
    %108 = vector.extract_strided_slice %75 {offsets = [1, 0], sizes = [23, 128], strides = [1, 1]} : vector<24x128xf32> to vector<23x128xf32>
    %109 = vector.shape_cast %107 : vector<23x1xi1> to vector<23x1xi1>
    %110 = vector.broadcast %109 : vector<23x1xi1> to vector<23x128xi1>
    %111 = vector.shape_cast %84 : vector<1x128xf32> to vector<1x128xf32>
    %112 = vector.broadcast %111 : vector<1x128xf32> to vector<23x128xf32>
    %113 = arith.select %110, %112, %108 : vector<23x128xi1>, vector<23x128xf32>
    %114 = vector.shape_cast %105 : vector<23x1xi1> to vector<23x1xi1>
    %115 = vector.broadcast %114 : vector<23x1xi1> to vector<23x128xi1>
    %116 = vector.shape_cast %83 : vector<1x128xf32> to vector<1x128xf32>
    %117 = vector.broadcast %116 : vector<1x128xf32> to vector<23x128xf32>
    %118 = arith.select %115, %117, %113 : vector<23x128xi1>, vector<23x128xf32>
    %cst_33 = arith.constant 0.000000e+00 : f32
    %119 = vector.broadcast %cst_33 : f32 to vector<18x128xf32>
    %120 = vector.extract_strided_slice %103 {offsets = [0, 0], sizes = [18, 128], strides = [1, 1]} : vector<23x128xf32> to vector<18x128xf32>
    %cst_34 = arith.constant 0.00202896656 : f32
    %121 = vector.broadcast %cst_34 : f32 to vector<18x128xf32>
    %122 = arith.mulf %121, %120 : vector<18x128xf32>
    %123 = arith.addf %119, %122 : vector<18x128xf32>
    %124 = vector.extract_strided_slice %118 {offsets = [0, 0], sizes = [18, 128], strides = [1, 1]} : vector<23x128xf32> to vector<18x128xf32>
    %cst_35 = arith.constant 0.00938946381 : f32
    %125 = vector.broadcast %cst_35 : f32 to vector<18x128xf32>
    %126 = arith.mulf %125, %124 : vector<18x128xf32>
    %127 = arith.addf %123, %126 : vector<18x128xf32>
    %128 = vector.extract_strided_slice %103 {offsets = [1, 0], sizes = [18, 128], strides = [1, 1]} : vector<23x128xf32> to vector<18x128xf32>
    %cst_36 = arith.constant -0.0255434643 : f32
    %129 = vector.broadcast %cst_36 : f32 to vector<18x128xf32>
    %130 = arith.mulf %129, %128 : vector<18x128xf32>
    %131 = arith.addf %127, %130 : vector<18x128xf32>
    %132 = vector.extract_strided_slice %118 {offsets = [1, 0], sizes = [18, 128], strides = [1, 1]} : vector<23x128xf32> to vector<18x128xf32>
    %cst_37 = arith.constant -0.0576573759 : f32
    %133 = vector.broadcast %cst_37 : f32 to vector<18x128xf32>
    %134 = arith.mulf %133, %132 : vector<18x128xf32>
    %135 = arith.addf %131, %134 : vector<18x128xf32>
    %136 = vector.extract_strided_slice %103 {offsets = [2, 0], sizes = [18, 128], strides = [1, 1]} : vector<23x128xf32> to vector<18x128xf32>
    %cst_38 = arith.constant 0.128572613 : f32
    %137 = vector.broadcast %cst_38 : f32 to vector<18x128xf32>
    %138 = arith.mulf %137, %136 : vector<18x128xf32>
    %139 = arith.addf %135, %138 : vector<18x128xf32>
    %140 = vector.extract_strided_slice %118 {offsets = [2, 0], sizes = [18, 128], strides = [1, 1]} : vector<23x128xf32> to vector<18x128xf32>
    %cst_39 = arith.constant 0.443209797 : f32
    %141 = vector.broadcast %cst_39 : f32 to vector<18x128xf32>
    %142 = arith.mulf %141, %140 : vector<18x128xf32>
    %143 = arith.addf %139, %142 : vector<18x128xf32>
    %144 = vector.extract_strided_slice %103 {offsets = [3, 0], sizes = [18, 128], strides = [1, 1]} : vector<23x128xf32> to vector<18x128xf32>
    %cst_40 = arith.constant 0.443209797 : f32
    %145 = vector.broadcast %cst_40 : f32 to vector<18x128xf32>
    %146 = arith.mulf %145, %144 : vector<18x128xf32>
    %147 = arith.addf %143, %146 : vector<18x128xf32>
    %148 = vector.extract_strided_slice %118 {offsets = [3, 0], sizes = [18, 128], strides = [1, 1]} : vector<23x128xf32> to vector<18x128xf32>
    %cst_41 = arith.constant 0.128572613 : f32
    %149 = vector.broadcast %cst_41 : f32 to vector<18x128xf32>
    %150 = arith.mulf %149, %148 : vector<18x128xf32>
    %151 = arith.addf %147, %150 : vector<18x128xf32>
    %152 = vector.extract_strided_slice %103 {offsets = [4, 0], sizes = [18, 128], strides = [1, 1]} : vector<23x128xf32> to vector<18x128xf32>
    %cst_42 = arith.constant -0.0576573759 : f32
    %153 = vector.broadcast %cst_42 : f32 to vector<18x128xf32>
    %154 = arith.mulf %153, %152 : vector<18x128xf32>
    %155 = arith.addf %151, %154 : vector<18x128xf32>
    %156 = vector.extract_strided_slice %118 {offsets = [4, 0], sizes = [18, 128], strides = [1, 1]} : vector<23x128xf32> to vector<18x128xf32>
    %cst_43 = arith.constant -0.0255434643 : f32
    %157 = vector.broadcast %cst_43 : f32 to vector<18x128xf32>
    %158 = arith.mulf %157, %156 : vector<18x128xf32>
    %159 = arith.addf %155, %158 : vector<18x128xf32>
    %160 = vector.extract_strided_slice %103 {offsets = [5, 0], sizes = [18, 128], strides = [1, 1]} : vector<23x128xf32> to vector<18x128xf32>
    %cst_44 = arith.constant 0.00938946381 : f32
    %161 = vector.broadcast %cst_44 : f32 to vector<18x128xf32>
    %162 = arith.mulf %161, %160 : vector<18x128xf32>
    %163 = arith.addf %159, %162 : vector<18x128xf32>
    %164 = vector.extract_strided_slice %118 {offsets = [5, 0], sizes = [18, 128], strides = [1, 1]} : vector<23x128xf32> to vector<18x128xf32>
    %cst_45 = arith.constant 0.00202896656 : f32
    %165 = vector.broadcast %cst_45 : f32 to vector<18x128xf32>
    %166 = arith.mulf %165, %164 : vector<18x128xf32>
    %167 = arith.addf %163, %166 : vector<18x128xf32>
    %c1_i32_46 = arith.constant 1 : i32
    %168 = arith.subi %0, %c1_i32_46 : i32
    %169 = tpu.iota {dimensions = array<i32: 0>} : vector<18x1xi32>
    %170 = vector.broadcast %168 : i32 to vector<18x1xi32>
    %171 = arith.addi %170, %169 : vector<18x1xi32>
    %c0_i32_47 = arith.constant 0 : i32
    %172 = vector.broadcast %c0_i32_47 : i32 to vector<18x1xi32>
    %173 = arith.cmpi sge, %171, %172 : vector<18x1xi32>
    %c64_i32 = arith.constant 64 : i32
    %174 = vector.broadcast %c64_i32 : i32 to vector<18x1xi32>
    %175 = arith.cmpi slt, %171, %174 : vector<18x1xi32>
    %176 = arith.andi %173, %175 : vector<18x1xi1>
    %cst_48 = arith.constant 0.000000e+00 : f32
    %177 = vector.shape_cast %176 : vector<18x1xi1> to vector<18x1xi1>
    %178 = vector.broadcast %177 : vector<18x1xi1> to vector<18x128xi1>
    %179 = vector.broadcast %cst_48 : f32 to vector<18x128xf32>
    %180 = arith.select %178, %167, %179 : vector<18x128xi1>, vector<18x128xf32>
    %181 = vector.extract_strided_slice %180 {offsets = [0, 0], sizes = [16, 128], strides = [1, 1]} : vector<18x128xf32> to vector<16x128xf32>
    %182 = arith.truncf %181 : vector<16x128xf32> to vector<16x128xbf16>
    %c0_49 = arith.constant 0 : index
    %c0_50 = arith.constant 0 : index
    %183 = vector.load %arg11[%c0_49, %c0_50] : memref<16x384xbf16, #tpu.memory_space<vmem>>, vector<16x128xbf16>
    tpu.vector_store %arg11[%c0_49, %c0_50], %182 {strides = array<i32>} : memref<16x384xbf16, #tpu.memory_space<vmem>>, vector<16x128xbf16>,
    %184 = vector.extract_strided_slice %180 {offsets = [1, 0], sizes = [16, 128], strides = [1, 1]} : vector<18x128xf32> to vector<16x128xf32>
    %185 = arith.truncf %184 : vector<16x128xf32> to vector<16x128xbf16>
    %c0_51 = arith.constant 0 : index
    %c128 = arith.constant 128 : index
    %186 = vector.load %arg11[%c0_51, %c128] : memref<16x384xbf16, #tpu.memory_space<vmem>>, vector<16x128xbf16>
    tpu.vector_store %arg11[%c0_51, %c128], %185 {strides = array<i32>} : memref<16x384xbf16, #tpu.memory_space<vmem>>, vector<16x128xbf16>,
    %187 = vector.extract_strided_slice %180 {offsets = [2, 0], sizes = [16, 128], strides = [1, 1]} : vector<18x128xf32> to vector<16x128xf32>
    %188 = arith.truncf %187 : vector<16x128xf32> to vector<16x128xbf16>
    %c0_52 = arith.constant 0 : index
    %c256 = arith.constant 256 : index
    %189 = vector.load %arg11[%c0_52, %c256] : memref<16x384xbf16, #tpu.memory_space<vmem>>, vector<16x128xbf16>
    tpu.vector_store %arg11[%c0_52, %c256], %188 {strides = array<i32>} : memref<16x384xbf16, #tpu.memory_space<vmem>>, vector<16x128xbf16>,
    %c0_53 = arith.constant 0 : index
    %c0_54 = arith.constant 0 : index
    %190 = vector.load %arg11[%c0_53, %c0_54] : memref<16x384xbf16, #tpu.memory_space<vmem>>, vector<16x384xbf16>
    %c0_55 = arith.constant 0 : index
    %c0_56 = arith.constant 0 : index
    %191 = vector.load %arg7[%c0_55, %c0_56] : memref<384x128xbf16, #tpu.memory_space<vmem>>, vector<384x128xbf16>
    %cst_57 = arith.constant dense<0.000000e+00> : vector<16x128xf32>
    %192 = tpu.matmul %190, %191, %cst_57 {dimension_numbers = #tpu.dot_dimension_numbers<[1], [0], [0], [1], [0, 0, 1, 1], [], []>} : vector<16x384xbf16>, vector<384x128xbf16>, vector<16x128xf32> -> vector<16x128xf32>
    %c0_58 = arith.constant 0 : index
    %c0_59 = arith.constant 0 : index
    %193 = vector.load %arg8[%c0_58, %c0_59] : memref<1x128xf32, #tpu.memory_space<vmem>>, vector<1x128xf32>
    %194 = vector.broadcast %193 : vector<1x128xf32> to vector<16x128xf32>
    %195 = arith.addf %192, %194 : vector<16x128xf32>
    %c0_60 = arith.constant 0 : index
    %c0_61 = arith.constant 0 : index
    %c0_62 = arith.constant 0 : index
    %196 = vector.load %arg3[%c0_60, %c0_61, %c0_62] : memref<1x16x128xf32, #tpu.memory_space<vmem>>, vector<1x16x128xf32>
    %197 = vector.shape_cast %196 : vector<1x16x128xf32> to vector<16x128xf32>
    %198 = arith.addf %195, %197 : vector<16x128xf32>
    %c0_63 = arith.constant 0 : index
    %c0_64 = arith.constant 0 : index
    %c0_65 = arith.constant 0 : index
    %199 = vector.load %arg9[%c0_63, %c0_64, %c0_65] : memref<1x16x128xf32, #tpu.memory_space<vmem>>, vector<1x16x128xf32>
    %200 = vector.shape_cast %199 : vector<1x16x128xf32> to vector<16x128xf32>
    %201 = vector.shape_cast %198 : vector<16x128xf32> to vector<1x16x128xf32>
    tpu.vector_store %arg9[%c0_63, %c0_64, %c0_65], %201 {strides = array<i32>} : memref<1x16x128xf32, #tpu.memory_space<vmem>>, vector<1x16x128xf32>,
    return
  }
  func.func @transform_0(%arg0: i32, %arg1: i32) -> (i32, i32, i32) {
    %c2_i32 = arith.constant 2 : i32
    %0 = arith.muli %arg1, %c2_i32 : i32
    %c1_i32 = arith.constant 1 : i32
    %1 = arith.subi %0, %c1_i32 : i32
    %c0_i32 = arith.constant 0 : i32
    %2 = arith.maxsi %1, %c0_i32 : i32
    %c0_i32_0 = arith.constant 0 : i32
    %c0_i32_1 = arith.constant 0 : i32
    return %arg0, %2, %c0_i32_0 : i32, i32, i32
  }
  func.func @transform_1(%arg0: i32, %arg1: i32) -> (i32, i32, i32) {
    %c0_i32 = arith.constant 0 : i32
    %c0_i32_0 = arith.constant 0 : i32
    return %arg0, %arg1, %c0_i32 : i32, i32, i32
  }
  func.func @transform_2(%arg0: i32, %arg1: i32) -> (i32, i32, i32) {
    %c1_i32 = arith.constant 1 : i32
    %0 = arith.addi %arg1, %c1_i32 : i32
    %c2_i32 = arith.constant 2 : i32
    %1 = arith.muli %0, %c2_i32 : i32
    %c7_i32 = arith.constant 7 : i32
    %2 = arith.minsi %1, %c7_i32 : i32
    %c0_i32 = arith.constant 0 : i32
    %c0_i32_0 = arith.constant 0 : i32
    return %arg0, %2, %c0_i32 : i32, i32, i32
  }
  func.func @transform_3(%arg0: i32, %arg1: i32) -> (i32, i32) {
    %c0_i32 = arith.constant 0 : i32
    %c0_i32_0 = arith.constant 0 : i32
    %c0_i32_1 = arith.constant 0 : i32
    return %c0_i32, %c0_i32_0 : i32, i32
  }
  func.func @transform_4(%arg0: i32, %arg1: i32) -> (i32, i32) {
    %c0_i32 = arith.constant 0 : i32
    %c0_i32_0 = arith.constant 0 : i32
    %c0_i32_1 = arith.constant 0 : i32
    return %c0_i32, %c0_i32_0 : i32, i32
  }
  func.func @transform_5(%arg0: i32, %arg1: i32) -> (i32, i32) {
    %c0_i32 = arith.constant 0 : i32
    %c0_i32_0 = arith.constant 0 : i32
    %c0_i32_1 = arith.constant 0 : i32
    return %c0_i32, %c0_i32_0 : i32, i32
  }
  func.func @transform_6(%arg0: i32, %arg1: i32) -> (i32, i32) {
    %c0_i32 = arith.constant 0 : i32
    %c0_i32_0 = arith.constant 0 : i32
    %c0_i32_1 = arith.constant 0 : i32
    return %c0_i32, %c0_i32_0 : i32, i32
  }
  func.func @transform_7(%arg0: i32, %arg1: i32) -> (i32, i32, i32) {
    %c0_i32 = arith.constant 0 : i32
    %c0_i32_0 = arith.constant 0 : i32
    return %arg0, %arg1, %c0_i32 : i32, i32, i32
  }
}

module attributes {stable_mosaic.version = 11 : i64} {
  func.func @kernel(%arg0: i32, %arg1: i32, %arg2: memref<1x16x128xf32, #tpu.memory_space<vmem>>, %arg3: memref<1x16x128xf32, #tpu.memory_space<vmem>>, %arg4: memref<1x16x128xf32, #tpu.memory_space<vmem>>, %arg5: memref<1x128xf32, #tpu.memory_space<vmem>>, %arg6: memref<1x128xf32, #tpu.memory_space<vmem>>, %arg7: memref<384x128xbf16, #tpu.memory_space<vmem>>, %arg8: memref<1x128xf32, #tpu.memory_space<vmem>>, %arg9: memref<1x16x128xf32, #tpu.memory_space<vmem>>, %arg10: memref<34x128xf32, #tpu.memory_space<vmem>>, %arg11: memref<16x384xbf16, #tpu.memory_space<vmem>>) attributes {dimension_semantics = [#tpu.dimension_semantics<parallel>, #tpu.dimension_semantics<parallel>], iteration_bounds = array<i64: 2, 4>, scalar_prefetch = 0 : i64, scratch_operands = 2 : i64, tpu.core_type = #tpu.core_type<tc>, window_params = [{transform_indices = @transform_0, window_bounds = array<i64: 1, 16, 128>}, {transform_indices = @transform_1, window_bounds = array<i64: 1, 16, 128>}, {transform_indices = @transform_2, window_bounds = array<i64: 1, 16, 128>}, {pipeline_mode = #tpu.pipeline_mode<synchronous>, transform_indices = @transform_3, window_bounds = array<i64: 1, 128>}, {pipeline_mode = #tpu.pipeline_mode<synchronous>, transform_indices = @transform_4, window_bounds = array<i64: 1, 128>}, {pipeline_mode = #tpu.pipeline_mode<synchronous>, transform_indices = @transform_5, window_bounds = array<i64: 384, 128>}, {pipeline_mode = #tpu.pipeline_mode<synchronous>, transform_indices = @transform_6, window_bounds = array<i64: 1, 128>}, {transform_indices = @transform_7, window_bounds = array<i64: 1, 16, 128>}]} {
    %c16_i32 = arith.constant 16 : i32
    %0 = arith.muli %arg1, %c16_i32 : i32
    %c0 = arith.constant 0 : index
    %c7 = arith.constant 7 : index
    %c0_0 = arith.constant 0 : index
    %1 = vector.load %arg2[%c0, %c7, %c0_0] : memref<1x16x128xf32, #tpu.memory_space<vmem>>, vector<1x9x128xf32>
    %2 = vector.shape_cast %1 : vector<1x9x128xf32> to vector<9x128xf32>
    %c0_1 = arith.constant 0 : index
    %c0_2 = arith.constant 0 : index
    %3 = vector.load %arg10[%c0_1, %c0_2] : memref<34x128xf32, #tpu.memory_space<vmem>>, vector<9x128xf32>
    tpu.vector_store %arg10[%c0_1, %c0_2], %2 {strides = array<i32>} : memref<34x128xf32, #tpu.memory_space<vmem>>, vector<9x128xf32>,
    %c0_3 = arith.constant 0 : index
    %c0_4 = arith.constant 0 : index
    %c0_5 = arith.constant 0 : index
    %4 = vector.load %arg3[%c0_3, %c0_4, %c0_5] : memref<1x16x128xf32, #tpu.memory_space<vmem>>, vector<1x16x128xf32>
    %5 = vector.shape_cast %4 : vector<1x16x128xf32> to vector<16x128xf32>
    %c9 = arith.constant 9 : index
    %c0_6 = arith.constant 0 : index
    %6 = vector.load %arg10[%c9, %c0_6] : memref<34x128xf32, #tpu.memory_space<vmem>>, vector<16x128xf32>
    tpu.vector_store %arg10[%c9, %c0_6], %5 {strides = array<i32>} : memref<34x128xf32, #tpu.memory_space<vmem>>, vector<16x128xf32>,
    %c0_7 = arith.constant 0 : index
    %c0_8 = arith.constant 0 : index
    %c0_9 = arith.constant 0 : index
    %7 = vector.load %arg4[%c0_7, %c0_8, %c0_9] : memref<1x16x128xf32, #tpu.memory_space<vmem>>, vector<1x9x128xf32>
    %8 = vector.shape_cast %7 : vector<1x9x128xf32> to vector<9x128xf32>
    %c25 = arith.constant 25 : index
    %c0_10 = arith.constant 0 : index
    %9 = vector.load %arg10[%c25, %c0_10] : memref<34x128xf32, #tpu.memory_space<vmem>>, vector<9x128xf32>
    tpu.vector_store %arg10[%c25, %c0_10], %8 {strides = array<i32>} : memref<34x128xf32, #tpu.memory_space<vmem>>, vector<9x128xf32>,
    %c0_i32 = arith.constant 0 : i32
    %10 = arith.cmpi eq, %arg1, %c0_i32 : i32
    %11 = arith.extui %10 : i1 to i32
    %c0_i32_11 = arith.constant 0 : i32
    %12 = arith.cmpi ne, %11, %c0_i32_11 : i32
    scf.if %12 {
      %c0_66 = arith.constant 0 : index
      %c0_67 = arith.constant 0 : index
      %c0_68 = arith.constant 0 : index
      %202 = vector.load %arg3[%c0_66, %c0_67, %c0_68] : memref<1x16x128xf32, #tpu.memory_space<vmem>>, vector<1x1x128xf32>
      %203 = vector.shape_cast %202 : vector<1x1x128xf32> to vector<1x128xf32>
      %204 = vector.shape_cast %203 : vector<1x128xf32> to vector<1x128xf32>
      %205 = vector.broadcast %204 : vector<1x128xf32> to vector<9x128xf32>
      %c0_69 = arith.constant 0 : index
      %c0_70 = arith.constant 0 : index
      %206 = vector.load %arg10[%c0_69, %c0_70] : memref<34x128xf32, #tpu.memory_space<vmem>>, vector<9x128xf32>
      tpu.vector_store %arg10[%c0_69, %c0_70], %205 {strides = array<i32>} : memref<34x128xf32, #tpu.memory_space<vmem>>, vector<9x128xf32>,
    } else {
    }
    %c3_i32 = arith.constant 3 : i32
    %13 = arith.cmpi eq, %arg1, %c3_i32 : i32
    %14 = arith.extui %13 : i1 to i32
    %c0_i32_12 = arith.constant 0 : i32
    %15 = arith.cmpi ne, %14, %c0_i32_12 : i32
    scf.if %15 {
      %c0_66 = arith.constant 0 : index
      %c15 = arith.constant 15 : index
      %c0_67 = arith.constant 0 : index
      %202 = vector.load %arg3[%c0_66, %c15, %c0_67] : memref<1x16x128xf32, #tpu.memory_space<vmem>>, vector<1x1x128xf32>
      %203 = vector.shape_cast %202 : vector<1x1x128xf32> to vector<1x128xf32>
      %204 = vector.shape_cast %203 : vector<1x128xf32> to vector<1x128xf32>
      %205 = vector.broadcast %204 : vector<1x128xf32> to vector<9x128xf32>
      %c25_68 = arith.constant 25 : index
      %c0_69 = arith.constant 0 : index
      %206 = vector.load %arg10[%c25_68, %c0_69] : memref<34x128xf32, #tpu.memory_space<vmem>>, vector<9x128xf32>
      tpu.vector_store %arg10[%c25_68, %c0_69], %205 {strides = array<i32>} : memref<34x128xf32, #tpu.memory_space<vmem>>, vector<9x128xf32>,
    } else {
    }
    %c0_13 = arith.constant 0 : index
    %c0_14 = arith.constant 0 : index
    %16 = vector.load %arg10[%c0_13, %c0_14] : memref<34x128xf32, #tpu.memory_space<vmem>>, vector<34x128xf32>
    %cst = arith.constant 0.000000e+00 : f32
    %17 = vector.broadcast %cst : f32 to vector<28x128xf32>
    %cst_15 = arith.constant 0.000000e+00 : f32
    %18 = vector.broadcast %cst_15 : f32 to vector<28x128xf32>
    %19 = vector.extract_strided_slice %16 {offsets = [5, 0], sizes = [28, 128], strides = [1, 1]} : vector<34x128xf32> to vector<28x128xf32>
    %cst_16 = arith.constant 0.0187789276 : f32
    %20 = vector.broadcast %cst_16 : f32 to vector<28x128xf32>
    %21 = arith.mulf %20, %19 : vector<28x128xf32>
    %22 = arith.addf %17, %21 : vector<28x128xf32>
    %23 = vector.extract_strided_slice %16 {offsets = [6, 0], sizes = [28, 128], strides = [1, 1]} : vector<34x128xf32> to vector<28x128xf32>
    %cst_17 = arith.constant 0.00405793311 : f32
    %24 = vector.broadcast %cst_17 : f32 to vector<28x128xf32>
    %25 = arith.mulf %24, %23 : vector<28x128xf32>
    %26 = arith.addf %18, %25 : vector<28x128xf32>
    %27 = vector.extract_strided_slice %16 {offsets = [4, 0], sizes = [28, 128], strides = [1, 1]} : vector<34x128xf32> to vector<28x128xf32>
    %cst_18 = arith.constant -0.115314752 : f32
    %28 = vector.broadcast %cst_18 : f32 to vector<28x128xf32>
    %29 = arith.mulf %28, %27 : vector<28x128xf32>
    %30 = arith.addf %22, %29 : vector<28x128xf32>
    %31 = vector.extract_strided_slice %16 {offsets = [5, 0], sizes = [28, 128], strides = [1, 1]} : vector<34x128xf32> to vector<28x128xf32>
    %cst_19 = arith.constant -0.0510869287 : f32
    %32 = vector.broadcast %cst_19 : f32 to vector<28x128xf32>
    %33 = arith.mulf %32, %31 : vector<28x128xf32>
    %34 = arith.addf %26, %33 : vector<28x128xf32>
    %35 = vector.extract_strided_slice %16 {offsets = [3, 0], sizes = [28, 128], strides = [1, 1]} : vector<34x128xf32> to vector<28x128xf32>
    %cst_20 = arith.constant 0.886419594 : f32
    %36 = vector.broadcast %cst_20 : f32 to vector<28x128xf32>
    %37 = arith.mulf %36, %35 : vector<28x128xf32>
    %38 = arith.addf %30, %37 : vector<28x128xf32>
    %39 = vector.extract_strided_slice %16 {offsets = [4, 0], sizes = [28, 128], strides = [1, 1]} : vector<34x128xf32> to vector<28x128xf32>
    %cst_21 = arith.constant 0.257145226 : f32
    %40 = vector.broadcast %cst_21 : f32 to vector<28x128xf32>
    %41 = arith.mulf %40, %39 : vector<28x128xf32>
    %42 = arith.addf %34, %41 : vector<28x128xf32>
    %43 = vector.extract_strided_slice %16 {offsets = [2, 0], sizes = [28, 128], strides = [1, 1]} : vector<34x128xf32> to vector<28x128xf32>
    %cst_22 = arith.constant 0.257145226 : f32
    %44 = vector.broadcast %cst_22 : f32 to vector<28x128xf32>
    %45 = arith.mulf %44, %43 : vector<28x128xf32>
    %46 = arith.addf %38, %45 : vector<28x128xf32>
    %47 = vector.extract_strided_slice %16 {offsets = [3, 0], sizes = [28, 128], strides = [1, 1]} : vector<34x128xf32> to vector<28x128xf32>
    %cst_23 = arith.constant 0.886419594 : f32
    %48 = vector.broadcast %cst_23 : f32 to vector<28x128xf32>
    %49 = arith.mulf %48, %47 : vector<28x128xf32>
    %50 = arith.addf %42, %49 : vector<28x128xf32>
    %51 = vector.extract_strided_slice %16 {offsets = [1, 0], sizes = [28, 128], strides = [1, 1]} : vector<34x128xf32> to vector<28x128xf32>
    %cst_24 = arith.constant -0.0510869287 : f32
    %52 = vector.broadcast %cst_24 : f32 to vector<28x128xf32>
    %53 = arith.mulf %52, %51 : vector<28x128xf32>
    %54 = arith.addf %46, %53 : vector<28x128xf32>
    %55 = vector.extract_strided_slice %16 {offsets = [2, 0], sizes = [28, 128], strides = [1, 1]} : vector<34x128xf32> to vector<28x128xf32>
    %cst_25 = arith.constant -0.115314752 : f32
    %56 = vector.broadcast %cst_25 : f32 to vector<28x128xf32>
    %57 = arith.mulf %56, %55 : vector<28x128xf32>
    %58 = arith.addf %50, %57 : vector<28x128xf32>
    %59 = vector.extract_strided_slice %16 {offsets = [0, 0], sizes = [28, 128], strides = [1, 1]} : vector<34x128xf32> to vector<28x128xf32>
    %cst_26 = arith.constant 0.00405793311 : f32
    %60 = vector.broadcast %cst_26 : f32 to vector<28x128xf32>
    %61 = arith.mulf %60, %59 : vector<28x128xf32>
    %62 = arith.addf %54, %61 : vector<28x128xf32>
    %63 = vector.extract_strided_slice %16 {offsets = [1, 0], sizes = [28, 128], strides = [1, 1]} : vector<34x128xf32> to vector<28x128xf32>
    %cst_27 = arith.constant 0.0187789276 : f32
    %64 = vector.broadcast %cst_27 : f32 to vector<28x128xf32>
    %65 = arith.mulf %64, %63 : vector<28x128xf32>
    %66 = arith.addf %58, %65 : vector<28x128xf32>
    %c0_28 = arith.constant 0 : index
    %c0_29 = arith.constant 0 : index
    %67 = vector.load %arg5[%c0_28, %c0_29] : memref<1x128xf32, #tpu.memory_space<vmem>>, vector<1x128xf32>
    %c0_30 = arith.constant 0 : index
    %c0_31 = arith.constant 0 : index
    %68 = vector.load %arg6[%c0_30, %c0_31] : memref<1x128xf32, #tpu.memory_space<vmem>>, vector<1x128xf32>
    %69 = vector.broadcast %67 : vector<1x128xf32> to vector<28x128xf32>
    %70 = arith.mulf %62, %69 : vector<28x128xf32>
    %71 = math.sin %70 : vector<28x128xf32>
    %72 = arith.mulf %71, %71 : vector<28x128xf32>
    %73 = vector.broadcast %68 : vector<1x128xf32> to vector<28x128xf32>
    %74 = arith.mulf %73, %72 : vector<28x128xf32>
    %75 = arith.addf %62, %74 : vector<28x128xf32>
    %76 = vector.broadcast %67 : vector<1x128xf32> to vector<28x128xf32>
    %77 = arith.mulf %66, %76 : vector<28x128xf32>
    %78 = math.sin %77 : vector<28x128xf32>
    %79 = arith.mulf %78, %78 : vector<28x128xf32>
    %80 = vector.broadcast %68 : vector<1x128xf32> to vector<28x128xf32>
    %81 = arith.mulf %80, %79 : vector<28x128xf32>
    %82 = arith.addf %66, %81 : vector<28x128xf32>
    %83 = vector.extract_strided_slice %75 {offsets = [6, 0], sizes = [1, 128], strides = [1, 1]} : vector<28x128xf32> to vector<1x128xf32>
    %84 = vector.extract_strided_slice %82 {offsets = [21, 0], sizes = [1, 128], strides = [1, 1]} : vector<28x128xf32> to vector<1x128xf32>
    %c3_i32_32 = arith.constant 3 : i32
    %85 = arith.subi %0, %c3_i32_32 : i32
    %86 = tpu.iota {dimensions = array<i32: 0>} : vector<27x1xi32>
    %87 = vector.broadcast %85 : i32 to vector<27x1xi32>
    %88 = arith.addi %87, %86 : vector<27x1xi32>
    %c2_i32 = arith.constant 2 : i32
    %89 = vector.broadcast %c2_i32 : i32 to vector<27x1xi32>
    %90 = arith.cmpi sle, %88, %89 : vector<27x1xi32>
    %c67_i32 = arith.constant 67 : i32
    %91 = vector.broadcast %c67_i32 : i32 to vector<27x1xi32>
    %92 = arith.cmpi sge, %88, %91 : vector<27x1xi32>
    %93 = vector.extract_strided_slice %82 {offsets = [0, 0], sizes = [27, 128], strides = [1, 1]} : vector<28x128xf32> to vector<27x128xf32>
    %94 = vector.shape_cast %92 : vector<27x1xi1> to vector<27x1xi1>
    %95 = vector.broadcast %94 : vector<27x1xi1> to vector<27x128xi1>
    %96 = vector.shape_cast %84 : vector<1x128xf32> to vector<1x128xf32>
    %97 = vector.broadcast %96 : vector<1x128xf32> to vector<27x128xf32>
    %98 = arith.select %95, %97, %93 : vector<27x128xi1>, vector<27x128xf32>
    %99 = vector.shape_cast %90 : vector<27x1xi1> to vector<27x1xi1>
    %100 = vector.broadcast %99 : vector<27x1xi1> to vector<27x128xi1>
    %101 = vector.shape_cast %83 : vector<1x128xf32> to vector<1x128xf32>
    %102 = vector.broadcast %101 : vector<1x128xf32> to vector<27x128xf32>
    %103 = arith.select %100, %102, %98 : vector<27x128xi1>, vector<27x128xf32>
    %c1_i32 = arith.constant 1 : i32
    %104 = vector.broadcast %c1_i32 : i32 to vector<27x1xi32>
    %105 = arith.cmpi sle, %88, %104 : vector<27x1xi32>
    %c66_i32 = arith.constant 66 : i32
    %106 = vector.broadcast %c66_i32 : i32 to vector<27x1xi32>
    %107 = arith.cmpi sge, %88, %106 : vector<27x1xi32>
    %108 = vector.extract_strided_slice %75 {offsets = [1, 0], sizes = [27, 128], strides = [1, 1]} : vector<28x128xf32> to vector<27x128xf32>
    %109 = vector.shape_cast %107 : vector<27x1xi1> to vector<27x1xi1>
    %110 = vector.broadcast %109 : vector<27x1xi1> to vector<27x128xi1>
    %111 = vector.shape_cast %84 : vector<1x128xf32> to vector<1x128xf32>
    %112 = vector.broadcast %111 : vector<1x128xf32> to vector<27x128xf32>
    %113 = arith.select %110, %112, %108 : vector<27x128xi1>, vector<27x128xf32>
    %114 = vector.shape_cast %105 : vector<27x1xi1> to vector<27x1xi1>
    %115 = vector.broadcast %114 : vector<27x1xi1> to vector<27x128xi1>
    %116 = vector.shape_cast %83 : vector<1x128xf32> to vector<1x128xf32>
    %117 = vector.broadcast %116 : vector<1x128xf32> to vector<27x128xf32>
    %118 = arith.select %115, %117, %113 : vector<27x128xi1>, vector<27x128xf32>
    %cst_33 = arith.constant 0.000000e+00 : f32
    %119 = vector.broadcast %cst_33 : f32 to vector<22x128xf32>
    %120 = vector.extract_strided_slice %103 {offsets = [0, 0], sizes = [22, 128], strides = [1, 1]} : vector<27x128xf32> to vector<22x128xf32>
    %cst_34 = arith.constant 0.00202896656 : f32
    %121 = vector.broadcast %cst_34 : f32 to vector<22x128xf32>
    %122 = arith.mulf %121, %120 : vector<22x128xf32>
    %123 = arith.addf %119, %122 : vector<22x128xf32>
    %124 = vector.extract_strided_slice %118 {offsets = [0, 0], sizes = [22, 128], strides = [1, 1]} : vector<27x128xf32> to vector<22x128xf32>
    %cst_35 = arith.constant 0.00938946381 : f32
    %125 = vector.broadcast %cst_35 : f32 to vector<22x128xf32>
    %126 = arith.mulf %125, %124 : vector<22x128xf32>
    %127 = arith.addf %123, %126 : vector<22x128xf32>
    %128 = vector.extract_strided_slice %103 {offsets = [1, 0], sizes = [22, 128], strides = [1, 1]} : vector<27x128xf32> to vector<22x128xf32>
    %cst_36 = arith.constant -0.0255434643 : f32
    %129 = vector.broadcast %cst_36 : f32 to vector<22x128xf32>
    %130 = arith.mulf %129, %128 : vector<22x128xf32>
    %131 = arith.addf %127, %130 : vector<22x128xf32>
    %132 = vector.extract_strided_slice %118 {offsets = [1, 0], sizes = [22, 128], strides = [1, 1]} : vector<27x128xf32> to vector<22x128xf32>
    %cst_37 = arith.constant -0.0576573759 : f32
    %133 = vector.broadcast %cst_37 : f32 to vector<22x128xf32>
    %134 = arith.mulf %133, %132 : vector<22x128xf32>
    %135 = arith.addf %131, %134 : vector<22x128xf32>
    %136 = vector.extract_strided_slice %103 {offsets = [2, 0], sizes = [22, 128], strides = [1, 1]} : vector<27x128xf32> to vector<22x128xf32>
    %cst_38 = arith.constant 0.128572613 : f32
    %137 = vector.broadcast %cst_38 : f32 to vector<22x128xf32>
    %138 = arith.mulf %137, %136 : vector<22x128xf32>
    %139 = arith.addf %135, %138 : vector<22x128xf32>
    %140 = vector.extract_strided_slice %118 {offsets = [2, 0], sizes = [22, 128], strides = [1, 1]} : vector<27x128xf32> to vector<22x128xf32>
    %cst_39 = arith.constant 0.443209797 : f32
    %141 = vector.broadcast %cst_39 : f32 to vector<22x128xf32>
    %142 = arith.mulf %141, %140 : vector<22x128xf32>
    %143 = arith.addf %139, %142 : vector<22x128xf32>
    %144 = vector.extract_strided_slice %103 {offsets = [3, 0], sizes = [22, 128], strides = [1, 1]} : vector<27x128xf32> to vector<22x128xf32>
    %cst_40 = arith.constant 0.443209797 : f32
    %145 = vector.broadcast %cst_40 : f32 to vector<22x128xf32>
    %146 = arith.mulf %145, %144 : vector<22x128xf32>
    %147 = arith.addf %143, %146 : vector<22x128xf32>
    %148 = vector.extract_strided_slice %118 {offsets = [3, 0], sizes = [22, 128], strides = [1, 1]} : vector<27x128xf32> to vector<22x128xf32>
    %cst_41 = arith.constant 0.128572613 : f32
    %149 = vector.broadcast %cst_41 : f32 to vector<22x128xf32>
    %150 = arith.mulf %149, %148 : vector<22x128xf32>
    %151 = arith.addf %147, %150 : vector<22x128xf32>
    %152 = vector.extract_strided_slice %103 {offsets = [4, 0], sizes = [22, 128], strides = [1, 1]} : vector<27x128xf32> to vector<22x128xf32>
    %cst_42 = arith.constant -0.0576573759 : f32
    %153 = vector.broadcast %cst_42 : f32 to vector<22x128xf32>
    %154 = arith.mulf %153, %152 : vector<22x128xf32>
    %155 = arith.addf %151, %154 : vector<22x128xf32>
    %156 = vector.extract_strided_slice %118 {offsets = [4, 0], sizes = [22, 128], strides = [1, 1]} : vector<27x128xf32> to vector<22x128xf32>
    %cst_43 = arith.constant -0.0255434643 : f32
    %157 = vector.broadcast %cst_43 : f32 to vector<22x128xf32>
    %158 = arith.mulf %157, %156 : vector<22x128xf32>
    %159 = arith.addf %155, %158 : vector<22x128xf32>
    %160 = vector.extract_strided_slice %103 {offsets = [5, 0], sizes = [22, 128], strides = [1, 1]} : vector<27x128xf32> to vector<22x128xf32>
    %cst_44 = arith.constant 0.00938946381 : f32
    %161 = vector.broadcast %cst_44 : f32 to vector<22x128xf32>
    %162 = arith.mulf %161, %160 : vector<22x128xf32>
    %163 = arith.addf %159, %162 : vector<22x128xf32>
    %164 = vector.extract_strided_slice %118 {offsets = [5, 0], sizes = [22, 128], strides = [1, 1]} : vector<27x128xf32> to vector<22x128xf32>
    %cst_45 = arith.constant 0.00202896656 : f32
    %165 = vector.broadcast %cst_45 : f32 to vector<22x128xf32>
    %166 = arith.mulf %165, %164 : vector<22x128xf32>
    %167 = arith.addf %163, %166 : vector<22x128xf32>
    %c3_i32_46 = arith.constant 3 : i32
    %168 = arith.subi %0, %c3_i32_46 : i32
    %169 = tpu.iota {dimensions = array<i32: 0>} : vector<22x1xi32>
    %170 = vector.broadcast %168 : i32 to vector<22x1xi32>
    %171 = arith.addi %170, %169 : vector<22x1xi32>
    %c0_i32_47 = arith.constant 0 : i32
    %172 = vector.broadcast %c0_i32_47 : i32 to vector<22x1xi32>
    %173 = arith.cmpi sge, %171, %172 : vector<22x1xi32>
    %c64_i32 = arith.constant 64 : i32
    %174 = vector.broadcast %c64_i32 : i32 to vector<22x1xi32>
    %175 = arith.cmpi slt, %171, %174 : vector<22x1xi32>
    %176 = arith.andi %173, %175 : vector<22x1xi1>
    %cst_48 = arith.constant 0.000000e+00 : f32
    %177 = vector.shape_cast %176 : vector<22x1xi1> to vector<22x1xi1>
    %178 = vector.broadcast %177 : vector<22x1xi1> to vector<22x128xi1>
    %179 = vector.broadcast %cst_48 : f32 to vector<22x128xf32>
    %180 = arith.select %178, %167, %179 : vector<22x128xi1>, vector<22x128xf32>
    %181 = vector.extract_strided_slice %180 {offsets = [0, 0], sizes = [16, 128], strides = [1, 1]} : vector<22x128xf32> to vector<16x128xf32>
    %182 = arith.truncf %181 : vector<16x128xf32> to vector<16x128xbf16>
    %c0_49 = arith.constant 0 : index
    %c0_50 = arith.constant 0 : index
    %183 = vector.load %arg11[%c0_49, %c0_50] : memref<16x384xbf16, #tpu.memory_space<vmem>>, vector<16x128xbf16>
    tpu.vector_store %arg11[%c0_49, %c0_50], %182 {strides = array<i32>} : memref<16x384xbf16, #tpu.memory_space<vmem>>, vector<16x128xbf16>,
    %184 = vector.extract_strided_slice %180 {offsets = [3, 0], sizes = [16, 128], strides = [1, 1]} : vector<22x128xf32> to vector<16x128xf32>
    %185 = arith.truncf %184 : vector<16x128xf32> to vector<16x128xbf16>
    %c0_51 = arith.constant 0 : index
    %c128 = arith.constant 128 : index
    %186 = vector.load %arg11[%c0_51, %c128] : memref<16x384xbf16, #tpu.memory_space<vmem>>, vector<16x128xbf16>
    tpu.vector_store %arg11[%c0_51, %c128], %185 {strides = array<i32>} : memref<16x384xbf16, #tpu.memory_space<vmem>>, vector<16x128xbf16>,
    %187 = vector.extract_strided_slice %180 {offsets = [6, 0], sizes = [16, 128], strides = [1, 1]} : vector<22x128xf32> to vector<16x128xf32>
    %188 = arith.truncf %187 : vector<16x128xf32> to vector<16x128xbf16>
    %c0_52 = arith.constant 0 : index
    %c256 = arith.constant 256 : index
    %189 = vector.load %arg11[%c0_52, %c256] : memref<16x384xbf16, #tpu.memory_space<vmem>>, vector<16x128xbf16>
    tpu.vector_store %arg11[%c0_52, %c256], %188 {strides = array<i32>} : memref<16x384xbf16, #tpu.memory_space<vmem>>, vector<16x128xbf16>,
    %c0_53 = arith.constant 0 : index
    %c0_54 = arith.constant 0 : index
    %190 = vector.load %arg11[%c0_53, %c0_54] : memref<16x384xbf16, #tpu.memory_space<vmem>>, vector<16x384xbf16>
    %c0_55 = arith.constant 0 : index
    %c0_56 = arith.constant 0 : index
    %191 = vector.load %arg7[%c0_55, %c0_56] : memref<384x128xbf16, #tpu.memory_space<vmem>>, vector<384x128xbf16>
    %cst_57 = arith.constant dense<0.000000e+00> : vector<16x128xf32>
    %192 = tpu.matmul %190, %191, %cst_57 {dimension_numbers = #tpu.dot_dimension_numbers<[1], [0], [0], [1], [0, 0, 1, 1], [], []>} : vector<16x384xbf16>, vector<384x128xbf16>, vector<16x128xf32> -> vector<16x128xf32>
    %c0_58 = arith.constant 0 : index
    %c0_59 = arith.constant 0 : index
    %193 = vector.load %arg8[%c0_58, %c0_59] : memref<1x128xf32, #tpu.memory_space<vmem>>, vector<1x128xf32>
    %194 = vector.broadcast %193 : vector<1x128xf32> to vector<16x128xf32>
    %195 = arith.addf %192, %194 : vector<16x128xf32>
    %c0_60 = arith.constant 0 : index
    %c0_61 = arith.constant 0 : index
    %c0_62 = arith.constant 0 : index
    %196 = vector.load %arg3[%c0_60, %c0_61, %c0_62] : memref<1x16x128xf32, #tpu.memory_space<vmem>>, vector<1x16x128xf32>
    %197 = vector.shape_cast %196 : vector<1x16x128xf32> to vector<16x128xf32>
    %198 = arith.addf %195, %197 : vector<16x128xf32>
    %c0_63 = arith.constant 0 : index
    %c0_64 = arith.constant 0 : index
    %c0_65 = arith.constant 0 : index
    %199 = vector.load %arg9[%c0_63, %c0_64, %c0_65] : memref<1x16x128xf32, #tpu.memory_space<vmem>>, vector<1x16x128xf32>
    %200 = vector.shape_cast %199 : vector<1x16x128xf32> to vector<16x128xf32>
    %201 = vector.shape_cast %198 : vector<16x128xf32> to vector<1x16x128xf32>
    tpu.vector_store %arg9[%c0_63, %c0_64, %c0_65], %201 {strides = array<i32>} : memref<1x16x128xf32, #tpu.memory_space<vmem>>, vector<1x16x128xf32>,
    return
  }
  func.func @transform_0(%arg0: i32, %arg1: i32) -> (i32, i32, i32) {
    %c1_i32 = arith.constant 1 : i32
    %0 = arith.muli %arg1, %c1_i32 : i32
    %c1_i32_0 = arith.constant 1 : i32
    %1 = arith.subi %0, %c1_i32_0 : i32
    %c0_i32 = arith.constant 0 : i32
    %2 = arith.maxsi %1, %c0_i32 : i32
    %c0_i32_1 = arith.constant 0 : i32
    %c0_i32_2 = arith.constant 0 : i32
    return %arg0, %2, %c0_i32_1 : i32, i32, i32
  }
  func.func @transform_1(%arg0: i32, %arg1: i32) -> (i32, i32, i32) {
    %c0_i32 = arith.constant 0 : i32
    %c0_i32_0 = arith.constant 0 : i32
    return %arg0, %arg1, %c0_i32 : i32, i32, i32
  }
  func.func @transform_2(%arg0: i32, %arg1: i32) -> (i32, i32, i32) {
    %c1_i32 = arith.constant 1 : i32
    %0 = arith.addi %arg1, %c1_i32 : i32
    %c1_i32_0 = arith.constant 1 : i32
    %1 = arith.muli %0, %c1_i32_0 : i32
    %c3_i32 = arith.constant 3 : i32
    %2 = arith.minsi %1, %c3_i32 : i32
    %c0_i32 = arith.constant 0 : i32
    %c0_i32_1 = arith.constant 0 : i32
    return %arg0, %2, %c0_i32 : i32, i32, i32
  }
  func.func @transform_3(%arg0: i32, %arg1: i32) -> (i32, i32) {
    %c0_i32 = arith.constant 0 : i32
    %c0_i32_0 = arith.constant 0 : i32
    %c0_i32_1 = arith.constant 0 : i32
    return %c0_i32, %c0_i32_0 : i32, i32
  }
  func.func @transform_4(%arg0: i32, %arg1: i32) -> (i32, i32) {
    %c0_i32 = arith.constant 0 : i32
    %c0_i32_0 = arith.constant 0 : i32
    %c0_i32_1 = arith.constant 0 : i32
    return %c0_i32, %c0_i32_0 : i32, i32
  }
  func.func @transform_5(%arg0: i32, %arg1: i32) -> (i32, i32) {
    %c0_i32 = arith.constant 0 : i32
    %c0_i32_0 = arith.constant 0 : i32
    %c0_i32_1 = arith.constant 0 : i32
    return %c0_i32, %c0_i32_0 : i32, i32
  }
  func.func @transform_6(%arg0: i32, %arg1: i32) -> (i32, i32) {
    %c0_i32 = arith.constant 0 : i32
    %c0_i32_0 = arith.constant 0 : i32
    %c0_i32_1 = arith.constant 0 : i32
    return %c0_i32, %c0_i32_0 : i32, i32
  }
  func.func @transform_7(%arg0: i32, %arg1: i32) -> (i32, i32, i32) {
    %c0_i32 = arith.constant 0 : i32
    %c0_i32_0 = arith.constant 0 : i32
    return %arg0, %arg1, %c0_i32 : i32, i32, i32
  }
}

</mosaic_0001>

<bundles_post_ra>
// kernel: _lambda_.2
= control target key start
LH: loop header
LB: loop body
LE: loop exit
PB: predicated region body
PF: predicated region fallthrough
CT: control target
= control target key end

     0   :  { %s5058_s0 = inlined_call_operand.hbm [shape: f32[2,64,128], index: 0, kind: input, shape index: {}, may-alias: {0,1,2}]   ;;  %s5059_s1 = inlined_call_operand.hbm [shape: f32[2,64,128], index: 1, kind: input, shape index: {}, may-alias: {0,1,2}]   ;;  %s5060_s2 = inlined_call_operand.hbm [shape: f32[2,64,128], index: 2, kind: input, shape index: {}, may-alias: {0,1,2}]   ;;  %s5061_s3 = inlined_call_operand.hbm [shape: f32[1,128], index: 3, kind: input, shape index: {}]   ;;  %s5062_s4 = inlined_call_operand.hbm [shape: f32[1,128], index: 4, kind: input, shape index: {}]   ;;  %s5063_s5 = inlined_call_operand.hbm [shape: bf16[384,128], index: 5, kind: input, shape index: {}]   ;;  %s5064_s6 = inlined_call_operand.hbm [shape: f32[1,128], index: 6, kind: input, shape index: {}]   ;;  %s5065_s7 = inlined_call_operand.hbm [shape: f32[2,64,128], index: 7, kind: output, shape index: {}]  }
   0x1   :  { %5140 = sst [smem:[#allocation49_spill]] %s5059_s1 }
   0x2   :  { %5141 = sst [smem:[#allocation50_spill]] %s5060_s2 }
   0x3   :  { %5142 = sst [smem:[#allocation51_spill]] %s5061_s3 }
   0x4   :  { %5143 = sst [smem:[#allocation52_spill]] %s5062_s4 }
   0x5   :  { %5144 = sst [smem:[#allocation53_spill]] %s5063_s5 }
   0x6   :  { %5145 = sst [smem:[#allocation54_spill]] %s5064_s6 }
   0x7   :  { %5146 = sst [smem:[#allocation55_spill]] %s5065_s7 }
   0x8   :  { %12 = vsyncpa [#allocation5], 0 }
   0x9   :  { %14 = vsyncpa [#allocation5 + $0x1], 0 }
   0xa   :  { %15 = vsyncpa [#allocation8], 0 }
   0xb   :  { %17 = vsyncpa [#allocation8 + $0x1], 0 }
   0xc   :  { %18 = vsyncpa [#allocation11], 0 }
   0xd   :  { %19 = vsyncpa [#allocation14], 0 }
   0xe   :  { %20 = vsyncpa [#allocation6], 0 }
   0xf   :  { %22 = vsyncpa [#allocation6 + $0x1], 0  ;;  %s3276_s24 = smov 0   ;;  %s3278_s25 = smov 0  }
  0x10   :  { %s3280_s26 = smov 0   ;;  %s3282_s27 = smov 0  }
  0x11   :  { %s3284_s28 = smov 0   ;;  %s3286_s29 = smov 0  }
  0x12   :  { %s3288_s30 = smov 0   ;;  %s3290_s8 = smov 0  }
  0x13   :  { %s3292_s9 = smov 0   ;;  %s3294_s10 = smov 0  }
  0x14   :  { %s3296_s11 = smov 0   ;;  %s3298_s12 = smov 0  }
  0x15   :  { %s3300_s13 = smov 0   ;;  %s3302_s14 = smov 0  }
  0x16 LB: > { %5147 = sst [smem:[#allocation23_spill]] %s3160_s24  ;;  %s3347_s15 = sadd.s32 4294967295, %s3212_s14   ;;  %s3212_s14 = sphi %s3302_s14, %s28_s14   ;;  %s3208_s13 = sphi %s3300_s13, %s5323_s13   ;;  %s3204_s12 = sphi %s3298_s12, %s5313_s12   ;;  %s3200_s11 = sphi %s3296_s11, %s5312_s11   ;;  %s3196_s10 = sphi %s3294_s10, %s5311_s10   ;;  %s3192_s9 = sphi %s3292_s9, %s5322_s9   ;;  %s3188_s8 = sphi %s3290_s8, %s5321_s8   ;;  %s3184_s30 = sphi %s3288_s30, %s5320_s30   ;;  %s3180_s29 = sphi %s3286_s29, %s5319_s29   ;;  %s3176_s28 = sphi %s3284_s28, %s5318_s28   ;;  %s3172_s27 = sphi %s3282_s27, %s5309_s27   ;;  %s3168_s26 = sphi %s3280_s26, %s5317_s26   ;;  %s3164_s25 = sphi %s3278_s25, %s5316_s25   ;;  %s3160_s24 = sphi %s3276_s24, %s5315_s24  }
  0x17   : > { %5148 = sst [smem:[#allocation24_spill]] %s3172_s27  ;;  %p2410_p0 = scmp.ge.s32.totalorder %s3212_s14, 1 }
  0x18   : > { %5149 = sst [smem:[#allocation25_spill]] %s3176_s28  ;;  %p5070_p1 = scmp.eq.s32.totalorder %s3347_s15, 0 }
  0x19   : > { %5150 = sst [smem:[#allocation26_spill]] %s3196_s10  ;;  %p257_p2 = scmp.lt.s32.totalorder %s3212_s14, 9 }
  0x1a   : > { %5151 = sst [smem:[#allocation27_spill]] %s3200_s11  ;;  %s3214_s17 = smov [#allocation10]  }
  0x1b   : > { %5152 = sst [smem:[#allocation28_spill]] %s3204_s12  ;;  %p3352_p3 = pnand %p2410_p0, %p257_p2 }
  0x1c   : > { %5153 = sst [smem:[#allocation29_spill]] %s3208_s13  ;;  %s270_s18 = sshll.u32 %s3214_s17, 4  ;;  %s271_s18 = int_to_ptr.vmem [resolvable:$true] %s270_s18 }
  0x1d   : > { %s5154_s16 = scalar_select %p3352_p3, 1, 0 }
  0x1e   : > { %p2625_p4 = pneg %p3352_p3  ;;  %s3215_s19 = smov [#allocation13]  }
  0x1f   : > { %5155 = sst [smem:[#allocation30_spill]] %s5154_s16  ;;  %s291_s20 = sshll.u32 %s3215_s19, 4  ;;  %s3364_s20 = int_to_ptr.vmem [resolvable:$true] %s291_s20 }
  0x20   : > { %p3360_p5 = pnand %p2625_p4, %p5070_p1  ;;  %s5157_s3 = sld [smem:[#allocation51_spill]] }
  0x22   : > { %s5156_s21 = scalar_select %p3360_p5, 1, 0 }
  0x23   : > { %p3374_p7 = pneg %p3360_p5 }
  0x26   : > { %s2848_s7 = scalar_lea.hbm %s5157_s3, 16 }
  0x27   : > { %p2849_p6 = scmp.ne.s32.totalorder %s5157_s3, %s2848_s7  ;;  %p2855_p10 = scmp.lt.u32.totalorder %s2848_s7, %s5157_s3 }
  0x29   : > { %p2851_p8 = pnand %p3374_p7, %p2849_p6 }
  0x2b   : > { %p2852_p9 = pneg %p2851_p8 }
  0x2d   : > { %p2857_p11 = pnand %p2855_p10, %p2852_p9 }
  0x2f   : > { %2860 = shalt.err (!%p2857_p11)
}
  0x30   : > { %s2861_s22 = scalar_lea.vmem %s271_s18, 16  ;;  %s2868_s10 = scalar_lea.vmem %s271_s18, 32 }
  0x31   : > { %p2862_p12 = scmp.ne.s32.totalorder %s271_s18, %s2861_s22  ;;  %p2869_p2 = scmp.lt.s32.totalorder %s271_s18, %s271_s18 }
  0x32   : > { %p2870_p4 = scmp.lt.s32.totalorder %s2868_s10, %s2861_s22 }
  0x33   : > { %p2864_p13 = pnand %p2862_p12, %p3374_p7 }
  0x34   : > { %p2871_p1 = por %p2870_p4, %p2869_p2 }
  0x35   : > { %p2865_p0 = pneg %p2864_p13 }
  0x37   : > { %p2872_p3 = pnand %p2871_p1, %p2865_p0 }
  0x39   : > { %2875 = shalt.err (!%p2872_p3)
}
  0x3a   : > { %2628 = dma.hbm_to_vmem [thread:$0]  (!%p3360_p5), %s5157_s3, 16, %s271_s18, [#allocation11]  }
  0x3b   : > { %s5159_s5 = sld [smem:[#allocation53_spill]] }
  0x41   : > { %s2876_s19 = scalar_lea.hbm %s5159_s5, 3072 }
  0x42   : > { %p2877_p6 = scmp.ne.s32.totalorder %s5159_s5, %s2876_s19  ;;  %p2883_p1 = scmp.lt.u32.totalorder %s2876_s19, %s5159_s5 }
  0x44   : > { %p2879_p8 = pnand %p2877_p6, %p3374_p7 }
  0x46   : > { %p2880_p9 = pneg %p2879_p8 }
  0x48   : > { %p2885_p3 = pnand %p2883_p1, %p2880_p9 }
  0x4a   : > { %2888 = shalt.err (!%p2885_p3)
}
  0x4b   : > { %s2889_s18 = scalar_lea.vmem %s3364_s20, 3072  ;;  %p2897_p13 = scmp.lt.s32.totalorder %s3364_s20, %s3364_s20 }
  0x4c   : > { %p2890_p10 = scmp.ne.s32.totalorder %s3364_s20, %s2889_s18  ;;  %p2898_p0 = scmp.lt.s32.totalorder %s2889_s18, %s2889_s18 }
  0x4e   : > { %p2892_p11 = pnand %p2890_p10, %p3374_p7  ;;  %p2899_p2 = por %p2898_p0, %p2897_p13 }
  0x50   : > { %p2893_p12 = pneg %p2892_p11 }
  0x52   : > { %p2900_p4 = pnand %p2899_p2, %p2893_p12 }
  0x54   : > { %2903 = shalt.err (!%p2900_p4)
}
  0x55   : > { %s3216_s2 = smov 64   ;;  %s3217_s24 = smov 4  }
  0x56   : > { %2634 = dma.hbm_to_vmem [thread:$0]  (!%p3360_p5), %s5159_s5, 3072, %s3364_s20, [#allocation14], %s3216_s2, %s3216_s2, %s3217_s24  }
  0x57   : > { %s2403_s7 = sadd.s32 4294967294, %s3212_s14   ;;  %s3415_s16 = sshll.u32 %s3204_s12, 1 }
  0x58   : > { %p5082_p6 = scmp.eq.s32.totalorder %s3212_s14, 0  ;;  %p92_p8 = scmp.ne.s32.totalorder %s3180_s29, %s3176_s28 }
  0x59   : > { %p98_p9 = scmp.ne.s32.totalorder %s3176_s28, %s3172_s27  ;;  %p244_p1 = scmp.eq.s32.totalorder %s3347_s15, 7 }
  0x5a   : > { %p250_p3 = scmp.eq.s32.totalorder %s2403_s7, 7  ;;  %p3426_p10 = por %p92_p8, %p5082_p6 }
  0x5b   : > { %p5161_p11 = scmp.eq.s32.totalorder %s3347_s15, 0  ;;  %p3436_p13 = por %p244_p1, %p92_p8 }
  0x5c   : > { %p3440_p0 = por %p250_p3, %p98_p9  ;;  %p5081_p2 = scmp.lt.s32.totalorder %s3212_s14, 8 }
  0x5d   : > { %p3432_p12 = por %p98_p9, %p5161_p11  ;;  %s3446_s2 = sshll.u32 %s3208_s13, 3 }
  0x5e   : > { %s5164_s10 = scalar_select %p3436_p13, 1, 0 }
  0x5f   : > { %s5162_s20 = scalar_select %p3432_p12, 1, 0 }
  0x60   : > { %5165 = sst [smem:[#allocation32_spill]] %s5164_s10  ;;  %s340_s24 = sand.u32 1, %s3212_s14  }
  0x61   : > { %5163 = sst [smem:[#allocation31_spill]] %s5162_s20  ;;  %s342_s11 = sand.u32 1, %s3180_s29  }
  0x62   : > { %s5166_s18 = scalar_select %p3440_p0, 1, 0 }
  0x63   : > { %s2421_s23 = sshll.u32 %s342_s11, 4  ;;  %s350_s7 = sadd.s32 %s3446_s2, %s3415_s16 }
  0x64   : > { %5167 = sst [smem:[#allocation33_spill]] %s5166_s18  ;;  %s2424_s19 = sshll.u32 %s350_s7, 7 }
  0x65   : > { %s344_s3 = scalar_lea.vmem [#allocation7], %s2421_s23  ;;  %s5168_s1 = sld [smem:[#allocation49_spill]] }
  0x66   : > { %s353_s5 = sshll.u32 %s344_s3, 4  ;;  %p3463_p4 = pnand %p5081_p2, %p3426_p10  ;;  %s3457_s5 = int_to_ptr.vmem [resolvable:$true] %s353_s5 }
  0x67   : > { %s3218_s3 = smov [#allocation12]   ;;  %s3469_s27 = scalar_lea.sflag [#allocation8], %s340_s24 }
  0x68   : > { %s3467_s11 = sshll.u32 %s3218_s3, 4  ;;  %p2906_p9 = pneg %p3463_p4  ;;  %s282_s11 = int_to_ptr.vmem [resolvable:$true] %s3467_s11 }
  0x6b   : > { %s3455_s28 = scalar_lea.hbm %s5168_s1, %s2424_s19  ;;  %s2909_s23 = scalar_lea.hbm %s5168_s1, 2048 }
  0x6c   : > { %s2904_s19 = scalar_lea.hbm %s3455_s28, 256  ;;  %p2910_p10 = scmp.lt.u32.totalorder %s3455_s28, %s5168_s1 }
  0x6d   : > { %p2905_p8 = scmp.ne.s32.totalorder %s3455_s28, %s2904_s19  ;;  %p2911_p11 = scmp.lt.u32.totalorder %s2909_s23, %s2904_s19 }
  0x6e   : > { %p2913_p6 = scmp.lt.u32.totalorder %s2904_s19, %s3455_s28 }
  0x6f   : > { %p2907_p1 = pnand %p2906_p9, %p2905_p8  ;;  %p2912_p2 = por %p2911_p11, %p2910_p10 }
  0x71   : > { %p2908_p3 = pneg %p2907_p1  ;;  %p2914_p0 = por %p2913_p6, %p2912_p2 }
  0x73   : > { %p2915_p13 = pnand %p2914_p0, %p2908_p3 }
  0x75   : > { %2918 = shalt.err (!%p2915_p13)
}
  0x76   : > { %s2919_s24 = scalar_lea.vmem %s3457_s5, 256  ;;  %s3219_s3 = smov [#allocation7]  }
  0x77   : > { %p2920_p8 = scmp.ne.s32.totalorder %s3457_s5, %s2919_s24  ;;  %s2924_s22 = sshll.u32 %s3219_s3, 4  ;;  %s2925_s22 = int_to_ptr.vmem [resolvable:$false] %s2924_s22 }
  0x78   : > { %s2926_s10 = scalar_lea.vmem %s2925_s22, 512  ;;  %p2927_p5 = scmp.lt.s32.totalorder %s3457_s5, %s2925_s22 }
  0x79   : > { %p2922_p1 = pnand %p2920_p8, %p2906_p9  ;;  %p2928_p10 = scmp.lt.s32.totalorder %s2926_s10, %s2919_s24 }
  0x7b   : > { %p2923_p12 = pneg %p2922_p1  ;;  %p2929_p11 = por %p2928_p10, %p2927_p5 }
  0x7d   : > { %p2930_p6 = pnand %p2929_p11, %p2923_p12 }
  0x7f   : > { %2933 = shalt.err (!%p2930_p6)
}
  0x80   : > { %s3220_s19 = smov 128   ;;  %s3221_s20 = smov 8  }
  0x81   : > { %2644 = dma.hbm_to_vmem [thread:$0]  (!%p3463_p4), %s3455_s28, 256, %s3457_s5, %s3469_s27, %s3220_s19, %s3220_s19, %s3221_s20  }
  0x82   : > { %s5170_s4 = sld [smem:[#allocation52_spill]] }
  0x88   : > { %s2934_s3 = scalar_lea.hbm %s5170_s4, 16 }
  0x89   : > { %p2935_p5 = scmp.ne.s32.totalorder %s5170_s4, %s2934_s3  ;;  %p2941_p0 = scmp.lt.u32.totalorder %s2934_s3, %s5170_s4 }
  0x8b   : > { %p2937_p12 = pnand %p2935_p5, %p3374_p7 }
  0x8d   : > { %p2938_p13 = pneg %p2937_p12 }
  0x8f   : > { %p2943_p2 = pnand %p2941_p0, %p2938_p13 }
  0x91   : > { %2946 = shalt.err (!%p2943_p2)
}
  0x92   : > { %s2947_s18 = scalar_lea.vmem %s282_s11, 16  ;;  %s2954_s5 = scalar_lea.vmem %s282_s11, 32 }
  0x93   : > { %p2948_p4 = scmp.ne.s32.totalorder %s282_s11, %s2947_s18  ;;  %p2955_p8 = scmp.lt.s32.totalorder %s282_s11, %s282_s11 }
  0x94   : > { %p2956_p1 = scmp.lt.s32.totalorder %s2954_s5, %s2947_s18 }
  0x95   : > { %p2950_p9 = pnand %p2948_p4, %p3374_p7 }
  0x96   : > { %p2957_p10 = por %p2956_p1, %p2955_p8 }
  0x97   : > { %p2951_p3 = pneg %p2950_p9 }
  0x99   : > { %p2958_p11 = pnand %p2957_p10, %p2951_p3 }
  0x9b   : > { %2961 = shalt.err (!%p2958_p11)
}
  0x9c   : > { %p5171_p6 = scmp.ne.s32.totalorder %s5156_s21, 0  ;;  %s3222_s1 = smov [#allocation15]  }
  0x9d   : > { %s305_s20 = sshll.u32 %s3222_s1, 4  ;;  %s5172_s6 = sld [smem:[#allocation54_spill]]  ;;  %s306_s20 = int_to_ptr.vmem [resolvable:$true] %s305_s20 }
  0x9e   : > { %2631 = dma.hbm_to_vmem [thread:$0]  (!%p5171_p6), %s5170_s4, 16, %s282_s11, [#allocation11]  }
  0xa3   : > { %s2962_s3 = scalar_lea.hbm %s5172_s6, 16 }
  0xa4   : > { %p2963_p5 = scmp.ne.s32.totalorder %s5172_s6, %s2962_s3  ;;  %p2969_p0 = scmp.lt.u32.totalorder %s2962_s3, %s5172_s6 }
  0xa6   : > { %p2965_p12 = pnand %p2963_p5, %p3374_p7 }
  0xa8   : > { %p2966_p13 = pneg %p2965_p12 }
  0xaa   : > { %p2971_p2 = pnand %p2969_p0, %p2966_p13 }
  0xac   : > { %2974 = shalt.err (!%p2971_p2)
}
  0xad   : > { %s2975_s11 = scalar_lea.vmem %s306_s20, 16  ;;  %s2982_s5 = scalar_lea.vmem %s306_s20, 32 }
  0xae   : > { %p2976_p4 = scmp.ne.s32.totalorder %s306_s20, %s2975_s11  ;;  %p2983_p8 = scmp.lt.s32.totalorder %s306_s20, %s306_s20 }
  0xaf   : > { %p2984_p1 = scmp.lt.s32.totalorder %s2982_s5, %s2975_s11 }
  0xb0   : > { %p2978_p9 = pnand %p2976_p4, %p3374_p7 }
  0xb1   : > { %p2985_p10 = por %p2984_p1, %p2983_p8 }
  0xb2   : > { %p2979_p3 = pneg %p2978_p9 }
  0xb4   : > { %p2986_p11 = pnand %p2985_p10, %p2979_p3 }
  0xb6   : > { %2989 = shalt.err (!%p2986_p11)
}
  0xb7   : > { %2637 = dma.hbm_to_vmem [thread:$0]  (!%p5171_p6), %s5172_s6, 16, %s306_s20, [#allocation14]  }
  0xb8   : > { %s37_s17 = sadd.s32 1, %s3204_s12  ;;  %s40_s1 = sadd.s32 1, %s3208_s13 }
  0xb9   : > { %p38_p7 = scmp.ge.s32.totalorder %s37_s17, 4  ;;  %s2405_s23 = sadd.s32 4294967295, %s3415_s16 }
  0xba   : > { %p46_p5 = scmp.gt.s32.totalorder %s2405_s23, 0  ;;  %s57_s21 = sadd.s32 1, %s3192_s9 }
  0xbb   : > { %s5325_s17 = smov (%p38_p7, %s37_s17), 0  ;;  %s5327_s1 = smov (!%p38_p7, %s40_s1), %s3208_s13 }
  0xbc   : > { %5173 = sst [smem:[#allocation34_spill]] %s5325_s17  ;;  %s5329_s23 = smov (!%p46_p5, %s2405_s23), 0 }
  0xbd   : > { %p42_p12 = scmp.ge.s32.totalorder %s5327_s1, 2  ;;  %s2406_s20 = sshll.u32 %s5325_s17, 1 }
  0xbe   : > { %s2407_s7 = sadd.s32 4294967295, %s2406_s20  ;;  %p64_p6 = scmp.ne.s32.totalorder %s3192_s9, %s3188_s8 }
  0xbf   : > { %s5331_s1 = smov (%p42_p12, %s5327_s1), 0  ;;  %p50_p13 = scmp.gt.s32.totalorder %s2407_s7, 0 }
  0xc0   : > { %5174 = sst [smem:[#allocation35_spill]] %s5331_s1  ;;  %p5175_p0 = scmp.eq.s32.totalorder %s3212_s14, 0 }
  0xc1   : > { %s3554_s22 = ssub.s32 %s3208_s13, %s5331_s1  ;;  %p70_p4 = scmp.ne.s32.totalorder %s3188_s8, %s3184_s30 }
  0xc2   : > { %p3548_p2 = por %p5175_p0, %p64_p6  ;;  %s5333_s7 = smov (!%p50_p13, %s2407_s7), 0 }
  0xc3   : > { %p5177_p9 = scmp.eq.s32.totalorder %s3347_s15, 0  ;;  %s81_s10 = ssub.s32 %s3204_s12, %s5325_s17 }
  0xc4   : > { %s53_s18 = ssub.s32 %s5329_s23, %s5333_s7  ;;  %s82_s11 = sor.u32 %s81_s10, %s3554_s22 }
  0xc5   : > { %p3560_p3 = por %p5177_p9, %p70_p4  ;;  %s54_s5 = sor.u32 %s53_s18, %s3554_s22 }
  0xc6   : > { %p83_p8 = scmp.eq.s32.totalorder %s82_s11, 0  ;;  %p55_p1 = scmp.eq.s32.totalorder %s54_s5, 0 }
  0xc7   : > { %s5178_s24 = scalar_select %p3560_p3, 1, 0 }
  0xc8   : > { %s3568_s28 = sadd.s32 2, %s2406_s20  ;;  %s5180_s19 = sadd.s32 1, %s3180_s29 }
  0xc9   : > { %5179 = sst [smem:[#allocation36_spill]] %s5178_s24  ;;  %s316_s6 = sand.u32 1, %s3192_s9  }
  0xca   : > { %s3573_s4 = scalar_select %p83_p8, %s3180_s29, %s5180_s19  }
  0xcb   : > { %s3576_s30 = scalar_select %p55_p1, %s3192_s9, %s57_s21  }
  0xcc   : > { %s2416_s1 = sshll.u32 %s316_s6, 3  ;;  %s329_s13 = sadd.s32 %s3446_s2, %s5329_s23 }
  0xcd   : > { %s2420_s17 = sshll.u32 %s329_s13, 7  ;;  %s320_s7 = scalar_lea.vmem [#allocation4], %s2416_s1 }
  0xce   : > { %s333_s10 = sshll.u32 %s320_s7, 4  ;;  %s3584_s18 = scalar_lea.hbm %s5058_s0, %s2420_s17  ;;  %s3586_s10 = int_to_ptr.vmem [resolvable:$true] %s333_s10 }
  0xcf   : > { %p5181_p11 = scmp.lt.s32.totalorder %s3212_s14, 8  ;;  %s317_s13 = scalar_lea.sflag [#allocation5], %s316_s6 }
  0xd0   : > { %s2990_s1 = scalar_lea.hbm %s3584_s18, 128  ;;  %s2995_s23 = scalar_lea.hbm %s5058_s0, 2048 }
  0xd1   : > { %p3592_p7 = pnand %p5181_p11, %p3548_p2  ;;  %p2991_p5 = scmp.ne.s32.totalorder %s3584_s18, %s2990_s1 }
  0xd2   : > { %p2996_p0 = scmp.lt.u32.totalorder %s3584_s18, %s5058_s0  ;;  %p2997_p2 = scmp.lt.u32.totalorder %s2995_s23, %s2990_s1 }
  0xd3   : > { %p2992_p12 = pneg %p3592_p7  ;;  %p2999_p9 = scmp.lt.u32.totalorder %s2990_s1, %s3584_s18 }
  0xd4   : > { %p2998_p4 = por %p2997_p2, %p2996_p0 }
  0xd5   : > { %p2993_p6 = pnand %p2992_p12, %p2991_p5 }
  0xd6   : > { %p3000_p8 = por %p2999_p9, %p2998_p4 }
  0xd7   : > { %p2994_p13 = pneg %p2993_p6 }
  0xd9   : > { %p3001_p1 = pnand %p3000_p8, %p2994_p13 }
  0xdb   : > { %3004 = shalt.err (!%p3001_p1)
}
  0xdc   : > { %s3005_s6 = scalar_lea.vmem %s3586_s10, 128  ;;  %s3223_s24 = smov [#allocation4]  }
  0xdd   : > { %p3006_p11 = scmp.ne.s32.totalorder %s3586_s10, %s3005_s6  ;;  %s3010_s11 = sshll.u32 %s3223_s24, 4  ;;  %s3011_s11 = int_to_ptr.vmem [resolvable:$false] %s3010_s11 }
  0xde   : > { %s3012_s5 = scalar_lea.vmem %s3011_s11, 256  ;;  %p3013_p10 = scmp.lt.s32.totalorder %s3586_s10, %s3011_s11 }
  0xdf   : > { %p3008_p5 = pnand %p3006_p11, %p2992_p12  ;;  %p3014_p0 = scmp.lt.s32.totalorder %s3012_s5, %s3005_s6 }
  0xe1   : > { %p3009_p6 = pneg %p3008_p5  ;;  %p3015_p2 = por %p3014_p0, %p3013_p10 }
  0xe3   : > { %p3016_p4 = pnand %p3015_p2, %p3009_p6 }
  0xe5   : > { %3019 = shalt.err (!%p3016_p4)
}
  0xe6   : > { %s5183_s19 = sld [smem:[#allocation23_spill]]  ;;  %s2510_s7 = sadd.s32 2, %s3415_s16 }
  0xe7   : > { %2641 = dma.hbm_to_vmem [thread:$0]  (!%p3592_p7), %s3584_s18, 128, %s3586_s10, %s317_s13  }
  0xe8   : > { %s121_s1 = sadd.s32 1, %s3168_s26  ;;  %p110_p10 = scmp.lt.s32.totalorder %s2510_s7, 7 }
  0xe9   : > { %p128_p12 = scmp.ne.s32.totalorder %s3168_s26, %s3164_s25  ;;  %p5184_p13 = scmp.lt.s32.totalorder %s3568_s28, 7 }
  0xea   : > { %s5337_s7 = smov (!%p110_p10, %s2510_s7), 7  ;;  %p5185_p9 = scmp.eq.s32.totalorder %s3212_s14, 0 }
  0xeb   : > { %s5335_s28 = smov (!%p5184_p13, %s3568_s28), 7  ;;  %s365_s17 = sand.u32 1, %s3168_s26  }
  0xec   : > { %p3630_p8 = por %p128_p12, %p5185_p9  ;;  %p134_p1 = scmp.ne.s32.totalorder %s3164_s25, %s5183_s19 }
  0xed   : > { %s117_s12 = ssub.s32 %s5337_s7, %s5335_s28  ;;  %p5187_p7 = scmp.eq.s32.totalorder %s3347_s15, 0 }
  0xee   : > { %s118_s23 = sor.u32 %s117_s12, %s3554_s22  ;;  %s2425_s10 = sshll.u32 %s365_s17, 3 }
  0xef   : > { %p3640_p11 = por %p134_p1, %p5187_p7  ;;  %p119_p5 = scmp.eq.s32.totalorder %s118_s23, 0 }
  0xf0   : > { %s376_s18 = sadd.s32 %s3446_s2, %s5337_s7  ;;  %s367_s3 = scalar_lea.vmem [#allocation9], %s2425_s10 }
  0xf1   : > { %s5188_s16 = scalar_select %p3640_p11, 1, 0 }
  0xf2   : > { %s3646_s13 = scalar_select %p119_p5, %s3168_s26, %s121_s1  }
  0xf3   : > { %s2428_s20 = sshll.u32 %s376_s18, 7  ;;  %s380_s6 = sshll.u32 %s367_s3, 4  ;;  %s3653_s6 = int_to_ptr.vmem [resolvable:$true] %s380_s6 }
  0xf4   : > { %s5189_s5 = sld [smem:[#allocation50_spill]]  ;;  %p5190_p6 = scmp.lt.s32.totalorder %s3212_s14, 8 }
  0xf6   : > { %p3659_p0 = pnand %p5190_p6, %p3630_p8 }
  0xf8   : > { %p3022_p4 = pneg %p3659_p0 }
  0xfa   : > { %s3651_s19 = scalar_lea.hbm %s5189_s5, %s2428_s20  ;;  %s3025_s1 = scalar_lea.hbm %s5189_s5, 2048 }
  0xfb   : > { %s3020_s22 = scalar_lea.hbm %s3651_s19, 128  ;;  %p3026_p13 = scmp.lt.u32.totalorder %s3651_s19, %s5189_s5 }
  0xfc   : > { %p3021_p2 = scmp.ne.s32.totalorder %s3651_s19, %s3020_s22  ;;  %p3027_p9 = scmp.lt.u32.totalorder %s3025_s1, %s3020_s22 }
  0xfd   : > { %p3029_p1 = scmp.lt.u32.totalorder %s3020_s22, %s3651_s19 }
  0xfe   : > { %p3023_p10 = pnand %p3022_p4, %p3021_p2  ;;  %p3028_p8 = por %p3027_p9, %p3026_p13 }
 0x100   : > { %p3024_p12 = pneg %p3023_p10  ;;  %p3030_p7 = por %p3029_p1, %p3028_p8 }
 0x102   : > { %p3031_p5 = pnand %p3030_p7, %p3024_p12 }
 0x104   : > { %3034 = shalt.err (!%p3031_p5)
}
 0x105   : > { %s3035_s17 = scalar_lea.vmem %s3653_s6, 128  ;;  %s3224_s23 = smov [#allocation9]  }
 0x106   : > { %p3036_p6 = scmp.ne.s32.totalorder %s3653_s6, %s3035_s17  ;;  %s3040_s10 = sshll.u32 %s3224_s23, 4  ;;  %s3041_s10 = int_to_ptr.vmem [resolvable:$false] %s3040_s10 }
 0x107   : > { %s3042_s18 = scalar_lea.vmem %s3041_s10, 256  ;;  %p3043_p11 = scmp.lt.s32.totalorder %s3653_s6, %s3041_s10 }
 0x108   : > { %p3038_p2 = pnand %p3036_p6, %p3022_p4  ;;  %p3044_p13 = scmp.lt.s32.totalorder %s3042_s18, %s3035_s17 }
 0x10a   : > { %p3039_p10 = pneg %p3038_p2  ;;  %p3045_p9 = por %p3044_p13, %p3043_p11 }
 0x10c   : > { %p3046_p8 = pnand %p3045_p9, %p3039_p10 }
 0x10e   : > { %3049 = shalt.err (!%p3046_p8)
}
 0x10f   : > { %2647 = dma.hbm_to_vmem [thread:$0]  (!%p3659_p0), %s3651_s19, 128, %s3653_s6, %s3469_s27  }
 0x110   : > { %s5192_s20 = sld [smem:[#allocation30_spill]] }
 0x116   : > { %p5193_p12 = scmp.ne.s32.totalorder %s5192_s20, 0 }
 0x118   : > { %389 = sbr.rel (%p5193_p12) target bundleno = 898 (0x382), region = 48 }
 0x11f   : > { %s391_s24 = sand.u32 1, %s3188_s8  }
 0x120   : > { %s2430_s11 = sshll.u32 %s391_s24, 3  ;;  %s392_s22 = scalar_lea.sflag [#allocation5], %s391_s24 }
 0x121   : > { %s395_s28 = scalar_lea.vmem [#allocation4], %s2430_s11 }
 0x122   : > { %3135 = dma.done.wait (%p3560_p3), %s392_s22, 128  }
 0x123   : > { %3137 = vsyncadd (%p3560_p3), %s392_s22, 4294967168  ;;  %s5195_s2 = sld [smem:[#allocation25_spill]]  ;;  %s5196_s7 = sld [smem:[#allocation31_spill]] }
 0x124   : > { %s400_s1 = sand.u32 1, %s3347_s15  }
 0x125   : > { %s401_s19 = scalar_lea.sflag [#allocation8], %s400_s1 }
 0x129   : > { %s402_s27 = sand.u32 1, %s5195_s2   ;;  %p5197_p11 = scmp.ne.s32.totalorder %s5196_s7, 0 }
 0x12a   : > { %s2431_s6 = sshll.u32 %s402_s27, 4 }
 0x12b   : > { %s3700_s21 = scalar_lea.vmem [#allocation7], %s2431_s6 }
 0x12c   : > { %3139 = dma.done.wait (%p5197_p11), %s401_s19, 256  }
 0x12d   : > { %3141 = vsyncadd (%p5197_p11), %s401_s19, 4294967040  ;;  %s411_s12 = sand.u32 1, %s3164_s25   ;;  %p5198_p3 = scmp.ne.s32.totalorder %s5188_s16, 0 }
 0x12e   : > { %s2432_s17 = sshll.u32 %s411_s12, 3 }
 0x12f   : > { %s413_s23 = scalar_lea.vmem [#allocation9], %s2432_s17 }
 0x130   : > { %3143 = dma.done.wait (%p5198_p3), %s401_s19, 128  }
 0x131   : > { %3145 = vsyncadd (%p5198_p3), %s401_s19, 4294967168  ;;  %p5199_p0 = scmp.eq.s32.totalorder %s3347_s15, 0 }
 0x133   : > { %3147 = dma.done.wait (%p5199_p0), [#allocation11], 32   ;;  %p5200_p4 = pmov %p5199_p0 }
 0x134   : > { %p5201_p1 = pmov %p5199_p0 }
 0x135   : > { %3149 = vsyncadd (%p5200_p4), [#allocation11], 4294967264 }
 0x136   : > { %3151 = dma.done.wait (%p5201_p1), [#allocation14], 3088   ;;  %p5202_p7 = pmov %p5199_p0 }
 0x137   : > { %s5203_s10 = sld [smem:[#allocation26_spill]]  ;;  %v482_v0 = vld [vmem:[%s395_s28 + $0x1] sm:$0x7f]  ;;  %v484_v1 = vld [vmem:[%s3700_s21] sm:$0xff]  ;;  %s3722_s16 = scalar_lea.vmem [#allocation16], %s2431_s6 }
 0x138   : > { %3153 = vsyncadd (%p5202_p7), [#allocation14], 4294964208  ;;  %v485_v2 = vld [vmem:[%s3700_s21 + $0x8] sm:$0xff]  ;;  %483 = vst [vmem:[#allocation2] sm:$0x7f] %v482_v0 }
 0x139   : > { %486 = vst [vmem:[#allocation2 + $0x7] sm:$0xff] %v484_v1  ;;  %487 = vst [vmem:[#allocation2 + $0xf] sm:$0xff] %v485_v2  ;;  %v488_v3 = vld [vmem:[%s413_s23] sm:$0x7f] }
 0x13a   : > { %489 = vst [vmem:[#allocation2 + $0x17] sm:$0x7f] %v488_v3 }
 0x13d   : > { %s2438_s18 = sshll.u32 %s5203_s10, 4  ;;  %p2439_p5 = scmp.ne.s32.totalorder %s5203_s10, 0 }
 0x13e   : > { %v2440_v4 = vld [vmem:[%s3700_s21] ss:$0 sm:$0xff] (!%p2439_p5) }
 0x13f   : > { %493 = sbr.rel (%p2439_p5) target bundleno = 326 (0x146), region = 80  ;;  %499 = vst [vmem:[#allocation2] sm:$0x7f] (!%p2439_p5), %v2440_v4 }
 0x146 PF: > { %s5204_s15 = sld [smem:[#allocation26_spill]] }
 0x14c   : > { %p2441_p6 = scmp.ne.s32.totalorder %s5204_s15, 3 }
 0x14d   : > { %v2442_v5 = vld [vmem:[%s3700_s21 + $0xf] ss:$0 sm:$0xff] (!%p2441_p6) }
 0x14e   : > { %503 = sbr.rel (%p2441_p6) target bundleno = 341 (0x155), region = 84  ;;  %509 = vst [vmem:[#allocation2 + $0x17] sm:$0x7f] (!%p2441_p6), %v2442_v5 }
 0x155 PF: > { %v2792_v6 = vld [vmem:[#allocation13 + $0x40] sm:$0xff]   ;;  %v5094_v8 = vmov 0.0   ;;  %v2795_v10 = vld [vmem:[#allocation13 + $0x48] sm:$0xff]   ;;  %v2798_v13 = vld [vmem:[#allocation13 + $0x50] sm:$0xff]   ;;  %vm538_vm0 = vcmask 1040384   ;;  %vm5139_vm1 = vcmask 1041408  }
 0x156   : > { %v2793_v7 = vld [vmem:[#allocation13] sm:$0xff]   ;;  %2549 = vmatprep.subr.bf16.mxu1 %v5094_v8  ;;  %2518 = vmatprep.subr.bf16.mxu0 %v2792_v6  ;;  %v2796_v11 = vld [vmem:[#allocation13 + $0x8] sm:$0xff]   ;;  %v2799_v14 = vld [vmem:[#allocation13 + $0x10] sm:$0xff]   ;;  %vm5136_vm2 = vcmask 1042432   ;;  %vm5137_vm3 = vcmask 1043456   ;;  %vm5138_vm4 = vcmask 1044480  }
 0x157   : > { %v2794_v9 = vld [vmem:[#allocation13 + $0x80] sm:$0xff]   ;;  %2519 = vmatpush3.bf16.msra.mxu0 %v2793_v7  ;;  %v2797_v12 = vld [vmem:[#allocation13 + $0x88] sm:$0xff]   ;;  %v2800_v15 = vld [vmem:[#allocation13 + $0x90] sm:$0xff]   ;;  %s5270_s20 = sld [smem:[#allocation26_spill]]  ;;  %s2477_s3 = sadd.s32 4294967295, %s2438_s18 }
 0x158   : > { %2550 = vmatpush3.bf16.msra.mxu1 %v2794_v9  ;;  %2520 = vmatprep.subr.bf16.mxu0 %v2795_v10  ;;  %v2801_v16 = vld [vmem:[#allocation13 + $0x58] sm:$0xff]   ;;  %v2804_v19 = vld [vmem:[#allocation13 + $0x60] sm:$0xff]   ;;  %v2807_v22 = vld [vmem:[#allocation13 + $0x68] sm:$0xff]   ;;  %s5300_s24 = sld [smem:[#allocation27_spill]]  ;;  %s5302_s7 = sld [smem:[#allocation32_spill]] }
 0x159   : > { %2551 = vmatprep.subr.bf16.mxu1 %v5094_v8  ;;  %v2802_v17 = vld [vmem:[#allocation13 + $0x18] sm:$0xff]   ;;  %v2805_v20 = vld [vmem:[#allocation13 + $0x20] sm:$0xff]   ;;  %v2808_v23 = vld [vmem:[#allocation13 + $0x28] sm:$0xff]   ;;  %s2227_s6 = sshll.u32 %s3722_s16, 4  ;;  %s5303_s17 = sld [smem:[#allocation55_spill]]  ;;  %s4976_s6 = int_to_ptr.vmem [resolvable:$true] %s2227_s6 }
 0x15a   : > { %v2803_v18 = vld [vmem:[#allocation13 + $0x98] sm:$0xff]   ;;  %v2806_v21 = vld [vmem:[#allocation13 + $0xa0] sm:$0xff]   ;;  %v2809_v24 = vld [vmem:[#allocation13 + $0xa8] sm:$0xff]   ;;  %s4982_s10 = scalar_lea.sflag [#allocation6], %s402_s27  ;;  %s3050_s18 = scalar_lea.vmem %s4976_s6, 256 }
 0x15b   : > { %2521 = vmatpush3.bf16.msra.mxu0 %v2796_v11  ;;  %v2810_v25 = vld [vmem:[#allocation13 + $0x70] sm:$0xff]   ;;  %v2813_v28 = vld [vmem:[#allocation13 + $0x78] sm:$0xff]   ;;  %v511_v31 = vld [vmem:[#allocation2 + $0x8] sm:$0xff]  ;;  %p3051_p2 = scmp.ne.s32.totalorder %s4976_s6, %s3050_s18 }
 0x15c   : > { %2552 = vmatpush3.bf16.msra.mxu1 %v2797_v12  ;;  %2522 = vmatprep.subr.bf16.mxu0 %v2798_v13  ;;  %v2811_v26 = vld [vmem:[#allocation13 + $0x30] sm:$0xff]   ;;  %v2814_v29 = vld [vmem:[#allocation13 + $0x38] sm:$0xff]   ;;  %v3738_v33 = vmul.f32 -0.11531475, %v511_v31  ;;  %v3746_v38 = vmul.f32 0.8864196, %v511_v31 }
 0x15d   : > { %2553 = vmatprep.subr.bf16.mxu1 %v5094_v8  ;;  %v2812_v27 = vld [vmem:[#allocation13 + $0xb0] sm:$0xff]   ;;  %v510_v30 = vld [vmem:[#allocation2] sm:$0xff]  ;;  %v3750_v41 = vmul.f32 0.018778928, %v511_v31  ;;  %v3756_v46 = vmul.f32 0.25714523, %v511_v31 }
 0x15e   : > { %v3736_v32 = vmul.f32 -0.11531475, %v510_v30  ;;  %v3740_v34 = vmul.f32 0.018778928, %v510_v30  ;;  %v3743_v36 = vmul.f32 0.8864196, %v510_v30 }
 0x15f   : > { %2523 = vmatpush3.bf16.msra.mxu0 %v2799_v14  ;;  %v540_v37 = vrot.slane %v3738_v33, 7  ;;  %v587_v43 = vrot.slane %v3746_v38, 6  ;;  %v3754_v44 = vmul.f32 0.25714523, %v510_v30  ;;  %v3760_v49 = vmul.f32 -0.05108693, %v510_v30 }
 0x160   : > { %2554 = vmatpush3.bf16.msra.mxu1 %v2800_v15  ;;  %2524 = vmatprep.subr.bf16.mxu0 %v2801_v16  ;;  %v539_v35 = vrot.slane %v3736_v32, 7  ;;  %v586_v40 = vrot.slane %v3743_v36, 6  ;;  %v626_v51 = vrot.slane %v3756_v46, 5  ;;  %v512_v52 = vld [vmem:[#allocation2 + $0x10] sm:$0xff]  ;;  %v3764_v53 = vmul.f32 -0.05108693, %v511_v31 }
 0x161   : > { %2555 = vmatprep.subr.bf16.mxu1 %v5094_v8  ;;  %v625_v47 = vrot.slane %v3754_v44, 5  ;;  %v656_v55 = vrot.slane %v3760_v49, 4  ;;  %v3769_v59 = vmul.f32 -0.11531475, %v512_v52  ;;  %v3771_v60 = vmul.f32 0.004057933, %v510_v30 }
 0x162   : > { %v550_v39 = vadd.f32 %v539_v35, %v3740_v34  ;;  %v541_v42 = vsel %vm538_vm0, %v539_v35, %v540_v37  ;;  %v588_v50 = vsel %vm5139_vm1, %v586_v40, %v587_v43  ;;  %v657_v58 = vrot.slane %v3764_v53, 4  ;;  %v3783_v6 = vld [vmem:[#allocation10] ss:$0 sm:$0xff]  ;;  %v3794_v14 = vld [vmem:[#allocation2 + $0x18] sm:$0x3f]  ;;  %s2504_s11 = sshll.u32 %s5270_s20, 1 }
 0x163   : > { %2525 = vmatpush3.bf16.msra.mxu0 %v2802_v17  ;;  %v551_v48 = vadd.f32 %v541_v42, %v3750_v41  ;;  %v627_v57 = vsel %vm5136_vm2, %v625_v47, %v626_v51  ;;  %v3773_v61 = vmul.f32 0.004057933, %v511_v31  ;;  %v690_v1 = vrot.slane %v3771_v60, 3  ;;  %s2505_s22 = sshll.u32 %s5300_s24, 3  ;;  %p5304_p10 = scmp.ne.s32.totalorder %s5302_s7, 0 }
 0x164   : > { %2556 = vmatpush3.bf16.msra.mxu1 %v2803_v18  ;;  %2526 = vmatprep.subr.bf16.mxu0 %v2804_v19  ;;  %v597_v45 = vadd.f32 %v586_v40, %v550_v39  ;;  %v658_v0 = vsel %vm5137_vm3, %v656_v55, %v657_v58  ;;  %v542_v3 = vrot.slane %v3769_v59, 7  ;;  %v3779_v4 = vmul.f32 0.8864196, %v512_v52  ;;  %s2224_s28 = sadd.s32 %s2505_s22, %s2504_s11 }
 0x165   : > { %2557 = vmatprep.subr.bf16.mxu1 %v5094_v8  ;;  %v598_v56 = vadd.f32 %v588_v50, %v551_v48  ;;  %v691_v2 = vrot.slane %v3773_v61, 3  ;;  %v3785_v9 = vmul.f32 0.018778928, %v512_v52  ;;  %v3796_v15 = vmul.f32 0.25714523, %v512_v52  ;;  %s2506_s1 = sshll.u32 %s2224_s28, 7  ;;  %p3052_p13 = pnand %p3051_p2, %p5304_p10 }
 0x166   : > { %v636_v54 = vadd.f32 %v625_v47, %v597_v45  ;;  %v543_v11 = vsel %vm538_vm0, %v540_v37, %v542_v3  ;;  %v589_v12 = vrot.slane %v3779_v4, 6  ;;  %v3802_v18 = vmul.f32 -0.11531475, %v3794_v14  ;;  %s4974_s23 = scalar_lea.hbm %s5303_s17, %s2506_s1 }
 0x167   : > { %2527 = vmatpush3.bf16.msra.mxu0 %v2805_v20  ;;  %v637_v63 = vadd.f32 %v627_v57, %v598_v56  ;;  %v692_v10 = vsel %vm5138_vm4, %v690_v1, %v691_v2  ;;  %v552_v19 = vadd.f32 %v543_v11, %v3785_v9  ;;  %v3819_v35 = vmul.f32 0.004057933, %v512_v52  ;;  %p3053_p9 = pneg %p3052_p13 }
 0x168   : > { %2558 = vmatpush3.bf16.msra.mxu1 %v2806_v21  ;;  %2528 = vmatprep.subr.bf16.mxu0 %v2807_v22  ;;  %v667_v62 = vadd.f32 %v656_v55, %v636_v54  ;;  %v590_v20 = vsel %vm5139_vm1, %v587_v43, %v589_v12  ;;  %v628_v21 = vrot.slane %v3796_v15, 5  ;;  %v3823_v39 = vmul.f32 0.018778928, %v3794_v14 }
 0x169   : > { %2559 = vmatprep.subr.bf16.mxu1 %v5094_v8  ;;  %v668_v7 = vadd.f32 %v658_v0, %v637_v63  ;;  %v693_v48 = vrot.slane %v3819_v35, 3  ;;  %v3832_v57 = vmul.f32 0.25714523, %v3794_v14  ;;  %v5099_v11 = vmov 1326507024  }
 0x16a   : > { %v3781_v5 = vadd.f32 %v690_v1, %v667_v62  ;;  %v5102_v1 = vmov 920167782  }
 0x16b   : > { %2529 = vmatpush3.bf16.msra.mxu0 %v2808_v23  ;;  %v3798_v16 = vadd.f32 %v692_v10, %v668_v7  ;;  %v3807_v23 = vmul.f32 -0.05108693, %v512_v52  ;;  %v694_v62 = vsel %vm5138_vm4, %v691_v2, %v693_v48  ;;  %v5104_v2 = vmov 683565275  }
 0x16c   : > { %2560 = vmatpush3.bf16.msra.mxu1 %v2809_v24  ;;  %2530 = vmatprep.subr.bf16.mxu0 %v2810_v25  ;;  %5205 = vst [vmem:[#allocation37_spill] sm:$0xff] %v3781_v5  ;;  %v3792_v13 = vmul.f32 %v3783_v6, %v3781_v5 }
 0x16d   : > { %2561 = vmatprep.subr.bf16.mxu1 %v5094_v8  ;;  %5207 = vst [vmem:[#allocation39_spill] sm:$0xff] %v3798_v16  ;;  %v3811_v24 = vmul.f32 %v3783_v6, %v3798_v16  ;;  %v659_v30 = vrot.slane %v3807_v23, 4 }
 0x16e   : > { %5206 = vst [vmem:[#allocation38_spill] sm:$0xff] %v3792_v13  ;;  %v737_v17 = vand.u32 2139095040, %v3792_v13  ;;  %v5101_v63 = vand.u32 2147483647, %v3792_v13 }
 0x16f   : > { %2531 = vmatpush3.bf16.msra.mxu0 %v2811_v26  ;;  %5208 = vst [vmem:[#allocation40_spill] sm:$0xff] %v3811_v24  ;;  %v544_v26 = vrot.slane %v3802_v18, 7  ;;  %v841_v37 = vand.u32 2139095040, %v3811_v24  ;;  %v660_v47 = vsel %vm5137_vm3, %v657_v58, %v659_v30  ;;  %v5117_v58 = vmov 2102212464  }
 0x170   : > { %2562 = vmatpush3.bf16.msra.mxu1 %v2812_v27  ;;  %2532 = vmatprep.subr.bf16.mxu0 %v2813_v28  ;;  %v738_v22 = vshrl.u32 %v737_v17, 23  ;;  %v599_v27 = vadd.f32 %v590_v20, %v552_v19  ;;  %v3815_v28 = vmul.f32 0.8864196, %v3794_v14  ;;  %v630_v19 = vrot.slane %v3832_v57, 5 }
 0x171   : > { %2563 = vmatprep.subr.bf16.mxu1 %v5094_v8  ;;  %v545_v40 = vsel %vm538_vm0, %v542_v3, %v544_v26  ;;  %v842_v52 = vshrl.u32 %v841_v37, 23 }
 0x172   : > { %v2444_v25 = vadd.s32 4294967169, %v738_v22  ;;  %v591_v45 = vrot.slane %v3815_v28, 6  ;;  %v553_v54 = vadd.f32 %v545_v40, %v3823_v39 }
 0x173   : > { %2533 = vmatpush3.bf16.msra.mxu0 %v2814_v29  ;;  %v629_v29 = vsel %vm5136_vm2, %v626_v51, %v628_v21  ;;  %v2448_v17 = vadd.s32 4294967169, %v842_v52 }
 0x174   : > { %v744_v31 = vadd.s32 1, %v2444_v25  ;;  %v638_v42 = vadd.f32 %v629_v29, %v599_v27  ;;  %v592_v56 = vsel %vm5139_vm1, %v589_v12, %v591_v45  ;;  %v5097_v25 = vmov 2475754826  }
 0x175   : > { %v5095_v29 = vmov 2131351028   ;;  %v741_v45 = vand.u32 8388607, %v5101_v63  ;;  %v848_v52 = vadd.s32 1, %v2448_v17 }
 0x176   : > { %vm745_vm5 = vcmp.gt.s32.totalorder %v744_v31, 0  ;;  %v669_v55 = vadd.f32 %v660_v47, %v638_v42  ;;  %v3854_v42 = vmul.f32 -0.05108693, %v3794_v14 }
 0x177   : > { %v746_v43 = vsel %vm745_vm5, %v744_v31, 0  ;;  %vm849_vm9 = vcmp.gt.s32.totalorder %v848_v52, 0 }
 0x178   : > { %v748_v50 = vand.u32 31, %v746_v43  ;;  %v3840_v7 = vshrl.u32 %v746_v43, 5  ;;  %v3845_v20 = vadd.f32 %v694_v62, %v669_v55  ;;  %v600_v55 = vadd.f32 %v592_v56, %v553_v54 }
 0x179   : > { %v631_v62 = vsel %vm5136_vm2, %v628_v21, %v630_v19  ;;  %v661_v8 = vrot.slane %v3854_v42, 4 }
 0x17a   : > { %v749_v51 = vsub.s32 32, %v748_v50  ;;  %v760_v0 = vshll.u32 %v5117_v58, %v748_v50  ;;  %v763_v10 = vshll.u32 %v5102_v1, %v748_v50  ;;  %5209 = vst [vmem:[#allocation41_spill] sm:$0xff] %v3845_v20  ;;  %v751_v22 = vshll.u32 %v5104_v2, %v748_v50 }
 0x17b   : > { %v754_v26 = vshll.u32 %v5097_v25, %v748_v50  ;;  %v757_v37 = vshll.u32 %v5095_v29, %v748_v50  ;;  %vm769_vm6 = vcmp.lt.s32.totalorder %v3840_v7, 4  ;;  %v3863_v50 = vmul.f32 %v3783_v6, %v3845_v20 }
 0x17c   : > { %v761_v3 = vshrl.u32 %v5102_v1, %v749_v51  ;;  %v764_v12 = vshrl.u32 %v5099_v11, %v749_v51  ;;  %v752_v27 = vshrl.u32 %v5097_v25, %v749_v51  ;;  %v755_v31 = vshrl.u32 %v5095_v29, %v749_v51 }
 0x17d   : > { %v758_v40 = vshrl.u32 %v5117_v58, %v749_v51  ;;  %5210 = vst [vmem:[#allocation42_spill] sm:$0xff] %v3863_v50  ;;  %vm766_vm7 = vcmp.lt.s32.totalorder %v3840_v7, 1  ;;  %vm768_vm8 = vcmp.lt.s32.totalorder %v3840_v7, 3  ;;  %v639_v54 = vadd.f32 %v631_v62, %v600_v55 }
 0x17e   : > { %v762_v43 = vor.u32 %v761_v3, %v760_v0  ;;  %v765_v47 = vor.u32 %v764_v12, %v763_v10  ;;  %v753_v29 = vor.u32 %v752_v27, %v751_v22  ;;  %v756_v25 = vor.u32 %v755_v31, %v754_v26 }
 0x17f   : > { %v759_v11 = vor.u32 %v758_v40, %v757_v37  ;;  %v742_v3 = vor.u32 8388608, %v741_v45  ;;  %v662_v56 = vsel %vm5137_vm3, %v659_v30, %v661_v8  ;;  %vm767_vm10 = vcmp.lt.s32.totalorder %v3840_v7, 2 }
 0x180   : > { %v775_v0 = vsel %vm769_vm6, %v762_v43, 920167782  ;;  %v779_v21 = vsel %vm769_vm6, %v765_v47, 1326507024  ;;  %v774_v10 = vsel %vm766_vm7, %v753_v29, %v756_v25  ;;  %v945_v17 = vand.u32 2139095040, %v3863_v50 }
 0x181   : > { %v776_v12 = vsel %vm768_vm8, %v759_v11, %v775_v0  ;;  %v778_v19 = vsel %vm766_vm7, %v756_v25, %v759_v11  ;;  %v780_v22 = vsel %vm768_vm8, %v762_v43, %v779_v21  ;;  %v850_v26 = vsel %vm849_vm9, %v848_v52, 0 }
 0x182   : > { %v782_v27 = vshll.u32 %v742_v3, 8  ;;  %v670_v31 = vadd.f32 %v662_v56, %v639_v54  ;;  %v777_v8 = vsel %vm767_vm10, %v774_v10, %v776_v12  ;;  %v781_v30 = vsel %vm767_vm10, %v778_v19, %v780_v22 }
 0x183   : > { %v852_v37 = vand.u32 31, %v850_v26  ;;  %v946_v40 = vshrl.u32 %v945_v17, 23  ;;  %v750_v45 = vshrl.u32 %v5104_v2, %v749_v51  ;;  %v771_v52 = vsel %vm769_vm6, %v759_v11, 2102212464 }
 0x184   : > { %v3887_v47 = vmul.u32.u64.low %v782_v27, %v777_v8  ;;  %v3888_v55 = vmul.u32.u64.high %v782_v27, %v777_v8, %v3887_v47  ;;  %v3893_v43 = vadd.f32 %v693_v48, %v670_v31  ;;  %v772_v54 = vsel %vm768_vm8, %v756_v25, %v771_v52 }
 0x185   : > { %v3897_v62 = vmul.u32.u64.low %v782_v27, %v781_v30  ;;  %v3898_v0 = vmul.u32.u64.high %v782_v27, %v781_v30, %v3897_v62  ;;  %v3900_v3 = vsub.s32 32, %v852_v37  ;;  %v2452_v21 = vadd.s32 4294967169, %v946_v40 }
 0x186   : > { %5211 = vst [vmem:[#allocation43_spill] sm:$0xff] %v3893_v43  ;;  %v770_v51 = vsel %vm766_vm7, %v750_v45, %v753_v29  ;;  %v562_v56 = vrot.slane %v3760_v49, 7  ;;  %v3909_v48 = vmul.f32 %v3783_v6, %v3893_v43  ;;  %v5110_v11 = vand.u32 2147483647, %v3811_v24 }
 0x187   : > { %v864_v10 = vshll.u32 %v5117_v58, %v852_v37  ;;  %v865_v12 = vshrl.u32 %v5102_v1, %v3900_v3  ;;  %v952_v17 = vadd.s32 1, %v2452_v21  ;;  %v773_v29 = vsel %vm767_vm10, %v770_v51, %v772_v54 }
 0x188   : > { %5212 = vst [vmem:[#allocation44_spill] sm:$0xff] %v3909_v48  ;;  %v3917_v19 = vshrl.u32 %v850_v26, 5  ;;  %v867_v25 = vshll.u32 %v5102_v1, %v852_v37  ;;  %v5213_v49 = vmov 1326507024   ;;  %v792_v31 = vadd.s32 1, %v3888_v55 }
 0x189   : > { %v868_v22 = vshrl.u32 %v5213_v49, %v3900_v3  ;;  %v855_v8 = vshll.u32 %v5104_v2, %v852_v37  ;;  %v5214_v30 = vmov 2475754826   ;;  %vm791_vm11 = vc.u32 %v3898_v0, %v3887_v47 }
 0x18a   : > { %v856_v40 = vshrl.u32 %v5214_v30, %v3900_v3  ;;  %v858_v45 = vshll.u32 %v5214_v30, %v852_v37  ;;  %v5215_v7 = vmov 2131351028   ;;  %v862_v62 = vshrl.u32 %v5117_v58, %v3900_v3 }
 0x18b   : > { %v859_v26 = vshrl.u32 %v5215_v7, %v3900_v3  ;;  %v861_v52 = vshll.u32 %v5215_v7, %v852_v37  ;;  %v866_v21 = vor.u32 %v865_v12, %v864_v10  ;;  %v1049_v51 = vand.u32 2139095040, %v3909_v48 }
 0x18c   : > { %v789_v54 = vmul.u32 %v782_v27, %v773_v29  ;;  %v845_v63 = vand.u32 8388607, %v5110_v11  ;;  %v869_v1 = vor.u32 %v868_v22, %v867_v25  ;;  %vm873_vm12 = vcmp.lt.s32.totalorder %v3917_v19, 4 }
 0x18d   : > { %v573_v2 = vadd.f32 %v562_v56, %v3771_v60  ;;  %v609_v43 = vrot.slane %v3754_v44, 6  ;;  %v793_v20 = vsel %vm791_vm11, %v792_v31, %v3888_v55  ;;  %v857_v37 = vor.u32 %v856_v40, %v855_v8 }
 0x18e   : > { %v860_v16 = vor.u32 %v859_v26, %v858_v45  ;;  %v863_v5 = vor.u32 %v862_v62, %v861_v52  ;;  %vm953_vm13 = vcmp.gt.s32.totalorder %v952_v17, 0  ;;  %vm870_vm14 = vcmp.lt.s32.totalorder %v3917_v19, 1 }
 0x18f   : > { %vm872_vm15 = vcmp.lt.s32.totalorder %v3917_v19, 3  ;;  %v879_v27 = vsel %vm873_vm12, %v866_v21, 920167782  ;;  %v1050_v10 = vshrl.u32 %v1049_v51, 23  ;;  %v794_v12 = vadd.s32 %v793_v20, %v789_v54 }
 0x190   : > { %v846_v29 = vor.u32 8388608, %v845_v63  ;;  %v883_v60 = vsel %vm873_vm12, %v869_v1, 1326507024  ;;  %v563_v44 = vrot.slane %v3764_v53, 7  ;;  %v565_v55 = vrot.slane %v3807_v23, 7 }
 0x191   : > { %v567_v25 = vrot.slane %v3854_v42, 7  ;;  %v954_v22 = vsel %vm953_vm13, %v952_v17, 0  ;;  %v620_v31 = vadd.f32 %v609_v43, %v573_v2  ;;  %vm871_vm5 = vcmp.lt.s32.totalorder %v3917_v19, 2 }
 0x192   : > { %v878_v8 = vsel %vm870_vm14, %v857_v37, %v860_v16  ;;  %v880_v20 = vsel %vm872_vm15, %v863_v5, %v879_v27  ;;  %v5114_v63 = vrot.slane %v3743_v36, 5  ;;  %v882_v1 = vsel %vm870_vm14, %v860_v16, %v863_v5 }
 0x193   : > { %v884_v53 = vsel %vm872_vm15, %v866_v21, %v883_v60  ;;  %v2456_v23 = vadd.s32 4294967169, %v1050_v10  ;;  %v795_v42 = vadd.s32 536870912, %v794_v12  ;;  %v3960_v17 = vshll.u32 %v846_v29, 8 }
 0x194   : > { %v956_v2 = vand.u32 31, %v954_v22  ;;  %v525_v40 = vmul.f32 0.004057933, %v3794_v14  ;;  %v564_v45 = vsel %vm538_vm0, %v562_v56, %v563_v44  ;;  %v881_v26 = vsel %vm871_vm5, %v878_v8, %v880_v20 }
 0x195   : > { %v566_v52 = vsel %vm538_vm0, %v563_v44, %v565_v55  ;;  %v568_v62 = vsel %vm538_vm0, %v565_v55, %v567_v25  ;;  %v5113_v51 = vrot.slane %v3756_v46, 6  ;;  %v885_v21 = vsel %vm871_vm5, %v882_v1, %v884_v53 }
 0x196   : > { %v651_v54 = vadd.f32 %v5114_v63, %v620_v31  ;;  %v5111_v27 = vrot.slane %v3736_v32, 4  ;;  %v5216_v14 = vmov 683565275   ;;  %v1056_v10 = vadd.s32 1, %v2456_v23 }
 0x197   : > { %v854_v56 = vshrl.u32 %v5216_v14, %v3900_v3  ;;  %v3976_v29 = vshrl.u32 %v795_v42, 30  ;;  %v3979_v60 = vmul.u32.u64.low %v3960_v17, %v881_v26  ;;  %v3980_v44 = vmul.u32.u64.high %v3960_v17, %v881_v26, %v3979_v60 }
 0x198   : > { %v3983_v55 = vsub.s32 32, %v956_v2  ;;  %v574_v25 = vadd.f32 %v564_v45, %v3773_v61  ;;  %v3987_v8 = vmul.u32.u64.low %v3960_v17, %v885_v21  ;;  %v3988_v31 = vmul.u32.u64.high %v3960_v17, %v885_v21, %v3987_v8 }
 0x199   : > { %5217 = vst [vmem:[#allocation45_spill] sm:$0xff] %v3976_v29  ;;  %5218 = vst [vmem:[#allocation46_spill] sm:$0xff] %v3979_v60  ;;  %v3991_v20 = vadd.f32 %v566_v52, %v3819_v35  ;;  %v3993_v3 = vadd.f32 %v568_v62, %v525_v40  ;;  %v875_v1 = vsel %vm873_vm12, %v863_v5, 2102212464  ;;  %v5112_v53 = vand.u32 2147483647, %v3863_v50 }
 0x19a   : > { %5219 = vst [vmem:[#allocation47_spill] sm:$0xff] %v3988_v31  ;;  %v611_v23 = vsel %vm5139_vm1, %v609_v43, %v5113_v51  ;;  %v682_v61 = vadd.f32 %v5111_v27, %v651_v54  ;;  %vm1057_vm0 = vcmp.gt.s32.totalorder %v1056_v10, 0  ;;  %v797_v35 = vshll.u32 %v3976_v29, 30 }
 0x19b   : > { %v874_v40 = vsel %vm870_vm14, %v854_v56, %v857_v37  ;;  %v968_v45 = vshll.u32 %v5117_v58, %v956_v2  ;;  %v5220_v5 = vmov 920167782   ;;  %v876_v52 = vsel %vm872_vm15, %v860_v16, %v875_v1 }
 0x19c   : > { %v969_v26 = vshrl.u32 %v5220_v5, %v3983_v55  ;;  %v4012_v43 = vshrl.u32 %v954_v22, 5  ;;  %v971_v62 = vshll.u32 %v5220_v5, %v956_v2  ;;  %v972_v21 = vshrl.u32 %v5213_v49, %v3983_v55 }
 0x19d   : > { %v949_v54 = vand.u32 8388607, %v5112_v53  ;;  %v959_v37 = vshll.u32 %v5216_v14, %v956_v2  ;;  %v962_v56 = vshll.u32 %v5214_v30, %v956_v2  ;;  %v1058_v8 = vsel %vm1057_vm0, %v1056_v10, 0 }
 0x19e   : > { %v960_v11 = vshrl.u32 %v5214_v30, %v3983_v55  ;;  %v963_v16 = vshrl.u32 %v5215_v7, %v3983_v55  ;;  %v965_v22 = vshll.u32 %v5215_v7, %v956_v2  ;;  %v966_v1 = vshrl.u32 %v5117_v58, %v3983_v55 }
 0x19f   : > { %v4028_v27 = vsub.s32 %v794_v12, %v797_v35  ;;  %v877_v53 = vsel %vm871_vm5, %v874_v40, %v876_v52  ;;  %v896_v51 = vadd.s32 1, %v3980_v44  ;;  %v970_v63 = vor.u32 %v969_v26, %v968_v45 }
 0x1a0   : > { %vm895_vm6 = vc.u32 %v3988_v31, %v3979_v60  ;;  %v973_v10 = vor.u32 %v972_v21, %v971_v62  ;;  %vm977_vm7 = vcmp.lt.s32.totalorder %v4012_v43, 4  ;;  %v1060_v42 = vand.u32 31, %v1058_v8 }
 0x1a1   : > { %v5120_v2 = vrot.slane %v3746_v38, 5  ;;  %v5221_v50 = vrot.slane %v3740_v34, 3  ;;  %v950_v12 = vor.u32 8388608, %v949_v54  ;;  %v5119_v19 = vand.u32 2147483647, %v3909_v48 }
 0x1a2   : > { %v893_v35 = vmul.u32 %v3960_v17, %v877_v53  ;;  %v961_v40 = vor.u32 %v960_v11, %v959_v37  ;;  %v964_v45 = vor.u32 %v963_v16, %v962_v56  ;;  %v967_v26 = vor.u32 %v966_v1, %v965_v22 }
 0x1a3   : > { %v4039_v58 = vadd.f32 %v5221_v50, %v682_v61  ;;  %v897_v52 = vsel %vm895_vm6, %v896_v51, %v3980_v44  ;;  %vm974_vm8 = vcmp.lt.s32.totalorder %v4012_v43, 1  ;;  %vm976_vm9 = vcmp.lt.s32.totalorder %v4012_v43, 3 }
 0x1a4   : > { %v983_v62 = vsel %vm977_vm7, %v970_v63, 920167782  ;;  %v800_v61 = vsub.s32 0, %v4028_v27  ;;  %v987_v21 = vsel %vm977_vm7, %v973_v10, 1326507024  ;;  %v4052_v17 = vsub.s32 32, %v1060_v42 }
 0x1a5   : > { %5222 = vst [vmem:[#allocation48_spill] sm:$0xff] %v4039_v58  ;;  %v621_v53 = vadd.f32 %v611_v23, %v574_v25  ;;  %v5223_v51 = vrot.slane %v3743_v36, 5  ;;  %v4060_v54 = vshll.u32 %v950_v12, 8  ;;  %v4062_v37 = vadd.s32 %v897_v52, %v893_v35 }
 0x1a6   : > { %vm975_vm10 = vcmp.lt.s32.totalorder %v4012_v43, 2  ;;  %v982_v56 = vsel %vm974_vm8, %v961_v40, %v964_v45  ;;  %v984_v16 = vsel %vm976_vm9, %v967_v26, %v983_v62  ;;  %v986_v25 = vsel %vm974_vm8, %v964_v45, %v967_v26 }
 0x1a7   : > { %v642_v44 = vsel %vm5136_vm2, %v5223_v51, %v5120_v2  ;;  %v988_v36 = vsel %vm976_vm9, %v970_v63, %v987_v21  ;;  %v1053_v23 = vand.u32 8388607, %v5119_v19  ;;  %v4077_v22 = vmul.f32 %v3783_v6, %v4039_v58 }
 0x1a8   : > { %v2445_v1 = vmin.u32 %v800_v61, %v4028_v27  ;;  %v958_v10 = vshrl.u32 %v5216_v14, %v3983_v55  ;;  %v5224_v12 = vmov 2102212464   ;;  %v1073_v52 = vshrl.u32 %v5220_v5, %v4052_v17 }
 0x1a9   : > { %v1072_v35 = vshll.u32 %v5224_v12, %v1060_v42  ;;  %v985_v63 = vsel %vm975_vm10, %v982_v56, %v984_v16  ;;  %v4087_v62 = vshrl.u32 %v1058_v8, 5  ;;  %v1075_v21 = vshll.u32 %v5220_v5, %v1060_v42 }
 0x1aa   : > { %v1076_v51 = vshrl.u32 %v5213_v49, %v4052_v17  ;;  %v899_v61 = vadd.s32 536870912, %v4062_v37  ;;  %v989_v55 = vsel %vm975_vm10, %v986_v25, %v988_v36  ;;  %v1063_v19 = vshll.u32 %v5216_v14, %v1060_v42 }
 0x1ab   : > { %v1066_v2 = vshll.u32 %v5214_v30, %v1060_v42  ;;  %v1064_v11 = vshrl.u32 %v5214_v30, %v4052_v17  ;;  %v1067_v8 = vshrl.u32 %v5215_v7, %v4052_v17  ;;  %v1069_v56 = vshll.u32 %v5215_v7, %v1060_v42 }
 0x1ac   : > { %v1070_v16 = vshrl.u32 %v5224_v12, %v4052_v17  ;;  %v979_v50 = vsel %vm977_vm7, %v967_v26, 2102212464  ;;  %v4107_v25 = vmul.u32.u64.low %v4060_v54, %v985_v63  ;;  %v4108_v36 = vmul.u32.u64.high %v4060_v54, %v985_v63, %v4107_v25 }
 0x1ad   : > { %v1074_v58 = vor.u32 %v1073_v52, %v1072_v35  ;;  %v4112_v48 = vmul.u32.u64.low %v4060_v54, %v989_v55  ;;  %v4113_v24 = vmul.u32.u64.high %v4060_v54, %v989_v55, %v4112_v48  ;;  %v1077_v13 = vor.u32 %v1076_v51, %v1075_v21 }
 0x1ae   : > { %vm1081_vm11 = vcmp.lt.s32.totalorder %v4087_v62, 4  ;;  %v5225_v42 = vrot.slane %v3796_v15, 6  ;;  %v5226_v29 = vrot.slane %v3756_v46, 6  ;;  %v652_v26 = vadd.f32 %v642_v44, %v621_v53 }
 0x1af   : > { %v672_v31 = vrot.slane %v3738_v33, 4  ;;  %v4122_v63 = vshrl.u32 %v899_v61, 30  ;;  %v978_v35 = vsel %vm974_vm8, %v958_v10, %v961_v40  ;;  %v4126_v52 = vor.u32 %v1064_v11, %v1063_v19 }
 0x1b0   : > { %v613_v60 = vsel %vm5139_vm1, %v5226_v29, %v5225_v42  ;;  %v4128_v48 = vor.u32 %v1067_v8, %v1066_v2  ;;  %v1071_v21 = vor.u32 %v1070_v16, %v1069_v56  ;;  %v980_v51 = vsel %vm976_vm9, %v964_v45, %v979_v50 }
 0x1b1   : > { %vm1078_vm12 = vcmp.lt.s32.totalorder %v4087_v62, 1  ;;  %vm1080_vm13 = vcmp.lt.s32.totalorder %v4087_v62, 3  ;;  %v1087_v46 = vsel %vm1081_vm11, %v1074_v58, 920167782  ;;  %v802_v29 = vclz %v2445_v1 }
 0x1b2   : > { %v1054_v53 = vor.u32 8388608, %v1053_v23  ;;  %v1091_v40 = vsel %vm1081_vm11, %v1077_v13, 1326507024  ;;  %v1175_v19 = vand.u32 2139095040, %v4077_v22  ;;  %v643_v2 = vrot.slane %v3779_v4, 5 }
 0x1b3   : > { %v5227_v45 = vrot.slane %v3736_v32, 4  ;;  %v708_v11 = vrot.slane %v3750_v41, 3  ;;  %v901_v44 = vshll.u32 %v4122_v63, 30  ;;  %v981_v23 = vsel %vm975_vm10, %v978_v35, %v980_v51 }
 0x1b4   : > { %vm1079_vm14 = vcmp.lt.s32.totalorder %v4087_v62, 2  ;;  %v1086_v4 = vsel %vm1078_vm12, %v4126_v52, %v4128_v48  ;;  %v1088_v13 = vsel %vm1080_vm13, %v1071_v21, %v1087_v46  ;;  %v1000_v32 = vadd.s32 1, %v4108_v36 }
 0x1b5   : > { %v673_v50 = vsel %vm5137_vm3, %v5227_v45, %v672_v31  ;;  %v1090_v1 = vsel %vm1078_vm12, %v4128_v48, %v1071_v21  ;;  %v1092_v43 = vsel %vm1080_vm13, %v1074_v58, %v1091_v40  ;;  %v1176_v10 = vshrl.u32 %v1175_v19, 23 }
 0x1b6   : > { %v683_v61 = vadd.f32 %v673_v50, %v652_v26  ;;  %v2446_v55 = vadd.s32 4294967294, %v802_v29  ;;  %vm999_vm15 = vc.u32 %v4113_v24, %v4107_v25  ;;  %v4164_v8 = vshll.u32 %v1054_v53, 8 }
 0x1b7   : > { %v5228_v56 = vrot.slane %v3740_v34, 3  ;;  %v4172_v42 = vsub.s32 %v4062_v37, %v901_v44  ;;  %v1089_v58 = vsel %vm1079_vm14, %v1086_v4, %v1088_v13  ;;  %v2461_v35 = vadd.s32 4294967169, %v1176_v10 }
 0x1b8   : > { %v5229_v26 = vrot.slane %v3832_v57, 6  ;;  %v5230_v51 = vrot.slane %v3796_v15, 6  ;;  %v622_v29 = vadd.f32 %v613_v60, %v3991_v20  ;;  %v997_v53 = vmul.u32 %v4060_v54, %v981_v23 }
 0x1b9   : > { %v709_v16 = vsel %vm5138_vm4, %v5228_v56, %v708_v11  ;;  %v1093_v34 = vsel %vm1079_vm14, %v1090_v1, %v1092_v43  ;;  %v5231_v37 = vrot.slane %v3746_v38, 5  ;;  %v645_v19 = vrot.slane %v3815_v28, 5 }
 0x1ba   : > { %v615_v46 = vsel %vm5139_vm1, %v5230_v51, %v5229_v26  ;;  %v1001_v45 = vsel %vm999_vm15, %v1000_v32, %v4108_v36  ;;  %v1182_v57 = vadd.s32 1, %v2461_v35  ;;  %v4190_v50 = vadd.f32 %v709_v16, %v683_v61 }
 0x1bb   : > { %v644_v40 = vsel %vm5136_vm2, %v5231_v37, %v643_v2  ;;  %vm2447_vm5 = vcmp.lt.s32.totalorder %v2446_v55, 0  ;;  %v4193_v15 = vmul.u32.u64.low %v4164_v8, %v1089_v58  ;;  %v4194_v60 = vmul.u32.u64.high %v4164_v8, %v1089_v58, %v4193_v15 }
 0x1bc   : > { %v904_v20 = vsub.s32 0, %v4172_v42  ;;  %v4199_v54 = vmul.u32.u64.low %v4164_v8, %v1093_v34  ;;  %v4200_v38 = vmul.u32.u64.high %v4164_v8, %v1093_v34, %v4199_v54  ;;  %vm1183_vm0 = vcmp.gt.s32.totalorder %v1182_v57, 0 }
 0x1bd   : > { %v4202_v44 = vadd.s32 %v1001_v45, %v997_v53  ;;  %v1062_v28 = vshrl.u32 %v5216_v14, %v4052_v17  ;;  %v5134_v36 = vand.u32 2147483647, %v4077_v22  ;;  %v1184_v23 = vsel %vm1183_vm0, %v1182_v57, 0 }
 0x1be   : > { %v4208_v4 = vadd.f32 %v615_v46, %v3993_v3  ;;  %v4211_v13 = vsel %vm5136_vm2, %v643_v2, %v645_v19  ;;  %v1083_v32 = vsel %vm1081_vm11, %v1071_v21, 2102212464  ;;  %v1186_v1 = vand.u32 31, %v1184_v23 }
 0x1bf   : > { %v4215_v43 = vadd.f32 %v644_v40, %v622_v29  ;;  %v674_v10 = vrot.slane %v3769_v59, 4  ;;  %v676_v61 = vrot.slane %v3802_v18, 4  ;;  %v790_v17 = vadd.s32 %v3887_v47, %v3898_v0 }
 0x1c0   : > { %v4222_v56 = vsel %vm2447_vm5, 0, %v2446_v55  ;;  %v4225_v3 = vmin.u32 %v904_v20, %v4172_v42  ;;  %v4229_v2 = vmul.f32 %v3783_v6, %v4190_v50  ;;  %v1187_v21 = vsub.s32 32, %v1186_v1 }
 0x1c1   : > { %v1003_v16 = vadd.s32 536870912, %v4202_v44  ;;  %v1082_v58 = vsel %vm1078_vm12, %v1062_v28, %v4126_v52  ;;  %v1084_v47 = vsel %vm1080_vm13, %v4128_v48, %v1083_v32  ;;  %v1179_v0 = vand.u32 8388607, %v5134_v36 }
 0x1c2   : > { %v1189_v55 = vshll.u32 %v5216_v14, %v1186_v1  ;;  %v1190_v35 = vshrl.u32 %v5214_v30, %v1187_v21  ;;  %v1192_v26 = vshll.u32 %v5214_v30, %v1186_v1  ;;  %v1193_v51 = vshrl.u32 %v5215_v7, %v1187_v21 }
 0x1c3   : > { %v806_v46 = vsub.s32 32, %v4222_v56  ;;  %v810_v29 = vsub.s32 4294967266, %v4222_v56  ;;  %v1104_v52 = vadd.s32 1, %v4194_v60  ;;  %v1195_v53 = vshll.u32 %v5215_v7, %v1186_v1 }
 0x1c4   : > { %v1085_v48 = vsel %vm1079_vm14, %v1082_v58, %v1084_v47  ;;  %vm1103_vm6 = vc.u32 %v4200_v38, %v4193_v15  ;;  %v1185_v34 = vshrl.u32 %v1184_v23, 5  ;;  %v1196_v37 = vshrl.u32 %v5224_v12, %v1187_v21 }
 0x1c5   : > { %v906_v40 = vclz %v4225_v3  ;;  %v4254_v19 = vshrl.u32 %v1003_v16, 30  ;;  %v1180_v45 = vor.u32 8388608, %v1179_v0  ;;  %v1198_v57 = vshll.u32 %v5224_v12, %v1186_v1 }
 0x1c6   : > { %v1191_v20 = vor.u32 %v1190_v35, %v1189_v55  ;;  %v1194_v54 = vor.u32 %v1193_v51, %v1192_v26  ;;  %v1199_v28 = vshrl.u32 %v5220_v5, %v1187_v21  ;;  %v1201_v62 = vshll.u32 %v5220_v5, %v1186_v1 }
 0x1c7   : > { %v1101_v32 = vmul.u32 %v4164_v8, %v1085_v48  ;;  %v1105_v58 = vsel %vm1103_vm6, %v1104_v52, %v4194_v60  ;;  %v1197_v23 = vor.u32 %v1196_v37, %v1195_v53  ;;  %v1279_v47 = vand.u32 2139095040, %v4229_v2 }
 0x1c8   : > { %v1188_v3 = vshrl.u32 %v5216_v14, %v1187_v21  ;;  %v1200_v16 = vor.u32 %v1199_v28, %v1198_v57  ;;  %v1202_v0 = vshrl.u32 %v5213_v49, %v1187_v21  ;;  %vm1204_vm7 = vcmp.lt.s32.totalorder %v1185_v34, 1 }
 0x1c9   : > { %vm1205_vm8 = vcmp.lt.s32.totalorder %v1185_v34, 2  ;;  %vm1206_vm9 = vcmp.lt.s32.totalorder %v1185_v34, 3  ;;  %vm1207_vm10 = vcmp.lt.s32.totalorder %v1185_v34, 4  ;;  %v1220_v55 = vshll.u32 %v1180_v45, 8 }
 0x1ca   : > { %v1203_v35 = vor.u32 %v1202_v0, %v1201_v62  ;;  %v1209_v26 = vsel %vm1207_vm10, %v1197_v23, 2102212464  ;;  %v1212_v1 = vsel %vm1204_vm7, %v1191_v20, %v1194_v54  ;;  %v1213_v51 = vsel %vm1207_vm10, %v1200_v16, 920167782 }
 0x1cb   : > { %v4264_v8 = vadd.s32 %v1105_v58, %v1101_v32  ;;  %v1214_v60 = vsel %vm1206_vm9, %v1197_v23, %v1213_v51  ;;  %v1216_v52 = vsel %vm1204_vm7, %v1194_v54, %v1197_v23  ;;  %v1280_v53 = vshrl.u32 %v1279_v47, 23 }
 0x1cc   : > { %v1208_v48 = vsel %vm1204_vm7, %v1188_v3, %v1191_v20  ;;  %v1210_v37 = vsel %vm1206_vm9, %v1194_v54, %v1209_v26  ;;  %v1215_v21 = vsel %vm1205_vm8, %v1212_v1, %v1214_v60  ;;  %v1217_v57 = vsel %vm1207_vm10, %v1203_v35, 1326507024 }
 0x1cd   : > { %v710_v28 = vrot.slane %v3785_v9, 3  ;;  %v807_v45 = vshll.u32 %v4028_v27, %v4222_v56  ;;  %v1005_v62 = vshll.u32 %v4254_v19, 30  ;;  %v1218_v32 = vsel %vm1206_vm9, %v1200_v16, %v1217_v57 }
 0x1ce   : > { %v808_v58 = vshrl.u32 %v790_v17, %v806_v46  ;;  %v1219_v0 = vsel %vm1205_vm8, %v1216_v52, %v1218_v32  ;;  %v4275_v23 = vmul.u32.u64.low %v1220_v55, %v1215_v21  ;;  %v4276_v47 = vmul.u32.u64.high %v1220_v55, %v1215_v21, %v4275_v23  ;;  %v5232_v52 = vld [vmem:[#allocation47_spill] sm:$0xff] }
 0x1cf   : > { %v811_v20 = vadd.s32 127, %v810_v29  ;;  %v1211_v54 = vsel %vm1205_vm8, %v1208_v48, %v1210_v37  ;;  %v4280_v3 = vmul.u32.u64.low %v1220_v55, %v1219_v0  ;;  %v4281_v35 = vmul.u32.u64.high %v1220_v55, %v1219_v0, %v4280_v3 }
 0x1d0   : > { %v675_v9 = vsel %vm5137_vm3, %v672_v31, %v674_v10  ;;  %v2450_v27 = vadd.s32 4294967294, %v906_v40  ;;  %v1107_v17 = vadd.s32 536870912, %v4264_v8  ;;  %v2465_v56 = vadd.s32 4294967169, %v1280_v53  ;;  %v5233_v53 = vld [vmem:[#allocation46_spill] sm:$0xff] }
 0x1d1   : > { %v654_v46 = vadd.f32 %v4211_v13, %v4208_v4  ;;  %v677_v29 = vsel %vm5137_vm3, %v674_v10, %v676_v61  ;;  %v4297_v34 = vsub.s32 %v4202_v44, %v1005_v62  ;;  %v712_v33 = vrot.slane %v3823_v39, 3 }
 0x1d2   : > { %v1227_v16 = vmul.u32 %v1220_v55, %v1211_v54  ;;  %v1230_v31 = vadd.s32 1, %v4276_v47  ;;  %v1286_v40 = vadd.s32 1, %v2465_v56  ;;  %v684_v26 = vadd.f32 %v675_v9, %v4215_v43 }
 0x1d3   : > { %v711_v4 = vsel %vm5138_vm4, %v708_v11, %v710_v28  ;;  %v4305_v18 = vor.u32 %v808_v58, %v807_v45  ;;  %v812_v59 = vshll.u32 %v811_v20, 23  ;;  %vm2451_vm11 = vcmp.lt.s32.totalorder %v2450_v27, 0 }
 0x1d4   : > { %v4307_v13 = vshrl.u32 %v1107_v17, 30  ;;  %vm1229_vm12 = vc.u32 %v4281_v35, %v4275_v23  ;;  %vm1287_vm13 = vcmp.gt.s32.totalorder %v1286_v40, 0  ;;  %v1008_v39 = vsub.s32 0, %v4297_v34 }
 0x1d5   : > { %v1231_v44 = vsel %vm1229_vm12, %v1230_v31, %v4276_v47  ;;  %v5133_v43 = vand.u32 2147483647, %v4229_v2  ;;  %v1288_v10 = vsel %vm1287_vm13, %v1286_v40, 0  ;;  %v4314_v41 = vadd.f32 %v677_v29, %v654_v46 }
 0x1d6   : > { %v4317_v11 = vsel %vm5138_vm4, %v710_v28, %v712_v33  ;;  %v1232_v61 = vadd.s32 %v1231_v44, %v1227_v16  ;;  %v1290_v55 = vand.u32 31, %v1288_v10  ;;  %v4319_v1 = vadd.f32 %v711_v4, %v684_v26 }
 0x1d7   : > { %v4321_v51 = vor.u32 4788187, %v812_v59  ;;  %v816_v60 = vcvt.s32.f32 %v4305_v18  ;;  %v894_v48 = vadd.s32 %v5233_v53, %v5232_v52  ;;  %v4327_v37 = vsel %vm2451_vm11, 0, %v2450_v27 }
 0x1d8   : > { %v1109_v21 = vshll.u32 %v4307_v13, 30  ;;  %v1233_v57 = vadd.s32 536870912, %v1232_v61  ;;  %v1291_v45 = vsub.s32 32, %v1290_v55  ;;  %v2453_v28 = vmin.u32 %v1008_v39, %v4297_v34 }
 0x1d9   : > { %v1283_v62 = vand.u32 8388607, %v5133_v43  ;;  %v1289_v32 = vshrl.u32 %v1288_v10, 5  ;;  %v1293_v58 = vshll.u32 %v5216_v14, %v1290_v55  ;;  %v1296_v20 = vshll.u32 %v5214_v30, %v1290_v55 }
 0x1da   : > { %v4334_v0 = vshrl.u32 %v1233_v57, 30  ;;  %v1294_v47 = vshrl.u32 %v5214_v30, %v1291_v45  ;;  %v1302_v54 = vshll.u32 %v5224_v12, %v1290_v55  ;;  %v1297_v3 = vshrl.u32 %v5215_v7, %v1291_v45 }
 0x1db   : > { %v1299_v9 = vshll.u32 %v5215_v7, %v1290_v55  ;;  %v1300_v27 = vshrl.u32 %v5224_v12, %v1291_v45  ;;  %v1303_v17 = vshrl.u32 %v5220_v5, %v1291_v45  ;;  %v814_v56 = vand.u32 2147483647, %v4321_v51 }
 0x1dc   : > { %v910_v46 = vsub.s32 32, %v4327_v37  ;;  %v4346_v29 = vsub.s32 %v4264_v8, %v1109_v21  ;;  %v4350_v33 = vmul.f32 %v3783_v6, %v4319_v1  ;;  %v911_v16 = vshll.u32 %v4172_v42, %v4327_v37 }
 0x1dd   : > { %v914_v31 = vsub.s32 4294967266, %v4327_v37  ;;  %v1235_v40 = vshll.u32 %v4334_v0, 30  ;;  %v1284_v26 = vor.u32 8388608, %v1283_v62  ;;  %v1295_v4 = vor.u32 %v1294_v47, %v1293_v58 }
 0x1de   : > { %v1298_v59 = vor.u32 %v1297_v3, %v1296_v20  ;;  %v1304_v39 = vor.u32 %v1303_v17, %v1302_v54  ;;  %v1305_v44 = vshll.u32 %v5220_v5, %v1290_v55  ;;  %v1010_v10 = vclz %v2453_v28 }
 0x1df   : > { %v1301_v8 = vor.u32 %v1300_v27, %v1299_v9  ;;  %v1306_v51 = vshrl.u32 %v5213_v49, %v1291_v45  ;;  %vm1308_vm14 = vcmp.lt.s32.totalorder %v1289_v32, 1  ;;  %v1112_v52 = vsub.s32 0, %v4346_v29 }
 0x1e0   : > { %v1292_v53 = vshrl.u32 %v5216_v14, %v1291_v45  ;;  %vm1310_vm15 = vcmp.lt.s32.totalorder %v1289_v32, 3  ;;  %vm1311_vm5 = vcmp.lt.s32.totalorder %v1289_v32, 4  ;;  %v1324_v21 = vshll.u32 %v1284_v26, 8 }
 0x1e1   : > { %v1307_v42 = vor.u32 %v1306_v51, %v1305_v44  ;;  %v1313_v37 = vsel %vm1311_vm5, %v1301_v8, 2102212464  ;;  %v1383_v57 = vand.u32 2139095040, %v4350_v33  ;;  %v4361_v62 = vsub.s32 %v1232_v61, %v1235_v40 }
 0x1e2   : > { %vm1309_vm0 = vcmp.lt.s32.totalorder %v1289_v32, 2  ;;  %v1316_v55 = vsel %vm1308_vm14, %v1295_v4, %v1298_v59  ;;  %v1317_v28 = vsel %vm1311_vm5, %v1304_v39, 920167782  ;;  %v912_v58 = vshrl.u32 %v894_v48, %v910_v46 }
 0x1e3   : > { %v1318_v47 = vsel %vm1310_vm15, %v1301_v8, %v1317_v28  ;;  %v1320_v20 = vsel %vm1308_vm14, %v1298_v59, %v1301_v8  ;;  %v1321_v54 = vsel %vm1311_vm5, %v1307_v42, 1326507024  ;;  %v915_v45 = vadd.s32 127, %v914_v31  ;;  %v5234_v28 = vld [vmem:[#allocation45_spill] sm:$0xff] }
 0x1e4   : > { %v2454_v3 = vadd.s32 4294967294, %v1010_v10  ;;  %v1312_v9 = vsel %vm1308_vm14, %v1292_v53, %v1295_v4  ;;  %v1314_v27 = vsel %vm1310_vm15, %v1298_v59, %v1313_v37  ;;  %v2457_v17 = vmin.u32 %v1112_v52, %v4346_v29 }
 0x1e5   : > { %v1319_v61 = vsel %vm1309_vm0, %v1316_v55, %v1318_v47  ;;  %v1322_v40 = vsel %vm1310_vm15, %v1304_v39, %v1321_v54  ;;  %v1384_v26 = vshrl.u32 %v1383_v57, 23  ;;  %v1238_v48 = vsub.s32 0, %v4361_v62 }
 0x1e6   : > { %v1323_v46 = vsel %vm1309_vm0, %v1320_v20, %v1322_v40  ;;  %v4373_v44 = vmul.u32.u64.low %v1324_v21, %v1319_v61  ;;  %v4374_v8 = vmul.u32.u64.high %v1324_v21, %v1319_v61, %v4373_v44  ;;  %v1315_v31 = vsel %vm1309_vm0, %v1312_v9, %v1314_v27 }
 0x1e7   : > { %v4378_v4 = vmul.u32.u64.low %v1324_v21, %v1323_v46  ;;  %v4379_v10 = vmul.u32.u64.high %v1324_v21, %v1323_v46, %v4378_v4  ;;  %v2469_v59 = vadd.s32 4294967169, %v1384_v26  ;;  %v916_v51 = vshll.u32 %v915_v45, 23 }
 0x1e8   : > { %v1114_v52 = vclz %v2457_v17  ;;  %v4383_v39 = vadd.f32 %v4317_v11, %v4314_v41  ;;  %v4387_v42 = vmul.f32 %v816_v60, %v814_v56  ;;  %v2462_v37 = vmin.u32 %v1238_v48, %v4361_v62 }
 0x1e9   : > { %v1390_v53 = vadd.s32 1, %v2469_v59  ;;  %v1331_v57 = vmul.u32 %v1324_v21, %v1315_v31  ;;  %v4390_v32 = vor.u32 %v912_v58, %v911_v16  ;;  %vm2455_vm6 = vcmp.lt.s32.totalorder %v2454_v3, 0 }
 0x1ea   : > { %vm1333_vm7 = vc.u32 %v4379_v10, %v4373_v44  ;;  %v1334_v55 = vadd.s32 1, %v4374_v8  ;;  %v4396_v20 = vor.u32 4788187, %v916_v51  ;;  %v2458_v41 = vadd.s32 4294967294, %v1114_v52 }
 0x1eb   : > { %vm1391_vm8 = vcmp.gt.s32.totalorder %v1390_v53, 0  ;;  %v5132_v11 = vand.u32 2147483647, %v4350_v33  ;;  %v4400_v56 = vsel %vm2455_vm6, 0, %v2454_v3  ;;  %v4404_v16 = vmul.f32 %v3783_v6, %v4383_v39 }
 0x1ec   : > { %v1335_v18 = vsel %vm1333_vm7, %v1334_v55, %v4374_v8  ;;  %v1392_v60 = vsel %vm1391_vm8, %v1390_v53, 0  ;;  %v1240_v21 = vclz %v2462_v37  ;;  %v998_v9 = vadd.s32 %v4107_v25, %v4113_v24 }
 0x1ed   : > { %v1336_v58 = vadd.s32 %v1335_v18, %v1331_v57  ;;  %v1394_v27 = vand.u32 31, %v1392_v60  ;;  %v918_v17 = vand.u32 2147483647, %v4396_v20  ;;  %v1014_v61 = vsub.s32 32, %v4400_v56 }
 0x1ee   : > { %v1018_v6 = vsub.s32 4294967266, %v4400_v56  ;;  %vm2459_vm9 = vcmp.lt.s32.totalorder %v2458_v41, 0  ;;  %v1387_v26 = vand.u32 8388607, %v5132_v11  ;;  %v2463_v46 = vadd.s32 4294967294, %v1240_v21 }
 0x1ef   : > { %v1337_v40 = vadd.s32 536870912, %v1336_v58  ;;  %v1395_v48 = vsub.s32 32, %v1394_v27  ;;  %v1393_v24 = vshrl.u32 %v1392_v60, 5  ;;  %v1397_v25 = vshll.u32 %v5216_v14, %v1394_v27 }
 0x1f0   : > { %v1400_v4 = vshll.u32 %v5214_v30, %v1394_v27  ;;  %v1406_v51 = vshll.u32 %v5224_v12, %v1394_v27  ;;  %v1403_v53 = vshll.u32 %v5215_v7, %v1394_v27  ;;  %v1102_v55 = vadd.s32 %v4193_v15, %v4200_v38 }
 0x1f1   : > { %v4417_v8 = vshrl.u32 %v1337_v40, 30  ;;  %v1398_v31 = vshrl.u32 %v5214_v30, %v1395_v48  ;;  %v1401_v59 = vshrl.u32 %v5215_v7, %v1395_v48  ;;  %v1404_v37 = vshrl.u32 %v5224_v12, %v1395_v48 }
 0x1f2   : > { %v1407_v57 = vshrl.u32 %v5220_v5, %v1395_v48  ;;  %v4431_v18 = vsel %vm2459_vm9, 0, %v2458_v41  ;;  %v1388_v60 = vor.u32 8388608, %v1387_v26  ;;  %v1409_v21 = vshll.u32 %v5220_v5, %v1394_v27  ;;  %v5235_v41 = vld [vmem:[#allocation38_spill] sm:$0xff] }
 0x1f3   : > { %v1339_v52 = vshll.u32 %v4417_v8, 30  ;;  %v1019_v40 = vadd.s32 127, %v1018_v6  ;;  %vm2464_vm10 = vcmp.lt.s32.totalorder %v2463_v46, 0  ;;  %v1396_v43 = vshrl.u32 %v5216_v14, %v1395_v48 }
 0x1f4   : > { %v1399_v36 = vor.u32 %v1398_v31, %v1397_v25  ;;  %v1402_v47 = vor.u32 %v1401_v59, %v1400_v4  ;;  %v1408_v54 = vor.u32 %v1407_v57, %v1406_v51  ;;  %v1410_v3 = vshrl.u32 %v5213_v49, %v1395_v48 }
 0x1f5   : > { %v4434_v11 = vsub.s32 %v1336_v58, %v1339_v52  ;;  %v1122_v45 = vsub.s32 4294967266, %v4431_v18  ;;  %v1405_v38 = vor.u32 %v1404_v37, %v1403_v53  ;;  %vm1412_vm11 = vcmp.lt.s32.totalorder %v1393_v24, 1 }
 0x1f6   : > { %vm736_vm12 = vcmp.lt.s32.totalorder %v5235_v41, 0  ;;  %v4441_v27 = vsel %vm2464_vm10, 0, %v2463_v46  ;;  %v1411_v6 = vor.u32 %v1410_v3, %v1409_v21  ;;  %vm1415_vm13 = vcmp.lt.s32.totalorder %v1393_v24, 4 }
 0x1f7   : > { %v1342_v15 = vsub.s32 0, %v4434_v11  ;;  %v1428_v58 = vshll.u32 %v1388_v60, 8  ;;  %vm1413_vm14 = vcmp.lt.s32.totalorder %v1393_v24, 2  ;;  %vm1414_vm15 = vcmp.lt.s32.totalorder %v1393_v24, 3 }
 0x1f8   : > { %v1417_v25 = vsel %vm1415_vm13, %v1405_v38, 2102212464  ;;  %v1416_v48 = vsel %vm1412_vm11, %v1396_v43, %v1399_v36  ;;  %v1420_v4 = vsel %vm1412_vm11, %v1399_v36, %v1402_v47  ;;  %v1421_v59 = vsel %vm1415_vm13, %v1408_v54, 920167782 }
 0x1f9   : > { %v2466_v26 = vmin.u32 %v1342_v15, %v4434_v11  ;;  %v1418_v31 = vsel %vm1414_vm15, %v1402_v47, %v1417_v25  ;;  %v1016_v51 = vshrl.u32 %v998_v9, %v1014_v61  ;;  %v1020_v46 = vshll.u32 %v1019_v40, 23 }
 0x1fa   : > { %v1118_v3 = vsub.s32 32, %v4431_v18  ;;  %v1123_v52 = vadd.s32 127, %v1122_v45  ;;  %v1248_v53 = vsub.s32 4294967266, %v4441_v27  ;;  %v1422_v37 = vsel %vm1414_vm15, %v1405_v38, %v1421_v59  ;;  %v5239_v45 = vld [vmem:[#allocation40_spill] sm:$0xff] }
 0x1fb   : > { %v1424_v57 = vsel %vm1412_vm11, %v1402_v47, %v1405_v38  ;;  %v1425_v60 = vsel %vm1415_vm13, %v1411_v6, 1326507024  ;;  %v1344_v43 = vclz %v2466_v26  ;;  %v1419_v21 = vsel %vm1413_vm14, %v1416_v48, %v1418_v31 }
 0x1fc   : > { %v1423_v36 = vsel %vm1413_vm14, %v1420_v4, %v1422_v37  ;;  %v1426_v15 = vsel %vm1414_vm15, %v1408_v54, %v1425_v60  ;;  %v5236_v9 = vand.u32 2147483647, %v5235_v41  ;;  %vm840_vm0 = vcmp.lt.s32.totalorder %v5239_v45, 0 }
 0x1fd   : > { %v1427_v40 = vsel %vm1413_vm14, %v1424_v57, %v1426_v15  ;;  %v4465_v47 = vmul.u32.u64.low %v1428_v58, %v1423_v36  ;;  %v4466_v38 = vmul.u32.u64.high %v1428_v58, %v1423_v36, %v4465_v47  ;;  %v1487_v6 = vand.u32 2139095040, %v4404_v16 }
 0x1fe   : > { %vm4459_vm5 = vcmp.le.f32.partialorder %v5236_v9, 0.7853982  ;;  %v5240_v54 = vcvt.s32.f32 %v4390_v32  ;;  %v5241_v25 = vshll.u32 %v4297_v34, %v4400_v56  ;;  %v1021_v24 = vor.u32 4788187, %v1020_v46 }
 0x1ff   : > { %v4477_v31 = vmul.u32.u64.low %v1428_v58, %v1427_v40  ;;  %v4478_v4 = vmul.u32.u64.high %v1428_v58, %v1427_v40, %v4477_v31  ;;  %v1228_v59 = vadd.s32 %v4275_v23, %v4281_v35  ;;  %v1244_v37 = vsub.s32 32, %v4441_v27 }
 0x200   : > { %v921_v26 = vmul.f32 %v5240_v54, %v918_v17  ;;  %v1017_v48 = vor.u32 %v1016_v51, %v5241_v25  ;;  %v1488_v57 = vshrl.u32 %v1487_v6, 23  ;;  %v1119_v20 = vshll.u32 %v4346_v29, %v4431_v18 }
 0x201   : > { %v1249_v60 = vadd.s32 127, %v1248_v53  ;;  %v2467_v32 = vadd.s32 4294967294, %v1344_v43  ;;  %v1435_v17 = vmul.u32 %v1428_v58, %v1419_v21  ;;  %v1120_v36 = vshrl.u32 %v1102_v55, %v1118_v3 }
 0x202   : > { %v1124_v15 = vshll.u32 %v1123_v52, 23  ;;  %v1438_v34 = vadd.s32 1, %v4466_v38  ;;  %v2473_v56 = vadd.s32 4294967169, %v1488_v57  ;;  %v5242_v51 = vxor.u32 2147483648, %v4387_v42 }
 0x203   : > { %v5243_v35 = vsub.s32 4, %v5234_v28  ;;  %v922_v18 = vxor.u32 2147483648, %v921_v26  ;;  %vm1437_vm6 = vc.u32 %v4478_v4, %v4465_v47  ;;  %v1245_v55 = vshll.u32 %v4361_v62, %v4441_v27 }
 0x204   : > { %v819_v23 = vsel %vm736_vm12, %v5242_v51, %v4387_v42  ;;  %v1246_v58 = vshrl.u32 %v1228_v59, %v1244_v37  ;;  %v1439_v46 = vsel %vm1437_vm6, %v1438_v34, %v4466_v38  ;;  %v1494_v3 = vadd.s32 1, %v2473_v56 }
 0x205   : > { %v4496_v29 = vsel %vm736_vm12, %v5243_v35, %v5234_v28  ;;  %v1024_v52 = vcvt.s32.f32 %v1017_v48  ;;  %v1250_v42 = vshll.u32 %v1249_v60, 23  ;;  %vm2468_vm7 = vcmp.lt.s32.totalorder %v2467_v32, 0 }
 0x206   : > { %v1440_v53 = vadd.s32 %v1439_v46, %v1435_v17  ;;  %v1022_v43 = vand.u32 2147483647, %v1021_v24  ;;  %v4503_v21 = vor.u32 %v1120_v36, %v1119_v20  ;;  %v4505_v28 = vor.u32 4788187, %v1124_v15  ;;  %v2815_v36 = vld [vmem:[#allocation13 + $0xb8] sm:$0xff]  }
 0x207   : > { %vm1495_vm8 = vcmp.gt.s32.totalorder %v1494_v3, 0  ;;  %v823_v9 = vsel %vm4459_vm5, 0, %v4496_v29  ;;  %v5135_v62 = vand.u32 2147483647, %v4404_v16  ;;  %v924_v27 = vsub.s32 4, %v4122_v63  ;;  %2564 = vmatpush3.bf16.msra.mxu1 %v2815_v36 }
 0x208   : > { %v1441_v40 = vadd.s32 536870912, %v1440_v53  ;;  %v4512_v38 = vor.u32 %v1246_v58, %v1245_v55  ;;  %v4514_v6 = vsel %vm2468_vm7, 0, %v2467_v32  ;;  %v1496_v54 = vsel %vm1495_vm8, %v1494_v3, 0 }
 0x209   : > { %v4519_v25 = vsel %vm4459_vm5, %v5235_v41, %v819_v23  ;;  %v4523_v48 = vsel %vm840_vm0, %v922_v18, %v921_v26  ;;  %v4525_v31 = vor.u32 4788187, %v1250_v42  ;;  %v4529_v59 = vmul.f32 %v1024_v52, %v1022_v43 }
 0x20a   : > { %v4527_v24 = vshrl.u32 %v1441_v40, 30  ;;  %v1126_v37 = vand.u32 2147483647, %v4505_v28  ;;  %v1128_v57 = vcvt.s32.f32 %v4503_v21  ;;  %v1498_v20 = vand.u32 31, %v1496_v54 }
 0x20b   : > { %v1332_v60 = vadd.s32 %v4373_v44, %v4379_v10  ;;  %v1352_v32 = vsub.s32 4294967266, %v4514_v6  ;;  %v1491_v26 = vand.u32 8388607, %v5135_v62  ;;  %v1254_v15 = vcvt.s32.f32 %v4512_v38  ;;  %v5251_v38 = vld [vmem:[#allocation44_spill] sm:$0xff] }
 0x20c   : > { %v1443_v17 = vshll.u32 %v4527_v24, 30  ;;  %v1348_v34 = vsub.s32 32, %v4514_v6  ;;  %v1497_v56 = vshrl.u32 %v1496_v54, 5  ;;  %v1499_v51 = vsub.s32 32, %v1498_v20 }
 0x20d   : > { %v1252_v23 = vand.u32 2147483647, %v4525_v31  ;;  %v1501_v44 = vshll.u32 %v5216_v14, %v1498_v20  ;;  %v1504_v10 = vshll.u32 %v5214_v30, %v1498_v20  ;;  %v1507_v58 = vshll.u32 %v5215_v7, %v1498_v20 }
 0x20e   : > { %v4542_v35 = vsub.s32 %v1440_v53, %v1443_v17  ;;  %v1502_v18 = vshrl.u32 %v5214_v30, %v1499_v51  ;;  %v1505_v55 = vshrl.u32 %v5215_v7, %v1499_v51  ;;  %v1510_v46 = vshll.u32 %v5224_v12, %v1498_v20 }
 0x20f   : > { %v1353_v3 = vadd.s32 127, %v1352_v32  ;;  %v1492_v42 = vor.u32 8388608, %v1491_v26  ;;  %v1508_v53 = vshrl.u32 %v5224_v12, %v1499_v51  ;;  %v1349_v43 = vshll.u32 %v4434_v11, %v4514_v6 }
 0x210   : > { %v1446_v52 = vsub.s32 0, %v4542_v35  ;;  %v1350_v40 = vshrl.u32 %v1332_v60, %v1348_v34  ;;  %v1511_v54 = vshrl.u32 %v5220_v5, %v1499_v51  ;;  %vm1516_vm9 = vcmp.lt.s32.totalorder %v1497_v56, 1 }
 0x211   : > { %v1500_v17 = vshrl.u32 %v5216_v14, %v1499_v51  ;;  %v1503_v7 = vor.u32 %v1502_v18, %v1501_v44  ;;  %v1506_v36 = vor.u32 %v1505_v55, %v1504_v10  ;;  %v5244_v32 = vand.u32 2147483647, %v5239_v45 }
 0x212   : > { %v2470_v30 = vmin.u32 %v1446_v52, %v4542_v35  ;;  %v1509_v12 = vor.u32 %v1508_v53, %v1507_v58  ;;  %v1512_v26 = vor.u32 %v1511_v54, %v1510_v46  ;;  %v1513_v11 = vshll.u32 %v5220_v5, %v1498_v20 }
 0x213   : > { %vm4559_vm10 = vcmp.le.f32.partialorder %v5244_v32, 0.7853982  ;;  %v1514_v6 = vshrl.u32 %v5213_v49, %v1499_v51  ;;  %v1354_v60 = vshll.u32 %v1353_v3, 23  ;;  %v1436_v34 = vadd.s32 %v4465_v47, %v4478_v4  ;;  %v5247_v51 = vld [vmem:[#allocation42_spill] sm:$0xff] }
 0x214   : > { %v1448_v52 = vclz %v2470_v30  ;;  %v1532_v14 = vshll.u32 %v1492_v42, 8  ;;  %vm1517_vm11 = vcmp.lt.s32.totalorder %v1497_v56, 2  ;;  %vm1518_vm12 = vcmp.lt.s32.totalorder %v1497_v56, 3 }
 0x215   : > { %v1515_v44 = vor.u32 %v1514_v6, %v1513_v11  ;;  %vm1519_vm13 = vcmp.lt.s32.totalorder %v1497_v56, 4  ;;  %v1520_v18 = vsel %vm1516_vm9, %v1500_v17, %v1503_v7  ;;  %v1524_v58 = vsel %vm1516_vm9, %v1503_v7, %v1506_v36 }
 0x216   : > { %v2471_v10 = vadd.s32 4294967294, %v1448_v52  ;;  %v1521_v55 = vsel %vm1519_vm13, %v1509_v12, 2102212464  ;;  %v1525_v5 = vsel %vm1519_vm13, %v1512_v26, 920167782  ;;  %v1528_v49 = vsel %vm1516_vm9, %v1506_v36, %v1509_v12 }
 0x217   : > { %v1522_v46 = vsel %vm1518_vm12, %v1506_v36, %v1521_v55  ;;  %v1529_v20 = vsel %vm1519_vm13, %v1515_v44, 1326507024  ;;  %vm944_vm14 = vcmp.lt.s32.totalorder %v5247_v51, 0  ;;  %v1351_v47 = vor.u32 %v1350_v40, %v1349_v43 }
 0x218   : > { %vm2472_vm15 = vcmp.lt.s32.totalorder %v2471_v10, 0  ;;  %v1526_v4 = vsel %vm1518_vm12, %v1509_v12, %v1525_v5  ;;  %v1530_v3 = vsel %vm1518_vm12, %v1512_v26, %v1529_v20  ;;  %v1355_v42 = vor.u32 4788187, %v1354_v60 }
 0x219   : > { %v1451_v53 = vsel %vm2472_vm15, 0, %v2471_v10  ;;  %v1527_v54 = vsel %vm1517_vm11, %v1524_v58, %v1526_v4  ;;  %v1531_v30 = vsel %vm1517_vm11, %v1528_v49, %v1530_v3  ;;  %v1523_v11 = vsel %vm1517_vm11, %v1520_v18, %v1522_v46 }
 0x21a   : > { %v1452_v17 = vsub.s32 32, %v1451_v53  ;;  %v1453_v7 = vshll.u32 %v4542_v35, %v1451_v53  ;;  %v1456_v32 = vsub.s32 4294967266, %v1451_v53  ;;  %v5248_v36 = vand.u32 2147483647, %v5247_v51 }
 0x21b   : > { %v4581_v43 = vmul.u32.u64.low %v1532_v14, %v1531_v30  ;;  %v4582_v40 = vmul.u32.u64.high %v1532_v14, %v1531_v30, %v4581_v43  ;;  %v4584_v12 = vmul.u32.u64.low %v1532_v14, %v1527_v54  ;;  %v4585_v26 = vmul.u32.u64.high %v1532_v14, %v1527_v54, %v4584_v12 }
 0x21c   : > { %vm4577_vm6 = vcmp.le.f32.partialorder %v5248_v36, 0.7853982  ;;  %v827_v35 = vadd.s32 3, %v823_v9  ;;  %v925_v56 = vsel %vm840_vm0, %v924_v27, %v4122_v63  ;;  %v1454_v60 = vshrl.u32 %v1436_v34, %v1452_v17 }
 0x21d   : > { %v1457_v52 = vadd.s32 127, %v1456_v32  ;;  %2816 = vcosq.f32 %v4519_v25  ;;  %v1129_v44 = vmul.f32 %v1128_v57, %v1126_v37  ;;  %v1356_v10 = vand.u32 2147483647, %v1355_v42 }
 0x21e   : > { %v1358_v61 = vcvt.s32.f32 %v1351_v47  ;;  %v926_v29 = vsel %vm4559_vm10, %v5239_v45, %v4523_v48  ;;  %v1455_v9 = vor.u32 %v1454_v60, %v1453_v7  ;;  %v1539_v55 = vmul.u32 %v1532_v14, %v1523_v11 }
 0x21f   : > { %v1458_v18 = vshll.u32 %v1457_v52, 23  ;;  %v1026_v63 = vxor.u32 2147483648, %v4529_v59  ;;  %v1255_v28 = vmul.f32 %v1254_v15, %v1252_v23  ;;  %vm1541_vm5 = vc.u32 %v4582_v40, %v4584_v12 }
 0x220   : > { %v1542_v21 = vadd.s32 1, %v4585_v26  ;;  %2818 = vsinq.f32 %v4519_v25  ;;  %v927_v27 = vsel %vm4559_vm10, 0, %v925_v56  ;;  %v1462_v37 = vcvt.s32.f32 %v1455_v9 }
 0x221   : > { %v1459_v48 = vor.u32 4788187, %v1458_v18  ;;  %v1028_v57 = vsub.s32 4, %v4254_v19  ;;  %v1130_v34 = vxor.u32 2147483648, %v1129_v44  ;;  %v1359_v14 = vmul.f32 %v1358_v61, %v1356_v10 }
 0x222   : > { %v1543_v31 = vsel %vm1541_vm5, %v1542_v21, %v4585_v26  ;;  %2820 = vcosq.f32 %v926_v29  ;;  %vm1048_vm0 = vcmp.lt.s32.totalorder %v5251_v38, 0  ;;  %v4620_v58 = vand.u32 3, %v827_v35 }
 0x223   : > { %v1460_v15 = vand.u32 2147483647, %v1459_v48  ;;  %v1544_v23 = vadd.s32 %v1543_v31, %v1539_v55  ;;  %v931_v46 = vadd.s32 3, %v927_v27  ;;  %v1027_v62 = vsel %vm944_vm14, %v1026_v63, %v4529_v59 }
 0x224   : > { %v1256_v25 = vxor.u32 2147483648, %v1255_v28  ;;  %2822 = vsinq.f32 %v926_v29  ;;  %vm1174_vm7 = vcmp.lt.s32.totalorder %v4077_v22, 0  ;;  %v1029_v20 = vsel %vm944_vm14, %v1028_v57, %v4254_v19 }
 0x225   : > { %v1463_v5 = vmul.f32 %v1462_v37, %v1460_v15  ;;  %v1545_v49 = vadd.s32 536870912, %v1544_v23  ;;  %v5252_v47 = vand.u32 2147483647, %v5251_v38  ;;  %v1131_v3 = vsel %vm1048_vm0, %v1130_v34, %v1129_v44 }
 0x226   : > { %v1360_v59 = vxor.u32 2147483648, %v1359_v14  ;;  %v1030_v42 = vsel %vm4577_vm6, %v5247_v51, %v1027_v62  ;;  %v1132_v53 = vsub.s32 4, %v4307_v13  ;;  %vm1278_vm9 = vcmp.lt.s32.totalorder %v4229_v2, 0 }
 0x227   : > { %vm4631_vm8 = vcmp.le.f32.partialorder %v5252_v47, 0.7853982  ;;  %v4642_v54 = vshrl.u32 %v1545_v49, 30  ;;  %v4644_v19 = vpop.eup %2816  ;;  %v4646_v30 = vand.u32 3, %v931_v46  ;;  %v5255_v17 = vand.u32 2147483647, %v4077_v22 }
 0x228   : > { %v1257_v32 = vsel %vm1174_vm7, %v1256_v25, %v1255_v28  ;;  %v1464_v11 = vxor.u32 2147483648, %v1463_v5  ;;  %vm833_vm11 = vcmp.eq.s32.totalorder %v4620_v58, 2  ;;  %v1031_v36 = vsel %vm4577_vm6, 0, %v1029_v20 }
 0x229   : > { %vm4650_vm10 = vcmp.le.f32.partialorder %v5255_v17, 0.7853982  ;;  %v1134_v43 = vsel %vm4631_vm8, %v5251_v38, %v1131_v3  ;;  %vm1382_vm12 = vcmp.lt.s32.totalorder %v4350_v33, 0  ;;  %v1547_v26 = vshll.u32 %v4642_v54, 30 }
 0x22a   : > { %vm830_vm13 = vcmp.eq.s32.totalorder %v4620_v58, 0  ;;  %2824 = vcosq.f32 %v1030_v42  ;;  %v1258_v35 = vsub.s32 4, %v4334_v0  ;;  %v5258_v56 = vand.u32 2147483647, %v4229_v2  ;;  %v2819_v52 = vpop.eup %2818 }
 0x22b   : > { %v1361_v6 = vsel %vm1278_vm9, %v1360_v59, %v1359_v14  ;;  %2826 = vsinq.f32 %v1030_v42  ;;  %v1133_v44 = vsel %vm1048_vm0, %v1132_v53, %v4307_v13  ;;  %v1260_v10 = vsel %vm4650_vm10, %v4077_v22, %v1257_v32 }
 0x22c   : > { %vm4668_vm14 = vcmp.le.f32.partialorder %v5258_v56, 0.7853982  ;;  %v4680_v61 = vsub.s32 %v1544_v23, %v1547_v26  ;;  %v1035_v29 = vadd.s32 3, %v1031_v36  ;;  %2828 = vcosq.f32 %v1134_v43  ;;  %v2821_v63 = vpop.eup %2820 }
 0x22d   : > { %v5261_v9 = vand.u32 2147483647, %v4350_v33  ;;  %v1465_v55 = vsel %vm1382_vm12, %v1464_v11, %v1463_v5  ;;  %2830 = vsinq.f32 %v1134_v43  ;;  %v1362_v13 = vsub.s32 4, %v4417_v8 }
 0x22e   : > { %v1364_v28 = vsel %vm4668_vm14, %v4229_v2, %v1361_v6  ;;  %v1550_v21 = vsub.s32 0, %v4680_v61  ;;  %v1135_v27 = vsel %vm4631_vm8, 0, %v1133_v44  ;;  %v1259_v48 = vsel %vm1174_vm7, %v1258_v35, %v4334_v0  ;;  %v2823_v37 = vpop.eup %2822 }
 0x22f   : > { %vm4684_vm15 = vcmp.le.f32.partialorder %v5261_v9, 0.7853982  ;;  %2832 = vcosq.f32 %v1260_v10  ;;  %vm829_vm6 = vcmp.lt.s32.totalorder %v4620_v58, 2  ;;  %vm933_vm5 = vcmp.lt.s32.totalorder %v4646_v30, 2 }
 0x230   : > { %2834 = vsinq.f32 %v1260_v10  ;;  %v1466_v57 = vsub.s32 4, %v4527_v24  ;;  %v1468_v34 = vsel %vm4684_vm15, %v4350_v33, %v1465_v55  ;;  %v2474_v14 = vmin.u32 %v1550_v21, %v4680_v61 }
 0x231   : > { %vm3232_vm0 = vmmov 0   ;;  %v5264_v31 = vmov 0.0   ;;  %v831_v15 = vxor.u32 2147483648, %v2819_v52  ;;  %v834_v0 = vxor.u32 2147483648, %v4644_v19 }
 0x232   : > { %2565 = vmatprep.mubr.msk.bf16.mxu1 %vm3232_vm0, %v5264_v31  ;;  %v938_v23 = vxor.u32 2147483648, %v2821_v63  ;;  %2836 = vcosq.f32 %v1364_v28  ;;  %v1261_v46 = vsel %vm4650_vm10, 0, %v1259_v48  ;;  %v1363_v62 = vsel %vm1278_vm9, %v1362_v13, %v4417_v8 }
 0x233   : > { %2838 = vsinq.f32 %v1364_v28  ;;  %v1552_v25 = vclz %v2474_v14  ;;  %v935_v5 = vxor.u32 2147483648, %v2823_v37  ;;  %vm937_vm7 = vcmp.eq.s32.totalorder %v4646_v30, 2 }
 0x234   : > { %v1139_v49 = vadd.s32 3, %v1135_v27  ;;  %2840 = vcosq.f32 %v1468_v34  ;;  %vm934_vm8 = vcmp.eq.s32.totalorder %v4646_v30, 0  ;;  %v1467_v20 = vsel %vm1382_vm12, %v1466_v57, %v4527_v24  ;;  %v2825_v4 = vpop.eup %2824 }
 0x235   : > { %2842 = vsinq.f32 %v1468_v34  ;;  %v2475_v47 = vadd.s32 4294967294, %v1552_v25  ;;  %v835_v3 = vsel %vm833_vm11, %v834_v0, %v2819_v52  ;;  %v4721_v8 = vand.u32 3, %v1035_v29  ;;  %v2827_v53 = vpop.eup %2826 }
 0x236   : > { %v1265_v59 = vadd.s32 3, %v1261_v46  ;;  %v1365_v42 = vsel %vm4668_vm14, 0, %v1363_v62  ;;  %v832_v17 = vsel %vm830_vm13, %v4644_v19, %v831_v15  ;;  %v939_v7 = vsel %vm937_vm7, %v938_v23, %v2823_v37  ;;  %v4730_v32 = vpop.eup %2828 }
 0x237   : > { %v1540_v24 = vadd.s32 %v4584_v12, %v4582_v40  ;;  %vm2476_vm9 = vcmp.lt.s32.totalorder %v2475_v47, 0  ;;  %v936_v11 = vsel %vm934_vm8, %v2821_v63, %v935_v5  ;;  %v4732_v36 = vand.u32 3, %v1139_v49  ;;  %v4736_v35 = vpop.eup %2830 }
 0x238   : > { %v1469_v43 = vsel %vm4684_vm15, 0, %v1467_v20  ;;  %v1555_v26 = vsel %vm2476_vm9, 0, %v2475_v47  ;;  %v1369_v56 = vadd.s32 3, %v1365_v42  ;;  %vm1038_vm10 = vcmp.eq.s32.totalorder %v4721_v8, 0 }
 0x239   : > { %v1556_v60 = vsub.s32 32, %v1555_v26  ;;  %v1557_v19 = vshll.u32 %v4680_v61, %v1555_v26  ;;  %v1560_v6 = vsub.s32 4294967266, %v1555_v26  ;;  %v2833_v52 = vpop.eup %2832  ;;  %v1039_v40 = vxor.u32 2147483648, %v2827_v53 }
 0x23a   : > { %v1042_v12 = vxor.u32 2147483648, %v2825_v4  ;;  %v4740_v44 = vand.u32 3, %v1265_v59  ;;  %v2835_v10 = vpop.eup %2834  ;;  %vm1041_vm11 = vcmp.eq.s32.totalorder %v4721_v8, 2  ;;  %v1473_v29 = vadd.s32 3, %v1469_v43 }
 0x23b   : > { %v1558_v9 = vshrl.u32 %v1540_v24, %v1556_v60  ;;  %v1561_v18 = vadd.s32 127, %v1560_v6  ;;  %v4745_v63 = vsel %vm829_vm6, %v832_v17, %v835_v3  ;;  %v4749_v61 = vsel %vm933_vm5, %v936_v11, %v939_v7 }
 0x23c   : > { %v2837_v55 = vpop.eup %2836  ;;  %vm1037_vm12 = vcmp.lt.s32.totalorder %v4721_v8, 2  ;;  %vm1142_vm13 = vcmp.eq.s32.totalorder %v4732_v36, 0  ;;  %v1370_v28 = vand.u32 3, %v1369_v56  ;;  %v1040_v37 = vsel %vm1038_vm10, %v2825_v4, %v1039_v40 }
 0x23d   : > { %v2839_v13 = vpop.eup %2838  ;;  %v1559_v21 = vor.u32 %v1558_v9, %v1557_v19  ;;  %v1562_v27 = vshll.u32 %v1561_v18, 23  ;;  %v1043_v57 = vsel %vm1041_vm11, %v1042_v12, %v2827_v53  ;;  %vm1145_vm14 = vcmp.eq.s32.totalorder %v4732_v36, 2  ;;  %v2460_v18 = vld [vmem:[#allocation12] ss:$0 sm:$0xff] }
 0x23e   : > { %v2841_v48 = vpop.eup %2840  ;;  %vm1267_vm15 = vcmp.lt.s32.totalorder %v4740_v44, 2  ;;  %vm826_vm6 = vweird.f32 %v5235_v41  ;;  %vm930_vm5 = vweird.f32 %v5239_v45  ;;  %vm1268_vm0 = vcmp.eq.s32.totalorder %v4740_v44, 0 }
 0x23f   : > { %v2843_v58 = vpop.eup %2842  ;;  %v1474_v30 = vand.u32 3, %v1473_v29  ;;  %v1563_v34 = vor.u32 4788187, %v1562_v27  ;;  %v1566_v14 = vcvt.s32.f32 %v1559_v21  ;;  %v1143_v31 = vxor.u32 2147483648, %v4736_v35 }
 0x240   : > { %v1146_v15 = vxor.u32 2147483648, %v4730_v32  ;;  %vm1271_vm10 = vcmp.eq.s32.totalorder %v4740_v44, 2  ;;  %v1272_v0 = vxor.u32 2147483648, %v2833_v52  ;;  %v1269_v23 = vxor.u32 2147483648, %v2835_v10 }
 0x241   : > { %vm1372_vm11 = vcmp.eq.s32.totalorder %v1370_v28, 0  ;;  %v1564_v46 = vand.u32 2147483647, %v1563_v34  ;;  %v1570_v62 = vsub.s32 4, %v4642_v54  ;;  %v1373_v25 = vxor.u32 2147483648, %v2839_v13 }
 0x242   : > { %v1376_v5 = vxor.u32 2147483648, %v2837_v55  ;;  %v1477_v49 = vxor.u32 2147483648, %v2843_v58  ;;  %v1480_v20 = vxor.u32 2147483648, %v2841_v48  ;;  %vm1375_vm2 = vcmp.eq.s32.totalorder %v1370_v28, 2 }
 0x243   : > { %vm1476_vm3 = vcmp.eq.s32.totalorder %v1474_v30, 0  ;;  %vm1479_vm4 = vcmp.eq.s32.totalorder %v1474_v30, 2  ;;  %v1567_v47 = vmul.f32 %v1566_v14, %v1564_v46  ;;  %v1273_v4 = vsel %vm1271_vm10, %v1272_v0, %v2835_v10 }
 0x244   : > { %vm1371_vm1 = vcmp.lt.s32.totalorder %v1370_v28, 2  ;;  %v5265_v3 = vand.u32 2147483647, %v4404_v16  ;;  %vm1486_vm8 = vcmp.lt.s32.totalorder %v4404_v16, 0  ;;  %v1270_v42 = vsel %vm1268_vm0, %v2833_v52, %v1269_v23  ;;  %v5272_v23 = vld [vmem:[#allocation37_spill] sm:$0xff] }
 0x245   : > { %vm1475_vm7 = vcmp.lt.s32.totalorder %v1474_v30, 2  ;;  %v1568_v53 = vxor.u32 2147483648, %v1567_v47  ;;  %v1571_v17 = vsel %vm1486_vm8, %v1570_v62, %v4642_v54  ;;  %v1374_v7 = vsel %vm1372_vm11, %v2837_v55, %v1373_v25 }
 0x246   : > { %vm4769_vm9 = vcmp.le.f32.partialorder %v5265_v3, 0.7853982  ;;  %v1377_v24 = vsel %vm1375_vm2, %v1376_v5, %v2839_v13  ;;  %v1478_v11 = vsel %vm1476_vm3, %v2841_v48, %v1477_v49  ;;  %v1481_v43 = vsel %vm1479_vm4, %v1480_v20, %v2843_v58  ;;  %v5273_v5 = vld [vmem:[#allocation48_spill] sm:$0xff] }
 0x247   : > { %v1044_v26 = vsel %vm1037_vm12, %v1040_v37, %v1043_v57  ;;  %v1147_v56 = vsel %vm1145_vm14, %v1146_v15, %v4736_v35  ;;  %vm1368_vm10 = vweird.f32 %v4229_v2  ;;  %v1569_v60 = vsel %vm1486_vm8, %v1568_v53, %v1567_v47  ;;  %v5274_v47 = vld [vmem:[#allocation39_spill] sm:$0xff]  ;;  %v5275_v53 = vld [vmem:[#allocation41_spill] sm:$0xff] }
 0x248   : > { %v1144_v19 = vsel %vm1142_vm13, %v4730_v32, %v1143_v31  ;;  %v1274_v54 = vsel %vm1267_vm15, %v1270_v42, %v1273_v4  ;;  %v1572_v6 = vsel %vm4769_vm9, %v4404_v16, %v1569_v60  ;;  %v1573_v8 = vsel %vm4769_vm9, 0, %v1571_v17 }
 0x249   : > { %v1378_v52 = vsel %vm1371_vm1, %v1374_v7, %v1377_v24  ;;  %vm1472_vm2 = vweird.f32 %v4350_v33  ;;  %v1482_v35 = vsel %vm1475_vm7, %v1478_v11, %v1481_v43  ;;  %2844 = vcosq.f32 %v1572_v6 }
 0x24a   : > { %v837_v32 = vsel %vm826_vm6, nan, %v4745_v63  ;;  %v941_v40 = vsel %vm930_vm5, nan, %v4749_v61  ;;  %vm1138_vm3 = vweird.f32 %v5251_v38  ;;  %2846 = vsinq.f32 %v1572_v6 }
 0x24b   : > { %vm5268_vm4 = vweird.f32 %v5247_v51  ;;  %vm5269_vm1 = vcmp.lt.s32.totalorder %v4732_v36, 2  ;;  %vm5271_vm12 = vweird.f32 %v4077_v22  ;;  %v1577_v10 = vadd.s32 3, %v1573_v8 }
 0x24c   : > { %v1045_v12 = vsel %vm5268_vm4, nan, %v1044_v26  ;;  %v1148_v33 = vsel %vm5269_vm1, %v1144_v19, %v1147_v56  ;;  %v1275_v44 = vsel %vm5271_vm12, nan, %v1274_v54  ;;  %v1379_v41 = vsel %vm1368_vm10, nan, %v1378_v52 }
 0x24d   : > { %v1483_v29 = vsel %vm1472_vm2, nan, %v1482_v35  ;;  %v1601_v45 = vlaneseq  ;;  %v1150_v9 = vmul.f32 %v837_v32, %v837_v32  ;;  %v1149_v38 = vsel %vm1138_vm3, nan, %v1148_v33 }
 0x24e   : > { %v1151_v55 = vmul.f32 %v941_v40, %v941_v40  ;;  %v1152_v63 = vmul.f32 %v1045_v12, %v1045_v12  ;;  %v1588_v51 = vmul.f32 %v1275_v44, %v1275_v44  ;;  %v1578_v61 = vand.u32 3, %v1577_v10 }
 0x24f   : > { %v1589_v13 = vmul.f32 %v1379_v41, %v1379_v41  ;;  %v1590_v36 = vmul.f32 %v1483_v29, %v1483_v29  ;;  %v1602_v28 = vshrl.u32 %v1601_v45, 7  ;;  %v1153_v22 = vmul.f32 %v1149_v38, %v1149_v38 }
 0x250   : > { %v1160_v21 = vmul.f32 %v2460_v18, %v1150_v9  ;;  %v1161_v27 = vmul.f32 %v2460_v18, %v1151_v55  ;;  %v1162_v48 = vmul.f32 %v2460_v18, %v1152_v63  ;;  %v1592_v2 = vmul.f32 %v2460_v18, %v1588_v51 }
 0x251   : > { %vm1583_vm13 = vcmp.eq.s32.totalorder %v1578_v61, 2  ;;  %v1593_v57 = vmul.f32 %v2460_v18, %v1589_v13  ;;  %v1594_v58 = vmul.f32 %v2460_v18, %v1590_v36  ;;  %v1605_v30 = vstv %s2477_s3 }
 0x252   : > { %vm1580_vm14 = vcmp.eq.s32.totalorder %v1578_v61, 0  ;;  %v1603_v31 = vadd.s32 8, %v1602_v28  ;;  %v1604_v15 = vadd.s32 16, %v1602_v28  ;;  %v1163_v0 = vmul.f32 %v2460_v18, %v1153_v22 }
 0x253   : > { %v2845_v37 = vpop.eup %2844  ;;  %v1164_v46 = vadd.f32 %v1160_v21, %v5272_v23  ;;  %vm1579_vm15 = vcmp.lt.s32.totalorder %v1578_v61, 2  ;;  %vm1576_vm6 = vweird.f32 %v4404_v16  ;;  %v1596_v49 = vadd.f32 %v1592_v2, %v5273_v5  ;;  %v5276_v16 = vld [vmem:[#allocation43_spill] sm:$0xff] }
 0x254   : > { %v2847_v34 = vpop.eup %2846  ;;  %v1584_v14 = vxor.u32 2147483648, %v2845_v37  ;;  %v4817_v20 = vadd.s32 %v1605_v30, %v1602_v28  ;;  %v1165_v4 = vadd.f32 %v1161_v27, %v5274_v47  ;;  %v1597_v59 = vadd.f32 %v1593_v57, %v4190_v50 }
 0x255   : > { %v1581_v62 = vxor.u32 2147483648, %v2847_v34  ;;  %v1598_v42 = vadd.f32 %v1594_v58, %v4319_v1  ;;  %v1166_v17 = vadd.f32 %v1162_v48, %v5275_v53  ;;  %v4823_v24 = vadd.s32 %v1605_v30, %v1603_v31 }
 0x256   : > { %v1585_v25 = vsel %vm1583_vm13, %v1584_v14, %v2847_v34  ;;  %v4825_v11 = vadd.s32 %v1605_v30, %v1604_v15  ;;  %v1167_v43 = vadd.f32 %v1163_v0, %v5276_v16  ;;  %vm1609_vm5 = vcmp.le.s32.totalorder %v4817_v20, 2 }
 0x257   : > { %v1582_v3 = vsel %vm1580_vm14, %v2845_v37, %v1581_v62  ;;  %v1623_v60 = vsub.s32 1, %v1602_v28  ;;  %v1629_v19 = vrot.slane %v1596_v49, 6  ;;  %v1630_v54 = vrot.slane %v1597_v59, 6 }
 0x258   : > { %v1586_v7 = vsel %vm1579_vm15, %v1582_v3, %v1585_v25  ;;  %v1632_v6 = vrot.slane %v1598_v42, 6  ;;  %v1671_v50 = vrot.slane %v1164_v46, 6  ;;  %v1672_v8 = vrot.slane %v1165_v4, 6 }
 0x259   : > { %v1587_v26 = vsel %vm1576_vm6, nan, %v1586_v7  ;;  %vm1610_vm0 = vcmp.le.s32.totalorder %v4823_v24, 2  ;;  %vm1611_vm7 = vcmp.le.s32.totalorder %v4825_v11, 2  ;;  %v1674_v52 = vrot.slane %v1166_v17, 6 }
 0x25a   : > { %v1591_v56 = vmul.f32 %v1587_v26, %v1587_v26  ;;  %vm1612_vm8 = vcmp.ge.s32.totalorder %v4817_v20, 67  ;;  %vm1613_vm9 = vcmp.ge.s32.totalorder %v4823_v24, 67  ;;  %vm1614_vm11 = vcmp.ge.s32.totalorder %v4825_v11, 67 }
 0x25b   : > { %v1676_v35 = vrot.slane %v1167_v43, 6  ;;  %v1651_v40 = vrot.slane %v1165_v4, %v1623_v60  ;;  %vm5277_vm3 = vcmask 1041408   ;;  %vm1658_vm1 = vcmp.ge.s32.totalorder %v4817_v20, 66 }
 0x25c   : > { %v1595_v1 = vmul.f32 %v2460_v18, %v1591_v56  ;;  %v1631_v12 = vsel %vm5277_vm3, %v1629_v19, %v1630_v54  ;;  %vm5278_vm4 = vmmov %vm5277_vm3  ;;  %vm1659_vm13 = vcmp.ge.s32.totalorder %v4823_v24, 66  ;;  %vm1657_vm15 = vcmp.le.s32.totalorder %v4825_v11, 1 }
 0x25d   : > { %v1633_v33 = vsel %vm5278_vm4, %v1630_v54, %v1632_v6  ;;  %vm5279_vm12 = vmmov %vm5277_vm3  ;;  %vm1660_vm6 = vcmp.ge.s32.totalorder %v4825_v11, 66  ;;  %vm1711_vm2 = vcmask 1046528  }
 0x25e   : > { %v1599_v32 = vadd.f32 %v1595_v1, %v4383_v39  ;;  %v1673_v44 = vsel %vm5279_vm12, %v1671_v50, %v1672_v8  ;;  %vm5280_vm14 = vmmov %vm5277_vm3 }
 0x25f   : > { %v1675_v29 = vsel %vm5280_vm14, %v1672_v8, %v1674_v52  ;;  %vm5281_vm10 = vmmov %vm5277_vm3  ;;  %vm1881_vm14 = vcmp.lt.s32.totalorder %v4823_v24, 64 }
 0x260   : > { %v1624_v10 = vrot.slane %v1599_v32, %v1623_v60  ;;  %v1634_v41 = vrot.slane %v1599_v32, 6  ;;  %v1677_v39 = vsel %vm5281_vm10, %v1674_v52, %v1676_v35  ;;  %vm1880_vm10 = vcmp.lt.s32.totalorder %v4817_v20, 64 }
 0x262   : > { %v1635_v45 = vsel %vm5277_vm3, %v1632_v6, %v1634_v41  ;;  %v1639_v9 = vsel %vm1612_vm8, %v1624_v10, %v1631_v12  ;;  %v1640_v18 = vsel %vm1613_vm9, %v1624_v10, %v1633_v33  ;;  %v1681_v38 = vsel %vm1658_vm1, %v1624_v10, %v1673_v44 }
 0x263   : > { %v1641_v55 = vsel %vm1614_vm11, %v1624_v10, %v1635_v45  ;;  %v4855_v63 = vsel %vm1609_vm5, %v1651_v40, %v1639_v9  ;;  %v4859_v51 = vsel %vm1610_vm0, %v1651_v40, %v1640_v18  ;;  %v1682_v61 = vsel %vm1659_vm13, %v1624_v10, %v1675_v29 }
 0x264   : > { %v4863_v13 = vsel %vm1611_vm7, %v1651_v40, %v1641_v55  ;;  %v1683_v36 = vsel %vm1660_vm6, %v1624_v10, %v1677_v39  ;;  %vm5282_vm8 = vcmp.le.s32.totalorder %v4817_v20, 1  ;;  %vm5283_vm9 = vcmp.le.s32.totalorder %v4823_v24, 1 }
 0x265   : > { %v4867_v28 = vsel %vm5282_vm8, %v1651_v40, %v1681_v38  ;;  %v4871_v22 = vsel %vm5283_vm9, %v1651_v40, %v1682_v61  ;;  %v4875_v21 = vsel %vm1657_vm15, %v1651_v40, %v1683_v36  ;;  %v1693_v27 = vmul.f32 0.0020289666, %v4855_v63 }
 0x266   : > { %v1694_v48 = vmul.f32 0.0020289666, %v4859_v51  ;;  %v1695_v2 = vmul.f32 0.0020289666, %v4863_v13  ;;  %v1699_v37 = vmul.f32 0.009389464, %v4867_v28 }
 0x267   : > { %v1700_v57 = vmul.f32 0.009389464, %v4871_v22  ;;  %v1701_v58 = vmul.f32 0.009389464, %v4875_v21  ;;  %v1705_v30 = vmul.f32 -0.025543464, %v4855_v63 }
 0x268   : > { %v1706_v34 = vmul.f32 -0.025543464, %v4859_v51  ;;  %v1707_v14 = vmul.f32 -0.025543464, %v4863_v13  ;;  %v1702_v31 = vadd.f32 %v1699_v37, %v1693_v27  ;;  %v1723_v23 = vmul.f32 -0.057657376, %v4867_v28 }
 0x269   : > { %v1703_v15 = vadd.f32 %v1700_v57, %v1694_v48  ;;  %v1704_v0 = vadd.f32 %v1701_v58, %v1695_v2  ;;  %v1712_v46 = vrot.slane %v1705_v30, 1  ;;  %v1724_v5 = vmul.f32 -0.057657376, %v4871_v22 }
 0x26a   : > { %v1713_v62 = vrot.slane %v1706_v34, 1  ;;  %v1715_v25 = vrot.slane %v1707_v14, 1  ;;  %v1725_v49 = vmul.f32 -0.057657376, %v4875_v21  ;;  %v1729_v47 = vrot.slane %v1723_v23, 1 }
 0x26b   : > { %v1740_v4 = vmul.f32 0.12857261, %v4855_v63  ;;  %vm1746_vm5 = vcmask 1045504   ;;  %v1730_v53 = vrot.slane %v1724_v5, 1  ;;  %v1741_v43 = vmul.f32 0.12857261, %v4859_v51 }
 0x26c   : > { %v1714_v3 = vsel %vm1711_vm2, %v1712_v46, %v1713_v62  ;;  %v1716_v59 = vsel %vm1711_vm2, %v1713_v62, %v1715_v25  ;;  %v1722_v42 = vadd.f32 %v1715_v25, %v1704_v0  ;;  %v1732_v16 = vrot.slane %v1725_v49, 1 }
 0x26d   : > { %v1720_v17 = vadd.f32 %v1714_v3, %v1702_v31  ;;  %v1721_v7 = vadd.f32 %v1716_v59, %v1703_v15  ;;  %v1731_v26 = vsel %vm1711_vm2, %v1729_v47, %v1730_v53  ;;  %v1742_v56 = vmul.f32 0.12857261, %v4863_v13 }
 0x26e   : > { %v1747_v60 = vrot.slane %v1740_v4, 2  ;;  %v1758_v19 = vmul.f32 0.4432098, %v4867_v28  ;;  %v1733_v54 = vsel %vm1711_vm2, %v1730_v53, %v1732_v16  ;;  %v1739_v50 = vadd.f32 %v1732_v16, %v1722_v42 }
 0x26f   : > { %v1737_v6 = vadd.f32 %v1731_v26, %v1720_v17  ;;  %v1748_v8 = vrot.slane %v1741_v43, 2  ;;  %v1738_v1 = vadd.f32 %v1733_v54, %v1721_v7  ;;  %v1750_v52 = vrot.slane %v1742_v56, 2 }
 0x270   : > { %v1759_v35 = vmul.f32 0.4432098, %v4871_v22  ;;  %v1760_v32 = vmul.f32 0.4432098, %v4875_v21  ;;  %v1764_v12 = vrot.slane %v1758_v19, 2  ;;  %vm5284_vm0 = vcmask 1044480  }
 0x271   : > { %v1749_v40 = vsel %vm1746_vm5, %v1747_v60, %v1748_v8  ;;  %v1775_v33 = vmul.f32 0.4432098, %v4855_v63  ;;  %v1776_v44 = vmul.f32 0.4432098, %v4859_v51  ;;  %v1751_v10 = vsel %vm1746_vm5, %v1748_v8, %v1750_v52  ;;  %vm5285_vm7 = vmmov %vm5284_vm0 }
 0x272   : > { %v1755_v41 = vadd.f32 %v1749_v40, %v1737_v6  ;;  %v1757_v29 = vadd.f32 %v1750_v52, %v1739_v50  ;;  %v1765_v39 = vrot.slane %v1759_v35, 2  ;;  %v1756_v45 = vadd.f32 %v1751_v10, %v1738_v1  ;;  %vm5286_vm4 = vmmov %vm5284_vm0 }
 0x273   : > { %v1767_v9 = vrot.slane %v1760_v32, 2  ;;  %v1777_v18 = vmul.f32 0.4432098, %v4863_v13  ;;  %v1781_v38 = vrot.slane %v1775_v33, 3  ;;  %v1782_v61 = vrot.slane %v1776_v44, 3  ;;  %vm5287_vm12 = vmmov %vm5284_vm0 }
 0x274   : > { %v1766_v55 = vsel %vm1746_vm5, %v1764_v12, %v1765_v39  ;;  %v1792_v36 = vmul.f32 0.12857261, %v4867_v28  ;;  %v1793_v27 = vmul.f32 0.12857261, %v4871_v22  ;;  %v1794_v34 = vmul.f32 0.12857261, %v4875_v21 }
 0x275   : > { %v1768_v48 = vsel %vm1746_vm5, %v1765_v39, %v1767_v9  ;;  %v1772_v2 = vadd.f32 %v1766_v55, %v1755_v41  ;;  %v1774_v37 = vadd.f32 %v1767_v9, %v1757_v29  ;;  %v1784_v57 = vrot.slane %v1777_v18, 3 }
 0x276   : > { %v1773_v58 = vadd.f32 %v1768_v48, %v1756_v45  ;;  %v1783_v30 = vsel %vm5284_vm0, %v1781_v38, %v1782_v61  ;;  %v1798_v14 = vrot.slane %v1792_v36, 3  ;;  %v1799_v23 = vrot.slane %v1793_v27, 3 }
 0x277   : > { %v1785_v31 = vsel %vm5285_vm7, %v1782_v61, %v1784_v57  ;;  %v1789_v15 = vadd.f32 %v1783_v30, %v1772_v2  ;;  %v1791_v0 = vadd.f32 %v1784_v57, %v1774_v37  ;;  %v1801_v62 = vrot.slane %v1794_v34, 3 }
 0x278   : > { %v1790_v46 = vadd.f32 %v1785_v31, %v1773_v58  ;;  %v1809_v25 = vmul.f32 -0.057657376, %v4855_v63  ;;  %v1810_v5 = vmul.f32 -0.057657376, %v4859_v51  ;;  %vm1877_vm11 = vcmp.ge.s32.totalorder %v4817_v20, 0 }
 0x279   : > { %v1800_v49 = vsel %vm5286_vm4, %v1798_v14, %v1799_v23  ;;  %v1811_v47 = vmul.f32 -0.057657376, %v4863_v13  ;;  %v1826_v4 = vmul.f32 -0.025543464, %v4867_v28  ;;  %v1827_v3 = vmul.f32 -0.025543464, %v4871_v22  ;;  %vm4941_vm7 = vmand %vm1877_vm11, %vm1880_vm10 }
 0x27a   : > { %vm1879_vm1 = vcmp.ge.s32.totalorder %v4825_v11, 0  ;;  %v1802_v59 = vsel %vm5287_vm12, %v1799_v23, %v1801_v62  ;;  %v1806_v42 = vadd.f32 %v1800_v49, %v1789_v15  ;;  %v1808_v53 = vadd.f32 %v1801_v62, %v1791_v0 }
 0x27b   : > { %v1815_v17 = vrot.slane %v1809_v25, 4  ;;  %vm1878_vm13 = vcmp.ge.s32.totalorder %v4823_v24, 0  ;;  %v1807_v7 = vadd.f32 %v1802_v59, %v1790_v46  ;;  %v1816_v16 = vrot.slane %v1810_v5, 4 }
 0x27c   : > { %v1818_v43 = vrot.slane %v1811_v47, 4  ;;  %v1828_v26 = vmul.f32 -0.025543464, %v4875_v21  ;;  %v1832_v56 = vrot.slane %v1826_v4, 4  ;;  %v1833_v60 = vrot.slane %v1827_v3, 4 }
 0x27d   : > { %v1843_v19 = vmul.f32 0.009389464, %v4855_v63  ;;  %v1844_v54 = vmul.f32 0.009389464, %v4859_v51  ;;  %vm5288_vm15 = vcmask 1043456   ;;  %vm5292_vm9 = vcmask 1042432  }
 0x27e   : > { %v1817_v6 = vsel %vm5288_vm15, %v1815_v17, %v1816_v16  ;;  %vm5289_vm6 = vmmov %vm5288_vm15  ;;  %v1825_v8 = vadd.f32 %v1818_v43, %v1808_v53  ;;  %v1835_v1 = vrot.slane %v1828_v26, 4  ;;  %v1845_v40 = vmul.f32 0.009389464, %v4863_v13  ;;  %v2478_v17 = vld [vmem:[#allocation15] ss:$0 sm:$0xff] }
 0x27f   : > { %v1819_v50 = vsel %vm5289_vm6, %v1816_v16, %v1818_v43  ;;  %v1823_v52 = vadd.f32 %v1817_v6, %v1806_v42  ;;  %vm5290_vm3 = vmmov %vm5289_vm6  ;;  %v1849_v44 = vrot.slane %v1843_v19, 5  ;;  %v1850_v10 = vrot.slane %v1844_v54, 5  ;;  %v2206_v6 = vld [vmem:[%s3700_s21 + $0x8] sm:$0xff] }
 0x280   : > { %v1824_v35 = vadd.f32 %v1819_v50, %v1807_v7  ;;  %v1834_v32 = vsel %vm5290_vm3, %v1832_v56, %v1833_v60  ;;  %vm5291_vm8 = vmmov %vm5290_vm3  ;;  %v1842_v33 = vadd.f32 %v1835_v1, %v1825_v8  ;;  %v1852_v51 = vrot.slane %v1845_v40, 5 }
 0x281   : > { %v1836_v12 = vsel %vm5291_vm8, %v1833_v60, %v1835_v1  ;;  %v1840_v63 = vadd.f32 %v1834_v32, %v1823_v52  ;;  %v1860_v29 = vmul.f32 0.0020289666, %v4867_v28  ;;  %v1851_v39 = vsel %vm5292_vm9, %v1849_v44, %v1850_v10  ;;  %vm5293_vm0 = vmmov %vm5292_vm9  ;;  %v2205_v60 = vld [vmem:[%s3700_s21] sm:$0xff]  ;;  %s3233_s21 = smov [#allocation16]  }
 0x282   : > { %v1841_v41 = vadd.f32 %v1836_v12, %v1824_v35  ;;  %v1861_v45 = vmul.f32 0.0020289666, %v4871_v22  ;;  %v1862_v9 = vmul.f32 0.0020289666, %v4875_v21  ;;  %vm1882_vm5 = vcmp.lt.s32.totalorder %v4825_v11, 64  ;;  %vm5296_vm12 = vmmov %vm5293_vm0  ;;  %s3054_s15 = sshll.u32 %s3233_s21, 4  ;;  %s3055_s15 = int_to_ptr.vmem [resolvable:$false] %s3054_s15 }
 0x283   : > { %v1853_v13 = vsel %vm5293_vm0, %v1850_v10, %v1852_v51  ;;  %v1857_v18 = vadd.f32 %v1851_v39, %v1840_v63  ;;  %v1859_v38 = vadd.f32 %v1852_v51, %v1842_v33  ;;  %v1866_v55 = vrot.slane %v1860_v29, 5  ;;  %vm1885_vm4 = vmand %vm1879_vm1, %vm1882_vm5  ;;  %s3056_s20 = scalar_lea.vmem %s3055_s15, 512  ;;  %p3057_p8 = scmp.lt.s32.totalorder %s4976_s6, %s3055_s15 }
 0x284   : > { %v1858_v61 = vadd.f32 %v1853_v13, %v1841_v41  ;;  %v1867_v36 = vrot.slane %v1861_v45, 5  ;;  %v1869_v27 = vrot.slane %v1862_v9, 5  ;;  %vm5297_vm15 = vmmov %vm5293_vm0  ;;  %vm1898_vm11 = vsmask.f32 7424  ;;  %p3058_p12 = scmp.lt.s32.totalorder %s3056_s20, %s3050_s18 }
 0x285   : > { %vm4953_vm6 = vmand %vm1878_vm13, %vm1881_vm14 }
 0x286   : > { %v1868_v22 = vsel %vm5296_vm12, %v1866_v55, %v1867_v36  ;;  %v1870_v21 = vsel %vm5297_vm15, %v1867_v36, %v1869_v27  ;;  %v1876_v48 = vadd.f32 %v1869_v27, %v1859_v38  ;;  %vm2515_vm10 = vmpackc.low %vm4953_vm6, %vm4941_vm7  ;;  %p3059_p11 = por %p3058_p12, %p3057_p8 }
 0x287   : > { %v1874_v20 = vadd.f32 %v1868_v22, %v1857_v18  ;;  %v1875_v37 = vadd.f32 %v1870_v21, %v1858_v61 }
 0x288   : > { %v1894_v57 = vsel %vm1885_vm4, %v1876_v48, 0.0  ;;  %p3060_p3 = pnand %p3059_p11, %p3053_p9 }
 0x289   : > { %v1892_v11 = vsel %vm4941_vm7, %v1874_v20, 0.0  ;;  %v1893_v58 = vsel %vm4953_vm6, %v1875_v37, 0.0  ;;  %v1897_v30 = vpack.c.bf16 %v1894_v57, %v1894_v57  ;;  %v2516_v5 = vpack.c.bf16 %v1875_v37, %v1874_v20 }
 0x28a   : > { %v1895_v34 = vpack.c.bf16 %v1893_v58, %v1892_v11 }
 0x28b   : > { %v1907_v14 = vshll.u32 %v1897_v30, 16  ;;  %v1917_v31 = vrot.slane %v1897_v30, 1 }
 0x28c   : > { %v1900_v15 = vshrl.u32 %v1895_v34, 16  ;;  %v1902_v0 = vshll.u32 %v1895_v34, 16  ;;  %v1916_v24 = vrot.slane %v1895_v34, 1 }
 0x28d   : > { %v1909_v46 = vrot.slane %v1907_v14, 1 }
 0x28e   : > { %v1904_v23 = vrot.slane %v1902_v0, 1  ;;  %v1918_v62 = vsel %vm1711_vm2, %v1916_v24, %v1917_v31 }
 0x28f   : > { %2566 = vmatmul.mubr.bf16.vlgmr.msra.gmra.mrb[0].mxu1 %v1918_v62 }
 0x290   : > { %v1905_v25 = vor.u32 %v1904_v23, %v1900_v15 }
 0x292   : > { %v1910_v49 = vsel %vm1898_vm11, %v1905_v25, %v1909_v46 }
 0x293   : > { %2155 = vmatprep.mubr.bf16.mxu0 %v1910_v49 }
 0x294   : > { %2517 = vmatmul.mubr.msk.bf16.vlgmr.msra.gmra.mrb[0].mxu0 %vm2515_vm10, %v2516_v5 }
 0x362   : > { %v2198_v47 = vpop.f32.mrb[0].mxu1 }
 0x363   : > { %v2567_v4 = vpop.f32.mrb[1].mxu1 }
 0x364   : > { %v2201_v3 = vpop.f32.mrb[2].mxu1 }
 0x365   : > { %v2568_v59 = vpop.f32.mrb[3].mxu1 }
 0x367   : > { %v2534_v42 = vpop.f32.mrb[0].mxu0 }
 0x368   : > { %v2535_v53 = vpop.f32.mrb[1].mxu0 }
 0x369   : > { %v2536_v7 = vadd.f32 %v2535_v53, %v2534_v42  ;;  %v2537_v16 = vpop.f32.mrb[2].mxu0 }
 0x36a   : > { %v2538_v43 = vpop.f32.mrb[3].mxu0 }
 0x36b   : > { %v2158_v26 = vadd.f32 %v2536_v7, %v2478_v17  ;;  %v2539_v56 = vadd.f32 %v2538_v43, %v2537_v16 }
 0x36d   : > { %v2199_v19 = vadd.f32 %v2198_v47, %v2158_v26  ;;  %v2161_v54 = vadd.f32 %v2539_v56, %v2478_v17 }
 0x36f   : > { %v2207_v50 = vadd.f32 %v2205_v60, %v2199_v19  ;;  %v2202_v8 = vadd.f32 %v2201_v3, %v2161_v54 }
 0x371   : > { %2209 = vst [vmem:[%s3722_s16] sm:$0xff] %v2207_v50  ;;  %v2208_v1 = vadd.f32 %v2206_v6, %v2202_v8 }
 0x373   : > { %2210 = vst [vmem:[%s3722_s16 + $0x8] sm:$0xff] %v2208_v1 }
 0x374   : > { %3063 = shalt.err (!%p3060_p3)
}
 0x375   : > { %s3064_s27 = scalar_lea.hbm %s4974_s23, 256  ;;  %s3068_s24 = scalar_lea.hbm %s5303_s17, 2048 }
 0x376   : > { %p3065_p0 = scmp.ne.s32.totalorder %s4974_s23, %s3064_s27  ;;  %p3069_p7 = scmp.lt.u32.totalorder %s4974_s23, %s5303_s17 }
 0x377   : > { %p3070_p5 = scmp.lt.u32.totalorder %s3068_s24, %s3064_s27  ;;  %p3072_p2 = scmp.lt.u32.totalorder %s3064_s27, %s4974_s23 }
 0x378   : > { %p3066_p4 = pnand %p3065_p0, %p5304_p10 }
 0x379   : > { %p3071_p6 = por %p3070_p5, %p3069_p7 }
 0x37a   : > { %p3067_p1 = pneg %p3066_p4 }
 0x37b   : > { %p3073_p13 = por %p3072_p2, %p3071_p6 }
 0x37d   : > { %p3074_p9 = pnand %p3073_p13, %p3067_p1 }
 0x37f   : > { %3077 = shalt.err (!%p3074_p9)
}
 0x380   : > { %s3234_s28 = smov 128   ;;  %s3235_s2 = smov 8  }
 0x381   : > { %2623 = dma.vmem_to_hbm [thread:$0]  (%p5304_p10), %s4976_s6, 256, %s4974_s23, %s4982_s10, %s3234_s28, %s3234_s28, %s3235_s2  }
 0x382 PF: > { %s5305_s1 = sld [smem:[#allocation24_spill]]  ;;  %s5306_s19 = sld [smem:[#allocation33_spill]] }
 0x383   : > { %p2661_p8 = scmp.ge.s32.totalorder %s3212_s14, 2 }
 0x388   : > { %s2242_s12 = sand.u32 1, %s5305_s1   ;;  %p5307_p12 = scmp.ne.s32.totalorder %s5306_s19, 0 }
 0x389   : > { %s2243_s18 = scalar_lea.sflag [#allocation6], %s2242_s12 }
 0x38a   : > { %p2649_p11 = pnand %p2661_p8, %p5307_p12 }
 0x38c   : > { %3155 = dma.done.wait (!%p2649_p11), %s2243_s18, 256  }
 0x38d   : > { %3157 = vsyncadd (!%p2649_p11), %s2243_s18, 4294967040  ;;  %s28_s14 = sadd.s32 1, %s3212_s14   ;;  %s5309_s27 = sld [smem:[#allocation25_spill]] }
 0x38e   : > { %p5011_p3 = scmp.ge.s32.totalorder %s28_s14, 10   ;;  %s5310_s7 = smov %s3576_s30 }
 0x38f   : > { %s5311_s10 = sld [smem:[#allocation28_spill]]  ;;  %s5312_s11 = sld [smem:[#allocation29_spill]] }
 0x390   : > { %s5313_s12 = sld [smem:[#allocation34_spill]]  ;;  %s5314_s6 = sld [smem:[#allocation35_spill]] }
 0x391   : > { %s5315_s24 = smov %s3164_s25  ;;  %s5316_s25 = smov %s3168_s26 }
 0x392   : > { %s5317_s26 = smov %s3646_s13  ;;  %s5318_s28 = smov %s3180_s29 }
 0x393   : > { %s5319_s29 = smov %s3573_s4  ;;  %s5320_s30 = smov %s3188_s8 }
 0x394   : > { %s5321_s8 = smov %s3192_s9  ;;  %s5322_s9 = smov %s5310_s7 }
 0x395   :  { %27 = sbr.rel (!%p5011_p3) target bundleno = 22 (0x16), region = 141 }
 0x396   : > { %s5323_s13 = smov %s5314_s6 }
 0x39c   :  { %2248 = vsyncpa [#allocation5], 1 }
 0x39d   :  { %2250 = vsyncpa [#allocation5 + $0x1], 1 }
 0x39e   :  { %2251 = vsyncpa [#allocation8], 1 }
 0x39f   :  { %2253 = vsyncpa [#allocation8 + $0x1], 1 }
 0x3a0   :  { %2254 = vsyncpa [#allocation11], 1 }
 0x3a1   :  { %2255 = vsyncpa [#allocation14], 1 }
 0x3a2   :  { %2256 = vsyncpa [#allocation6], 1 }
 0x3a3   :  { %2258 = vsyncpa [#allocation6 + $0x1], 1 }

// kernel: _lambda_.3
= control target key start
LH: loop header
LB: loop body
LE: loop exit
PB: predicated region body
PF: predicated region fallthrough
CT: control target
= control target key end

     0   :  { %s5596_s0 = inlined_call_operand.hbm [shape: f32[2,64,128], index: 0, kind: input, shape index: {}, may-alias: {0,1,2}]   ;;  %s5597_s1 = inlined_call_operand.hbm [shape: f32[2,64,128], index: 1, kind: input, shape index: {}, may-alias: {0,1,2}]   ;;  %s5598_s2 = inlined_call_operand.hbm [shape: f32[2,64,128], index: 2, kind: input, shape index: {}, may-alias: {0,1,2}]   ;;  %s5599_s3 = inlined_call_operand.hbm [shape: f32[1,128], index: 3, kind: input, shape index: {}]   ;;  %s5600_s4 = inlined_call_operand.hbm [shape: f32[1,128], index: 4, kind: input, shape index: {}]   ;;  %s5601_s5 = inlined_call_operand.hbm [shape: bf16[384,128], index: 5, kind: input, shape index: {}]   ;;  %s5602_s6 = inlined_call_operand.hbm [shape: f32[1,128], index: 6, kind: input, shape index: {}]   ;;  %s5603_s7 = inlined_call_operand.hbm [shape: f32[2,64,128], index: 7, kind: output, shape index: {}]  }
   0x1   :  { %5677 = sst [smem:[#allocation45_spill]] %s5596_s0 }
   0x2   :  { %5678 = sst [smem:[#allocation46_spill]] %s5597_s1 }
   0x3   :  { %5679 = sst [smem:[#allocation47_spill]] %s5598_s2 }
   0x4   :  { %5680 = sst [smem:[#allocation48_spill]] %s5599_s3 }
   0x5   :  { %5681 = sst [smem:[#allocation49_spill]] %s5600_s4 }
   0x6   :  { %5682 = sst [smem:[#allocation50_spill]] %s5601_s5 }
   0x7   :  { %5683 = sst [smem:[#allocation51_spill]] %s5602_s6 }
   0x8   :  { %5684 = sst [smem:[#allocation52_spill]] %s5603_s7 }
   0x9   :  { %12 = vsyncpa [#allocation5], 0 }
   0xa   :  { %14 = vsyncpa [#allocation5 + $0x1], 0 }
   0xb   :  { %15 = vsyncpa [#allocation8], 0 }
   0xc   :  { %17 = vsyncpa [#allocation8 + $0x1], 0 }
   0xd   :  { %18 = vsyncpa [#allocation11], 0 }
   0xe   :  { %19 = vsyncpa [#allocation14], 0 }
   0xf   :  { %20 = vsyncpa [#allocation6], 0 }
  0x10   :  { %22 = vsyncpa [#allocation6 + $0x1], 0  ;;  %s3603_s24 = smov 0   ;;  %s3605_s25 = smov 0  }
  0x11   :  { %s3607_s26 = smov 0   ;;  %s3609_s27 = smov 0  }
  0x12   :  { %s3611_s28 = smov 0   ;;  %s3613_s29 = smov 0  }
  0x13   :  { %s3615_s30 = smov 0   ;;  %s3617_s8 = smov 0  }
  0x14   :  { %s3619_s9 = smov 0   ;;  %s3621_s10 = smov 0  }
  0x15   :  { %s3623_s11 = smov 0   ;;  %s3625_s12 = smov 0  }
  0x16   :  { %s3627_s13 = smov 0   ;;  %s3629_s14 = smov 0  }
  0x17 LB: > { %5685 = sst [smem:[#allocation23_spill]] %s3487_s24  ;;  %s3674_s15 = sadd.s32 4294967295, %s3539_s14   ;;  %s3539_s14 = sphi %s3629_s14, %s28_s14   ;;  %s3535_s13 = sphi %s3627_s13, %s5868_s13   ;;  %s3531_s12 = sphi %s3625_s12, %s5867_s12   ;;  %s3527_s11 = sphi %s3623_s11, %s5856_s11   ;;  %s3523_s10 = sphi %s3621_s10, %s5866_s10   ;;  %s3519_s9 = sphi %s3619_s9, %s5865_s9   ;;  %s3515_s8 = sphi %s3617_s8, %s5864_s8   ;;  %s3511_s30 = sphi %s3615_s30, %s5863_s30   ;;  %s3507_s29 = sphi %s3613_s29, %s5862_s29   ;;  %s3503_s28 = sphi %s3611_s28, %s5861_s28   ;;  %s3499_s27 = sphi %s3609_s27, %s5854_s27   ;;  %s3495_s26 = sphi %s3607_s26, %s5860_s26   ;;  %s3491_s25 = sphi %s3605_s25, %s5853_s25   ;;  %s3487_s24 = sphi %s3603_s24, %s5852_s24  }
  0x18   : > { %5686 = sst [smem:[#allocation24_spill]] %s3491_s25  ;;  %p2717_p0 = scmp.ge.s32.totalorder %s3539_s14, 1 }
  0x19   : > { %5687 = sst [smem:[#allocation25_spill]] %s3495_s26  ;;  %p5608_p1 = scmp.eq.s32.totalorder %s3674_s15, 0 }
  0x1a   : > { %5688 = sst [smem:[#allocation26_spill]] %s3499_s27  ;;  %p253_p2 = scmp.lt.s32.totalorder %s3539_s14, 9 }
  0x1b   : > { %5689 = sst [smem:[#allocation27_spill]] %s3503_s28  ;;  %s3541_s17 = smov [#allocation10]  }
  0x1c   : > { %5690 = sst [smem:[#allocation28_spill]] %s3523_s10  ;;  %p3679_p3 = pnand %p2717_p0, %p253_p2 }
  0x1d   : > { %5691 = sst [smem:[#allocation29_spill]] %s3527_s11  ;;  %s266_s18 = sshll.u32 %s3541_s17, 4  ;;  %s267_s18 = int_to_ptr.vmem [resolvable:$true] %s266_s18 }
  0x1e   : > { %5692 = sst [smem:[#allocation30_spill]] %s3535_s13  ;;  %p2942_p4 = pneg %p3679_p3 }
  0x1f   : > { %s5693_s16 = scalar_select %p3679_p3, 1, 0 }
  0x20   : > { %s3542_s19 = smov [#allocation13]   ;;  %p3687_p5 = pnand %p2942_p4, %p5608_p1 }
  0x21   : > { %5694 = sst [smem:[#allocation31_spill]] %s5693_s16  ;;  %s287_s20 = sshll.u32 %s3542_s19, 4  ;;  %s3691_s20 = int_to_ptr.vmem [resolvable:$true] %s287_s20 }
  0x22   : > { %s5695_s21 = scalar_select %p3687_p5, 1, 0 }
  0x23   : > { %s5696_s3 = sld [smem:[#allocation48_spill]]  ;;  %p3701_p7 = pneg %p3687_p5 }
  0x29   : > { %s3175_s7 = scalar_lea.hbm %s5696_s3, 16 }
  0x2a   : > { %p3176_p6 = scmp.ne.s32.totalorder %s5696_s3, %s3175_s7  ;;  %p3182_p10 = scmp.lt.u32.totalorder %s3175_s7, %s5696_s3 }
  0x2c   : > { %p3178_p8 = pnand %p3701_p7, %p3176_p6 }
  0x2e   : > { %p3179_p9 = pneg %p3178_p8 }
  0x30   : > { %p3184_p11 = pnand %p3182_p10, %p3179_p9 }
  0x32   : > { %3187 = shalt.err (!%p3184_p11)
}
  0x33   : > { %s3188_s22 = scalar_lea.vmem %s267_s18, 16  ;;  %s3195_s10 = scalar_lea.vmem %s267_s18, 32 }
  0x34   : > { %p3189_p12 = scmp.ne.s32.totalorder %s267_s18, %s3188_s22  ;;  %p3196_p2 = scmp.lt.s32.totalorder %s267_s18, %s267_s18 }
  0x35   : > { %p3197_p4 = scmp.lt.s32.totalorder %s3195_s10, %s3188_s22 }
  0x36   : > { %p3191_p13 = pnand %p3189_p12, %p3701_p7 }
  0x37   : > { %p3198_p1 = por %p3197_p4, %p3196_p2 }
  0x38   : > { %p3192_p0 = pneg %p3191_p13 }
  0x3a   : > { %p3199_p3 = pnand %p3198_p1, %p3192_p0 }
  0x3c   : > { %3202 = shalt.err (!%p3199_p3)
}
  0x3d   : > { %2945 = dma.hbm_to_vmem [thread:$0]  (!%p3687_p5), %s5696_s3, 16, %s267_s18, [#allocation11]  }
  0x3e   : > { %s5698_s5 = sld [smem:[#allocation50_spill]] }
  0x44   : > { %s3203_s19 = scalar_lea.hbm %s5698_s5, 3072 }
  0x45   : > { %p3204_p6 = scmp.ne.s32.totalorder %s5698_s5, %s3203_s19  ;;  %p3210_p1 = scmp.lt.u32.totalorder %s3203_s19, %s5698_s5 }
  0x47   : > { %p3206_p8 = pnand %p3204_p6, %p3701_p7 }
  0x49   : > { %p3207_p9 = pneg %p3206_p8 }
  0x4b   : > { %p3212_p3 = pnand %p3210_p1, %p3207_p9 }
  0x4d   : > { %3215 = shalt.err (!%p3212_p3)
}
  0x4e   : > { %s3216_s18 = scalar_lea.vmem %s3691_s20, 3072  ;;  %p3224_p13 = scmp.lt.s32.totalorder %s3691_s20, %s3691_s20 }
  0x4f   : > { %p3217_p10 = scmp.ne.s32.totalorder %s3691_s20, %s3216_s18  ;;  %p3225_p0 = scmp.lt.s32.totalorder %s3216_s18, %s3216_s18 }
  0x51   : > { %p3219_p11 = pnand %p3217_p10, %p3701_p7  ;;  %p3226_p2 = por %p3225_p0, %p3224_p13 }
  0x53   : > { %p3220_p12 = pneg %p3219_p11 }
  0x55   : > { %p3227_p4 = pnand %p3226_p2, %p3220_p12 }
  0x57   : > { %3230 = shalt.err (!%p3227_p4)
}
  0x58   : > { %s3543_s2 = smov 64   ;;  %s3544_s24 = smov 4  }
  0x59   : > { %2951 = dma.hbm_to_vmem [thread:$0]  (!%p3687_p5), %s5698_s5, 3072, %s3691_s20, [#allocation14], %s3543_s2, %s3543_s2, %s3544_s24  }
  0x5a   : > { %s2714_s7 = sadd.s32 4294967294, %s3539_s14   ;;  %s3742_s16 = sadd.s32 1, %s3531_s12 }
  0x5b   : > { %p38_p6 = scmp.ge.s32.totalorder %s3742_s16, 4  ;;  %s40_s19 = sadd.s32 1, %s3535_s13 }
  0x5c   : > { %p5622_p8 = scmp.eq.s32.totalorder %s3539_s14, 0  ;;  %p90_p9 = scmp.ne.s32.totalorder %s3507_s29, %s3503_s28 }
  0x5d   : > { %s3749_s10 = scalar_select %p38_p6, 0, %s3742_s16  }
  0x5e   : > { %s5870_s19 = smov (!%p38_p6, %s40_s19), %s3535_s13  ;;  %p96_p1 = scmp.ne.s32.totalorder %s3503_s28, %s3499_s27 }
  0x5f   : > { %p240_p3 = scmp.eq.s32.totalorder %s3674_s15, 7  ;;  %p3763_p10 = por %p90_p9, %p5622_p8 }
  0x60   : > { %p246_p11 = scmp.eq.s32.totalorder %s2714_s7, 7  ;;  %p5700_p12 = scmp.eq.s32.totalorder %s3674_s15, 0 }
  0x61   : > { %p3773_p0 = por %p240_p3, %p90_p9  ;;  %p5621_p4 = scmp.lt.s32.totalorder %s3539_s14, 8 }
  0x62   : > { %p3769_p13 = por %p96_p1, %p5700_p12  ;;  %p3777_p2 = por %p246_p11, %p96_p1 }
  0x63   : > { %s5703_s24 = scalar_select %p3773_p0, 1, 0 }
  0x64   : > { %s5701_s2 = scalar_select %p3769_p13, 1, 0 }
  0x65   : > { %5704 = sst [smem:[#allocation33_spill]] %s5703_s24  ;;  %s3783_s23 = sshll.u32 %s3535_s13, 3 }
  0x66   : > { %5702 = sst [smem:[#allocation32_spill]] %s5701_s2  ;;  %s338_s7 = sand.u32 1, %s3539_s14  }
  0x67   : > { %s5705_s11 = scalar_select %p3777_p2, 1, 0 }
  0x68   : > { %s340_s22 = sand.u32 1, %s3507_s29   ;;  %s2729_s3 = sshll.u32 %s3531_s12, 1 }
  0x69   : > { %5706 = sst [smem:[#allocation34_spill]] %s5705_s11  ;;  %s2728_s20 = sshll.u32 %s340_s22, 4 }
  0x6a   : > { %s348_s5 = sadd.s32 %s2729_s3, %s3783_s23  ;;  %s342_s28 = scalar_lea.vmem [#allocation7], %s2728_s20 }
  0x6b   : > { %s2731_s27 = sshll.u32 %s348_s5, 7  ;;  %s351_s2 = sshll.u32 %s342_s28, 4  ;;  %s3794_s2 = int_to_ptr.vmem [resolvable:$true] %s351_s2 }
  0x6c   : > { %s5707_s1 = sld [smem:[#allocation46_spill]]  ;;  %p3800_p6 = pnand %p5621_p4, %p3763_p10 }
  0x6d   : > { %s3545_s3 = smov [#allocation12]   ;;  %s3806_s25 = scalar_lea.sflag [#allocation8], %s338_s7 }
  0x6e   : > { %s277_s5 = sshll.u32 %s3545_s3, 4  ;;  %p3233_p1 = pneg %p3800_p6  ;;  %s3804_s5 = int_to_ptr.vmem [resolvable:$true] %s277_s5 }
  0x72   : > { %s3792_s24 = scalar_lea.hbm %s5707_s1, %s2731_s27  ;;  %s3236_s20 = scalar_lea.hbm %s5707_s1, 2048 }
  0x73   : > { %s3231_s26 = scalar_lea.hbm %s3792_s24, 256  ;;  %p3237_p10 = scmp.lt.u32.totalorder %s3792_s24, %s5707_s1 }
  0x74   : > { %p3232_p9 = scmp.ne.s32.totalorder %s3792_s24, %s3231_s26  ;;  %p3238_p12 = scmp.lt.u32.totalorder %s3236_s20, %s3231_s26 }
  0x75   : > { %p3240_p8 = scmp.lt.u32.totalorder %s3231_s26, %s3792_s24 }
  0x76   : > { %p3234_p3 = pnand %p3233_p1, %p3232_p9  ;;  %p3239_p4 = por %p3238_p12, %p3237_p10 }
  0x78   : > { %p3235_p11 = pneg %p3234_p3  ;;  %p3241_p2 = por %p3240_p8, %p3239_p4 }
  0x7a   : > { %p3242_p0 = pnand %p3241_p2, %p3235_p11 }
  0x7c   : > { %3245 = shalt.err (!%p3242_p0)
}
  0x7d   : > { %s3246_s7 = scalar_lea.vmem %s3794_s2, 256  ;;  %s3546_s3 = smov [#allocation7]  }
  0x7e   : > { %p3247_p9 = scmp.ne.s32.totalorder %s3794_s2, %s3246_s7  ;;  %s3251_s27 = sshll.u32 %s3546_s3, 4  ;;  %s3252_s27 = int_to_ptr.vmem [resolvable:$false] %s3251_s27 }
  0x7f   : > { %s3253_s11 = scalar_lea.vmem %s3252_s27, 512  ;;  %p3254_p5 = scmp.lt.s32.totalorder %s3794_s2, %s3252_s27 }
  0x80   : > { %p3249_p3 = pnand %p3247_p9, %p3233_p1  ;;  %p3255_p10 = scmp.lt.s32.totalorder %s3253_s11, %s3246_s7 }
  0x82   : > { %p3250_p13 = pneg %p3249_p3  ;;  %p3256_p12 = por %p3255_p10, %p3254_p5 }
  0x84   : > { %p3257_p8 = pnand %p3256_p12, %p3250_p13 }
  0x86   : > { %3260 = shalt.err (!%p3257_p8)
}
  0x87   : > { %s5627_s26 = smov 128   ;;  %s5629_s28 = smov 8  }
  0x88   : > { %2961 = dma.hbm_to_vmem [thread:$0]  (!%p3800_p6), %s3792_s24, 256, %s3794_s2, %s3806_s25, %s5627_s26, %s5627_s26, %s5629_s28  }
  0x89   : > { %s5709_s4 = sld [smem:[#allocation49_spill]] }
  0x8f   : > { %s3261_s3 = scalar_lea.hbm %s5709_s4, 16 }
  0x90   : > { %p3262_p5 = scmp.ne.s32.totalorder %s5709_s4, %s3261_s3  ;;  %p3268_p2 = scmp.lt.u32.totalorder %s3261_s3, %s5709_s4 }
  0x92   : > { %p3264_p13 = pnand %p3262_p5, %p3701_p7 }
  0x94   : > { %p3265_p0 = pneg %p3264_p13 }
  0x96   : > { %p3270_p4 = pnand %p3268_p2, %p3265_p0 }
  0x98   : > { %3273 = shalt.err (!%p3270_p4)
}
  0x99   : > { %s3274_s2 = scalar_lea.vmem %s3804_s5, 16  ;;  %s3281_s24 = scalar_lea.vmem %s3804_s5, 32 }
  0x9a   : > { %p3275_p6 = scmp.ne.s32.totalorder %s3804_s5, %s3274_s2  ;;  %p3282_p9 = scmp.lt.s32.totalorder %s3804_s5, %s3804_s5 }
  0x9b   : > { %p3283_p3 = scmp.lt.s32.totalorder %s3281_s24, %s3274_s2 }
  0x9c   : > { %p3277_p1 = pnand %p3275_p6, %p3701_p7 }
  0x9d   : > { %p3284_p10 = por %p3283_p3, %p3282_p9 }
  0x9e   : > { %p3278_p11 = pneg %p3277_p1 }
  0xa0   : > { %p3285_p12 = pnand %p3284_p10, %p3278_p11 }
  0xa2   : > { %3288 = shalt.err (!%p3285_p12)
}
  0xa3   : > { %p5710_p8 = scmp.ne.s32.totalorder %s5695_s21, 0  ;;  %s3549_s20 = smov [#allocation15]  }
  0xa4   : > { %s301_s18 = sshll.u32 %s3549_s20, 4  ;;  %s5711_s6 = sld [smem:[#allocation51_spill]]  ;;  %s302_s18 = int_to_ptr.vmem [resolvable:$true] %s301_s18 }
  0xa5   : > { %2948 = dma.hbm_to_vmem [thread:$0]  (!%p5710_p8), %s5709_s4, 16, %s3804_s5, [#allocation11]  }
  0xaa   : > { %s3289_s27 = scalar_lea.hbm %s5711_s6, 16 }
  0xab   : > { %p3290_p5 = scmp.ne.s32.totalorder %s5711_s6, %s3289_s27  ;;  %p3296_p2 = scmp.lt.u32.totalorder %s3289_s27, %s5711_s6 }
  0xad   : > { %p3292_p13 = pnand %p3290_p5, %p3701_p7 }
  0xaf   : > { %p3293_p0 = pneg %p3292_p13 }
  0xb1   : > { %p3298_p4 = pnand %p3296_p2, %p3293_p0 }
  0xb3   : > { %3301 = shalt.err (!%p3298_p4)
}
  0xb4   : > { %s3302_s5 = scalar_lea.vmem %s302_s18, 16  ;;  %s3309_s1 = scalar_lea.vmem %s302_s18, 32 }
  0xb5   : > { %p3303_p6 = scmp.ne.s32.totalorder %s302_s18, %s3302_s5  ;;  %p3310_p9 = scmp.lt.s32.totalorder %s302_s18, %s302_s18 }
  0xb6   : > { %p3311_p3 = scmp.lt.s32.totalorder %s3309_s1, %s3302_s5 }
  0xb7   : > { %p3305_p1 = pnand %p3303_p6, %p3701_p7 }
  0xb8   : > { %p3312_p10 = por %p3311_p3, %p3310_p9 }
  0xb9   : > { %p3306_p11 = pneg %p3305_p1 }
  0xbb   : > { %p3313_p12 = pnand %p3312_p10, %p3306_p11 }
  0xbd   : > { %3316 = shalt.err (!%p3313_p12)
}
  0xbe   : > { %2954 = dma.hbm_to_vmem [thread:$0]  (!%p5710_p8), %s5711_s6, 16, %s302_s18, [#allocation14]  }
  0xbf   : > { %p42_p7 = scmp.ge.s32.totalorder %s5870_s19, 2  ;;  %s2715_s21 = sadd.s32 4294967295, %s3531_s12 }
  0xc0   : > { %p45_p5 = scmp.gt.s32.totalorder %s2715_s21, 0  ;;  %s2716_s17 = sadd.s32 4294967295, %s3749_s10 }
  0xc1   : > { %s5872_s19 = smov (%p42_p7, %s5870_s19), 0  ;;  %p48_p13 = scmp.gt.s32.totalorder %s2716_s17, 0 }
  0xc2   : > { %5712 = sst [smem:[#allocation35_spill]] %s5872_s19  ;;  %s5874_s21 = smov (!%p45_p5, %s2715_s21), 0 }
  0xc3   : > { %s3887_s26 = ssub.s32 %s3535_s13, %s5872_s19  ;;  %s55_s3 = sadd.s32 1, %s3519_s9 }
  0xc4   : > { %p62_p8 = scmp.ne.s32.totalorder %s3519_s9, %s3515_s8  ;;  %s5876_s17 = smov (!%p48_p13, %s2716_s17), 0 }
  0xc5   : > { %p5713_p0 = scmp.eq.s32.totalorder %s3539_s14, 0  ;;  %p68_p4 = scmp.ne.s32.totalorder %s3515_s8, %s3511_s30 }
  0xc6   : > { %s51_s7 = ssub.s32 %s5874_s21, %s5876_s17  ;;  %s5715_s27 = ssub.s32 %s3531_s12, %s3749_s10 }
  0xc7   : > { %p3894_p2 = por %p5713_p0, %p62_p8  ;;  %s80_s11 = sor.u32 %s5715_s27, %s3887_s26 }
  0xc8   : > { %s52_s2 = sor.u32 %s51_s7, %s3887_s26  ;;  %p5716_p6 = scmp.eq.s32.totalorder %s3674_s15, 0 }
  0xc9   : > { %p53_p11 = scmp.eq.s32.totalorder %s52_s2, 0  ;;  %p81_p9 = scmp.eq.s32.totalorder %s80_s11, 0 }
  0xca   : > { %p3907_p1 = por %p5716_p6, %p68_p4  ;;  %s312_s5 = sand.u32 1, %s3519_s9  }
  0xcb   : > { %s2725_s1 = sshll.u32 %s5874_s21, 1  ;;  %s5718_s20 = sadd.s32 1, %s3507_s29 }
  0xcc   : > { %s3913_s22 = scalar_select %p53_p11, %s3519_s9, %s55_s3  }
  0xcd   : > { %s3918_s28 = scalar_select %p81_p9, %s3507_s29, %s5718_s20  }
  0xce   : > { %s2723_s30 = sshll.u32 %s312_s5, 4  ;;  %s325_s17 = sadd.s32 %s3783_s23, %s2725_s1 }
  0xcf   : > { %s2727_s27 = sshll.u32 %s325_s17, 7  ;;  %s316_s4 = scalar_lea.vmem [#allocation4], %s2723_s30 }
  0xd0   : > { %s328_s6 = sshll.u32 %s316_s4, 4  ;;  %s5719_s0 = sld [smem:[#allocation45_spill]]  ;;  %s3926_s6 = int_to_ptr.vmem [resolvable:$true] %s328_s6 }
  0xd1   : > { %p5720_p3 = scmp.lt.s32.totalorder %s3539_s14, 8  ;;  %s3936_s4 = scalar_lea.sflag [#allocation5], %s312_s5 }
  0xd3   : > { %p3932_p10 = pnand %p5720_p3, %p3894_p2 }
  0xd5   : > { %p3319_p7 = pneg %p3932_p10 }
  0xd6   : > { %s3924_s13 = scalar_lea.hbm %s5719_s0, %s2727_s27  ;;  %s3322_s18 = scalar_lea.hbm %s5719_s0, 2048 }
  0xd7   : > { %s3317_s3 = scalar_lea.hbm %s3924_s13, 256  ;;  %p3323_p8 = scmp.lt.u32.totalorder %s3924_s13, %s5719_s0 }
  0xd8   : > { %p3318_p12 = scmp.ne.s32.totalorder %s3924_s13, %s3317_s3  ;;  %p3324_p0 = scmp.lt.u32.totalorder %s3322_s18, %s3317_s3 }
  0xd9   : > { %p3326_p4 = scmp.lt.u32.totalorder %s3317_s3, %s3924_s13 }
  0xda   : > { %p3320_p5 = pnand %p3319_p7, %p3318_p12  ;;  %p3325_p2 = por %p3324_p0, %p3323_p8 }
  0xdc   : > { %p3321_p13 = pneg %p3320_p5  ;;  %p3327_p6 = por %p3326_p4, %p3325_p2 }
  0xde   : > { %p3328_p11 = pnand %p3327_p6, %p3321_p13 }
  0xe0   : > { %3331 = shalt.err (!%p3328_p11)
}
  0xe1   : > { %s3332_s5 = scalar_lea.vmem %s3926_s6, 256  ;;  %s3550_s20 = smov [#allocation4]  }
  0xe2   : > { %p3333_p9 = scmp.ne.s32.totalorder %s3926_s6, %s3332_s5  ;;  %s3337_s30 = sshll.u32 %s3550_s20, 4  ;;  %s3338_s30 = int_to_ptr.vmem [resolvable:$false] %s3337_s30 }
  0xe3   : > { %s3339_s17 = scalar_lea.vmem %s3338_s30, 512  ;;  %p3340_p5 = scmp.lt.s32.totalorder %s3926_s6, %s3338_s30 }
  0xe4   : > { %p3335_p3 = pnand %p3333_p9, %p3319_p7  ;;  %p3341_p8 = scmp.lt.s32.totalorder %s3339_s17, %s3332_s5 }
  0xe6   : > { %p3336_p12 = pneg %p3335_p3  ;;  %p3342_p0 = por %p3341_p8, %p3340_p5 }
  0xe8   : > { %p3343_p2 = pnand %p3342_p0, %p3336_p12 }
  0xea   : > { %3346 = shalt.err (!%p3343_p2)
}
  0xeb   : > { %s5722_s27 = smov 8   ;;  %s5723_s7 = smov 128  }
  0xec   : > { %s5724_s3 = sld [smem:[#allocation25_spill]]  ;;  %s5725_s19 = sld [smem:[#allocation24_spill]] }
  0xed   : > { %s5726_s11 = sld [smem:[#allocation23_spill]]  ;;  %p107_p7 = scmp.lt.s32.totalorder %s3742_s16, 3 }
  0xee   : > { %2958 = dma.hbm_to_vmem [thread:$0]  (!%p3932_p10), %s3924_s13, 256, %s3926_s6, %s3936_s4, %s5723_s7, %s5723_s7, %s5722_s27  }
  0xef   : > { %s109_s21 = sadd.s32 1, %s3749_s10  ;;  %s5878_s16 = smov (!%p107_p7, %s3742_s16), 3 }
  0xf0   : > { %p110_p13 = scmp.lt.s32.totalorder %s109_s21, 3  ;;  %p5727_p11 = scmp.eq.s32.totalorder %s3539_s14, 0 }
  0xf1   : > { %p5728_p12 = scmp.eq.s32.totalorder %s3674_s15, 0  ;;  %s2733_s4 = sshll.u32 %s5878_s16, 1 }
  0xf2   : > { %s117_s18 = sadd.s32 1, %s5724_s3  ;;  %s5880_s21 = smov (!%p110_p13, %s109_s21), 3 }
  0xf3   : > { %p124_p4 = scmp.ne.s32.totalorder %s5724_s3, %s5725_s19  ;;  %p130_p6 = scmp.ne.s32.totalorder %s5725_s19, %s5726_s11 }
  0xf4   : > { %s113_s2 = ssub.s32 %s5878_s16, %s5880_s21  ;;  %s363_s1 = sand.u32 1, %s5724_s3  }
  0xf5   : > { %s114_s5 = sor.u32 %s113_s2, %s3887_s26  ;;  %p126_p9 = por %p124_p4, %p5727_p11 }
  0xf6   : > { %p115_p3 = scmp.eq.s32.totalorder %s114_s5, 0  ;;  %p3981_p5 = por %p130_p6, %p5728_p12 }
  0xf7   : > { %s2732_s13 = sshll.u32 %s363_s1, 4  ;;  %s374_s20 = sadd.s32 %s2733_s4, %s3783_s23 }
  0xf8   : > { %s5729_s6 = scalar_select %p3981_p5, 1, 0 }
  0xf9   : > { %s5882_s3 = smov (!%p115_p3, %s5724_s3), %s117_s18  ;;  %s2735_s30 = sshll.u32 %s374_s20, 7 }
  0xfa   : > { %s365_s17 = scalar_lea.vmem [#allocation9], %s2732_s13  ;;  %s5730_s0 = sld [smem:[#allocation47_spill]] }
  0xfb   : > { %s377_s19 = sshll.u32 %s365_s17, 4  ;;  %p5731_p10 = scmp.lt.s32.totalorder %s3539_s14, 8  ;;  %s3994_s19 = int_to_ptr.vmem [resolvable:$true] %s377_s19 }
  0xfd   : > { %p3998_p8 = pnand %p5731_p10, %p126_p9 }
  0xff   : > { %p3349_p2 = pneg %p3998_p8 }
 0x100   : > { %s3992_s26 = scalar_lea.hbm %s5730_s0, %s2735_s30  ;;  %s3352_s1 = scalar_lea.hbm %s5730_s0, 2048 }
 0x101   : > { %s3347_s23 = scalar_lea.hbm %s3992_s26, 256  ;;  %p3353_p4 = scmp.lt.u32.totalorder %s3992_s26, %s5730_s0 }
 0x102   : > { %p3348_p0 = scmp.ne.s32.totalorder %s3992_s26, %s3347_s23  ;;  %p3354_p6 = scmp.lt.u32.totalorder %s3352_s1, %s3347_s23 }
 0x103   : > { %p3356_p9 = scmp.lt.u32.totalorder %s3347_s23, %s3992_s26 }
 0x104   : > { %p3350_p7 = pnand %p3349_p2, %p3348_p0  ;;  %p3355_p11 = por %p3354_p6, %p3353_p4 }
 0x106   : > { %p3351_p13 = pneg %p3350_p7  ;;  %p3357_p3 = por %p3356_p9, %p3355_p11 }
 0x108   : > { %p3358_p12 = pnand %p3357_p3, %p3351_p13 }
 0x10a   : > { %3361 = shalt.err (!%p3358_p12)
}
 0x10b   : > { %s3362_s4 = scalar_lea.vmem %s3994_s19, 256  ;;  %s3551_s20 = smov [#allocation9]  }
 0x10c   : > { %p3363_p10 = scmp.ne.s32.totalorder %s3994_s19, %s3362_s4  ;;  %s3367_s30 = sshll.u32 %s3551_s20, 4  ;;  %s3368_s30 = int_to_ptr.vmem [resolvable:$false] %s3367_s30 }
 0x10d   : > { %s3369_s17 = scalar_lea.vmem %s3368_s30, 512  ;;  %p3370_p5 = scmp.lt.s32.totalorder %s3994_s19, %s3368_s30 }
 0x10e   : > { %p3365_p0 = pnand %p3363_p10, %p3349_p2  ;;  %p3371_p4 = scmp.lt.s32.totalorder %s3369_s17, %s3362_s4 }
 0x110   : > { %p3366_p7 = pneg %p3365_p0  ;;  %p3372_p6 = por %p3371_p4, %p3370_p5 }
 0x112   : > { %p3373_p11 = pnand %p3372_p6, %p3366_p7 }
 0x114   : > { %3376 = shalt.err (!%p3373_p11)
}
 0x115   : > { %2964 = dma.hbm_to_vmem [thread:$0]  (!%p3998_p8), %s3992_s26, 256, %s3994_s19, %s3806_s25, %s5723_s7, %s5723_s7, %s5722_s27  }
 0x116   : > { %s5733_s11 = sld [smem:[#allocation31_spill]] }
 0x11c   : > { %p5734_p2 = scmp.ne.s32.totalorder %s5733_s11, 0 }
 0x11e   : > { %389 = sbr.rel (%p5734_p2) target bundleno = 972 (0x3cc), region = 48 }
 0x125   : > { %s391_s21 = sand.u32 1, %s3515_s8  }
 0x126   : > { %s2737_s23 = sshll.u32 %s391_s21, 4  ;;  %s392_s18 = scalar_lea.sflag [#allocation5], %s391_s21 }
 0x127   : > { %s395_s2 = scalar_lea.vmem [#allocation4], %s2737_s23 }
 0x128   : > { %3462 = dma.done.wait (%p3907_p1), %s392_s18, 256  }
 0x129   : > { %3464 = vsyncadd (%p3907_p1), %s392_s18, 4294967040  ;;  %s5735_s16 = sld [smem:[#allocation27_spill]]  ;;  %s400_s5 = sand.u32 1, %s3674_s15  }
 0x12a   : > { %s5736_s1 = sld [smem:[#allocation32_spill]]  ;;  %s401_s7 = scalar_lea.sflag [#allocation8], %s400_s5 }
 0x12f   : > { %s402_s25 = sand.u32 1, %s5735_s16  }
 0x130   : > { %s2738_s27 = sshll.u32 %s402_s25, 4  ;;  %p5737_p5 = scmp.ne.s32.totalorder %s5736_s1, 0 }
 0x131   : > { %s4042_s19 = scalar_lea.vmem [#allocation7], %s2738_s27 }
 0x132   : > { %3466 = dma.done.wait (%p5737_p5), %s401_s7, 256  }
 0x133   : > { %3468 = vsyncadd (%p5737_p5), %s401_s7, 4294967040  ;;  %s5738_s26 = sld [smem:[#allocation24_spill]]  ;;  %p5739_p1 = scmp.ne.s32.totalorder %s5729_s6, 0 }
 0x139   : > { %s411_s24 = sand.u32 1, %s5738_s26  }
 0x13a   : > { %s2739_s13 = sshll.u32 %s411_s24, 4 }
 0x13b   : > { %s413_s4 = scalar_lea.vmem [#allocation9], %s2739_s13 }
 0x13c   : > { %3470 = dma.done.wait (%p5739_p1), %s401_s7, 256  }
 0x13d   : > { %3472 = vsyncadd (%p5739_p1), %s401_s7, 4294967040  ;;  %p5740_p8 = scmp.eq.s32.totalorder %s3674_s15, 0 }
 0x13f   : > { %3474 = dma.done.wait (%p5740_p8), [#allocation11], 32   ;;  %p5741_p13 = pmov %p5740_p8 }
 0x140   : > { %p5742_p9 = pmov %p5740_p8 }
 0x141   : > { %3476 = vsyncadd (%p5741_p13), [#allocation11], 4294967264 }
 0x142   : > { %3478 = dma.done.wait (%p5742_p9), [#allocation14], 3088   ;;  %p5743_p3 = pmov %p5740_p8 }
 0x143   : > { %s5744_s20 = sld [smem:[#allocation28_spill]]  ;;  %v482_v0 = vld [vmem:[%s395_s2 + $0x7] sm:$0xff]  ;;  %v483_v1 = vld [vmem:[%s395_s2 + $0xf] sm:$0x1]  ;;  %s4064_s6 = scalar_lea.vmem [#allocation16], %s2738_s27 }
 0x144   : > { %3480 = vsyncadd (%p5743_p3), [#allocation14], 4294964208  ;;  %v486_v2 = vld [vmem:[%s4042_s19] sm:$0xff]  ;;  %484 = vst [vmem:[#allocation2] sm:$0xff] %v482_v0  ;;  %v487_v3 = vld [vmem:[%s4042_s19 + $0x8] sm:$0xff] }
 0x145   : > { %485 = vst [vmem:[#allocation2 + $0x8] sm:$0x1] %v483_v1  ;;  %488 = vst [vmem:[#allocation2 + $0x9] sm:$0xff] %v486_v2  ;;  %v490_v4 = vld [vmem:[%s413_s4] sm:$0xff]  ;;  %v491_v5 = vld [vmem:[%s413_s4 + $0x8] sm:$0x1] }
 0x146   : > { %489 = vst [vmem:[#allocation2 + $0x11] sm:$0xff] %v487_v3  ;;  %492 = vst [vmem:[#allocation2 + $0x19] sm:$0xff] %v490_v4 }
 0x147   : > { %493 = vst [vmem:[#allocation2 + $0x21] sm:$0x1] %v491_v5 }
 0x149   : > { %s2745_s30 = sshll.u32 %s5744_s20, 4  ;;  %p2746_p12 = scmp.ne.s32.totalorder %s5744_s20, 0 }
 0x14a   : > { %v2747_v6 = vld [vmem:[%s4042_s19] ss:$0 sm:$0xff] (!%p2746_p12) }
 0x14b   : > { %497 = sbr.rel (%p2746_p12) target bundleno = 338 (0x152), region = 80  ;;  %503 = vst [vmem:[#allocation2] sm:$0xff] (!%p2746_p12), %v2747_v6  ;;  %504 = vst [vmem:[#allocation2 + $0x8] sm:$0x1] (!%p2746_p12), %v2747_v6 }
 0x152 PF: > { %s5745_s15 = sld [smem:[#allocation28_spill]] }
 0x158   : > { %p2748_p10 = scmp.ne.s32.totalorder %s5745_s15, 3 }
 0x159   : > { %v2749_v7 = vld [vmem:[%s4042_s19 + $0xf] ss:$0 sm:$0xff] (!%p2748_p10) }
 0x15a   : > { %508 = sbr.rel (%p2748_p10) target bundleno = 353 (0x161), region = 84  ;;  %514 = vst [vmem:[#allocation2 + $0x19] sm:$0xff] (!%p2748_p10), %v2749_v7  ;;  %515 = vst [vmem:[#allocation2 + $0x21] sm:$0x1] (!%p2748_p10), %v2749_v7 }
 0x161 PF: > { %v3109_v8 = vld [vmem:[#allocation13 + $0x40] sm:$0xff]   ;;  %v5634_v10 = vmov 0.0   ;;  %v3112_v12 = vld [vmem:[#allocation13 + $0x48] sm:$0xff]   ;;  %v3115_v15 = vld [vmem:[#allocation13 + $0x50] sm:$0xff]   ;;  %vm549_vm0 = vcmask 1040384   ;;  %vm604_vm1 = vcmask 1041408  }
 0x162   : > { %v3110_v9 = vld [vmem:[#allocation13] sm:$0xff]   ;;  %2858 = vmatprep.subr.bf16.mxu1 %v5634_v10  ;;  %2827 = vmatprep.subr.bf16.mxu0 %v3109_v8  ;;  %v3113_v13 = vld [vmem:[#allocation13 + $0x8] sm:$0xff]   ;;  %v3116_v16 = vld [vmem:[#allocation13 + $0x10] sm:$0xff]   ;;  %vm5674_vm2 = vcmask 1042432   ;;  %vm5675_vm3 = vcmask 1043456   ;;  %vm5676_vm4 = vcmask 1044480  }
 0x163   : > { %v3111_v11 = vld [vmem:[#allocation13 + $0x80] sm:$0xff]   ;;  %2828 = vmatpush3.bf16.msra.mxu0 %v3110_v9  ;;  %v3114_v14 = vld [vmem:[#allocation13 + $0x88] sm:$0xff]   ;;  %v3117_v17 = vld [vmem:[#allocation13 + $0x90] sm:$0xff]   ;;  %s5812_s17 = sld [smem:[#allocation28_spill]]  ;;  %s2792_s11 = sadd.s32 4294967293, %s2745_s30 }
 0x164   : > { %2859 = vmatpush3.bf16.msra.mxu1 %v3111_v11  ;;  %2829 = vmatprep.subr.bf16.mxu0 %v3112_v12  ;;  %v3118_v18 = vld [vmem:[#allocation13 + $0x58] sm:$0xff]   ;;  %v3121_v21 = vld [vmem:[#allocation13 + $0x60] sm:$0xff]   ;;  %v3124_v24 = vld [vmem:[#allocation13 + $0x68] sm:$0xff]   ;;  %s5842_s21 = sld [smem:[#allocation29_spill]]  ;;  %s5844_s1 = sld [smem:[#allocation33_spill]] }
 0x165   : > { %2860 = vmatprep.subr.bf16.mxu1 %v5634_v10  ;;  %v3119_v19 = vld [vmem:[#allocation13 + $0x18] sm:$0xff]   ;;  %v3122_v22 = vld [vmem:[#allocation13 + $0x20] sm:$0xff]   ;;  %v3125_v25 = vld [vmem:[#allocation13 + $0x28] sm:$0xff]   ;;  %s2536_s27 = sshll.u32 %s4064_s6, 4  ;;  %s5845_s24 = sld [smem:[#allocation52_spill]]  ;;  %s5514_s27 = int_to_ptr.vmem [resolvable:$true] %s2536_s27 }
 0x166   : > { %v3120_v20 = vld [vmem:[#allocation13 + $0x98] sm:$0xff]   ;;  %v3123_v23 = vld [vmem:[#allocation13 + $0xa0] sm:$0xff]   ;;  %v3126_v26 = vld [vmem:[#allocation13 + $0xa8] sm:$0xff]   ;;  %s5520_s20 = scalar_lea.sflag [#allocation6], %s402_s25  ;;  %s3377_s30 = scalar_lea.vmem %s5514_s27, 256 }
 0x167   : > { %2830 = vmatpush3.bf16.msra.mxu0 %v3113_v13  ;;  %v3127_v27 = vld [vmem:[#allocation13 + $0x70] sm:$0xff]   ;;  %v3130_v30 = vld [vmem:[#allocation13 + $0x78] sm:$0xff]   ;;  %v518_v34 = vld [vmem:[#allocation2 + $0x10] sm:$0xff]  ;;  %p3378_p0 = scmp.ne.s32.totalorder %s5514_s27, %s3377_s30 }
 0x168   : > { %2861 = vmatpush3.bf16.msra.mxu1 %v3114_v14  ;;  %2831 = vmatprep.subr.bf16.mxu0 %v3115_v15  ;;  %v3128_v28 = vld [vmem:[#allocation13 + $0x30] sm:$0xff]   ;;  %v3131_v31 = vld [vmem:[#allocation13 + $0x38] sm:$0xff]   ;;  %v4082_v37 = vmul.f32 -0.11531475, %v518_v34  ;;  %v4091_v43 = vmul.f32 0.8864196, %v518_v34 }
 0x169   : > { %2862 = vmatprep.subr.bf16.mxu1 %v5634_v10  ;;  %v3129_v29 = vld [vmem:[#allocation13 + $0xb0] sm:$0xff]   ;;  %v517_v33 = vld [vmem:[#allocation2 + $0x8] sm:$0xff]  ;;  %v4097_v46 = vmul.f32 0.018778928, %v518_v34  ;;  %v4110_v56 = vmul.f32 0.25714523, %v518_v34 }
 0x16a   : > { %v516_v32 = vld [vmem:[#allocation2] sm:$0xff]  ;;  %v4080_v36 = vmul.f32 -0.11531475, %v517_v33  ;;  %v4088_v41 = vmul.f32 0.8864196, %v517_v33  ;;  %v553_v42 = vrot.slane %v4082_v37, 7 }
 0x16b   : > { %2832 = vmatpush3.bf16.msra.mxu0 %v3116_v16  ;;  %v4078_v35 = vmul.f32 -0.11531475, %v516_v32  ;;  %v4086_v40 = vmul.f32 0.8864196, %v516_v32  ;;  %v4093_v44 = vmul.f32 0.018778928, %v516_v32  ;;  %s5846_s4 = smov %s5845_s24 }
 0x16c   : > { %2863 = vmatpush3.bf16.msra.mxu1 %v3117_v17  ;;  %2833 = vmatprep.subr.bf16.mxu0 %v3118_v18  ;;  %v551_v39 = vrot.slane %v4080_v36, 7  ;;  %v4095_v45 = vmul.f32 0.018778928, %v517_v33  ;;  %5747 = vst [vmem:[#allocation37_spill] sm:$0xff] %v4097_v46  ;;  %v606_v49 = vrot.slane %v4088_v41, 6  ;;  %v608_v51 = vrot.slane %v4091_v43, 6 }
 0x16d   : > { %2864 = vmatprep.subr.bf16.mxu1 %v5634_v10  ;;  %v550_v38 = vrot.slane %v4078_v35, 7  ;;  %v605_v48 = vrot.slane %v4086_v40, 6  ;;  %v4105_v53 = vmul.f32 0.25714523, %v516_v32  ;;  %v4107_v54 = vmul.f32 0.25714523, %v517_v33 }
 0x16e   : > { %5746 = vst [vmem:[#allocation36_spill] sm:$0xff] %v4095_v45  ;;  %v554_v50 = vsel %vm549_vm0, %v551_v39, %v553_v42  ;;  %v609_v61 = vsel %vm604_vm1, %v606_v49, %v608_v51  ;;  %v651_v62 = vrot.slane %v4110_v56, 5  ;;  %v519_v63 = vld [vmem:[#allocation2 + $0x18] sm:$0xff]  ;;  %v4118_v0 = vmul.f32 -0.05108693, %v516_v32  ;;  %s2819_s23 = sshll.u32 %s5812_s17, 1 }
 0x16f   : > { %2834 = vmatpush3.bf16.msra.mxu0 %v3119_v19  ;;  %v552_v47 = vsel %vm549_vm0, %v550_v38, %v551_v39  ;;  %v562_v52 = vadd.f32 %v550_v38, %v4093_v44  ;;  %v564_v57 = vadd.f32 %v554_v50, %v4097_v46  ;;  %v607_v58 = vsel %vm604_vm1, %v605_v48, %v606_v49  ;;  %s2820_s18 = sshll.u32 %s5842_s21, 3  ;;  %p5847_p7 = scmp.ne.s32.totalorder %s5844_s1, 0 }
 0x170   : > { %2865 = vmatpush3.bf16.msra.mxu1 %v3120_v20  ;;  %2835 = vmatprep.subr.bf16.mxu0 %v3121_v21  ;;  %v563_v55 = vadd.f32 %v552_v47, %v4095_v45  ;;  %v648_v59 = vrot.slane %v4105_v53, 5  ;;  %v649_v60 = vrot.slane %v4107_v54, 5  ;;  %v4120_v1 = vmul.f32 -0.05108693, %v517_v33  ;;  %s2533_s2 = sadd.s32 %s2820_s18, %s2819_s23 }
 0x171   : > { %2866 = vmatprep.subr.bf16.mxu1 %v5634_v10  ;;  %v617_v2 = vadd.f32 %v605_v48, %v562_v52  ;;  %v4122_v3 = vmul.f32 -0.05108693, %v518_v34  ;;  %v619_v5 = vadd.f32 %v609_v61, %v564_v57  ;;  %v683_v7 = vrot.slane %v4118_v0, 4  ;;  %s2821_s5 = sshll.u32 %s2533_s2, 7  ;;  %p3379_p4 = pnand %p3378_p0, %p5847_p7 }
 0x172   : > { %v618_v4 = vadd.f32 %v607_v58, %v563_v55  ;;  %v650_v6 = vsel %vm5674_vm2, %v648_v59, %v649_v60  ;;  %v684_v8 = vrot.slane %v4120_v1, 4  ;;  %v4127_v9 = vmul.f32 -0.11531475, %v519_v63  ;;  %s5512_s13 = scalar_lea.hbm %s5845_s24, %s2821_s5 }
 0x173   : > { %2836 = vmatpush3.bf16.msra.mxu0 %v3122_v22  ;;  %v652_v11 = vsel %vm5674_vm2, %v649_v60, %v651_v62  ;;  %v686_v12 = vrot.slane %v4122_v3, 4  ;;  %v660_v13 = vadd.f32 %v648_v59, %v617_v2  ;;  %v4131_v14 = vmul.f32 0.004057933, %v516_v32  ;;  %v4184_v2 = vld [vmem:[#allocation2 + $0x20] sm:$0x3]  ;;  %p3380_p6 = pneg %p3379_p4 }
 0x174   : > { %2867 = vmatpush3.bf16.msra.mxu1 %v3123_v23  ;;  %2837 = vmatprep.subr.bf16.mxu0 %v3124_v24  ;;  %v661_v15 = vadd.f32 %v650_v6, %v618_v4  ;;  %v4133_v16 = vmul.f32 0.004057933, %v517_v33  ;;  %v4135_v17 = vmul.f32 0.004057933, %v518_v34  ;;  %v662_v18 = vadd.f32 %v652_v11, %v619_v5  ;;  %v4153_v34 = vld [vmem:[#allocation10] ss:$0 sm:$0xff] }
 0x175   : > { %2868 = vmatprep.subr.bf16.mxu1 %v5634_v10  ;;  %v685_v19 = vsel %vm5675_vm3, %v683_v7, %v684_v8  ;;  %v5641_v20 = vrot.slane %v4127_v9, 7  ;;  %v4139_v21 = vmul.f32 0.8864196, %v519_v63  ;;  %v687_v22 = vsel %vm5675_vm3, %v684_v8, %v686_v12 }
 0x176   : > { %v695_v23 = vadd.f32 %v683_v7, %v660_v13  ;;  %v722_v24 = vrot.slane %v4131_v14, 3  ;;  %v4157_v39 = vmul.f32 0.25714523, %v519_v63  ;;  %v4172_v55 = vmul.f32 -0.05108693, %v519_v63 }
 0x177   : > { %2838 = vmatpush3.bf16.msra.mxu0 %v3125_v25  ;;  %v723_v25 = vrot.slane %v4133_v16, 3  ;;  %v4191_v5 = vmul.f32 0.018778928, %v4184_v2  ;;  %v4193_v6 = vmul.f32 0.004057933, %v519_v63 }
 0x178   : > { %2869 = vmatpush3.bf16.msra.mxu1 %v3126_v26  ;;  %2839 = vmatprep.subr.bf16.mxu0 %v3127_v27  ;;  %v725_v26 = vrot.slane %v4135_v17, 3  ;;  %v696_v27 = vadd.f32 %v685_v19, %v661_v15  ;;  %v4155_v38 = vadd.f32 %v722_v24, %v695_v23  ;;  %v5639_v52 = vrot.slane %v4157_v39, 5 }
 0x179   : > { %2870 = vmatprep.subr.bf16.mxu1 %v5634_v10  ;;  %v724_v32 = vsel %vm5676_vm4, %v722_v24, %v723_v25  ;;  %v5638_v4 = vrot.slane %v4172_v55, 4 }
 0x17a   : > { %v726_v33 = vsel %vm5676_vm4, %v723_v25, %v725_v26  ;;  %5749 = vst [vmem:[#allocation39_spill] sm:$0xff] %v4155_v38  ;;  %v4159_v47 = vadd.f32 %v724_v32, %v696_v27  ;;  %v5655_v32 = vmov 1326507024  }
 0x17b   : > { %2840 = vmatpush3.bf16.msra.mxu0 %v3128_v28  ;;  %v4145_v28 = vmul.f32 0.018778928, %v519_v63  ;;  %v689_v23 = vsel %vm5675_vm3, %v686_v12, %v5638_v4 }
 0x17c   : > { %2871 = vmatpush3.bf16.msra.mxu1 %v3129_v29  ;;  %2841 = vmatprep.subr.bf16.mxu0 %v3130_v30  ;;  %v697_v29 = vadd.f32 %v687_v22, %v662_v18  ;;  %v556_v30 = vsel %vm549_vm0, %v553_v42, %v5641_v20  ;;  %5750 = vst [vmem:[#allocation40_spill] sm:$0xff] %v4159_v47  ;;  %v5637_v18 = vrot.slane %v4193_v6, 3  ;;  %v4202_v22 = vmul.f32 -0.05108693, %v4184_v2 }
 0x17d   : > { %2872 = vmatprep.subr.bf16.mxu1 %v5634_v10  ;;  %5748 = vst [vmem:[#allocation38_spill] sm:$0xff] %v4145_v28  ;;  %v565_v48 = vadd.f32 %v556_v30, %v4145_v28  ;;  %v4166_v42 = vmul.f32 %v4153_v34, %v4155_v38  ;;  %v4176_v57 = vmul.f32 %v4153_v34, %v4159_v47 }
 0x17e   : > { %v4162_v49 = vadd.f32 %v726_v33, %v697_v29  ;;  %v4220_v12 = vsel %vm5676_vm4, %v725_v26, %v5637_v18 }
 0x17f   : > { %2842 = vmatpush3.bf16.msra.mxu0 %v3131_v31  ;;  %v5640_v31 = vrot.slane %v4139_v21, 6  ;;  %5752 = vst [vmem:[#allocation42_spill] sm:$0xff] %v4176_v57  ;;  %v5636_v58 = vand.u32 2147483647, %v4166_v42  ;;  %v776_v61 = vand.u32 2139095040, %v4166_v42  ;;  %v880_v13 = vand.u32 2139095040, %v4176_v57 }
 0x180   : > { %5751 = vst [vmem:[#allocation41_spill] sm:$0xff] %v4162_v49  ;;  %v4181_v60 = vmul.f32 %v4153_v34, %v4162_v49  ;;  %v5635_v11 = vand.u32 2147483647, %v4176_v57 }
 0x181   : > { %v611_v50 = vsel %vm604_vm1, %v608_v51, %v5640_v31  ;;  %v654_v51 = vsel %vm5674_vm2, %v651_v62, %v5639_v52  ;;  %v777_v7 = vshrl.u32 %v776_v61, 23  ;;  %v780_v8 = vand.u32 8388607, %v5636_v58 }
 0x182   : > { %v620_v59 = vadd.f32 %v611_v50, %v565_v48  ;;  %5753 = vst [vmem:[#allocation43_spill] sm:$0xff] %v4181_v60  ;;  %v984_v62 = vand.u32 2139095040, %v4181_v60  ;;  %v881_v24 = vshrl.u32 %v880_v13, 23  ;;  %v4213_v50 = vand.u32 8388607, %v5635_v11 }
 0x183   : > { %v2751_v19 = vadd.s32 4294967169, %v777_v7  ;;  %v781_v33 = vor.u32 8388608, %v780_v8  ;;  %v5645_v11 = vmov 2475754826   ;;  %v5647_v58 = vmov 2131351028  }
 0x184   : > { %v663_v15 = vadd.f32 %v654_v51, %v620_v59  ;;  %v985_v30 = vshrl.u32 %v984_v62, 23  ;;  %v2755_v48 = vadd.s32 4294967169, %v881_v24  ;;  %v5760_v28 = vor.u32 8388608, %v4213_v50 }
 0x185   : > { %v783_v29 = vadd.s32 1, %v2751_v19  ;;  %v4222_v62 = vshll.u32 %v781_v33, 8 }
 0x186   : > { %v4215_v59 = vadd.f32 %v689_v23, %v663_v15  ;;  %v2759_v61 = vadd.s32 4294967169, %v985_v30  ;;  %v887_v7 = vadd.s32 1, %v2755_v48  ;;  %v5643_v15 = vmov 683565275  }
 0x187   : > { %vm784_vm5 = vcmp.gt.s32.totalorder %v783_v29, 0  ;;  %v925_v46 = vshll.u32 %v5760_v28, 8 }
 0x188   : > { %v785_v51 = vsel %vm784_vm5, %v783_v29, 0  ;;  %v4225_v24 = vadd.s32 1, %v2759_v61  ;;  %v5649_v29 = vmov 2102212464   ;;  %vm888_vm7 = vcmp.gt.s32.totalorder %v887_v7, 0 }
 0x189   : > { %v786_v13 = vshrl.u32 %v785_v51, 5  ;;  %v787_v19 = vand.u32 31, %v785_v51  ;;  %v5651_v51 = vmov 920167782   ;;  %v889_v20 = vsel %vm888_vm7, %v887_v7, 0 }
 0x18a   : > { %v890_v7 = vshrl.u32 %v889_v20, 5  ;;  %vm992_vm5 = vcmp.gt.s32.totalorder %v4225_v24, 0 }
 0x18b   : > { %v788_v10 = vsub.s32 32, %v787_v19  ;;  %v790_v23 = vshll.u32 %v5643_v15, %v787_v19  ;;  %v793_v26 = vshll.u32 %v5645_v11, %v787_v19  ;;  %v796_v30 = vshll.u32 %v5647_v58, %v787_v19 }
 0x18c   : > { %v799_v48 = vshll.u32 %v5649_v29, %v787_v19  ;;  %v802_v33 = vshll.u32 %v5651_v51, %v787_v19  ;;  %vm805_vm6 = vcmp.lt.s32.totalorder %v786_v13, 1  ;;  %vm806_vm8 = vcmp.lt.s32.totalorder %v786_v13, 2 }
 0x18d   : > { %v789_v61 = vshrl.u32 %v5643_v15, %v788_v10  ;;  %v791_v18 = vshrl.u32 %v5645_v11, %v788_v10  ;;  %v794_v4 = vshrl.u32 %v5647_v58, %v788_v10  ;;  %v797_v52 = vshrl.u32 %v5649_v29, %v788_v10 }
 0x18e   : > { %v800_v31 = vshrl.u32 %v5651_v51, %v788_v10  ;;  %v803_v27 = vshrl.u32 %v5655_v32, %v788_v10  ;;  %vm808_vm9 = vcmp.lt.s32.totalorder %v786_v13, 4  ;;  %vm807_vm10 = vcmp.lt.s32.totalorder %v786_v13, 3 }
 0x18f   : > { %v792_v63 = vor.u32 %v791_v18, %v790_v23  ;;  %v795_v25 = vor.u32 %v794_v4, %v793_v26  ;;  %v798_v19 = vor.u32 %v797_v52, %v796_v30  ;;  %v891_v15 = vand.u32 31, %v889_v20 }
 0x190   : > { %v801_v8 = vor.u32 %v800_v31, %v799_v48  ;;  %v804_v49 = vor.u32 %v803_v27, %v802_v33  ;;  %v5754_v26 = vmov 683565275   ;;  %v5758_v33 = vmov 920167782  }
 0x191   : > { %v809_v11 = vsel %vm805_vm6, %v789_v61, %v792_v63  ;;  %v810_v58 = vsel %vm808_vm9, %v798_v19, 2102212464  ;;  %v813_v29 = vsel %vm805_vm6, %v792_v63, %v795_v25  ;;  %v817_v51 = vsel %vm805_vm6, %v795_v25, %v798_v19 }
 0x192   : > { %v811_v47 = vsel %vm807_vm10, %v795_v25, %v810_v58  ;;  %v814_v38 = vsel %vm808_vm9, %v801_v8, 920167782  ;;  %v818_v10 = vsel %vm808_vm9, %v804_v49, 1326507024  ;;  %v892_v32 = vsub.s32 32, %v891_v15 }
 0x193   : > { %v812_v18 = vsel %vm806_vm8, %v809_v11, %v811_v47  ;;  %v815_v4 = vsel %vm807_vm10, %v798_v19, %v814_v38  ;;  %v819_v52 = vsel %vm807_vm10, %v801_v8, %v818_v10  ;;  %v894_v30 = vshll.u32 %v5754_v26, %v891_v15 }
 0x194   : > { %v816_v31 = vsel %vm806_vm8, %v813_v29, %v815_v4  ;;  %v820_v27 = vsel %vm806_vm8, %v817_v51, %v819_v52  ;;  %v828_v23 = vmul.u32 %v4222_v62, %v812_v18  ;;  %v5755_v38 = vmov 2475754826  }
 0x195   : > { %v4247_v63 = vmul.u32.u64.low %v4222_v62, %v820_v27  ;;  %v4248_v48 = vmul.u32.u64.high %v4222_v62, %v820_v27, %v4247_v63  ;;  %v4251_v49 = vmul.u32.u64.low %v4222_v62, %v816_v31  ;;  %v4252_v58 = vmul.u32.u64.high %v4222_v62, %v816_v31, %v4251_v49 }
 0x196   : > { %v895_v47 = vshrl.u32 %v5755_v38, %v892_v32  ;;  %v897_v20 = vshll.u32 %v5755_v38, %v891_v15  ;;  %v5756_v11 = vmov 2131351028   ;;  %v5757_v8 = vmov 2102212464  }
 0x197   : > { %v898_v25 = vshrl.u32 %v5756_v11, %v892_v32  ;;  %v900_v13 = vshll.u32 %v5756_v11, %v891_v15  ;;  %v901_v29 = vshrl.u32 %v5757_v8, %v892_v32  ;;  %v903_v51 = vshll.u32 %v5757_v8, %v891_v15 }
 0x198   : > { %v904_v61 = vshrl.u32 %v5758_v33, %v892_v32  ;;  %v906_v19 = vshll.u32 %v5758_v33, %v891_v15  ;;  %v896_v10 = vor.u32 %v895_v47, %v894_v30  ;;  %v5759_v18 = vmov 1326507024  }
 0x199   : > { %v899_v62 = vor.u32 %v898_v25, %v897_v20  ;;  %v907_v4 = vshrl.u32 %v5759_v18, %v892_v32  ;;  %vm909_vm11 = vcmp.lt.s32.totalorder %v890_v7, 1  ;;  %vm830_vm12 = vc.u32 %v4248_v48, %v4251_v49 }
 0x19a   : > { %v831_v52 = vadd.s32 1, %v4252_v58  ;;  %v893_v31 = vshrl.u32 %v5754_v26, %v892_v32  ;;  %v902_v27 = vor.u32 %v901_v29, %v900_v13  ;;  %v905_v63 = vor.u32 %v904_v61, %v903_v51 }
 0x19b   : > { %v908_v57 = vor.u32 %v907_v4, %v906_v19  ;;  %vm911_vm13 = vcmp.lt.s32.totalorder %v890_v7, 3  ;;  %vm910_vm14 = vcmp.lt.s32.totalorder %v890_v7, 2  ;;  %vm912_vm15 = vcmp.lt.s32.totalorder %v890_v7, 4 }
 0x19c   : > { %v832_v15 = vsel %vm830_vm12, %v831_v52, %v4252_v58  ;;  %v917_v30 = vsel %vm909_vm11, %v896_v10, %v899_v62  ;;  %v914_v20 = vsel %vm912_vm15, %v902_v27, 2102212464  ;;  %v918_v25 = vsel %vm912_vm15, %v905_v63, 920167782 }
 0x19d   : > { %v833_v47 = vadd.s32 %v832_v15, %v828_v23  ;;  %v921_v45 = vsel %vm909_vm11, %v899_v62, %v902_v27  ;;  %v913_v32 = vsel %vm909_vm11, %v893_v31, %v896_v10  ;;  %v919_v13 = vsel %vm911_vm13, %v902_v27, %v918_v25 }
 0x19e   : > { %v922_v29 = vsel %vm912_vm15, %v908_v57, 1326507024  ;;  %v915_v28 = vsel %vm911_vm13, %v899_v62, %v914_v20  ;;  %v920_v58 = vsel %vm910_vm14, %v917_v30, %v919_v13  ;;  %v4281_v23 = vadd.f32 %v4220_v12, %v4215_v59 }
 0x19f   : > { %v834_v50 = vadd.s32 536870912, %v833_v47  ;;  %v923_v51 = vsel %vm911_vm13, %v905_v63, %v922_v29  ;;  %v4284_v19 = vmul.u32.u64.low %v925_v46, %v920_v58  ;;  %v4285_v10 = vmul.u32.u64.high %v925_v46, %v920_v58, %v4284_v19 }
 0x1a0   : > { %5761 = vst [vmem:[#allocation44_spill] sm:$0xff] %v4281_v23  ;;  %v924_v61 = vsel %vm910_vm14, %v921_v45, %v923_v51  ;;  %v993_v62 = vsel %vm992_vm5, %v4225_v24, 0  ;;  %v535_v31 = vmul.f32 0.004057933, %v4184_v2  ;;  %v584_v27 = vrot.slane %v4202_v22, 7 }
 0x1a1   : > { %v4288_v57 = vshrl.u32 %v834_v50, 30  ;;  %v4290_v4 = vmul.u32.u64.low %v925_v46, %v924_v61  ;;  %v4291_v52 = vmul.u32.u64.high %v925_v46, %v924_v61, %v4290_v4  ;;  %v916_v59 = vsel %vm910_vm14, %v913_v32, %v915_v28 }
 0x1a2   : > { %v995_v12 = vand.u32 31, %v993_v62  ;;  %v5762_v45 = vrot.slane %v4127_v9, 7  ;;  %v5763_v15 = vrot.slane %v4120_v1, 7  ;;  %v5764_v30 = vrot.slane %v4118_v0, 7 }
 0x1a3   : > { %v836_v25 = vshll.u32 %v4288_v57, 30  ;;  %v5664_v24 = vand.u32 2147483647, %v4181_v60  ;;  %v5765_v2 = vrot.slane %v4122_v3, 7  ;;  %v5767_v32 = vrot.slane %v4172_v55, 7 }
 0x1a4   : > { %v566_v63 = vadd.f32 %v5762_v45, %v4191_v5  ;;  %v579_v20 = vsel %vm549_vm0, %v5764_v30, %v5763_v15  ;;  %v5766_v22 = vmov %v5763_v15  ;;  %v4319_v29 = vmul.f32 %v4153_v34, %v4281_v23 }
 0x1a5   : > { %v581_v7 = vsel %vm549_vm0, %v5766_v22, %v5765_v2  ;;  %v5768_v5 = vmov %v5765_v2  ;;  %v935_v50 = vadd.s32 1, %v4285_v10  ;;  %v4322_v28 = vsub.s32 %v833_v47, %v836_v25 }
 0x1a6   : > { %v583_v13 = vsel %vm549_vm0, %v5768_v5, %v5767_v32  ;;  %v932_v58 = vmul.u32 %v925_v46, %v916_v59  ;;  %vm934_vm6 = vc.u32 %v4291_v52, %v4284_v19  ;;  %v996_v1 = vsub.s32 32, %v995_v12 }
 0x1a7   : > { %v5769_v51 = vmov %v5767_v32  ;;  %v5770_v3 = vmov %v5764_v30  ;;  %v592_v45 = vadd.f32 %v579_v20, %v4133_v16  ;;  %v936_v15 = vsel %vm934_vm6, %v935_v50, %v4285_v10 }
 0x1a8   : > { %v585_v61 = vsel %vm549_vm0, %v5769_v51, %v584_v27  ;;  %v591_v4 = vadd.f32 %v5770_v3, %v4131_v14  ;;  %v4335_v47 = vadd.f32 %v581_v7, %v4135_v17  ;;  %v4338_v46 = vadd.f32 %v583_v13, %v4193_v6 }
 0x1a9   : > { %v839_v59 = vsub.s32 0, %v4322_v28  ;;  %v988_v30 = vand.u32 8388607, %v5664_v24  ;;  %v4343_v27 = vshrl.u32 %v993_v62, 5  ;;  %v998_v0 = vshll.u32 %v5754_v26, %v995_v12 }
 0x1aa   : > { %v1007_v14 = vshll.u32 %v5757_v8, %v995_v12  ;;  %v1088_v16 = vand.u32 2139095040, %v4319_v29  ;;  %v4349_v17 = vadd.s32 %v936_v15, %v932_v58  ;;  %v999_v20 = vshrl.u32 %v5755_v38, %v996_v1 }
 0x1ab   : > { %v2752_v10 = vmin.u32 %v839_v59, %v4322_v28  ;;  %v1001_v25 = vshll.u32 %v5755_v38, %v995_v12  ;;  %v1002_v2 = vshrl.u32 %v5756_v11, %v996_v1  ;;  %v1004_v22 = vshll.u32 %v5756_v11, %v995_v12 }
 0x1ac   : > { %v1005_v62 = vshrl.u32 %v5757_v8, %v996_v1  ;;  %v1008_v7 = vshrl.u32 %v5758_v33, %v996_v1  ;;  %v595_v32 = vadd.f32 %v585_v61, %v535_v31  ;;  %v1010_v13 = vshll.u32 %v5758_v33, %v995_v12 }
 0x1ad   : > { %v1011_v50 = vshrl.u32 %v5759_v18, %v996_v1  ;;  %v630_v58 = vrot.slane %v4105_v53, 6  ;;  %v631_v51 = vrot.slane %v4107_v54, 6  ;;  %v633_v3 = vrot.slane %v4110_v56, 6 }
 0x1ae   : > { %v1009_v15 = vor.u32 %v1008_v7, %v1007_v14  ;;  %v841_v59 = vclz %v2752_v10  ;;  %v989_v24 = vor.u32 8388608, %v988_v30  ;;  %vm1016_vm0 = vcmp.lt.s32.totalorder %v4343_v27, 4 }
 0x1af   : > { %v1089_v23 = vshrl.u32 %v1088_v16, 23  ;;  %v938_v31 = vadd.s32 536870912, %v4349_v17  ;;  %v1000_v61 = vor.u32 %v999_v20, %v998_v0  ;;  %v1003_v5 = vor.u32 %v1002_v2, %v1001_v25 }
 0x1b0   : > { %v1006_v60 = vor.u32 %v1005_v62, %v1004_v22  ;;  %v1012_v12 = vor.u32 %v1011_v50, %v1010_v13  ;;  %vm1013_vm7 = vcmp.lt.s32.totalorder %v4343_v27, 1  ;;  %vm1015_vm8 = vcmp.lt.s32.totalorder %v4343_v27, 3 }
 0x1b1   : > { %v1022_v53 = vsel %vm1016_vm0, %v1009_v15, 920167782  ;;  %v5771_v54 = vrot.slane %v4139_v21, 6  ;;  %v632_v30 = vsel %vm604_vm1, %v630_v58, %v631_v51  ;;  %v635_v14 = vrot.slane %v4157_v39, 6 }
 0x1b2   : > { %v997_v16 = vshrl.u32 %v5754_v26, %v996_v1  ;;  %v642_v0 = vadd.f32 %v630_v58, %v591_v4  ;;  %v2753_v10 = vadd.s32 4294967294, %v841_v59  ;;  %vm1014_vm9 = vcmp.lt.s32.totalorder %v4343_v27, 2 }
 0x1b3   : > { %v621_v56 = vadd.f32 %v5771_v54, %v566_v63  ;;  %v2763_v20 = vadd.s32 4294967169, %v1089_v23  ;;  %v1018_v25 = vsel %vm1016_vm0, %v1006_v60, 2102212464  ;;  %v1021_v2 = vsel %vm1013_vm7, %v1000_v61, %v1003_v5 }
 0x1b4   : > { %v1023_v63 = vsel %vm1015_vm8, %v1006_v60, %v1022_v53  ;;  %v1025_v22 = vsel %vm1013_vm7, %v1003_v5, %v1006_v60  ;;  %v634_v62 = vsel %vm604_vm1, %v631_v51, %v633_v3  ;;  %v4384_v1 = vshrl.u32 %v938_v31, 30 }
 0x1b5   : > { %v1026_v4 = vsel %vm1016_vm0, %v1012_v12, 1326507024  ;;  %v1029_v23 = vshll.u32 %v989_v24, 8  ;;  %v636_v7 = vsel %vm604_vm1, %v633_v3, %v635_v14  ;;  %v643_v13 = vadd.f32 %v632_v30, %v592_v45 }
 0x1b6   : > { %v1017_v50 = vsel %vm1013_vm7, %v997_v16, %v1000_v61  ;;  %v1027_v58 = vsel %vm1015_vm8, %v1009_v15, %v1026_v4  ;;  %v1019_v60 = vsel %vm1015_vm8, %v1003_v5, %v1018_v25  ;;  %v1024_v51 = vsel %vm1014_vm9, %v1021_v2, %v1023_v63 }
 0x1b7   : > { %v1028_v59 = vsel %vm1014_vm9, %v1025_v22, %v1027_v58  ;;  %v1095_v31 = vadd.s32 1, %v2763_v20  ;;  %v5772_v24 = vrot.slane %v4157_v39, 5  ;;  %v666_v45 = vrot.slane %v4088_v41, 5 }
 0x1b8   : > { %v668_v61 = vrot.slane %v4091_v43, 5  ;;  %vm2754_vm10 = vcmp.lt.s32.totalorder %v2753_v10, 0  ;;  %v644_v15 = vadd.f32 %v634_v62, %v4335_v47  ;;  %v940_v12 = vshll.u32 %v4384_v1, 30 }
 0x1b9   : > { %v664_v3 = vadd.f32 %v5772_v24, %v621_v56  ;;  %v4405_v5 = vmul.u32.u64.low %v1029_v23, %v1028_v59  ;;  %v4406_v53 = vmul.u32.u64.high %v1029_v23, %v1028_v59, %v4405_v5  ;;  %v1020_v54 = vsel %vm1014_vm9, %v1017_v50, %v1019_v60 }
 0x1ba   : > { %v4410_v30 = vmul.u32.u64.low %v1029_v23, %v1024_v51  ;;  %v4411_v16 = vmul.u32.u64.high %v1029_v23, %v1024_v51, %v4410_v30  ;;  %vm1096_vm11 = vcmp.gt.s32.totalorder %v1095_v31, 0  ;;  %v646_v39 = vadd.f32 %v635_v14, %v595_v32 }
 0x1bb   : > { %v670_v41 = vrot.slane %v4139_v21, 5  ;;  %v844_v43 = vsel %vm2754_vm10, 0, %v2753_v10  ;;  %v1097_v56 = vsel %vm1096_vm11, %v1095_v31, 0  ;;  %v5773_v47 = vrot.slane %v4086_v40, 5 }
 0x1bc   : > { %v669_v25 = vsel %vm5674_vm2, %v666_v45, %v668_v61  ;;  %v5774_v2 = vrot.slane %v4172_v55, 4  ;;  %v1099_v63 = vand.u32 31, %v1097_v56  ;;  %v4422_v22 = vsub.s32 %v4349_v17, %v940_v12 }
 0x1bd   : > { %v667_v20 = vsel %vm5674_vm2, %v5773_v47, %v666_v45  ;;  %v1036_v62 = vmul.u32 %v1029_v23, %v1020_v54  ;;  %vm1038_vm12 = vc.u32 %v4406_v53, %v4410_v30  ;;  %v5669_v21 = vand.u32 2147483647, %v4319_v29 }
 0x1be   : > { %v699_v27 = vadd.f32 %v5774_v2, %v664_v3  ;;  %v849_v32 = vsub.s32 4294967266, %v844_v43  ;;  %v1039_v14 = vadd.s32 1, %v4411_v16  ;;  %v4429_v10 = vadd.f32 %v636_v7, %v4338_v46 }
 0x1bf   : > { %v4432_v4 = vsel %vm5674_vm2, %v668_v61, %v670_v41  ;;  %v5775_v55 = vmov %v5773_v47  ;;  %v1100_v17 = vsub.s32 32, %v1099_v63  ;;  %v4438_v23 = vadd.f32 %v667_v20, %v643_v13 }
 0x1c0   : > { %v4436_v50 = vadd.f32 %v5775_v55, %v642_v0  ;;  %v4440_v58 = vadd.f32 %v669_v25, %v644_v15  ;;  %v4442_v60 = vadd.f32 %v670_v41, %v646_v39  ;;  %v1040_v51 = vsel %vm1038_vm12, %v1039_v14, %v4411_v16 }
 0x1c1   : > { %v5776_v59 = vrot.slane %v4193_v6, 3  ;;  %v943_v7 = vsub.s32 0, %v4422_v22  ;;  %v1041_v31 = vadd.s32 %v1040_v51, %v1036_v62  ;;  %v1092_v40 = vand.u32 8388607, %v5669_v21 }
 0x1c2   : > { %v829_v0 = vadd.s32 %v4251_v49, %v4248_v48  ;;  %v845_v13 = vsub.s32 32, %v844_v43  ;;  %v846_v24 = vshll.u32 %v4322_v28, %v844_v43  ;;  %v850_v3 = vadd.s32 127, %v849_v32 }
 0x1c3   : > { %v4447_v46 = vadd.f32 %v5776_v59, %v699_v27  ;;  %v1042_v45 = vadd.s32 536870912, %v1041_v31  ;;  %v1098_v61 = vshrl.u32 %v1097_v56, 5  ;;  %v1102_v15 = vshll.u32 %v5754_v26, %v1099_v63 }
 0x1c4   : > { %v1103_v6 = vshrl.u32 %v5755_v38, %v1100_v17  ;;  %v1105_v12 = vshll.u32 %v5755_v38, %v1099_v63  ;;  %v1106_v5 = vshrl.u32 %v5756_v11, %v1100_v17  ;;  %v1108_v54 = vshll.u32 %v5756_v11, %v1099_v63 }
 0x1c5   : > { %v1109_v16 = vshrl.u32 %v5757_v8, %v1100_v17  ;;  %v2756_v48 = vmin.u32 %v943_v7, %v4422_v22  ;;  %v4462_v49 = vshrl.u32 %v1042_v45, 30  ;;  %v1111_v28 = vshll.u32 %v5757_v8, %v1099_v63 }
 0x1c6   : > { %v1112_v39 = vshrl.u32 %v5758_v33, %v1100_v17  ;;  %v847_v41 = vshrl.u32 %v829_v0, %v845_v13  ;;  %v851_v43 = vshll.u32 %v850_v3, 23  ;;  %v1114_v56 = vshll.u32 %v5758_v33, %v1099_v63 }
 0x1c7   : > { %v1115_v47 = vshrl.u32 %v5759_v18, %v1100_v17  ;;  %v700_v20 = vrot.slane %v4078_v35, 4  ;;  %v1044_v25 = vshll.u32 %v4462_v49, 30  ;;  %v1104_v2 = vor.u32 %v1103_v6, %v1102_v15 }
 0x1c8   : > { %v1113_v27 = vor.u32 %v1112_v39, %v1111_v28  ;;  %v1107_v62 = vor.u32 %v1106_v5, %v1105_v12  ;;  %v1110_v32 = vor.u32 %v1109_v16, %v1108_v54  ;;  %vm1120_vm13 = vcmp.lt.s32.totalorder %v1098_v61, 4 }
 0x1c9   : > { %v1116_v14 = vor.u32 %v1115_v47, %v1114_v56  ;;  %v945_v55 = vclz %v2756_v48  ;;  %v1093_v51 = vor.u32 8388608, %v1092_v40  ;;  %vm1117_vm14 = vcmp.lt.s32.totalorder %v1098_v61, 1 }
 0x1ca   : > { %vm1119_vm15 = vcmp.lt.s32.totalorder %v1098_v61, 3  ;;  %v701_v59 = vrot.slane %v4080_v36, 4  ;;  %v4473_v63 = vmul.f32 %v4153_v34, %v4447_v46  ;;  %v848_v7 = vor.u32 %v847_v41, %v846_v24 }
 0x1cb   : > { %v852_v35 = vor.u32 4788187, %v851_v43  ;;  %v4475_v0 = vsub.s32 %v1041_v31, %v1044_v25  ;;  %v1101_v13 = vshrl.u32 %v5754_v26, %v1100_v17  ;;  %vm1118_vm5 = vcmp.lt.s32.totalorder %v1098_v61, 2 }
 0x1cc   : > { %v1126_v3 = vsel %vm1120_vm13, %v1113_v27, 920167782  ;;  %v1122_v45 = vsel %vm1120_vm13, %v1110_v32, 2102212464  ;;  %v1125_v40 = vsel %vm1117_vm14, %v1104_v2, %v1107_v62  ;;  %v1130_v36 = vsel %vm1120_vm13, %v1116_v14, 1326507024 }
 0x1cd   : > { %v1127_v15 = vsel %vm1119_vm15, %v1110_v32, %v1126_v3  ;;  %v703_v6 = vrot.slane %v4082_v37, 4  ;;  %v2757_v12 = vadd.s32 4294967294, %v945_v55  ;;  %v1129_v24 = vsel %vm1117_vm14, %v1107_v62, %v1110_v32 }
 0x1ce   : > { %v1133_v31 = vshll.u32 %v1093_v51, 8  ;;  %v853_v5 = vand.u32 2147483647, %v852_v35  ;;  %v855_v54 = vcvt.s32.f32 %v848_v7  ;;  %v1131_v17 = vsel %vm1119_vm15, %v1113_v27, %v1130_v36 }
 0x1cf   : > { %v1192_v16 = vand.u32 2139095040, %v4473_v63  ;;  %v1047_v48 = vsub.s32 0, %v4475_v0  ;;  %v1121_v28 = vsel %vm1117_vm14, %v1101_v13, %v1104_v2  ;;  %v1123_v39 = vsel %vm1119_vm15, %v1107_v62, %v1122_v45 }
 0x1d0   : > { %v1128_v41 = vsel %vm1118_vm5, %v1125_v40, %v1127_v15  ;;  %v680_v37 = vadd.f32 %v4432_v4, %v4429_v10  ;;  %v702_v43 = vsel %vm5675_vm3, %v700_v20, %v701_v59  ;;  %v705_v56 = vrot.slane %v4127_v9, 4 }
 0x1d1   : > { %v1132_v47 = vsel %vm1118_vm5, %v1129_v24, %v1131_v17  ;;  %v704_v25 = vsel %vm5675_vm3, %v701_v59, %v703_v6  ;;  %vm2758_vm6 = vcmp.lt.s32.totalorder %v2757_v12, 0  ;;  %v1124_v2 = vsel %vm1118_vm5, %v1121_v28, %v1123_v39 }
 0x1d2   : > { %v4497_v27 = vmul.u32.u64.low %v1133_v31, %v1132_v47  ;;  %v4498_v32 = vmul.u32.u64.high %v1133_v31, %v1132_v47, %v4497_v27  ;;  %v4501_v62 = vmul.u32.u64.low %v1133_v31, %v1128_v41  ;;  %v4502_v14 = vmul.u32.u64.high %v1133_v31, %v1128_v41, %v4501_v62 }
 0x1d3   : > { %v1193_v55 = vshrl.u32 %v1192_v16, 23  ;;  %v712_v10 = vadd.f32 %v700_v20, %v4436_v50  ;;  %v856_v4 = vmul.f32 %v855_v54, %v853_v5  ;;  %v859_v9 = vsub.s32 4, %v4288_v57  ;;  %v5782_v27 = vld [vmem:[#allocation38_spill] sm:$0xff] }
 0x1d4   : > { %v2760_v51 = vmin.u32 %v1047_v48, %v4475_v0  ;;  %v706_v59 = vsel %vm5675_vm3, %v703_v6, %v705_v56  ;;  %v4510_v7 = vadd.f32 %v702_v43, %v4438_v23  ;;  %v948_v35 = vsel %vm2758_vm6, 0, %v2757_v12  ;;  %v5778_v12 = vld [vmem:[#allocation37_spill] sm:$0xff] }
 0x1d5   : > { %v2767_v61 = vadd.s32 4294967169, %v1193_v55  ;;  %v4513_v13 = vadd.f32 %v704_v25, %v4440_v58  ;;  %v4516_v3 = vadd.f32 %v705_v56, %v4442_v60  ;;  %v743_v50 = vrot.slane %v4093_v44, 3  ;;  %v5777_v60 = vld [vmem:[#allocation36_spill] sm:$0xff] }
 0x1d6   : > { %v1140_v20 = vmul.u32 %v1133_v31, %v1124_v2  ;;  %vm775_vm0 = vcmp.lt.s32.totalorder %v4166_v42, 0  ;;  %vm1142_vm7 = vc.u32 %v4498_v32, %v4501_v62  ;;  %v1143_v45 = vadd.s32 1, %v4502_v14 }
 0x1d7   : > { %v1199_v23 = vadd.s32 1, %v2767_v61  ;;  %v857_v40 = vxor.u32 2147483648, %v856_v4  ;;  %v860_v58 = vsel %vm775_vm0, %v859_v9, %v4288_v57  ;;  %v953_v15 = vsub.s32 4294967266, %v948_v35 }
 0x1d8   : > { %v1049_v36 = vclz %v2760_v51  ;;  %v744_v6 = vrot.slane %v5777_v60, 3  ;;  %v746_v44 = vrot.slane %v5778_v12, 3  ;;  %v1144_v24 = vsel %vm1142_vm7, %v1143_v45, %v4502_v14 }
 0x1d9   : > { %vm1200_vm8 = vcmp.gt.s32.totalorder %v1199_v23, 0  ;;  %v4529_v31 = vadd.f32 %v706_v59, %v680_v37  ;;  %v5779_v5 = vand.u32 2147483647, %v4166_v42  ;;  %v1145_v17 = vadd.s32 %v1144_v24, %v1140_v20 }
 0x1da   : > { %v5668_v57 = vand.u32 2147483647, %v4473_v63  ;;  %v933_v48 = vadd.s32 %v4284_v19, %v4291_v52  ;;  %v949_v28 = vsub.s32 32, %v948_v35  ;;  %v1201_v39 = vsel %vm1200_vm8, %v1199_v23, 0 }
 0x1db   : > { %vm4533_vm9 = vcmp.le.f32.partialorder %v5779_v5, 0.7853982  ;;  %v858_v41 = vsel %vm775_vm0, %v857_v40, %v856_v4  ;;  %v954_v37 = vadd.s32 127, %v953_v15  ;;  %v2761_v43 = vadd.s32 4294967294, %v1049_v36 }
 0x1dc   : > { %v862_v16 = vsel %vm4533_vm9, 0, %v860_v58  ;;  %v1146_v56 = vadd.s32 536870912, %v1145_v17  ;;  %v4545_v47 = vsel %vm5676_vm4, %v743_v50, %v744_v6  ;;  %v4550_v25 = vsel %vm5676_vm4, %v744_v6, %v746_v44 }
 0x1dd   : > { %v748_v2 = vrot.slane %v5782_v27, 3  ;;  %v1203_v14 = vand.u32 31, %v1201_v39  ;;  %v4553_v19 = vadd.f32 %v743_v50, %v712_v10  ;;  %v4555_v52 = vadd.s32 3, %v862_v16 }
 0x1de   : > { %v963_v55 = vsub.s32 4, %v4384_v1  ;;  %v4558_v4 = vshrl.u32 %v1146_v56, 30  ;;  %v861_v9 = vsel %vm4533_vm9, %v4166_v42, %v858_v41  ;;  %v950_v51 = vshll.u32 %v4422_v22, %v948_v35 }
 0x1df   : > { %v951_v59 = vshrl.u32 %v933_v48, %v949_v28  ;;  %v1204_v61 = vsub.s32 32, %v1203_v14  ;;  %v955_v20 = vshll.u32 %v954_v37, 23  ;;  %vm2762_vm10 = vcmp.lt.s32.totalorder %v2761_v43, 0 }
 0x1e0   : > { %v1148_v45 = vshll.u32 %v4558_v4, 30  ;;  %v1196_v10 = vand.u32 8388607, %v5668_v57  ;;  %v1206_v50 = vshll.u32 %v5754_v26, %v1203_v14  ;;  %v1209_v40 = vshll.u32 %v5755_v38, %v1203_v14 }
 0x1e1   : > { %v1207_v23 = vshrl.u32 %v5755_v38, %v1204_v61  ;;  %v1210_v58 = vshrl.u32 %v5756_v11, %v1204_v61  ;;  %v1202_v15 = vshrl.u32 %v1201_v39, 5  ;;  %v1212_v22 = vshll.u32 %v5756_v11, %v1203_v14 }
 0x1e2   : > { %v1213_v35 = vshrl.u32 %v5757_v8, %v1204_v61  ;;  %v1215_v36 = vshll.u32 %v5757_v8, %v1203_v14  ;;  %3133 = vcosq.f32 %v861_v9  ;;  %v952_v60 = vor.u32 %v951_v59, %v950_v51 }
 0x1e3   : > { %v1037_v6 = vadd.s32 %v4410_v30, %v4406_v53  ;;  %v1052_v24 = vsel %vm2762_vm10, 0, %v2761_v43  ;;  %v956_v5 = vor.u32 4788187, %v955_v20  ;;  %v4576_v54 = vsub.s32 %v1145_v17, %v1148_v45 }
 0x1e4   : > { %v1197_v16 = vor.u32 8388608, %v1196_v10  ;;  %v1216_v48 = vshrl.u32 %v5758_v33, %v1204_v61  ;;  %v1208_v28 = vor.u32 %v1207_v23, %v1206_v50  ;;  %v1211_v39 = vor.u32 %v1210_v58, %v1209_v40 }
 0x1e5   : > { %v1218_v41 = vshll.u32 %v5758_v33, %v1203_v14  ;;  %v1219_v37 = vshrl.u32 %v5759_v18, %v1204_v61  ;;  %v1057_v56 = vsub.s32 4294967266, %v1052_v24  ;;  %v1214_v57 = vor.u32 %v1213_v35, %v1212_v22 }
 0x1e6   : > { %v1217_v21 = vor.u32 %v1216_v48, %v1215_v36  ;;  %vm1221_vm11 = vcmp.lt.s32.totalorder %v1202_v15, 1  ;;  %3135 = vsinq.f32 %v861_v9  ;;  %v959_v51 = vcvt.s32.f32 %v952_v60 }
 0x1e7   : > { %v1205_v53 = vshrl.u32 %v5754_v26, %v1204_v61  ;;  %v1220_v30 = vor.u32 %v1219_v37, %v1218_v41  ;;  %v957_v17 = vand.u32 2147483647, %v956_v5  ;;  %v1053_v43 = vsub.s32 32, %v1052_v24 }
 0x1e8   : > { %vm1223_vm12 = vcmp.lt.s32.totalorder %v1202_v15, 3  ;;  %v1237_v59 = vshll.u32 %v1197_v16, 8  ;;  %v1151_v20 = vsub.s32 0, %v4576_v54  ;;  %vm1222_vm13 = vcmp.lt.s32.totalorder %v1202_v15, 2 }
 0x1e9   : > { %vm1224_vm14 = vcmp.lt.s32.totalorder %v1202_v15, 4  ;;  %v1229_v14 = vsel %vm1221_vm11, %v1208_v28, %v1211_v39  ;;  %v1058_v45 = vadd.s32 127, %v1057_v56  ;;  %v1233_v23 = vsel %vm1221_vm11, %v1211_v39, %v1214_v57 }
 0x1ea   : > { %v1226_v10 = vsel %vm1224_vm14, %v1214_v57, 2102212464  ;;  %v1230_v50 = vsel %vm1224_vm14, %v1217_v21, 920167782  ;;  %v1225_v9 = vsel %vm1221_vm11, %v1205_v53, %v1208_v28  ;;  %v1234_v58 = vsel %vm1224_vm14, %v1220_v30, 1326507024 }
 0x1eb   : > { %v1227_v61 = vsel %vm1223_vm12, %v1211_v39, %v1226_v10  ;;  %v1231_v40 = vsel %vm1223_vm12, %v1214_v57, %v1230_v50  ;;  %v960_v22 = vmul.f32 %v959_v51, %v957_v17  ;;  %v1235_v36 = vsel %vm1223_vm12, %v1217_v21, %v1234_v58  ;;  %v5783_v51 = vld [vmem:[#allocation42_spill] sm:$0xff] }
 0x1ec   : > { %v1232_v35 = vsel %vm1222_vm13, %v1229_v14, %v1231_v40  ;;  %v4592_v60 = vmul.f32 %v4153_v34, %v4553_v19  ;;  %v3134_v5 = vpop.eup %3133  ;;  %v2764_v16 = vmin.u32 %v1151_v20, %v4576_v54  ;;  %v1236_v48 = vsel %vm1222_vm13, %v1233_v23, %v1235_v36 }
 0x1ed   : > { %v4596_v28 = vmul.u32.u64.low %v1237_v59, %v1232_v35  ;;  %v4597_v41 = vmul.u32.u64.high %v1237_v59, %v1232_v35, %v4596_v28  ;;  %v1054_v57 = vshll.u32 %v4475_v0, %v1052_v24  ;;  %v1055_v39 = vshrl.u32 %v1037_v6, %v1053_v43 }
 0x1ee   : > { %v1059_v37 = vshll.u32 %v1058_v45, 23  ;;  %v1228_v56 = vsel %vm1222_vm13, %v1225_v9, %v1227_v61  ;;  %v749_v21 = vsel %vm5676_vm4, %v746_v44, %v748_v2  ;;  %vm879_vm15 = vcmp.lt.s32.totalorder %v5783_v51, 0 }
 0x1ef   : > { %v4608_v53 = vmul.u32.u64.low %v1237_v59, %v1236_v48  ;;  %v4609_v30 = vmul.u32.u64.high %v1237_v59, %v1236_v48, %v4608_v53  ;;  %v4613_v17 = vadd.f32 %v4545_v47, %v4510_v7  ;;  %v867_v0 = vand.u32 3, %v4555_v52 }
 0x1f0   : > { %v964_v15 = vsel %vm879_vm15, %v963_v55, %v4384_v1  ;;  %v1322_v12 = vand.u32 2139095040, %v4592_v60  ;;  %v3136_v44 = vpop.eup %3135  ;;  %v961_v6 = vxor.u32 2147483648, %v960_v22  ;;  %v1153_v24 = vclz %v2764_v16 }
 0x1f1   : > { %v1244_v43 = vmul.u32 %v1237_v59, %v1228_v56  ;;  %v1247_v20 = vadd.s32 1, %v4597_v41  ;;  %v4625_v7 = vadd.f32 %v4550_v25, %v4513_v13  ;;  %v1056_v47 = vor.u32 %v1055_v39, %v1054_v57  ;;  %v5787_v59 = vld [vmem:[#allocation43_spill] sm:$0xff] }
 0x1f2   : > { %v1060_v52 = vor.u32 4788187, %v1059_v37  ;;  %v1323_v14 = vshrl.u32 %v1322_v12, 23  ;;  %v4630_v45 = vadd.f32 %v748_v2, %v4516_v3  ;;  %v5784_v1 = vand.u32 2147483647, %v5783_v51 }
 0x1f3   : > { %vm983_vm6 = vcmp.lt.s32.totalorder %v5787_v59, 0  ;;  %vm1246_vm0 = vc.u32 %v4609_v30, %v4596_v28  ;;  %vm869_vm7 = vcmp.eq.s32.totalorder %v867_v0, 0  ;;  %v1067_v25 = vsub.s32 4, %v4462_v49 }
 0x1f4   : > { %vm4634_vm5 = vcmp.le.f32.partialorder %v5784_v1, 0.7853982  ;;  %v1248_v3 = vsel %vm1246_vm0, %v1247_v20, %v4597_v41  ;;  %v962_v27 = vsel %vm879_vm15, %v961_v6, %v960_v22  ;;  %v2765_v2 = vadd.s32 4294967294, %v1153_v24 }
 0x1f5   : > { %v966_v13 = vsel %vm4634_vm5, 0, %v964_v15  ;;  %v1249_v10 = vadd.s32 %v1248_v3, %v1244_v43  ;;  %v2772_v50 = vadd.s32 4294967169, %v1323_v14  ;;  %v870_v23 = vxor.u32 2147483648, %v3136_v44 }
 0x1f6   : > { %v873_v9 = vxor.u32 2147483648, %v3134_v5  ;;  %v1061_v61 = vand.u32 2147483647, %v1060_v52  ;;  %v1063_v40 = vcvt.s32.f32 %v1056_v47  ;;  %vm872_vm8 = vcmp.eq.s32.totalorder %v867_v0, 2 }
 0x1f7   : > { %v970_v58 = vadd.s32 3, %v966_v13  ;;  %v1250_v35 = vadd.s32 536870912, %v1249_v10  ;;  %v1329_v36 = vadd.s32 1, %v2772_v50  ;;  %v4648_v16 = vadd.f32 %v749_v21, %v4529_v31 }
 0x1f8   : > { %v965_v48 = vsel %vm4634_vm5, %v5783_v51, %v962_v27  ;;  %v4656_v22 = vsel %vm983_vm6, %v1067_v25, %v4462_v49  ;;  %v5671_v41 = vand.u32 2147483647, %v4592_v60  ;;  %vm868_vm9 = vcmp.lt.s32.totalorder %v867_v0, 2 }
 0x1f9   : > { %v5788_v57 = vand.u32 2147483647, %v5787_v59  ;;  %vm2766_vm11 = vcmp.lt.s32.totalorder %v2765_v2, 0  ;;  %vm1330_vm12 = vcmp.gt.s32.totalorder %v1329_v36, 0  ;;  %v871_v31 = vsel %vm869_vm7, %v3134_v5, %v870_v23 }
 0x1fa   : > { %v874_v37 = vsel %vm872_vm8, %v873_v9, %v3136_v44  ;;  %v4666_v56 = vmul.f32 %v1063_v40, %v1061_v61  ;;  %v1331_v21 = vsel %vm1330_vm12, %v1329_v36, 0  ;;  %3137 = vcosq.f32 %v965_v48 }
 0x1fb   : > { %vm4661_vm10 = vcmp.le.f32.partialorder %v5788_v57, 0.7853982  ;;  %v4668_v49 = vand.u32 3, %v970_v58  ;;  %v4673_v15 = vshrl.u32 %v1250_v35, 30  ;;  %3139 = vsinq.f32 %v965_v48 }
 0x1fc   : > { %v1070_v53 = vsel %vm4661_vm10, 0, %v4656_v22  ;;  %v4675_v12 = vsel %vm2766_vm11, 0, %v2765_v2  ;;  %v1326_v6 = vand.u32 8388607, %v5671_v41  ;;  %v1333_v5 = vand.u32 31, %v1331_v21 }
 0x1fd   : > { %v875_v44 = vsel %vm868_vm9, %v871_v31, %v874_v37  ;;  %v1141_v24 = vadd.s32 %v4501_v62, %v4498_v32  ;;  %v1157_v43 = vsub.s32 32, %v4675_v12  ;;  %v4685_v20 = vmul.f32 %v4153_v34, %v4613_v17 }
 0x1fe   : > { %vm865_vm13 = vweird.f32 %v4166_v42  ;;  %v1065_v47 = vxor.u32 2147483648, %v4666_v56  ;;  %v1158_v52 = vshll.u32 %v4576_v54, %v4675_v12  ;;  %v1334_v14 = vsub.s32 32, %v1333_v5 }
 0x1ff   : > { %v1336_v0 = vshll.u32 %v5754_v26, %v1333_v5  ;;  %v1161_v1 = vsub.s32 4294967266, %v4675_v12  ;;  %v1252_v32 = vshll.u32 %v4673_v15, 30  ;;  %v1332_v62 = vshrl.u32 %v1331_v21, 5 }
 0x200   : > { %v1339_v55 = vshll.u32 %v5755_v38, %v1333_v5  ;;  %v1327_v13 = vor.u32 8388608, %v1326_v6  ;;  %v1337_v34 = vshrl.u32 %v5755_v38, %v1334_v14  ;;  %v1340_v25 = vshrl.u32 %v5756_v11, %v1334_v14 }
 0x201   : > { %v1342_v3 = vshll.u32 %v5756_v11, %v1333_v5  ;;  %v1159_v27 = vshrl.u32 %v1141_v24, %v1157_v43  ;;  %v1343_v54 = vshrl.u32 %v5757_v8, %v1334_v14  ;;  %v1345_v2 = vshll.u32 %v5757_v8, %v1333_v5 }
 0x202   : > { %v1426_v50 = vand.u32 2139095040, %v4685_v20  ;;  %vm976_vm14 = vcmp.eq.s32.totalorder %v4668_v49, 2  ;;  %v1338_v23 = vor.u32 %v1337_v34, %v1336_v0  ;;  %v1341_v9 = vor.u32 %v1340_v25, %v1339_v55 }
 0x203   : > { %v1346_v61 = vshrl.u32 %v5758_v33, %v1334_v14  ;;  %v1348_v40 = vshll.u32 %v5758_v33, %v1333_v5  ;;  %vm973_vm15 = vcmp.eq.s32.totalorder %v4668_v49, 0  ;;  %v1162_v58 = vadd.s32 127, %v1161_v1 }
 0x204   : > { %v4705_v35 = vsub.s32 %v1249_v10, %v1252_v32  ;;  %v1335_v36 = vshrl.u32 %v5754_v26, %v1334_v14  ;;  %vm1351_vm5 = vcmp.lt.s32.totalorder %v1332_v62, 1  ;;  %v1344_v48 = vor.u32 %v1343_v54, %v1342_v3  ;;  %v3138_v21 = vpop.eup %3137 }
 0x205   : > { %v1347_v57 = vor.u32 %v1346_v61, %v1345_v2  ;;  %v1349_v31 = vshrl.u32 %v5759_v18, %v1334_v14  ;;  %v4709_v37 = vshll.u32 %v1327_v13, 8  ;;  %vm1352_vm0 = vcmp.lt.s32.totalorder %v1332_v62, 2  ;;  %v3140_v6 = vpop.eup %3139 }
 0x206   : > { %vm1353_vm7 = vcmp.lt.s32.totalorder %v1332_v62, 3  ;;  %vm1354_vm8 = vcmp.lt.s32.totalorder %v1332_v62, 4  ;;  %v1427_v12 = vshrl.u32 %v1426_v50, 23  ;;  %v1359_v10 = vsel %vm1351_vm5, %v1338_v23, %v1341_v9  ;;  %v4754_v62 = vld [vmem:[#allocation12] ss:$0 sm:$0xff] }
 0x207   : > { %v1350_v5 = vor.u32 %v1349_v31, %v1348_v40  ;;  %v1356_v24 = vsel %vm1354_vm8, %v1344_v48, 2102212464  ;;  %v1360_v43 = vsel %vm1354_vm8, %v1347_v57, 920167782  ;;  %vm972_vm9 = vcmp.lt.s32.totalorder %v4668_v49, 2 }
 0x208   : > { %vm1087_vm11 = vcmp.lt.s32.totalorder %v4319_v29, 0  ;;  %v1163_v14 = vshll.u32 %v1162_v58, 23  ;;  %v1255_v0 = vsub.s32 0, %v4705_v35  ;;  %v1355_v1 = vsel %vm1351_vm5, %v1335_v36, %v1338_v23 }
 0x209   : > { %v1361_v32 = vsel %vm1353_vm7, %v1344_v48, %v1360_v43  ;;  %v1357_v55 = vsel %vm1353_vm7, %v1341_v9, %v1356_v24  ;;  %v1363_v34 = vsel %vm1351_vm5, %v1341_v9, %v1344_v48  ;;  %v1364_v25 = vsel %vm1354_vm8, %v1350_v5, 1326507024 }
 0x20a   : > { %v1362_v13 = vsel %vm1352_vm0, %v1359_v10, %v1361_v32  ;;  %v876_v3 = vsel %vm865_vm13, nan, %v875_v44  ;;  %v974_v54 = vxor.u32 2147483648, %v3140_v6  ;;  %v977_v2 = vxor.u32 2147483648, %v3138_v21 }
 0x20b   : > { %v2776_v50 = vadd.s32 4294967169, %v1427_v12  ;;  %v1066_v23 = vsel %vm983_vm6, %v1065_v47, %v4666_v56  ;;  %v5791_v61 = vand.u32 2147483647, %v4319_v29  ;;  %v1365_v9 = vsel %vm1353_vm7, %v1347_v57, %v1364_v25 }
 0x20c   : > { %v4736_v58 = vmul.u32.u64.low %v4709_v37, %v1362_v13  ;;  %v4737_v36 = vmul.u32.u64.high %v4709_v37, %v1362_v13, %v4736_v58  ;;  %v1160_v42 = vor.u32 %v1159_v27, %v1158_v52  ;;  %v1164_v44 = vor.u32 4788187, %v1163_v14 }
 0x20d   : > { %vm4730_vm12 = vcmp.le.f32.partialorder %v5791_v61, 0.7853982  ;;  %v1358_v48 = vsel %vm1352_vm0, %v1355_v1, %v1357_v55  ;;  %v1366_v31 = vsel %vm1352_vm0, %v1363_v34, %v1365_v9  ;;  %v1171_v56 = vsub.s32 4, %v4558_v4  ;;  %v4776_v55 = vld [vmem:[#allocation10] ss:$0 sm:$0xff] }
 0x20e   : > { %v2768_v47 = vmin.u32 %v1255_v0, %v4705_v35  ;;  %v4745_v12 = vmul.u32.u64.low %v4709_v37, %v1366_v31  ;;  %v4746_v5 = vmul.u32.u64.high %v4709_v37, %v1366_v31, %v4745_v12  ;;  %v978_v57 = vsel %vm976_vm14, %v977_v2, %v3140_v6 }
 0x20f   : > { %v1074_v52 = vadd.s32 3, %v1070_v53  ;;  %v1293_v27 = vmul.f32 %v876_v3, %v876_v3  ;;  %v1433_v24 = vadd.s32 1, %v2776_v50  ;;  %v975_v10 = vsel %vm973_vm15, %v3138_v21, %v974_v54 }
 0x210   : > { %v1069_v43 = vsel %vm4661_vm10, %v5787_v59, %v1066_v23  ;;  %v1374_v14 = vmul.u32 %v4709_v37, %v1358_v48  ;;  %v1377_v6 = vadd.s32 1, %v4737_v36  ;;  %v1165_v0 = vand.u32 2147483647, %v1164_v44 }
 0x211   : > { %v1167_v1 = vcvt.s32.f32 %v1160_v42  ;;  %v5670_v22 = vand.u32 2147483647, %v4685_v20  ;;  %vm1434_vm6 = vcmp.gt.s32.totalorder %v1433_v24, 0  ;;  %v4767_v53 = vsel %vm1087_vm11, %v1171_v56, %v4558_v4 }
 0x212   : > { %v1257_v32 = vclz %v2768_v47  ;;  %vm1376_vm13 = vc.u32 %v4746_v5, %v4736_v58  ;;  %v1435_v39 = vsel %vm1434_vm6, %v1433_v24, 0  ;;  %v4771_v21 = vand.u32 3, %v1074_v52 }
 0x213   : > { %v4774_v37 = vmul.f32 %v4754_v62, %v1293_v27  ;;  %v4780_v13 = vmul.f32 %v4776_v55, %v4625_v7  ;;  %v1378_v34 = vsel %vm1376_vm13, %v1377_v6, %v4737_v36  ;;  %v4785_v4 = vsel %vm972_vm9, %v975_v10, %v978_v57 }
 0x214   : > { %3141 = vcosq.f32 %v1069_v43  ;;  %v1379_v25 = vadd.s32 %v1378_v34, %v1374_v14  ;;  %v1437_v3 = vand.u32 31, %v1435_v39  ;;  %v4787_v54 = vmul.f32 %v1167_v1, %v1165_v0 }
 0x215   : > { %3143 = vsinq.f32 %v1069_v43  ;;  %v1174_v2 = vsel %vm4730_vm12, 0, %v4767_v53  ;;  %v1430_v50 = vand.u32 8388607, %v5670_v22  ;;  %v2769_v23 = vadd.s32 4294967294, %v1257_v32 }
 0x216   : > { %v1380_v61 = vadd.s32 536870912, %v1379_v25  ;;  %v1438_v9 = vsub.s32 32, %v1437_v3  ;;  %v1440_v49 = vshll.u32 %v5754_v26, %v1437_v3  ;;  %v1436_v36 = vshrl.u32 %v1435_v39, 5 }
 0x217   : > { %v1443_v42 = vshll.u32 %v5755_v38, %v1437_v3  ;;  %v1446_v44 = vshll.u32 %v5756_v11, %v1437_v3  ;;  %v1449_v48 = vshll.u32 %v5757_v8, %v1437_v3  ;;  %v1452_v12 = vshll.u32 %v5758_v33, %v1437_v3 }
 0x218   : > { %v4798_v31 = vshrl.u32 %v1380_v61, 30  ;;  %v1441_v56 = vshrl.u32 %v5755_v38, %v1438_v9  ;;  %v1444_v47 = vshrl.u32 %v5756_v11, %v1438_v9  ;;  %v1447_v57 = vshrl.u32 %v5757_v8, %v1438_v9 }
 0x219   : > { %v1450_v52 = vshrl.u32 %v5758_v33, %v1438_v9  ;;  %v1453_v27 = vshrl.u32 %v5759_v18, %v1438_v9  ;;  %v1530_v24 = vand.u32 2139095040, %v4780_v13  ;;  %vm2770_vm10 = vcmp.lt.s32.totalorder %v2769_v23, 0 }
 0x21a   : > { %v1382_v10 = vshll.u32 %v4798_v31, 30  ;;  %v1431_v43 = vor.u32 8388608, %v1430_v50  ;;  %v1442_v14 = vor.u32 %v1441_v56, %v1440_v49  ;;  %v1439_v6 = vshrl.u32 %v5754_v26, %v1438_v9 }
 0x21b   : > { %v1445_v0 = vor.u32 %v1444_v47, %v1443_v42  ;;  %v1451_v1 = vor.u32 %v1450_v52, %v1449_v48  ;;  %vm1455_vm14 = vcmp.lt.s32.totalorder %v1436_v36, 1  ;;  %vm969_vm15 = vweird.f32 %v5783_v51 }
 0x21c   : > { %vm1080_vm5 = vcmp.eq.s32.totalorder %v4771_v21, 2  ;;  %v1169_v32 = vxor.u32 2147483648, %v4787_v54  ;;  %v4812_v39 = vsub.s32 %v1379_v25, %v1382_v10  ;;  %v1448_v34 = vor.u32 %v1447_v57, %v1446_v44 }
 0x21d   : > { %v1454_v3 = vor.u32 %v1453_v27, %v1452_v12  ;;  %v1260_v61 = vsel %vm2770_vm10, 0, %v2769_v23  ;;  %vm1457_vm0 = vcmp.lt.s32.totalorder %v1436_v36, 3  ;;  %vm1458_vm7 = vcmp.lt.s32.totalorder %v1436_v36, 4 }
 0x21e   : > { %v1531_v50 = vshrl.u32 %v1530_v24, 23  ;;  %v3142_v49 = vpop.eup %3141  ;;  %vm1077_vm8 = vcmp.eq.s32.totalorder %v4771_v21, 0  ;;  %v1385_v9 = vsub.s32 0, %v4812_v39  ;;  %vm1456_vm9 = vcmp.lt.s32.totalorder %v1436_v36, 2 }
 0x21f   : > { %v1460_v42 = vsel %vm1458_vm7, %v1448_v34, 2102212464  ;;  %v1463_v48 = vsel %vm1455_vm14, %v1442_v14, %v1445_v0  ;;  %v3144_v56 = vpop.eup %3143  ;;  %v1459_v47 = vsel %vm1455_vm14, %v1439_v6, %v1442_v14  ;;  %v1464_v25 = vsel %vm1458_vm7, %v1451_v1, 920167782 }
 0x220   : > { %v1468_v52 = vsel %vm1458_vm7, %v1454_v3, 1326507024  ;;  %v1471_v44 = vshll.u32 %v1431_v43, 8  ;;  %v2773_v23 = vmin.u32 %v1385_v9, %v4812_v39  ;;  %v1461_v12 = vsel %vm1457_vm0, %v1445_v0, %v1460_v42 }
 0x221   : > { %v1465_v57 = vsel %vm1457_vm0, %v1448_v34, %v1464_v25  ;;  %v1467_v27 = vsel %vm1455_vm14, %v1445_v0, %v1448_v34  ;;  %vm1076_vm6 = vcmp.lt.s32.totalorder %v4771_v21, 2  ;;  %v1265_v24 = vsub.s32 4294967266, %v1260_v61 }
 0x222   : > { %v1466_v10 = vsel %vm1456_vm9, %v1463_v48, %v1465_v57  ;;  %v1469_v22 = vsel %vm1457_vm0, %v1451_v1, %v1468_v52  ;;  %v2780_v41 = vadd.s32 4294967169, %v1531_v50  ;;  %v1081_v14 = vxor.u32 2147483648, %v3142_v49 }
 0x223   : > { %v1245_v43 = vadd.s32 %v4596_v28, %v4609_v30  ;;  %v1261_v6 = vsub.s32 32, %v1260_v61  ;;  %v1387_v3 = vclz %v2773_v23  ;;  %vm1191_vm13 = vcmp.lt.s32.totalorder %v4473_v63, 0 }
 0x224   : > { %v1462_v9 = vsel %vm1456_vm9, %v1459_v47, %v1461_v12  ;;  %v1470_v0 = vsel %vm1456_vm9, %v1467_v27, %v1469_v22  ;;  %v4830_v34 = vmul.u32.u64.low %v1471_v44, %v1466_v10  ;;  %v4831_v42 = vmul.u32.u64.high %v1471_v44, %v1466_v10, %v4830_v34 }
 0x225   : > { %v2774_v48 = vadd.s32 4294967294, %v1387_v3  ;;  %v4834_v25 = vmul.u32.u64.low %v1471_v44, %v1470_v0  ;;  %v4835_v1 = vmul.u32.u64.high %v1471_v44, %v1470_v0, %v4834_v25  ;;  %v1537_v50 = vadd.s32 1, %v2780_v41 }
 0x226   : > { %v1078_v52 = vxor.u32 2147483648, %v3144_v56  ;;  %v1170_v28 = vsel %vm1087_vm11, %v1169_v32, %v4787_v54  ;;  %v1266_v30 = vadd.s32 127, %v1265_v24  ;;  %v4842_v47 = vmul.f32 %v4776_v55, %v4648_v16 }
 0x227   : > { %v1178_v22 = vadd.s32 3, %v1174_v2  ;;  %v1262_v36 = vshll.u32 %v4705_v35, %v1260_v61  ;;  %v1263_v23 = vshrl.u32 %v1245_v43, %v1261_v6  ;;  %vm1538_vm10 = vcmp.gt.s32.totalorder %v1537_v50, 0 }
 0x228   : > { %v980_v41 = vsel %vm969_vm15, nan, %v4785_v4  ;;  %v1082_v54 = vsel %vm1080_vm5, %v1081_v14, %v3144_v56  ;;  %v1478_v32 = vmul.u32 %v1471_v44, %v1462_v9  ;;  %v1481_v12 = vadd.s32 1, %v4831_v42 }
 0x229   : > { %v1173_v57 = vsel %vm4730_vm12, %v4319_v29, %v1170_v28  ;;  %v1275_v53 = vsub.s32 4, %v4673_v15  ;;  %vm2775_vm11 = vcmp.lt.s32.totalorder %v2774_v48, 0  ;;  %v1539_v35 = vsel %vm1538_vm10, %v1537_v50, 0 }
 0x22a   : > { %v1079_v2 = vsel %vm1077_vm8, %v3142_v49, %v1078_v52  ;;  %v1267_v61 = vshll.u32 %v1266_v30, 23  ;;  %vm1480_vm14 = vc.u32 %v4835_v1, %v4830_v34  ;;  %v5673_v51 = vand.u32 2147483647, %v4780_v13 }
 0x22b   : > { %v4864_v4 = vand.u32 3, %v1178_v22  ;;  %v1264_v56 = vor.u32 %v1263_v23, %v1262_v36  ;;  %v4868_v40 = vmul.f32 %v4776_v55, %v4630_v45  ;;  %v1482_v44 = vsel %vm1480_vm14, %v1481_v12, %v4831_v42 }
 0x22c   : > { %3145 = vcosq.f32 %v1173_v57  ;;  %v4871_v27 = vsel %vm2775_vm11, 0, %v2774_v48  ;;  %v1483_v24 = vadd.s32 %v1482_v44, %v1478_v32  ;;  %v1541_v49 = vand.u32 31, %v1539_v35 }
 0x22d   : > { %v4875_v10 = vsel %vm1076_vm6, %v1079_v2, %v1082_v54  ;;  %3147 = vsinq.f32 %v1173_v57  ;;  %v4880_v14 = vsel %vm1191_vm13, %v1275_v53, %v4673_v15  ;;  %v4882_v43 = vmul.f32 %v980_v41, %v980_v41 }
 0x22e   : > { %v1268_v55 = vor.u32 4788187, %v1267_v61  ;;  %v1484_v6 = vadd.s32 536870912, %v1483_v24  ;;  %v1534_v3 = vand.u32 8388607, %v5673_v51  ;;  %v1542_v9 = vsub.s32 32, %v1541_v49 }
 0x22f   : > { %v1271_v0 = vcvt.s32.f32 %v1264_v56  ;;  %v1375_v21 = vadd.s32 %v4736_v58, %v4746_v5  ;;  %v1395_v42 = vsub.s32 4294967266, %v4871_v27  ;;  %v1544_v48 = vshll.u32 %v5754_v26, %v1541_v49 }
 0x230   : > { %v5794_v25 = vand.u32 2147483647, %v4473_v63  ;;  %v4896_v50 = vshrl.u32 %v1484_v6, 30  ;;  %v1545_v52 = vshrl.u32 %v5755_v38, %v1542_v9  ;;  %v1547_v28 = vshll.u32 %v5755_v38, %v1541_v49 }
 0x231   : > { %v1548_v30 = vshrl.u32 %v5756_v11, %v1542_v9  ;;  %v1540_v22 = vshrl.u32 %v1539_v35, 5  ;;  %v1550_v58 = vshll.u32 %v5756_v11, %v1541_v49  ;;  %v1551_v5 = vshrl.u32 %v5757_v8, %v1542_v9 }
 0x232   : > { %vm4892_vm12 = vcmp.le.f32.partialorder %v5794_v25, 0.7853982  ;;  %v1553_v36 = vshll.u32 %v5757_v8, %v1541_v49  ;;  %v1269_v23 = vand.u32 2147483647, %v1268_v55  ;;  %v1391_v41 = vsub.s32 32, %v4871_v27 }
 0x233   : > { %v1486_v54 = vshll.u32 %v4896_v50, 30  ;;  %v1535_v32 = vor.u32 8388608, %v1534_v3  ;;  %v1392_v12 = vshll.u32 %v4812_v39, %v4871_v27  ;;  %v1396_v57 = vadd.s32 127, %v1395_v42 }
 0x234   : > { %v1554_v53 = vshrl.u32 %v5758_v33, %v1542_v9  ;;  %v1556_v35 = vshll.u32 %v5758_v33, %v1541_v49  ;;  %v1546_v61 = vor.u32 %v1545_v52, %v1544_v48  ;;  %v1549_v56 = vor.u32 %v1548_v30, %v1547_v28 }
 0x235   : > { %v4910_v2 = vsub.s32 %v1483_v24, %v1486_v54  ;;  %v1557_v44 = vshrl.u32 %v5759_v18, %v1542_v9  ;;  %v1552_v55 = vor.u32 %v1551_v5, %v1550_v58  ;;  %vm1559_vm15 = vcmp.lt.s32.totalorder %v1540_v22, 1 }
 0x236   : > { %v1555_v6 = vor.u32 %v1554_v53, %v1553_v36  ;;  %vm1562_vm5 = vcmp.lt.s32.totalorder %v1540_v22, 4  ;;  %v4913_v25 = vpop.eup %3145  ;;  %vm1073_vm0 = vweird.f32 %v5787_v59  ;;  %v1393_v39 = vshrl.u32 %v1375_v21, %v1391_v41 }
 0x237   : > { %v1489_v27 = vsub.s32 0, %v4910_v2  ;;  %v1543_v3 = vshrl.u32 %v5754_v26, %v1542_v9  ;;  %vm1561_vm7 = vcmp.lt.s32.totalorder %v1540_v22, 3  ;;  %v3148_v24 = vpop.eup %3147  ;;  %v1397_v49 = vshll.u32 %v1396_v57, 23 }
 0x238   : > { %v1558_v42 = vor.u32 %v1557_v44, %v1556_v35  ;;  %v1564_v48 = vsel %vm1562_vm5, %v1552_v55, 2102212464  ;;  %v1568_v52 = vsel %vm1562_vm5, %v1555_v6, 920167782  ;;  %vm1181_vm8 = vcmp.eq.s32.totalorder %v4864_v4, 0 }
 0x239   : > { %vm1184_vm9 = vcmp.eq.s32.totalorder %v4864_v4, 2  ;;  %v2777_v28 = vmin.u32 %v1489_v27, %v4910_v2  ;;  %vm1560_vm6 = vcmp.lt.s32.totalorder %v1540_v22, 2  ;;  %v1567_v21 = vsel %vm1559_vm15, %v1546_v61, %v1549_v56 }
 0x23a   : > { %v1575_v30 = vshll.u32 %v1535_v32, 8  ;;  %v1272_v58 = vmul.f32 %v1271_v0, %v1269_v23  ;;  %v1278_v9 = vsel %vm4892_vm12, 0, %v4880_v14  ;;  %vm1321_vm10 = vcmp.lt.s32.totalorder %v4592_v60, 0 }
 0x23b   : > { %v1569_v5 = vsel %vm1561_vm7, %v1552_v55, %v1568_v52  ;;  %v1634_v36 = vand.u32 2139095040, %v4842_v47  ;;  %v1491_v41 = vclz %v2777_v28  ;;  %v1563_v54 = vsel %vm1559_vm15, %v1543_v3, %v1546_v61 }
 0x23c   : > { %v1565_v57 = vsel %vm1561_vm7, %v1549_v56, %v1564_v48  ;;  %v1571_v53 = vsel %vm1559_vm15, %v1549_v56, %v1552_v55  ;;  %v1394_v35 = vor.u32 %v1393_v39, %v1392_v12  ;;  %v1398_v32 = vor.u32 4788187, %v1397_v49 }
 0x23d   : > { %v1570_v0 = vsel %vm1560_vm6, %v1567_v21, %v1569_v5  ;;  %v1572_v23 = vsel %vm1562_vm5, %v1558_v42, 1326507024  ;;  %vm1180_vm11 = vcmp.lt.s32.totalorder %v4864_v4, 2  ;;  %v5797_v14 = vand.u32 2147483647, %v4592_v60 }
 0x23e   : > { %v2778_v27 = vadd.s32 4294967294, %v1491_v41  ;;  %v1573_v61 = vsel %vm1561_vm7, %v1555_v6, %v1572_v23  ;;  %v4943_v3 = vmul.u32.u64.low %v1575_v30, %v1570_v0  ;;  %v4944_v48 = vmul.u32.u64.high %v1575_v30, %v1570_v0, %v4943_v3 }
 0x23f   : > { %vm4938_vm14 = vcmp.le.f32.partialorder %v5797_v14, 0.7853982  ;;  %v1273_v12 = vxor.u32 2147483648, %v1272_v58  ;;  %v1566_v56 = vsel %vm1560_vm6, %v1563_v54, %v1565_v57  ;;  %v1574_v55 = vsel %vm1560_vm6, %v1571_v53, %v1573_v61 }
 0x240   : > { %v1635_v39 = vshrl.u32 %v1634_v36, 23  ;;  %v1405_v49 = vsub.s32 4, %v4798_v31  ;;  %vm2779_vm15 = vcmp.lt.s32.totalorder %v2778_v27, 0  ;;  %v1182_v28 = vxor.u32 2147483648, %v3148_v24 }
 0x241   : > { %v4950_v42 = vmul.u32.u64.low %v1575_v30, %v1574_v55  ;;  %v4951_v52 = vmul.u32.u64.high %v1575_v30, %v1574_v55, %v4950_v42  ;;  %v1185_v21 = vxor.u32 2147483648, %v4913_v25  ;;  %v1494_v6 = vsel %vm2779_vm15, 0, %v2778_v27 }
 0x242   : > { %v2784_v5 = vadd.s32 4294967169, %v1635_v39  ;;  %v1399_v41 = vand.u32 2147483647, %v1398_v32  ;;  %v1401_v0 = vcvt.s32.f32 %v1394_v35  ;;  %v1582_v23 = vmul.u32 %v1575_v30, %v1566_v56 }
 0x243   : > { %v1585_v14 = vadd.s32 1, %v4944_v48  ;;  %v1084_v22 = vsel %vm1073_vm0, nan, %v4875_v10  ;;  %v1274_v36 = vsel %vm1191_vm13, %v1273_v12, %v1272_v58  ;;  %vm1425_vm5 = vcmp.lt.s32.totalorder %v4685_v20, 0 }
 0x244   : > { %v1641_v54 = vadd.s32 1, %v2784_v5  ;;  %v1282_v57 = vadd.s32 3, %v1278_v9  ;;  %v1406_v53 = vsel %vm1321_vm10, %v1405_v49, %v4798_v31  ;;  %v1499_v32 = vsub.s32 4294967266, %v1494_v6 }
 0x245   : > { %vm1584_vm7 = vc.u32 %v4951_v52, %v4943_v3  ;;  %v1183_v59 = vsel %vm1181_vm8, %v4913_v25, %v1182_v28  ;;  %v1186_v10 = vsel %vm1184_vm9, %v1185_v21, %v3148_v24  ;;  %v4975_v58 = vsel %vm4892_vm12, %v4473_v63, %v1274_v36 }
 0x246   : > { %v1586_v30 = vsel %vm1584_vm7, %v1585_v14, %v4944_v48  ;;  %vm1642_vm13 = vcmp.gt.s32.totalorder %v1641_v54, 0  ;;  %v1402_v31 = vmul.f32 %v1401_v0, %v1399_v41  ;;  %v5672_v35 = vand.u32 2147483647, %v4842_v47 }
 0x247   : > { %v1587_v9 = vadd.s32 %v1586_v30, %v1582_v23  ;;  %v1408_v27 = vsel %vm4938_vm14, 0, %v1406_v53  ;;  %v1479_v25 = vadd.s32 %v4830_v34, %v4835_v1  ;;  %v1495_v61 = vsub.s32 32, %v1494_v6 }
 0x248   : > { %v1643_v24 = vsel %vm1642_vm13, %v1641_v54, 0  ;;  %v4982_v12 = vmul.f32 %v1084_v22, %v1084_v22  ;;  %v1500_v48 = vadd.s32 127, %v1499_v32  ;;  %v1509_v56 = vsub.s32 4, %v4896_v50 }
 0x249   : > { %v1588_v15 = vadd.s32 536870912, %v1587_v9  ;;  %v4987_v55 = vsel %vm1180_vm11, %v1183_v59, %v1186_v10  ;;  %3149 = vcosq.f32 %v4975_v58  ;;  %v4990_v39 = vand.u32 3, %v1282_v57 }
 0x24a   : > { %v1645_v49 = vand.u32 31, %v1643_v24  ;;  %v1403_v42 = vxor.u32 2147483648, %v1402_v31  ;;  %v4992_v28 = vadd.s32 3, %v1408_v27  ;;  %v1638_v1 = vand.u32 8388607, %v5672_v35 }
 0x24b   : > { %v4994_v34 = vshrl.u32 %v1588_v15, 30  ;;  %v1496_v21 = vshll.u32 %v4910_v2, %v1494_v6  ;;  %v1497_v5 = vshrl.u32 %v1479_v25, %v1495_v61  ;;  %v1738_v4 = vand.u32 2139095040, %v4868_v40 }
 0x24c   : > { %v1646_v41 = vsub.s32 32, %v1645_v49  ;;  %v1501_v0 = vshll.u32 %v1500_v48, 23  ;;  %v5003_v23 = vsel %vm1425_vm5, %v1509_v56, %v4896_v50  ;;  %v1644_v22 = vshrl.u32 %v1643_v24, 5 }
 0x24d   : > { %v1590_v14 = vshll.u32 %v4994_v34, 30  ;;  %v1648_v36 = vshll.u32 %v5754_v26, %v1645_v49  ;;  %v1651_v57 = vshll.u32 %v5755_v38, %v1645_v49  ;;  %v1654_v53 = vshll.u32 %v5756_v11, %v1645_v49 }
 0x24e   : > { %v1649_v54 = vshrl.u32 %v5755_v38, %v1646_v41  ;;  %v1652_v2 = vshrl.u32 %v5756_v11, %v1646_v41  ;;  %v1655_v32 = vshrl.u32 %v5757_v8, %v1646_v41  ;;  %v1657_v50 = vshll.u32 %v5757_v8, %v1645_v49 }
 0x24f   : > { %v5010_v6 = vsub.s32 %v1587_v9, %v1590_v14  ;;  %v1404_v59 = vsel %vm1321_vm10, %v1403_v42, %v1402_v31  ;;  %v1498_v10 = vor.u32 %v1497_v5, %v1496_v21  ;;  %v1639_v30 = vor.u32 8388608, %v1638_v1 }
 0x250   : > { %v1739_v27 = vshrl.u32 %v1738_v4, 23  ;;  %v1502_v25 = vor.u32 4788187, %v1501_v0  ;;  %v1647_v24 = vshrl.u32 %v5754_v26, %v1646_v41  ;;  %v1658_v9 = vshrl.u32 %v5758_v33, %v1646_v41  ;;  %v3132_v0 = vld [vmem:[#allocation13 + $0xb8] sm:$0xff]  }
 0x251   : > { %v1593_v61 = vsub.s32 0, %v5010_v6  ;;  %v1650_v48 = vor.u32 %v1649_v54, %v1648_v36  ;;  %v1653_v56 = vor.u32 %v1652_v2, %v1651_v57  ;;  %v1660_v15 = vshll.u32 %v5758_v33, %v1645_v49  ;;  %2873 = vmatpush3.bf16.msra.mxu1 %v3132_v0 }
 0x252   : > { %v1661_v14 = vshrl.u32 %v5759_v18, %v1646_v41  ;;  %v1656_v51 = vor.u32 %v1655_v32, %v1654_v53  ;;  %v1659_v31 = vor.u32 %v1658_v9, %v1657_v50  ;;  %vm1663_vm12 = vcmp.lt.s32.totalorder %v1644_v22, 1 }
 0x253   : > { %v2781_v35 = vmin.u32 %v1593_v61, %v5010_v6  ;;  %v5023_v42 = vpop.eup %3149  ;;  %v1583_v1 = vadd.s32 %v4943_v3, %v4951_v52  ;;  %v1679_v5 = vshll.u32 %v1639_v30, 8  ;;  %v2788_v4 = vadd.s32 4294967169, %v1739_v27 }
 0x254   : > { %v1662_v21 = vor.u32 %v1661_v14, %v1660_v15  ;;  %v1503_v36 = vand.u32 2147483647, %v1502_v25  ;;  %v1505_v54 = vcvt.s32.f32 %v1498_v10  ;;  %vm1665_vm0 = vcmp.lt.s32.totalorder %v1644_v22, 3 }
 0x255   : > { %v1595_v57 = vclz %v2781_v35  ;;  %vm1664_vm8 = vcmp.lt.s32.totalorder %v1644_v22, 2  ;;  %vm1666_vm9 = vcmp.lt.s32.totalorder %v1644_v22, 4  ;;  %v1667_v49 = vsel %vm1663_vm12, %v1647_v24, %v1650_v48 }
 0x256   : > { %v1671_v41 = vsel %vm1663_vm12, %v1650_v48, %v1653_v56  ;;  %v5800_v2 = vand.u32 2147483647, %v4685_v20  ;;  %v1668_v52 = vsel %vm1666_vm9, %v1656_v51, 2102212464  ;;  %v1672_v32 = vsel %vm1666_vm9, %v1659_v31, 920167782 }
 0x257   : > { %v2782_v3 = vadd.s32 4294967294, %v1595_v57  ;;  %v1675_v50 = vsel %vm1663_vm12, %v1653_v56, %v1656_v51  ;;  %v1669_v35 = vsel %vm1665_vm0, %v1653_v56, %v1668_v52  ;;  %v1673_v10 = vsel %vm1665_vm0, %v1656_v51, %v1672_v32 }
 0x258   : > { %vm5031_vm6 = vcmp.le.f32.partialorder %v5800_v2, 0.7853982  ;;  %v1676_v30 = vsel %vm1666_vm9, %v1662_v21, 1326507024  ;;  %v1745_v27 = vadd.s32 1, %v2788_v4  ;;  %v1506_v25 = vmul.f32 %v1505_v54, %v1503_v36 }
 0x259   : > { %vm2783_vm10 = vcmp.lt.s32.totalorder %v2782_v3, 0  ;;  %v1674_v61 = vsel %vm1664_vm8, %v1671_v41, %v1673_v10  ;;  %v1677_v24 = vsel %vm1665_vm0, %v1659_v31, %v1676_v30  ;;  %v1670_v51 = vsel %vm1664_vm8, %v1667_v49, %v1669_v35 }
 0x25a   : > { %v1598_v9 = vsel %vm2783_vm10, 0, %v2782_v3  ;;  %v1678_v48 = vsel %vm1664_vm8, %v1675_v50, %v1677_v24  ;;  %v5041_v15 = vmul.u32.u64.low %v1679_v5, %v1674_v61  ;;  %v5042_v14 = vmul.u32.u64.high %v1679_v5, %v1674_v61, %v5041_v15 }
 0x25b   : > { %v1599_v0 = vsub.s32 32, %v1598_v9  ;;  %v1600_v56 = vshll.u32 %v5010_v6, %v1598_v9  ;;  %v1603_v57 = vsub.s32 4294967266, %v1598_v9  ;;  %v1407_v21 = vsel %vm4938_vm14, %v4592_v60, %v1404_v59 }
 0x25c   : > { %v5050_v4 = vmul.u32.u64.low %v1679_v5, %v1678_v48  ;;  %v5051_v36 = vmul.u32.u64.high %v1679_v5, %v1678_v48, %v5050_v4  ;;  %vm1746_vm11 = vcmp.gt.s32.totalorder %v1745_v27, 0  ;;  %v1735_v41 = vand.u32 2147483647, %v4868_v40 }
 0x25d   : > { %v1601_v31 = vshrl.u32 %v1583_v1, %v1599_v0  ;;  %v1604_v54 = vadd.s32 127, %v1603_v57  ;;  %v1747_v2 = vsel %vm1746_vm11, %v1745_v27, 0  ;;  %v1507_v3 = vxor.u32 2147483648, %v1506_v25 }
 0x25e   : > { %vm1529_vm15 = vcmp.lt.s32.totalorder %v4780_v13, 0  ;;  %v1686_v6 = vmul.u32 %v1679_v5, %v1670_v51  ;;  %v1689_v22 = vadd.s32 1, %v5042_v14  ;;  %v1749_v49 = vand.u32 31, %v1747_v2 }
 0x25f   : > { %3151 = vsinq.f32 %v4975_v58  ;;  %v5058_v44 = vand.u32 3, %v4992_v28  ;;  %v1602_v59 = vor.u32 %v1601_v31, %v1600_v56  ;;  %v1605_v52 = vshll.u32 %v1604_v54, 23 }
 0x260   : > { %v1289_v1 = vxor.u32 2147483648, %v5023_v42  ;;  %v1512_v32 = vsel %vm5031_vm6, 0, %v5003_v23  ;;  %vm1688_vm14 = vc.u32 %v5051_v36, %v5041_v15  ;;  %v1750_v5 = vsub.s32 32, %v1749_v49 }
 0x261   : > { %3153 = vcosq.f32 %v1407_v21  ;;  %v5803_v50 = vand.u32 2147483647, %v4780_v13  ;;  %v1606_v28 = vor.u32 4788187, %v1605_v52  ;;  %v1609_v35 = vcvt.s32.f32 %v1602_v59 }
 0x262   : > { %v1690_v10 = vsel %vm1688_vm14, %v1689_v22, %v5042_v14  ;;  %3155 = vsinq.f32 %v1407_v21  ;;  %v1508_v30 = vsel %vm1425_vm5, %v1507_v3, %v1506_v25  ;;  %v1742_v61 = vand.u32 8388607, %v1735_v41 }
 0x263   : > { %vm5068_vm7 = vcmp.le.f32.partialorder %v5803_v50, 0.7853982  ;;  %v1691_v27 = vadd.s32 %v1690_v10, %v1686_v6  ;;  %v1607_v24 = vand.u32 2147483647, %v1606_v28  ;;  %v1752_v9 = vshll.u32 %v5754_v26, %v1749_v49 }
 0x264   : > { %v1753_v48 = vshrl.u32 %v5755_v38, %v1750_v5  ;;  %v1755_v0 = vshll.u32 %v5755_v38, %v1749_v49  ;;  %v1756_v57 = vshrl.u32 %v5756_v11, %v1750_v5  ;;  %v1758_v14 = vshll.u32 %v5756_v11, %v1749_v49 }
 0x265   : > { %v1692_v56 = vadd.s32 536870912, %v1691_v27  ;;  %v1759_v51 = vshrl.u32 %v5757_v8, %v1750_v5  ;;  %v1610_v21 = vmul.f32 %v1609_v35, %v1607_v24  ;;  %v1748_v25 = vshrl.u32 %v1747_v2, 5 }
 0x266   : > { %v1761_v4 = vshll.u32 %v5757_v8, %v1749_v49  ;;  %v1762_v31 = vshrl.u32 %v5758_v33, %v1750_v5  ;;  %v1511_v54 = vsel %vm5031_vm6, %v4685_v20, %v1508_v30  ;;  %v1743_v38 = vor.u32 8388608, %v1742_v61 }
 0x267   : > { %v5088_v3 = vshrl.u32 %v1692_v56, 30  ;;  %v1764_v6 = vshll.u32 %v5758_v33, %v1749_v49  ;;  %vm1288_vm5 = vcmp.eq.s32.totalorder %v4990_v39, 2  ;;  %v1611_v11 = vxor.u32 2147483648, %v1610_v21 }
 0x268   : > { %v1751_v22 = vshrl.u32 %v5754_v26, %v1750_v5  ;;  %v1754_v59 = vor.u32 %v1753_v48, %v1752_v9  ;;  %v1765_v2 = vshrl.u32 %v5759_v18, %v1750_v5  ;;  %vm1285_vm13 = vcmp.eq.s32.totalorder %v4990_v39, 0 }
 0x269   : > { %v1694_v8 = vshll.u32 %v5088_v3, 30  ;;  %v1757_v52 = vor.u32 %v1756_v57, %v1755_v0  ;;  %v1760_v50 = vor.u32 %v1759_v51, %v1758_v14  ;;  %v1763_v28 = vor.u32 %v1762_v31, %v1761_v4  ;;  %v3152_v35 = vpop.eup %3151 }
 0x26a   : > { %v1612_v10 = vsel %vm1529_vm15, %v1611_v11, %v1610_v21  ;;  %v1766_v33 = vor.u32 %v1765_v2, %v1764_v6  ;;  %vm1767_vm12 = vcmp.lt.s32.totalorder %v1748_v25, 1  ;;  %vm1770_vm0 = vcmp.lt.s32.totalorder %v1748_v25, 4 }
 0x26b   : > { %3157 = vcosq.f32 %v1511_v54  ;;  %v5098_v49 = vsub.s32 %v1691_v27, %v1694_v8  ;;  %v1772_v26 = vsel %vm1770_vm0, %v1760_v50, 2102212464  ;;  %v5101_v18 = vshll.u32 %v1743_v38, 8  ;;  %v3154_v5 = vpop.eup %3153 }
 0x26c   : > { %vm1284_vm8 = vcmp.lt.s32.totalorder %v4990_v39, 2  ;;  %3159 = vsinq.f32 %v1511_v54  ;;  %v1613_v30 = vsub.s32 4, %v4994_v34  ;;  %vm1768_vm9 = vcmp.lt.s32.totalorder %v1748_v25, 2  ;;  %v3156_v61 = vpop.eup %3155 }
 0x26d   : > { %vm1769_vm10 = vcmp.lt.s32.totalorder %v1748_v25, 3  ;;  %v1615_v24 = vsel %vm5068_vm7, %v4780_v13, %v1612_v10  ;;  %v1697_v27 = vsub.s32 0, %v5098_v49  ;;  %v1771_v9 = vsel %vm1767_vm12, %v1751_v22, %v1754_v59 }
 0x26e   : > { %v1775_v48 = vsel %vm1767_vm12, %v1754_v59, %v1757_v52  ;;  %v1773_v0 = vsel %vm1769_vm10, %v1757_v52, %v1772_v26  ;;  %v1776_v56 = vsel %vm1770_vm0, %v1763_v28, 920167782  ;;  %v1779_v57 = vsel %vm1767_vm12, %v1757_v52, %v1760_v50 }
 0x26f   : > { %v1780_v14 = vsel %vm1770_vm0, %v1766_v33, 1326507024  ;;  %v1286_v51 = vxor.u32 2147483648, %v3152_v35  ;;  %v2785_v21 = vmin.u32 %v1697_v27, %v5098_v49  ;;  %v1777_v4 = vsel %vm1769_vm10, %v1760_v50, %v1776_v56 }
 0x270   : > { %v1781_v31 = vsel %vm1769_vm10, %v1763_v28, %v1780_v14  ;;  %v1516_v54 = vadd.s32 3, %v1512_v32  ;;  %3161 = vcosq.f32 %v1615_v24  ;;  %v1778_v38 = vsel %vm1768_vm9, %v1775_v48, %v1777_v4 }
 0x271   : > { %v1782_v6 = vsel %vm1768_vm9, %v1779_v57, %v1781_v31  ;;  %vm1177_vm11 = vweird.f32 %v4319_v29  ;;  %vm1281_vm14 = vweird.f32 %v4473_v63  ;;  %v1614_v11 = vsel %vm1529_vm15, %v1613_v30, %v4994_v34 }
 0x272   : > { %3163 = vsinq.f32 %v1615_v24  ;;  %v1699_v22 = vclz %v2785_v21  ;;  %v1774_v53 = vsel %vm1768_vm9, %v1771_v9, %v1773_v0  ;;  %v1290_v8 = vsel %vm1288_vm5, %v1289_v1, %v3152_v35 }
 0x273   : > { %v5128_v23 = vmul.u32.u64.low %v5101_v18, %v1782_v6  ;;  %v5129_v32 = vmul.u32.u64.high %v5101_v18, %v1782_v6, %v5128_v23  ;;  %v5132_v59 = vmul.u32.u64.low %v5101_v18, %v1778_v38  ;;  %v5133_v2 = vmul.u32.u64.high %v5101_v18, %v1778_v38, %v5132_v59 }
 0x274   : > { %vm1411_vm6 = vweird.f32 %v4592_v60  ;;  %vm1415_vm15 = vcmp.eq.s32.totalorder %v5058_v44, 0  ;;  %vm1418_vm12 = vcmp.eq.s32.totalorder %v5058_v44, 2  ;;  %v2786_v34 = vadd.s32 4294967294, %v1699_v22 }
 0x275   : > { %v1287_v25 = vsel %vm1285_vm13, %v5023_v42, %v1286_v51  ;;  %v1416_v52 = vxor.u32 2147483648, %v3156_v61  ;;  %v1419_v50 = vxor.u32 2147483648, %v3154_v5  ;;  %v1517_v28 = vand.u32 3, %v1516_v54  ;;  %v3158_v10 = vpop.eup %3157 }
 0x276   : > { %v1616_v33 = vsel %vm5068_vm7, 0, %v1614_v11  ;;  %v1687_v1 = vadd.s32 %v5041_v15, %v5051_v36  ;;  %vm2787_vm5 = vcmp.lt.s32.totalorder %v2786_v34, 0  ;;  %v1790_v35 = vmul.u32 %v5101_v18, %v1774_v53  ;;  %v3160_v26 = vpop.eup %3159 }
 0x277   : > { %vm1414_vm0 = vcmp.lt.s32.totalorder %v5058_v44, 2  ;;  %v1702_v30 = vsel %vm2787_vm5, 0, %v2786_v34  ;;  %vm1792_vm13 = vc.u32 %v5129_v32, %v5132_v59  ;;  %v1793_v42 = vadd.s32 1, %v5133_v2 }
 0x278   : > { %v1291_v24 = vsel %vm1284_vm8, %v1287_v25, %v1290_v8  ;;  %v1703_v58 = vsub.s32 32, %v1702_v30  ;;  %v1704_v27 = vshll.u32 %v5098_v49, %v1702_v30  ;;  %v1707_v9 = vsub.s32 4294967266, %v1702_v30 }
 0x279   : > { %v1417_v15 = vsel %vm1415_vm15, %v3154_v5, %v1416_v52  ;;  %v1420_v36 = vsel %vm1418_vm12, %v1419_v50, %v3156_v61  ;;  %v1620_v18 = vadd.s32 3, %v1616_v33  ;;  %v1794_v48 = vsel %vm1792_vm13, %v1793_v42, %v5133_v2 }
 0x27a   : > { %vm1519_vm7 = vcmp.eq.s32.totalorder %v1517_v28, 0  ;;  %v1705_v0 = vshrl.u32 %v1687_v1, %v1703_v58  ;;  %v1708_v56 = vadd.s32 127, %v1707_v9  ;;  %v1795_v57 = vadd.s32 %v1794_v48, %v1790_v35  ;;  %v3162_v14 = vpop.eup %3161 }
 0x27b   : > { %v1520_v39 = vxor.u32 2147483648, %v3160_v26  ;;  %vm1522_vm8 = vcmp.eq.s32.totalorder %v1517_v28, 2  ;;  %v1523_v51 = vxor.u32 2147483648, %v3158_v10  ;;  %v1717_v49 = vsub.s32 4, %v5088_v3 }
 0x27c   : > { %v3164_v21 = vpop.eup %3163  ;;  %v1421_v5 = vsel %vm1414_vm0, %v1417_v15, %v1420_v36  ;;  %v1706_v4 = vor.u32 %v1705_v0, %v1704_v27  ;;  %v1709_v31 = vshll.u32 %v1708_v56, 23  ;;  %v1796_v61 = vadd.s32 536870912, %v1795_v57 }
 0x27d   : > { %v1188_v54 = vsel %vm1177_vm11, nan, %v4987_v55  ;;  %v1292_v38 = vsel %vm1281_vm14, nan, %v1291_v24  ;;  %v1621_v6 = vand.u32 3, %v1620_v18  ;;  %vm1633_vm9 = vcmp.lt.s32.totalorder %v4842_v47, 0 }
 0x27e   : > { %vm1518_vm10 = vcmp.lt.s32.totalorder %v1517_v28, 2  ;;  %v1710_v11 = vor.u32 4788187, %v1709_v31  ;;  %v1713_v22 = vcvt.s32.f32 %v1706_v4  ;;  %v5172_v53 = vshrl.u32 %v1796_v61, 30  ;;  %v5813_v61 = vld [vmem:[#allocation44_spill] sm:$0xff] }
 0x27f   : > { %v1422_v44 = vsel %vm1411_vm6, nan, %v1421_v5  ;;  %v1521_v23 = vsel %vm1519_vm7, %v3158_v10, %v1520_v39  ;;  %v1524_v2 = vsel %vm1522_vm8, %v1523_v51, %v3160_v26  ;;  %v1718_v29 = vsel %vm1633_vm9, %v1717_v49, %v5088_v3  ;;  %v5810_v51 = vld [vmem:[#allocation40_spill] sm:$0xff] }
 0x280   : > { %v1624_v63 = vxor.u32 2147483648, %v3164_v21  ;;  %v1627_v55 = vxor.u32 2147483648, %v3162_v14  ;;  %v1711_v8 = vand.u32 2147483647, %v1710_v11  ;;  %v1798_v34 = vshll.u32 %v5172_v53, 30 }
 0x281   : > { %v1296_v25 = vmul.f32 %v1188_v54, %v1188_v54  ;;  %vm1515_vm11 = vweird.f32 %v4685_v20  ;;  %vm1623_vm14 = vcmp.eq.s32.totalorder %v1621_v6, 0  ;;  %vm1626_vm15 = vcmp.eq.s32.totalorder %v1621_v6, 2 }
 0x282   : > { %v1297_v60 = vmul.f32 %v1292_v38, %v1292_v38  ;;  %v5806_v52 = vand.u32 2147483647, %v4842_v47  ;;  %v1714_v10 = vmul.f32 %v1713_v22, %v1711_v8  ;;  %v5189_v33 = vsub.s32 %v1795_v57, %v1798_v34 }
 0x283   : > { %v1525_v3 = vsel %vm1518_vm10, %v1521_v23, %v1524_v2  ;;  %vm1622_vm12 = vcmp.lt.s32.totalorder %v1621_v6, 2  ;;  %v1839_v35 = vmul.f32 %v1422_v44, %v1422_v44  ;;  %v1625_v26 = vsel %vm1623_vm14, %v3162_v14, %v1624_v63  ;;  %v5809_v14 = vld [vmem:[#allocation39_spill] sm:$0xff] }
 0x284   : > { %vm5185_vm6 = vcmp.le.f32.partialorder %v5806_v52, 0.7853982  ;;  %v1628_v30 = vsel %vm1626_vm15, %v1627_v55, %v3164_v21  ;;  %v1715_v42 = vxor.u32 2147483648, %v1714_v10  ;;  %v1801_v24 = vsub.s32 0, %v5189_v33  ;;  %v5811_v21 = vld [vmem:[#allocation41_spill] sm:$0xff] }
 0x285   : > { %v1720_v1 = vsel %vm5185_vm6, 0, %v1718_v29  ;;  %v1305_v58 = vmul.f32 %v4754_v62, %v4882_v43  ;;  %v1306_v27 = vmul.f32 %v4754_v62, %v4982_v12  ;;  %v1307_v9 = vmul.f32 %v4754_v62, %v1296_v25  ;;  %v5244_v44 = vld [vmem:[#allocation12] ss:$0 sm:$0xff] }
 0x286   : > { %vm1619_vm5 = vweird.f32 %v4780_v13  ;;  %v1308_v28 = vmul.f32 %v4754_v62, %v1297_v60  ;;  %v1526_v15 = vsel %vm1515_vm11, nan, %v1525_v3  ;;  %v1716_v36 = vsel %vm1633_vm9, %v1715_v42, %v1714_v10 }
 0x287   : > { %v2789_v18 = vmin.u32 %v1801_v24, %v5189_v33  ;;  %v1629_v48 = vsel %vm1622_vm12, %v1625_v26, %v1628_v30  ;;  %v1719_v43 = vsel %vm5185_vm6, %v4842_v47, %v1716_v36  ;;  %v1724_v12 = vadd.s32 3, %v1720_v1 }
 0x288   : > { %v1855_v0 = vlaneseq  ;;  %3165 = vcosq.f32 %v1719_v43  ;;  %v1844_v57 = vmul.f32 %v4754_v62, %v1839_v35  ;;  %v5213_v20 = vadd.f32 %v4774_v37, %v5809_v14 }
 0x289   : > { %v1803_v56 = vclz %v2789_v18  ;;  %3167 = vsinq.f32 %v1719_v43  ;;  %v1840_v39 = vmul.f32 %v1526_v15, %v1526_v15  ;;  %v5216_v49 = vadd.f32 %v1305_v58, %v5810_v51 }
 0x28a   : > { %v5219_v5 = vadd.f32 %v1306_v27, %v5811_v21  ;;  %v1630_v4 = vsel %vm1619_vm5, nan, %v1629_v48  ;;  %v5224_v54 = vadd.f32 %v1307_v9, %v5813_v61  ;;  %v5227_v62 = vadd.f32 %v1308_v28, %v4447_v46 }
 0x28b   : > { %v2790_v31 = vadd.s32 4294967294, %v1803_v56  ;;  %v1725_v37 = vand.u32 3, %v1724_v12  ;;  %v5229_v38 = vshrl.u32 %v1855_v0, 7  ;;  %vm5233_vm0 = vcmp.le.f32.partialorder %v1735_v41, 0.7853982 }
 0x28c   : > { %vm1737_vm13 = vcmp.lt.s32.totalorder %v4868_v40, 0  ;;  %v1791_v13 = vadd.s32 %v5132_v59, %v5129_v32  ;;  %v5241_v11 = vadd.f32 %v1844_v57, %v4553_v19  ;;  %vm1723_vm8 = vweird.f32 %v4842_v47 }
 0x28d   : > { %vm2791_vm7 = vcmp.lt.s32.totalorder %v2790_v31, 0  ;;  %v1841_v22 = vmul.f32 %v1630_v4, %v1630_v4  ;;  %v1845_v41 = vmul.f32 %v5244_v44, %v1840_v39  ;;  %v1821_v32 = vsub.s32 4, %v5172_v53 }
 0x28e   : > { %v1806_v46 = vsel %vm2791_vm7, 0, %v2790_v31  ;;  %vm3559_vm9 = vmmov 0   ;;  %v5816_v59 = vmov 0.0   ;;  %vm1726_vm10 = vcmp.lt.s32.totalorder %v1725_v37, 2 }
 0x28f   : > { %v1807_v23 = vsub.s32 32, %v1806_v46  ;;  %v1808_v2 = vshll.u32 %v5189_v33, %v1806_v46  ;;  %v1811_v29 = vsub.s32 4294967266, %v1806_v46  ;;  %2874 = vmatprep.mubr.msk.bf16.mxu1 %vm3559_vm9, %v5816_v59  ;;  %vm1727_vm11 = vcmp.eq.s32.totalorder %v1725_v37, 0 }
 0x290   : > { %vm1730_vm14 = vcmp.eq.s32.totalorder %v1725_v37, 2  ;;  %v1857_v19 = vadd.s32 8, %v5229_v38  ;;  %v1858_v8 = vadd.s32 16, %v5229_v38  ;;  %v1860_v34 = vstv %s2792_s11 }
 0x291   : > { %v1809_v63 = vshrl.u32 %v1791_v13, %v1807_v23  ;;  %v1812_v55 = vadd.s32 127, %v1811_v29  ;;  %v1850_v25 = vadd.f32 %v1845_v41, %v4613_v17  ;;  %v1890_v60 = vrot.slane %v5241_v11, 6 }
 0x292   : > { %v1944_v52 = vrot.slane %v5213_v20, 6  ;;  %v1945_v50 = vrot.slane %v5216_v49, 6  ;;  %v3166_v10 = vpop.eup %3165  ;;  %v1822_v1 = vsel %vm1737_vm13, %v1821_v32, %v5172_v53  ;;  %v1846_v35 = vmul.f32 %v5244_v44, %v1841_v22 }
 0x293   : > { %v1810_v33 = vor.u32 %v1809_v63, %v1808_v2  ;;  %v1813_v3 = vshll.u32 %v1812_v55, 23  ;;  %v3168_v26 = vpop.eup %3167  ;;  %v1731_v30 = vxor.u32 2147483648, %v3166_v10  ;;  %v1859_v42 = vadd.s32 24, %v5229_v38 }
 0x294   : > { %v5264_v17 = vadd.s32 %v1860_v34, %v5229_v38  ;;  %v5266_v24 = vadd.s32 %v1860_v34, %v1857_v19  ;;  %v1728_v58 = vxor.u32 2147483648, %v3168_v26  ;;  %v5268_v28 = vadd.s32 %v1860_v34, %v1858_v8 }
 0x295   : > { %v1814_v27 = vor.u32 4788187, %v1813_v3  ;;  %v1817_v9 = vcvt.s32.f32 %v1810_v33  ;;  %v1732_v15 = vsel %vm1730_vm14, %v1731_v30, %v3168_v26  ;;  %v1824_v53 = vsel %vm5233_vm0, 0, %v1822_v1 }
 0x296   : > { %v1883_v36 = vsub.s32 3, %v5229_v38  ;;  %v1947_v18 = vrot.slane %v5219_v5, 6  ;;  %v1729_v48 = vsel %vm1727_vm11, %v3166_v10, %v1728_v58  ;;  %v1851_v12 = vadd.f32 %v1846_v35, %v4625_v7 }
 0x297   : > { %v1815_v43 = vand.u32 2147483647, %v1814_v27  ;;  %v1891_v0 = vrot.slane %v1850_v25, 6  ;;  %v1733_v56 = vsel %vm1726_vm10, %v1729_v48, %v1732_v15  ;;  %v5278_v57 = vadd.s32 %v1860_v34, %v1859_v42 }
 0x298   : > { %vm1865_vm15 = vcmp.le.s32.totalorder %v5264_v17, 2  ;;  %vm1866_vm6 = vcmp.le.s32.totalorder %v5266_v24, 2  ;;  %v1734_v14 = vsel %vm1723_vm8, nan, %v1733_v56  ;;  %v1828_v39 = vadd.s32 3, %v1824_v53 }
 0x299   : > { %v1818_v20 = vmul.f32 %v1817_v9, %v1815_v43  ;;  %vm1867_vm12 = vcmp.le.s32.totalorder %v5268_v28, 2  ;;  %vm1869_vm5 = vcmp.ge.s32.totalorder %v5264_v17, 67  ;;  %v1842_v51 = vmul.f32 %v1734_v14, %v1734_v14 }
 0x29a   : > { %vm1870_vm7 = vcmp.ge.s32.totalorder %v5266_v24, 67  ;;  %vm1871_vm9 = vcmp.ge.s32.totalorder %v5268_v28, 67  ;;  %vm1923_vm10 = vcmp.le.s32.totalorder %v5264_v17, 1  ;;  %v1892_v21 = vsel %vm604_vm1, %v1890_v60, %v1891_v0 }
 0x29b   : > { %v1819_v7 = vxor.u32 2147483648, %v1818_v20  ;;  %v1893_v5 = vrot.slane %v1851_v12, 6  ;;  %v5291_v47 = vrot.slane %v5216_v49, %v1883_v36  ;;  %v1847_v4 = vmul.f32 %v5244_v44, %v1842_v51 }
 0x29c   : > { %vm1924_vm8 = vcmp.le.s32.totalorder %v5266_v24, 1  ;;  %vm1925_vm11 = vcmp.le.s32.totalorder %v5268_v28, 1  ;;  %v5299_v61 = vand.u32 3, %v1828_v39  ;;  %v1949_v37 = vrot.slane %v5224_v54, 6 }
 0x29d   : > { %v1820_v31 = vsel %vm1737_vm13, %v1819_v7, %v1818_v20  ;;  %v1951_v38 = vrot.slane %v5227_v62, 6  ;;  %v5307_v13 = vadd.f32 %v1847_v4, %v4648_v16  ;;  %vm1927_vm2 = vcmp.ge.s32.totalorder %v5264_v17, 66 }
 0x29e   : > { %v1823_v49 = vsel %vm5233_vm0, %v4868_v40, %v1820_v31  ;;  %vm1928_vm3 = vcmp.ge.s32.totalorder %v5266_v24, 66  ;;  %v1894_v11 = vsel %vm604_vm1, %v1891_v0, %v1893_v5  ;;  %vm1929_vm13 = vcmp.ge.s32.totalorder %v5268_v28, 66 }
 0x29f   : > { %3169 = vcosq.f32 %v1823_v49  ;;  %v1946_v54 = vsel %vm604_vm1, %v1944_v52, %v1945_v50  ;;  %v5315_v62 = vrot.slane %v5307_v13, %v1883_v36  ;;  %v1895_v6 = vrot.slane %v5307_v13, 6 }
 0x2a0   : > { %3171 = vsinq.f32 %v1823_v49  ;;  %v1948_v16 = vsel %vm604_vm1, %v1945_v50, %v1947_v18  ;;  %vm1930_vm4 = vcmp.ge.s32.totalorder %v5278_v57, 66  ;;  %v1950_v46 = vsel %vm604_vm1, %v1947_v18, %v1949_v37 }
 0x2a1   : > { %v1952_v22 = vsel %vm604_vm1, %v1949_v37, %v1951_v38  ;;  %vm1831_vm14 = vcmp.eq.s32.totalorder %v5299_v61, 0  ;;  %v1896_v41 = vsel %vm604_vm1, %v1893_v5, %v1895_v6  ;;  %v1903_v23 = vsel %vm1869_vm5, %v5315_v62, %v1892_v21 }
 0x2a2   : > { %v1904_v2 = vsel %vm1870_vm7, %v5315_v62, %v1894_v11  ;;  %v1957_v29 = vsel %vm1927_vm2, %v5315_v62, %v1946_v54  ;;  %vm1830_vm0 = vcmp.lt.s32.totalorder %v5299_v61, 2  ;;  %v1905_v32 = vsel %vm1871_vm9, %v5315_v62, %v1896_v41 }
 0x2a3   : > { %v5343_v59 = vsel %vm1865_vm15, %v5291_v47, %v1903_v23  ;;  %v5348_v19 = vsel %vm1866_vm6, %v5291_v47, %v1904_v2  ;;  %v1958_v63 = vsel %vm1928_vm3, %v5315_v62, %v1948_v16  ;;  %v5356_v55 = vsel %vm1867_vm12, %v5291_v47, %v1905_v32 }
 0x2a4   : > { %v1959_v8 = vsel %vm1929_vm13, %v5315_v62, %v1950_v46  ;;  %v1960_v34 = vsel %vm1930_vm4, %v5315_v62, %v1952_v22  ;;  %v5365_v25 = vsel %vm1923_vm10, %v5291_v47, %v1957_v29  ;;  %v5370_v60 = vsel %vm1924_vm8, %v5291_v47, %v1958_v63 }
 0x2a5   : > { %v5375_v52 = vsel %vm1925_vm11, %v5291_v47, %v1959_v8  ;;  %v1973_v50 = vmul.f32 0.0020289666, %v5343_v59  ;;  %vm1991_vm2 = vcmask 1046528   ;;  %vm1827_vm3 = vweird.f32 %v4868_v40 }
 0x2a6   : > { %v1974_v10 = vmul.f32 0.0020289666, %v5348_v19  ;;  %v1975_v33 = vmul.f32 0.0020289666, %v5356_v55  ;;  %v1979_v3 = vmul.f32 0.009389464, %v5365_v25 }
 0x2a7   : > { %vm5817_vm4 = vcmp.le.s32.totalorder %v5278_v57, 1  ;;  %v1980_v35 = vmul.f32 0.009389464, %v5370_v60  ;;  %v1981_v26 = vmul.f32 0.009389464, %v5375_v52  ;;  %vm2026_vm15 = vcmask 1045504  }
 0x2a8   : > { %v5385_v1 = vsel %vm5817_vm4, %v5291_v47, %v1960_v34  ;;  %v1985_v30 = vmul.f32 -0.025543464, %v5343_v59  ;;  %v1982_v42 = vadd.f32 %v1979_v3, %v1973_v50  ;;  %v1986_v58 = vmul.f32 -0.025543464, %v5348_v19 }
 0x2a9   : > { %v1987_v27 = vmul.f32 -0.025543464, %v5356_v55  ;;  %v2003_v9 = vmul.f32 -0.057657376, %v5365_v25  ;;  %v3170_v15 = vpop.eup %3169  ;;  %v1983_v53 = vadd.f32 %v1980_v35, %v1974_v10  ;;  %v1984_v36 = vadd.f32 %v1981_v26, %v1975_v33 }
 0x2aa   : > { %v1992_v18 = vrot.slane %v1985_v30, 1  ;;  %v2004_v48 = vmul.f32 -0.057657376, %v5370_v60  ;;  %v3172_v43 = vpop.eup %3171  ;;  %v1835_v12 = vxor.u32 2147483648, %v3170_v15  ;;  %v1993_v0 = vrot.slane %v1986_v58, 1 }
 0x2ab   : > { %v1995_v56 = vrot.slane %v1987_v27, 1  ;;  %v2005_v14 = vmul.f32 -0.057657376, %v5375_v52  ;;  %v1832_v20 = vxor.u32 2147483648, %v3172_v43  ;;  %v2009_v39 = vrot.slane %v2003_v9, 1 }
 0x2ac   : > { %v2010_v51 = vrot.slane %v2004_v48, 1  ;;  %v2020_v7 = vmul.f32 0.12857261, %v5343_v59  ;;  %vm5818_vm6 = vcmp.eq.s32.totalorder %v5299_v61, 2  ;;  %v1994_v5 = vsel %vm1991_vm2, %v1992_v18, %v1993_v0 }
 0x2ad   : > { %v1836_v21 = vsel %vm5818_vm6, %v1835_v12, %v3172_v43  ;;  %v1996_v4 = vsel %vm1991_vm2, %v1993_v0, %v1995_v56  ;;  %v2002_v31 = vadd.f32 %v1995_v56, %v1984_v36  ;;  %v1833_v37 = vsel %vm1831_vm14, %v3170_v15, %v1832_v20 }
 0x2ae   : > { %v2000_v38 = vadd.f32 %v1994_v5, %v1982_v42  ;;  %v2001_v49 = vadd.f32 %v1996_v4, %v1983_v53  ;;  %v2011_v11 = vsel %vm1991_vm2, %v2009_v39, %v2010_v51  ;;  %v1837_v54 = vsel %vm1830_vm0, %v1833_v37, %v1836_v21 }
 0x2af   : > { %vm1872_vm12 = vcmp.ge.s32.totalorder %v5278_v57, 67  ;;  %v2012_v16 = vrot.slane %v2005_v14, 1  ;;  %v2021_v46 = vmul.f32 0.12857261, %v5348_v19  ;;  %v2022_v22 = vmul.f32 0.12857261, %v5356_v55 }
 0x2b0   : > { %v1838_v41 = vsel %vm1827_vm3, nan, %v1837_v54  ;;  %vm1868_vm5 = vcmp.le.s32.totalorder %v5278_v57, 2  ;;  %v2017_v23 = vadd.f32 %v2011_v11, %v2000_v38  ;;  %v2027_v2 = vrot.slane %v2020_v7, 2 }
 0x2b1   : > { %v2038_v29 = vmul.f32 0.4432098, %v5365_v25  ;;  %v1843_v32 = vmul.f32 %v1838_v41, %v1838_v41  ;;  %v2013_v61 = vsel %vm1991_vm2, %v2010_v51, %v2012_v16  ;;  %v2019_v63 = vadd.f32 %v2012_v16, %v2002_v31 }
 0x2b2   : > { %v2028_v8 = vrot.slane %v2021_v46, 2  ;;  %v2018_v34 = vadd.f32 %v2013_v61, %v2001_v49  ;;  %v2030_v50 = vrot.slane %v2022_v22, 2  ;;  %v2039_v10 = vmul.f32 0.4432098, %v5370_v60 }
 0x2b3   : > { %v2040_v33 = vmul.f32 0.4432098, %v5375_v52  ;;  %v1848_v40 = vmul.f32 %v5244_v44, %v1843_v32  ;;  %v2044_v35 = vrot.slane %v2038_v29, 2  ;;  %v2055_v26 = vmul.f32 0.4432098, %v5343_v59 }
 0x2b4   : > { %v2029_v3 = vsel %vm2026_vm15, %v2027_v2, %v2028_v8  ;;  %v2031_v30 = vsel %vm2026_vm15, %v2028_v8, %v2030_v50  ;;  %v2037_v58 = vadd.f32 %v2030_v50, %v2019_v63  ;;  %v2045_v27 = vrot.slane %v2039_v10, 2 }
 0x2b5   : > { %v2035_v42 = vadd.f32 %v2029_v3, %v2017_v23  ;;  %v1853_v9 = vadd.f32 %v1848_v40, %v4630_v45  ;;  %v2036_v15 = vadd.f32 %v2031_v30, %v2018_v34  ;;  %v2047_v53 = vrot.slane %v2040_v33, 2 }
 0x2b6   : > { %v2056_v36 = vmul.f32 0.4432098, %v5348_v19  ;;  %v2046_v18 = vsel %vm2026_vm15, %v2044_v35, %v2045_v27  ;;  %v2057_v44 = vmul.f32 0.4432098, %v5356_v55  ;;  %v2063_v48 = vrot.slane %v2055_v26, 3 }
 0x2b7   : > { %v2076_v43 = vmul.f32 0.12857261, %v5365_v25  ;;  %v1897_v12 = vrot.slane %v1853_v9, 6  ;;  %v2048_v0 = vsel %vm2026_vm15, %v2045_v27, %v2047_v53  ;;  %v2052_v56 = vadd.f32 %v2046_v18, %v2035_v42 }
 0x2b8   : > { %v2054_v14 = vadd.f32 %v2047_v53, %v2037_v58  ;;  %v2053_v20 = vadd.f32 %v2048_v0, %v2036_v15  ;;  %v2064_v39 = vrot.slane %v2056_v36, 3  ;;  %v2066_v51 = vrot.slane %v2057_v44, 3 }
 0x2b9   : > { %v2077_v45 = vmul.f32 0.12857261, %v5370_v60  ;;  %v1898_v7 = vsel %vm604_vm1, %v1895_v6, %v1897_v12  ;;  %v2078_v21 = vmul.f32 0.12857261, %v5375_v52  ;;  %v2079_v5 = vmul.f32 0.12857261, %v5385_v1 }
 0x2ba   : > { %v2084_v4 = vrot.slane %v2076_v43, 3  ;;  %v1906_v31 = vsel %vm1872_vm12, %v5315_v62, %v1898_v7  ;;  %vm5819_vm7 = vcmask 1044480   ;;  %v2097_v41 = vmul.f32 -0.057657376, %v5343_v59 }
 0x2bb   : > { %v2065_v37 = vsel %vm5819_vm7, %v2063_v48, %v2064_v39  ;;  %vm5820_vm9 = vmmov %vm5819_vm7  ;;  %v2085_v49 = vrot.slane %v2077_v45, 3  ;;  %v1922_v13 = vsel %vm1868_vm5, %v5291_v47, %v1906_v31  ;;  %v2087_v54 = vrot.slane %v2078_v21, 3 }
 0x2bc   : > { %v2067_v38 = vsel %vm5820_vm9, %v2064_v39, %v2066_v51  ;;  %v2073_v11 = vadd.f32 %v2065_v37, %v2052_v56  ;;  %v2058_v16 = vmul.f32 0.4432098, %v1922_v13  ;;  %vm5821_vm1 = vmmov %vm5819_vm7  ;;  %v2089_v22 = vrot.slane %v2079_v5, 3 }
 0x2bd   : > { %v2074_v6 = vadd.f32 %v2067_v38, %v2053_v20  ;;  %v2086_v46 = vsel %vm5821_vm1, %v2084_v4, %v2085_v49  ;;  %vm5822_vm10 = vmmov %vm5821_vm1  ;;  %v2098_v2 = vmul.f32 -0.057657376, %v5348_v19  ;;  %v2099_v29 = vmul.f32 -0.057657376, %v5356_v55 }
 0x2be   : > { %v2088_v62 = vsel %vm5822_vm10, %v2085_v49, %v2087_v54  ;;  %v2094_v23 = vadd.f32 %v2086_v46, %v2073_v11  ;;  %v2068_v32 = vrot.slane %v2058_v16, 3  ;;  %vm5823_vm8 = vmmov %vm5821_vm1  ;;  %v2100_v61 = vmul.f32 -0.057657376, %v1922_v13 }
 0x2bf   : > { %v2090_v57 = vsel %vm5823_vm8, %v2087_v54, %v2089_v22  ;;  %v2095_v47 = vadd.f32 %v2088_v62, %v2074_v6  ;;  %v2105_v63 = vrot.slane %v2097_v41, 4  ;;  %v2106_v8 = vrot.slane %v2098_v2, 4  ;;  %vm5824_vm11 = vmmov %vm5821_vm1 }
 0x2c0   : > { %v2108_v34 = vrot.slane %v2099_v29, 4  ;;  %v2118_v50 = vmul.f32 -0.025543464, %v5365_v25  ;;  %v2069_v10 = vsel %vm5824_vm11, %v2066_v51, %v2068_v32  ;;  %v2110_v33 = vrot.slane %v2100_v61, 4 }
 0x2c1   : > { %v2119_v40 = vmul.f32 -0.025543464, %v5370_v60  ;;  %v2120_v3 = vmul.f32 -0.025543464, %v5375_v52  ;;  %vm2181_vm14 = vcmp.ge.s32.totalorder %v5264_v17, 0  ;;  %vm2184_vm13 = vcmp.lt.s32.totalorder %v5264_v17, 64 }
 0x2c2   : > { %v2075_v35 = vadd.f32 %v2069_v10, %v2054_v14  ;;  %vm5825_vm0 = vcmask 1043456   ;;  %v2121_v42 = vmul.f32 -0.025543464, %v5385_v1  ;;  %vm2182_vm3 = vcmp.ge.s32.totalorder %v5266_v24, 0  ;;  %vm5476_vm11 = vmand %vm2181_vm14, %vm2184_vm13 }
 0x2c3   : > { %v2107_v26 = vsel %vm5825_vm0, %v2105_v63, %v2106_v8  ;;  %vm5826_vm2 = vmmov %vm5825_vm0  ;;  %vm2185_vm4 = vcmp.lt.s32.totalorder %v5266_v24, 64  ;;  %v2126_v15 = vrot.slane %v2118_v50, 4  ;;  %vm2183_vm6 = vcmp.ge.s32.totalorder %v5268_v28, 0 }
 0x2c4   : > { %v2109_v30 = vsel %vm5826_vm2, %v2106_v8, %v2108_v34  ;;  %vm5827_vm15 = vmmov %vm5825_vm0  ;;  %v2115_v27 = vadd.f32 %v2107_v26, %v2094_v23  ;;  %v2096_v53 = vadd.f32 %v2090_v57, %v2075_v35  ;;  %v2127_v36 = vrot.slane %v2119_v40, 4 }
 0x2c5   : > { %v2111_v58 = vsel %vm5827_vm15, %v2108_v34, %v2110_v33  ;;  %v2116_v9 = vadd.f32 %v2109_v30, %v2095_v47  ;;  %v2129_v18 = vrot.slane %v2120_v3, 4  ;;  %v2131_v44 = vrot.slane %v2121_v42, 4  ;;  %vm5828_vm12 = vmmov %vm5825_vm0 }
 0x2c6   : > { %v2139_v48 = vmul.f32 0.009389464, %v5343_v59  ;;  %v2140_v43 = vmul.f32 0.009389464, %v5348_v19  ;;  %v2141_v12 = vmul.f32 0.009389464, %v5356_v55  ;;  %v2117_v0 = vadd.f32 %v2111_v58, %v2096_v53  ;;  %vm5829_vm5 = vmmov %vm5825_vm0 }
 0x2c7   : > { %v2128_v56 = vsel %vm5828_vm12, %v2126_v15, %v2127_v36  ;;  %v2130_v14 = vsel %vm5829_vm5, %v2127_v36, %v2129_v18  ;;  %vm5830_vm7 = vmmov %vm5825_vm0  ;;  %v2142_v45 = vmul.f32 0.009389464, %v1922_v13  ;;  %v2160_v59 = vmul.f32 0.0020289666, %v5365_v25 }
 0x2c8   : > { %v2132_v20 = vsel %vm5830_vm7, %v2129_v18, %v2131_v44  ;;  %v2136_v39 = vadd.f32 %v2128_v56, %v2115_v27  ;;  %v2137_v51 = vadd.f32 %v2130_v14, %v2116_v9  ;;  %v2147_v7 = vrot.slane %v2139_v48, 5  ;;  %vm5485_vm2 = vmand %vm2182_vm3, %vm2185_vm4  ;;  %v2793_v44 = vld [vmem:[#allocation15] ss:$0 sm:$0xff] }
 0x2c9   : > { %v2138_v21 = vadd.f32 %v2132_v20, %v2117_v0  ;;  %v2148_v5 = vrot.slane %v2140_v43, 5  ;;  %v2150_v4 = vrot.slane %v2141_v12, 5  ;;  %v2152_v31 = vrot.slane %v2142_v45, 5  ;;  %vm2824_vm4 = vmpackc.low %vm5485_vm2, %vm5476_vm11  ;;  %v2514_v14 = vld [vmem:[%s4042_s19] sm:$0xff] }
 0x2ca   : > { %v2161_v19 = vmul.f32 0.0020289666, %v5370_v60  ;;  %v2162_v55 = vmul.f32 0.0020289666, %v5375_v52  ;;  %vm2186_vm9 = vcmp.lt.s32.totalorder %v5268_v28, 64  ;;  %vm5831_vm1 = vcmask 1042432  }
 0x2cb   : > { %v2149_v37 = vsel %vm5831_vm1, %v2147_v7, %v2148_v5  ;;  %vm5832_vm10 = vmmov %vm5831_vm1  ;;  %v2163_v49 = vmul.f32 0.0020289666, %v5385_v1  ;;  %v2168_v13 = vrot.slane %v2160_v59, 5  ;;  %vm2202_vm13 = vsmask.f32 6400 }
 0x2cc   : > { %v2151_v38 = vsel %vm5832_vm10, %v2148_v5, %v2150_v4  ;;  %vm5833_vm8 = vmmov %vm5831_vm1  ;;  %v2157_v6 = vadd.f32 %v2149_v37, %v2136_v39  ;;  %v2169_v16 = vrot.slane %v2161_v19, 5  ;;  %v2171_v46 = vrot.slane %v2162_v55, 5 }
 0x2cd   : > { %v2153_v11 = vsel %vm5833_vm8, %v2150_v4, %v2152_v31  ;;  %v2158_v54 = vadd.f32 %v2151_v38, %v2137_v51  ;;  %v2173_v22 = vrot.slane %v2163_v49, 5  ;;  %vm5836_vm0 = vmmov %vm5831_vm1  ;;  %vm5841_vm3 = vcmask 1044480   ;;  %v2515_v51 = vld [vmem:[%s4042_s19 + $0x8] sm:$0xff]  ;;  %s3560_s19 = smov [#allocation16]  }
 0x2ce   : > { %v2159_v25 = vadd.f32 %v2153_v11, %v2138_v21  ;;  %v2170_v52 = vsel %vm5836_vm0, %v2168_v13, %v2169_v16  ;;  %vm5839_vm15 = vmmov %vm5836_vm0  ;;  %s3381_s15 = sshll.u32 %s3560_s19, 4  ;;  %s3382_s15 = int_to_ptr.vmem [resolvable:$false] %s3381_s15 }
 0x2cf   : > { %v2172_v41 = vsel %vm5839_vm15, %v2169_v16, %v2171_v46  ;;  %vm5840_vm12 = vmmov %vm5836_vm0  ;;  %v2178_v23 = vadd.f32 %v2170_v52, %v2157_v6  ;;  %s3383_s17 = scalar_lea.vmem %s3382_s15, 512  ;;  %p3384_p11 = scmp.lt.s32.totalorder %s5514_s27, %s3382_s15 }
 0x2d0   : > { %v2174_v62 = vsel %vm5840_vm12, %v2171_v46, %v2173_v22  ;;  %vm2189_vm14 = vmand %vm2183_vm6, %vm2186_vm9  ;;  %v2179_v17 = vadd.f32 %v2172_v41, %v2158_v54  ;;  %p3385_p2 = scmp.lt.s32.totalorder %s3383_s17, %s3377_s30 }
 0x2d1   : > { %v2180_v2 = vadd.f32 %v2174_v62, %v2159_v25  ;;  %v2196_v29 = vsel %vm5476_vm11, %v2178_v23, 0.0 }
 0x2d2   : > { %v2197_v24 = vsel %vm5485_vm2, %v2179_v17, 0.0  ;;  %v2825_v42 = vpack.c.bf16 %v2179_v17, %v2178_v23  ;;  %p3386_p5 = por %p3385_p2, %p3384_p11 }
 0x2d3   : > { %v2198_v32 = vsel %vm2189_vm14, %v2180_v2, 0.0  ;;  %v2199_v57 = vpack.c.bf16 %v2197_v24, %v2196_v29 }
 0x2d4   : > { %v2201_v47 = vpack.c.bf16 %v2198_v32, %v2198_v32  ;;  %p3387_p1 = pnand %p3386_p5, %p3380_p6 }
 0x2d5   : > { %v2204_v61 = vshrl.u32 %v2199_v57, 16  ;;  %v2207_v63 = vshll.u32 %v2199_v57, 16  ;;  %v2225_v50 = vrot.slane %v2199_v57, 3 }
 0x2d6   : > { %v2212_v8 = vshrl.u32 %v2201_v47, 16  ;;  %v2215_v34 = vshll.u32 %v2201_v47, 16  ;;  %v2226_v10 = vrot.slane %v2201_v47, 3 }
 0x2d7   : > { %v2206_v33 = vrot.slane %v2204_v61, 1  ;;  %v2209_v28 = vrot.slane %v2207_v63, 2 }
 0x2d8   : > { %v2214_v40 = vrot.slane %v2212_v8, 1  ;;  %v2217_v3 = vrot.slane %v2215_v34, 2  ;;  %v2227_v35 = vsel %vm5841_vm3, %v2225_v50, %v2226_v10 }
 0x2d9   : > { %v2210_v26 = vor.u32 %v2209_v28, %v2206_v33  ;;  %2875 = vmatmul.mubr.bf16.vlgmr.msra.gmra.mrb[0].mxu1 %v2227_v35 }
 0x2da   : > { %v2218_v30 = vor.u32 %v2217_v3, %v2214_v40 }
 0x2dc   : > { %v2219_v58 = vsel %vm2202_vm13, %v2210_v26, %v2218_v30 }
 0x2dd   : > { %2464 = vmatprep.mubr.bf16.mxu0 %v2219_v58 }
 0x2de   : > { %2826 = vmatmul.mubr.msk.bf16.vlgmr.msra.gmra.mrb[0].mxu0 %vm2824_vm4, %v2825_v42 }
 0x3ac   : > { %v2507_v27 = vpop.f32.mrb[0].mxu1 }
 0x3ad   : > { %v2876_v9 = vpop.f32.mrb[1].mxu1 }
 0x3ae   : > { %v2510_v15 = vpop.f32.mrb[2].mxu1 }
 0x3af   : > { %v2877_v53 = vpop.f32.mrb[3].mxu1 }
 0x3b1   : > { %v2843_v36 = vpop.f32.mrb[0].mxu0 }
 0x3b2   : > { %v2844_v18 = vpop.f32.mrb[1].mxu0 }
 0x3b3   : > { %v2845_v48 = vadd.f32 %v2844_v18, %v2843_v36  ;;  %v2846_v43 = vpop.f32.mrb[2].mxu0 }
 0x3b4   : > { %v2847_v12 = vpop.f32.mrb[3].mxu0 }
 0x3b5   : > { %v2467_v0 = vadd.f32 %v2845_v48, %v2793_v44  ;;  %v2848_v56 = vadd.f32 %v2847_v12, %v2846_v43 }
 0x3b7   : > { %v2508_v20 = vadd.f32 %v2507_v27, %v2467_v0  ;;  %v2470_v39 = vadd.f32 %v2848_v56, %v2793_v44 }
 0x3b9   : > { %v2516_v45 = vadd.f32 %v2514_v14, %v2508_v20  ;;  %v2511_v7 = vadd.f32 %v2510_v15, %v2470_v39 }
 0x3bb   : > { %2518 = vst [vmem:[%s4064_s6] sm:$0xff] %v2516_v45  ;;  %v2517_v21 = vadd.f32 %v2515_v51, %v2511_v7 }
 0x3bd   : > { %2519 = vst [vmem:[%s4064_s6 + $0x8] sm:$0xff] %v2517_v21 }
 0x3be   : > { %3390 = shalt.err (!%p3387_p1)
}
 0x3bf   : > { %s3391_s25 = scalar_lea.hbm %s5512_s13, 256  ;;  %s3395_s21 = scalar_lea.hbm %s5846_s4, 2048 }
 0x3c0   : > { %p3392_p8 = scmp.ne.s32.totalorder %s5512_s13, %s3391_s25  ;;  %p3396_p3 = scmp.lt.u32.totalorder %s5512_s13, %s5846_s4 }
 0x3c1   : > { %p3397_p12 = scmp.lt.u32.totalorder %s3395_s21, %s3391_s25  ;;  %p3399_p0 = scmp.lt.u32.totalorder %s3391_s25, %s5512_s13 }
 0x3c2   : > { %p3393_p13 = pnand %p3392_p8, %p5847_p7 }
 0x3c3   : > { %p3398_p10 = por %p3397_p12, %p3396_p3 }
 0x3c4   : > { %p3394_p9 = pneg %p3393_p13 }
 0x3c5   : > { %p3400_p4 = por %p3399_p0, %p3398_p10 }
 0x3c7   : > { %p3401_p6 = pnand %p3400_p4, %p3394_p9 }
 0x3c9   : > { %3404 = shalt.err (!%p3401_p6)
}
 0x3ca   : > { %s3561_s2 = smov 128   ;;  %s3562_s16 = smov 8  }
 0x3cb   : > { %2940 = dma.vmem_to_hbm [thread:$0]  (%p5847_p7), %s5514_s27, 256, %s5512_s13, %s5520_s20, %s3561_s2, %s3561_s2, %s3562_s16  }
 0x3cc PF: > { %s5848_s5 = sld [smem:[#allocation26_spill]]  ;;  %s5849_s7 = sld [smem:[#allocation34_spill]] }
 0x3cd   : > { %p2978_p11 = scmp.ge.s32.totalorder %s3539_s14, 2 }
 0x3d2   : > { %s2551_s26 = sand.u32 1, %s5848_s5   ;;  %p5850_p2 = scmp.ne.s32.totalorder %s5849_s7, 0 }
 0x3d3   : > { %s2552_s24 = scalar_lea.sflag [#allocation6], %s2551_s26 }
 0x3d4   : > { %p2966_p5 = pnand %p2978_p11, %p5850_p2 }
 0x3d6   : > { %3482 = dma.done.wait (!%p2966_p5), %s2552_s24, 256  }
 0x3d7   : > { %3484 = vsyncadd (!%p2966_p5), %s2552_s24, 4294967040  ;;  %s28_s14 = sadd.s32 1, %s3539_s14   ;;  %s5852_s24 = sld [smem:[#allocation24_spill]] }
 0x3d8   : > { %p5549_p1 = scmp.ge.s32.totalorder %s28_s14, 10   ;;  %s5853_s25 = sld [smem:[#allocation25_spill]] }
 0x3d9   : > { %s5854_s27 = sld [smem:[#allocation27_spill]]  ;;  %s5855_s1 = smov %s3918_s28 }
 0x3da   : > { %s5856_s11 = sld [smem:[#allocation30_spill]]  ;;  %s5857_s13 = smov %s3749_s10 }
 0x3db   : > { %s5858_s20 = sld [smem:[#allocation35_spill]]  ;;  %s5860_s26 = smov %s5882_s3 }
 0x3dc   : > { %s5861_s28 = smov %s3507_s29  ;;  %s5862_s29 = smov %s5855_s1 }
 0x3dd   : > { %s5863_s30 = smov %s3515_s8  ;;  %s5864_s8 = smov %s3519_s9 }
 0x3de   : > { %s5865_s9 = smov %s3913_s22  ;;  %s5866_s10 = smov %s3531_s12 }
 0x3df   : > { %s5867_s12 = smov %s5857_s13  ;;  %27 = sbr.rel (!%p5549_p1) target bundleno = 23 (0x17), region = 141 }
 0x3e1   : > { %s5868_s13 = smov %s5858_s20 }
 0x3e6   :  { %2557 = vsyncpa [#allocation5], 1 }
 0x3e7   :  { %2559 = vsyncpa [#allocation5 + $0x1], 1 }
 0x3e8   :  { %2560 = vsyncpa [#allocation8], 1 }
 0x3e9   :  { %2562 = vsyncpa [#allocation8 + $0x1], 1 }
 0x3ea   :  { %2563 = vsyncpa [#allocation11], 1 }
 0x3eb   :  { %2564 = vsyncpa [#allocation14], 1 }
 0x3ec   :  { %2565 = vsyncpa [#allocation6], 1 }
 0x3ed   :  { %2567 = vsyncpa [#allocation6 + $0x1], 1 }

</bundles_post_ra>
